<compile_context>
chip_gen: v5e
topology: v5e:2x2
jax: 0.10.0
libtpu: 0.0.40
codegen_flags: <defaults>
</compile_context>

<pallas_src>
import functools

import jax
import jax.numpy as jnp
from jax import lax
from jax.experimental import pallas as pl
from jax.experimental.pallas import tpu as pltpu


# Static geometry implied by the module:
#   Conv2d(2,32,4,2,1) -> Swish -> Conv2d(32,64,4,2,1) -> Swish -> flatten 14400
#   => input [B, 2, 60, 60]; conv1 out 30x30x32; conv2 out 15x15x64.
H_IN = 60
C_IN = 2
C1 = 32
C2 = 64
H1 = 30                       # conv1 output spatial
S2D = 16                      # space-to-depth grid (conv1 out padded to 32 -> /2)
H2 = 15                       # conv2 output spatial
FC_K = H2 * H2 * C2           # 14400
FC_TK = 7424                  # 29 * 256 : MXU-depth aligned fc1 K tile
FC_KSTEPS = 2
FC_KPAD = FC_TK * FC_KSTEPS   # 14848 (3.1% pad vs 14400)
HID = 128
HEAD_N = 128                  # lane-dense head slab: [mu | logvar | zero pad]


# ----------------------------------------------------------------------------
# Kernel 1: fused conv1 + conv2 with Swish.
#   cols_ref : [B*256, 128] bf16  extended conv1 im2col; rows ordered
#              (b, H2grid, W2grid), lanes ((r,s) 2x2 sub-position, kh, kw, cin).
#   w1_ref   : [128, 128] bf16    block-diag(conv1 GEMM weight [32,32], 4).
#   w2_ref   : [4, 128, 64] bf16  conv2 tap weights, tap t = i*2 + j.
#   o_ref    : [B*256, 64] bf16   conv2 output on the 16x16 grid; rows with
#              oh==15 or ow==15 are don't-care and sliced off outside.
#   s2d_ref  : VMEM scratch [B*256 + 32, 128] bf16 (space-to-depth conv1 out).
# ----------------------------------------------------------------------------
def _conv_stack_kernel(cols_ref, w1_ref, w2_ref, o_ref, s2d_ref):
    nrows = o_ref.shape[0]
    chunk = 128

    # Stage 1: conv1 as a lane-dense block-diagonal GEMM + Swish -> s2d scratch.
    for c in range(nrows // chunk):
        a = jnp.dot(cols_ref[pl.ds(c * chunk, chunk), :], w1_ref[...],
                    preferred_element_type=jnp.float32)
        s2d_ref[pl.ds(c * chunk, chunk), :] = (
            a * jax.nn.sigmoid(a)).astype(s2d_ref.dtype)

    # Zero the tail so the shifted reads below are well defined.
    s2d_ref[pl.ds(nrows, 2 * S2D), :] = jnp.zeros((2 * S2D, 128), s2d_ref.dtype)

    # Stage 2: conv2 == 2x2 stride-1 conv over the s2d image, expressed as
    # 4 row-shifted GEMMs (row offsets 0, 1, 16, 17) accumulated in f32.
    for c in range(nrows // chunk):
        acc = jnp.zeros((chunk, o_ref.shape[1]), jnp.float32)
        for t in range(4):
            off = c * chunk + (t // 2) * S2D + (t % 2)
            acc += jnp.dot(s2d_ref[pl.ds(off, chunk), :], w2_ref[t],
                           preferred_element_type=jnp.float32)
        o_ref[pl.ds(c * chunk, chunk), :] = (
            acc * jax.nn.sigmoid(acc)).astype(o_ref.dtype)


def conv_stack(cols, w1bd, w2taps):
    nrows = cols.shape[0]
    return pl.pallas_call(
        _conv_stack_kernel,
        out_shape=jax.ShapeDtypeStruct((nrows, C2), jnp.bfloat16),
        grid=(1,),
        in_specs=[
            pl.BlockSpec((nrows, 128), lambda i: (0, 0)),
            pl.BlockSpec((128, 128), lambda i: (0, 0)),
            pl.BlockSpec((4, 128, C2), lambda i: (0, 0, 0)),
        ],
        out_specs=pl.BlockSpec((nrows, C2), lambda i: (0, 0)),
        scratch_shapes=[pltpu.VMEM((nrows + 2 * S2D, 128), jnp.bfloat16)],
        compiler_params=pltpu.CompilerParams(
            dimension_semantics=("arbitrary",)),
    )(cols, w1bd, w2taps)


# ----------------------------------------------------------------------------
# Kernel 2: fused fc1 (Linear 14400->128 + Swish) + fc_mu + fc_logvar.
#   K-tiled (2 steps of 7424) over the padded contraction; the fc1 weight
#   stream is double-buffered by the BlockSpec pipeline, the input x is
#   resident (single DMA), h lives in a VMEM scratch accumulator, and the
#   heads fire on the last step into a lane-dense [B, 128] slab
#   (cols 0..L-1 = mu, L..2L-1 = logvar, rest zero padding).
# ----------------------------------------------------------------------------
def _fc_heads_kernel(x_ref, w1_ref, b1_ref, wh_ref, bh_ref, o_ref, acc_ref):
    # NOTE: the grid axis is a K-reduction. It MUST stay "arbitrary"
    # (sequential); the accumulator / last-step store silently breaks if this
    # axis is ever marked "parallel" or split across cores.
    k = pl.program_id(0)

    @pl.when(k == 0)
    def _():
        acc_ref[...] = jnp.zeros_like(acc_ref)

    acc_ref[...] += jnp.dot(x_ref[k], w1_ref[...],
                            preferred_element_type=jnp.float32)

    @pl.when(k == pl.num_programs(0) - 1)
    def _():
        h = acc_ref[...] + b1_ref[...]          # bias in f32
        h = h * jax.nn.sigmoid(h)               # Swish in f32
        out = jnp.dot(h.astype(jnp.bfloat16), wh_ref[...],
                      preferred_element_type=jnp.float32)
        o_ref[...] = (out + bh_ref[...]).astype(o_ref.dtype)


def fc_heads(xk, w1, b1, wh, bh):
    """xk: [KSTEPS, B, TK] bf16 (resident); w1: [KSTEPS*TK, 128] bf16 (streamed)."""
    ksteps, B, tk = xk.shape
    assert w1.shape == (ksteps * tk, HID)
    return pl.pallas_call(
        _fc_heads_kernel,
        out_shape=jax.ShapeDtypeStruct((B, HEAD_N), jnp.float32),
        grid=(ksteps,),
        in_specs=[
            pl.BlockSpec((ksteps, B, tk), lambda k: (0, 0, 0)),   # resident, 1 DMA
            pl.BlockSpec((tk, HID), lambda k: (k, 0)),            # weight stream
            pl.BlockSpec((1, HID), lambda k: (0, 0)),
            pl.BlockSpec((HID, HEAD_N), lambda k: (0, 0)),
            pl.BlockSpec((1, HEAD_N), lambda k: (0, 0)),
        ],
        out_specs=pl.BlockSpec((B, HEAD_N), lambda k: (0, 0)),
        scratch_shapes=[pltpu.VMEM((B, HID), jnp.float32)],
        compiler_params=pltpu.CompilerParams(
            dimension_semantics=("arbitrary",)),
    )(xk, w1, b1, wh, bh)


# ----------------------------------------------------------------------------
# Glue: extended conv1 im2col in XLA (pure slicing on the tiny input).
# The 32x32 extended conv1 output grid already carries conv2's pad=1 ring;
# its im2col rows are zero there, and since conv1 has no bias swish(0)=0
# reproduces the zero padding exactly.
# ----------------------------------------------------------------------------
def _conv1_cols_extended(x_nchw):
    B = x_nchw.shape[0]
    x = jnp.transpose(x_nchw, (0, 2, 3, 1)).astype(jnp.bfloat16)     # NHWC bf16
    xp = jnp.pad(x, ((0, 0), (1, 1), (1, 1), (0, 0)))                # [B,62,62,2]
    span = 2 * (H1 - 1) + 1
    cols = jnp.concatenate(
        [xp[:, kh:kh + span:2, kw:kw + span:2, :]
         for kh in range(4) for kw in range(4)], axis=-1)            # [B,30,30,32]
    cols = jnp.pad(cols, ((0, 0), (1, 1), (1, 1), (0, 0)))           # [B,32,32,32]
    cols = cols.reshape(B, S2D, 2, S2D, 2, 16 * C_IN)
    cols = cols.transpose(0, 1, 3, 2, 4, 5).reshape(B * S2D * S2D, 4 * 16 * C_IN)
    return cols                                                      # [B*256, 128]


# ----------------------------------------------------------------------------
# Parameters (PyTorch-style init) + one-time weight re-layout.
# ----------------------------------------------------------------------------
def init_params(key, latent_dim):
    ks = jax.random.split(key, 8)

    def u(k, shape, fan_in):
        bound = 1.0 / jnp.sqrt(fan_in)
        return jax.random.uniform(k, shape, jnp.float32, -bound, bound)

    return {
        "conv1_w": u(ks[0], (C1, C_IN, 4, 4), C_IN * 16),
        "conv2_w": u(ks[1], (C2, C1, 4, 4), C1 * 16),
        "fc1_w": u(ks[2], (HID, FC_K), FC_K),
        "fc1_b": u(ks[3], (HID,), FC_K),
        "mu_w": u(ks[4], (latent_dim, HID), HID),
        "mu_b": u(ks[5], (latent_dim,), HID),
        "lv_w": u(ks[6], (latent_dim, HID), HID),
        "lv_b": u(ks[7], (latent_dim,), HID),
    }


def prepare_params(params, latent_dim):
    """One-time weight re-layout / cast (init-time, not per forward)."""
    assert 2 * latent_dim <= HEAD_N and FC_KPAD >= FC_K
    bf = jnp.bfloat16

    # conv1: [Cout,Cin,kh,kw] -> GEMM [kh*kw*Cin, Cout] = [32,32] -> 4x block
    # diagonal [128,128] so 4 output pixels share one lane-dense GEMM row.
    w1g = params["conv1_w"].transpose(2, 3, 1, 0).reshape(16 * C_IN, C1)
    w1bd = jnp.kron(jnp.eye(4, dtype=w1g.dtype), w1g).astype(bf)

    # conv2 as a 2x2 stride-1 conv over the space-to-depth image: tap (i,j)
    # weight [(r,s,cin)=128, cout=64] with kh = 2i+r, kw = 2j+s.
    w2 = params["conv2_w"].transpose(2, 3, 1, 0)            # [kh,kw,cin,cout]
    w2 = w2.reshape(2, 2, 2, 2, C1, C2)                     # [i,r,j,s,cin,cout]
    w2taps = w2.transpose(0, 2, 1, 3, 4, 5).reshape(4, 4 * C1, C2).astype(bf)

    # fc1: permute columns from NCHW flatten (c,h,w) to NHWC flatten (h,w,c),
    # transpose to [K,128], zero-pad K to FC_KPAD, cast bf16.
    fc1 = params["fc1_w"].reshape(HID, C2, H2, H2)          # [out, c, h, w]
    fc1 = fc1.transpose(2, 3, 1, 0).reshape(FC_K, HID)
    fc1 = jnp.pad(fc1, ((0, FC_KPAD - FC_K), (0, 0))).astype(bf)

    # heads: concatenate mu|logvar and pad to a 128-lane slab.
    wh = jnp.concatenate([params["mu_w"].T, params["lv_w"].T], axis=1)
    wh = jnp.pad(wh, ((0, 0), (0, HEAD_N - 2 * latent_dim))).astype(bf)
    bh = jnp.concatenate([params["mu_b"], params["lv_b"]])
    bh = jnp.pad(bh, (0, HEAD_N - 2 * latent_dim)).reshape(1, HEAD_N)

    return {
        "w1bd": w1bd,
        "w2taps": w2taps,
        "fc1_w": fc1,
        "fc1_b": params["fc1_b"].reshape(1, HID).astype(jnp.float32),
        "head_w": wh,
        "head_b": bh.astype(jnp.float32),
    }


# ----------------------------------------------------------------------------
# Forward (matches ImageEncoder.forward semantics; input is PyTorch NCHW).
# ----------------------------------------------------------------------------
def image_encoder_forward(prep, x_nchw, *, latent_dim):
    """x_nchw: [B, 2, 60, 60] f32  ->  (mu, logvar), each [B, latent_dim] f32."""
    B = x_nchw.shape[0]
    cols = _conv1_cols_extended(x_nchw)                              # [B*256, 128]
    h2g = conv_stack(cols, prep["w1bd"], prep["w2taps"])             # [B*256, 64]
    h2 = h2g.reshape(B, S2D, S2D, C2)[:, :H2, :H2, :]                # drop ring rows
    hf = h2.reshape(B, FC_K)                                         # NHWC flatten
    hf = jnp.pad(hf, ((0, 0), (0, FC_KPAD - FC_K)))
    xk = hf.reshape(B, FC_KSTEPS, FC_TK).transpose(1, 0, 2)          # [KSTEPS,B,TK]
    out = fc_heads(xk, prep["fc1_w"], prep["fc1_b"],
                   prep["head_w"], prep["head_b"])                   # [B,128] f32
    return out[:, :latent_dim], out[:, latent_dim:2 * latent_dim]


# ----------------------------------------------------------------------------
# References for correctness checks.
# ----------------------------------------------------------------------------
def _ref_forward_f32(params, x):
    def swish(v):
        return v * jax.nn.sigmoid(v)

    def conv(v, w):
        return lax.conv_general_dilated(
            v, w, window_strides=(2, 2), padding=((1, 1), (1, 1)),
            dimension_numbers=("NCHW", "OIHW", "NCHW"))

    h = swish(conv(x, params["conv1_w"]))
    h = swish(conv(h, params["conv2_w"]))
    h = h.reshape(h.shape[0], -1)
    h = swish(h @ params["fc1_w"].T + params["fc1_b"])
    mu = h @ params["mu_w"].T + params["mu_b"]
    logvar = h @ params["lv_w"].T + params["lv_b"]
    return mu, logvar


def _ref_forward_bf16_matched(params, x):
    """Same numerics as the Pallas path: bf16 operands, f32 accum/bias/Swish."""
    bf = jnp.bfloat16

    def swish(v):
        return v * jax.nn.sigmoid(v)

    def conv(v, w):
        return lax.conv_general_dilated(
            v.astype(bf), w.astype(bf), window_strides=(2, 2),
            padding=((1, 1), (1, 1)),
            dimension_numbers=("NCHW", "OIHW", "NCHW"),
            preferred_element_type=jnp.float32)

    h = swish(conv(x, params["conv1_w"])).astype(bf)
    h = swish(conv(h, params["conv2_w"]))
    h = h.reshape(h.shape[0], -1).astype(bf)
    h = swish(jnp.dot(h, params["fc1_w"].T.astype(bf),
                      preferred_element_type=jnp.float32) + params["fc1_b"])
    h = h.astype(bf)
    mu = jnp.dot(h, params["mu_w"].T.astype(bf),
                 preferred_element_type=jnp.float32) + params["mu_b"]
    logvar = jnp.dot(h, params["lv_w"].T.astype(bf),
                     preferred_element_type=jnp.float32) + params["lv_b"]
    return mu, logvar


if __name__ == "__main__":
    latent_dim = 16
    key = jax.random.PRNGKey(0)
    k_p, k_x = jax.random.split(key)
    params = init_params(k_p, latent_dim)
    prep = prepare_params(params, latent_dim)

    # Input implied by the module: Conv(2->32,s2) -> Conv(32->64,s2) -> 14400
    # flattened features  =>  2 input channels, 60x60 spatial.
    x = jax.random.normal(k_x, (2, C_IN, H_IN, H_IN), jnp.float32)

    fwd = jax.jit(functools.partial(image_encoder_forward, latent_dim=latent_dim))
    mu, logvar = fwd(prep, x)
    mu, logvar = jax.block_until_ready((mu, logvar))

    mu_m, lv_m = _ref_forward_bf16_matched(params, x)
    mu_f, lv_f = _ref_forward_f32(params, x)

    assert mu.shape == (2, latent_dim) and logvar.shape == (2, latent_dim)
    # Tight check vs precision-matched reference (validates layout / fusion):
    assert jnp.allclose(mu, mu_m, atol=1e-3, rtol=1e-3)
    assert jnp.allclose(logvar, lv_m, atol=1e-3, rtol=1e-3)
    # Loose check vs pure-f32 reference (bf16 MXU operands, f32 accumulation):
    assert jnp.allclose(mu, mu_f, atol=2e-2, rtol=2e-2)
    assert jnp.allclose(logvar, lv_f, atol=2e-2, rtol=2e-2)

    print("KERNEL_OK")
</pallas_src>

<mosaic_0001>
module attributes {stable_mosaic.version = 11 : i64} {
  func.func @_conv_stack_kernel(%arg0: i32, %arg1: memref<512x128xbf16, #tpu.memory_space<vmem>>, %arg2: memref<128x128xbf16, #tpu.memory_space<vmem>>, %arg3: memref<4x128x64xbf16, #tpu.memory_space<vmem>>, %arg4: memref<512x64xbf16, #tpu.memory_space<vmem>>, %arg5: memref<544x128xbf16, #tpu.memory_space<vmem>>) attributes {dimension_semantics = [#tpu.dimension_semantics<arbitrary>], iteration_bounds = array<i64: 1>, scalar_prefetch = 0 : i64, scratch_operands = 1 : i64, tpu.core_type = #tpu.core_type<tc>, window_params = [{pipeline_mode = #tpu.pipeline_mode<synchronous>, transform_indices = @transform_0, window_bounds = array<i64: 512, 128>}, {pipeline_mode = #tpu.pipeline_mode<synchronous>, transform_indices = @transform_1, window_bounds = array<i64: 128, 128>}, {pipeline_mode = #tpu.pipeline_mode<synchronous>, transform_indices = @transform_2, window_bounds = array<i64: 4, 128, 64>}, {pipeline_mode = #tpu.pipeline_mode<synchronous>, transform_indices = @transform_3, window_bounds = array<i64: 512, 64>}]} {
    %c0 = arith.constant 0 : index
    %c0_0 = arith.constant 0 : index
    %0 = vector.load %arg1[%c0, %c0_0] : memref<512x128xbf16, #tpu.memory_space<vmem>>, vector<128x128xbf16>
    %c0_1 = arith.constant 0 : index
    %c0_2 = arith.constant 0 : index
    %1 = vector.load %arg2[%c0_1, %c0_2] : memref<128x128xbf16, #tpu.memory_space<vmem>>, vector<128x128xbf16>
    %cst = arith.constant dense<0.000000e+00> : vector<128x128xf32>
    %2 = tpu.matmul %0, %1, %cst {dimension_numbers = #tpu.dot_dimension_numbers<[1], [0], [0], [1], [0, 0, 1, 1], [], []>} : vector<128x128xbf16>, vector<128x128xbf16>, vector<128x128xf32> -> vector<128x128xf32>
    %3 = arith.negf %2 : vector<128x128xf32>
    %4 = math.exp %3 : vector<128x128xf32>
    %cst_3 = arith.constant 1.000000e+00 : f32
    %5 = vector.broadcast %cst_3 : f32 to vector<128x128xf32>
    %6 = arith.addf %5, %4 : vector<128x128xf32>
    %7 = arith.divf %5, %6 : vector<128x128xf32>
    %8 = arith.mulf %2, %7 : vector<128x128xf32>
    %9 = arith.truncf %8 : vector<128x128xf32> to vector<128x128xbf16>
    %c0_4 = arith.constant 0 : index
    %c0_5 = arith.constant 0 : index
    %10 = vector.load %arg5[%c0_4, %c0_5] : memref<544x128xbf16, #tpu.memory_space<vmem>>, vector<128x128xbf16>
    tpu.vector_store %arg5[%c0_4, %c0_5], %9 {strides = array<i32>} : memref<544x128xbf16, #tpu.memory_space<vmem>>, vector<128x128xbf16>,
    %c128 = arith.constant 128 : index
    %c0_6 = arith.constant 0 : index
    %11 = vector.load %arg1[%c128, %c0_6] : memref<512x128xbf16, #tpu.memory_space<vmem>>, vector<128x128xbf16>
    %c0_7 = arith.constant 0 : index
    %c0_8 = arith.constant 0 : index
    %12 = vector.load %arg2[%c0_7, %c0_8] : memref<128x128xbf16, #tpu.memory_space<vmem>>, vector<128x128xbf16>
    %cst_9 = arith.constant dense<0.000000e+00> : vector<128x128xf32>
    %13 = tpu.matmul %11, %12, %cst_9 {dimension_numbers = #tpu.dot_dimension_numbers<[1], [0], [0], [1], [0, 0, 1, 1], [], []>} : vector<128x128xbf16>, vector<128x128xbf16>, vector<128x128xf32> -> vector<128x128xf32>
    %14 = arith.negf %13 : vector<128x128xf32>
    %15 = math.exp %14 : vector<128x128xf32>
    %cst_10 = arith.constant 1.000000e+00 : f32
    %16 = vector.broadcast %cst_10 : f32 to vector<128x128xf32>
    %17 = arith.addf %16, %15 : vector<128x128xf32>
    %18 = arith.divf %16, %17 : vector<128x128xf32>
    %19 = arith.mulf %13, %18 : vector<128x128xf32>
    %20 = arith.truncf %19 : vector<128x128xf32> to vector<128x128xbf16>
    %c128_11 = arith.constant 128 : index
    %c0_12 = arith.constant 0 : index
    %21 = vector.load %arg5[%c128_11, %c0_12] : memref<544x128xbf16, #tpu.memory_space<vmem>>, vector<128x128xbf16>
    tpu.vector_store %arg5[%c128_11, %c0_12], %20 {strides = array<i32>} : memref<544x128xbf16, #tpu.memory_space<vmem>>, vector<128x128xbf16>,
    %c256 = arith.constant 256 : index
    %c0_13 = arith.constant 0 : index
    %22 = vector.load %arg1[%c256, %c0_13] : memref<512x128xbf16, #tpu.memory_space<vmem>>, vector<128x128xbf16>
    %c0_14 = arith.constant 0 : index
    %c0_15 = arith.constant 0 : index
    %23 = vector.load %arg2[%c0_14, %c0_15] : memref<128x128xbf16, #tpu.memory_space<vmem>>, vector<128x128xbf16>
    %cst_16 = arith.constant dense<0.000000e+00> : vector<128x128xf32>
    %24 = tpu.matmul %22, %23, %cst_16 {dimension_numbers = #tpu.dot_dimension_numbers<[1], [0], [0], [1], [0, 0, 1, 1], [], []>} : vector<128x128xbf16>, vector<128x128xbf16>, vector<128x128xf32> -> vector<128x128xf32>
    %25 = arith.negf %24 : vector<128x128xf32>
    %26 = math.exp %25 : vector<128x128xf32>
    %cst_17 = arith.constant 1.000000e+00 : f32
    %27 = vector.broadcast %cst_17 : f32 to vector<128x128xf32>
    %28 = arith.addf %27, %26 : vector<128x128xf32>
    %29 = arith.divf %27, %28 : vector<128x128xf32>
    %30 = arith.mulf %24, %29 : vector<128x128xf32>
    %31 = arith.truncf %30 : vector<128x128xf32> to vector<128x128xbf16>
    %c256_18 = arith.constant 256 : index
    %c0_19 = arith.constant 0 : index
    %32 = vector.load %arg5[%c256_18, %c0_19] : memref<544x128xbf16, #tpu.memory_space<vmem>>, vector<128x128xbf16>
    tpu.vector_store %arg5[%c256_18, %c0_19], %31 {strides = array<i32>} : memref<544x128xbf16, #tpu.memory_space<vmem>>, vector<128x128xbf16>,
    %c384 = arith.constant 384 : index
    %c0_20 = arith.constant 0 : index
    %33 = vector.load %arg1[%c384, %c0_20] : memref<512x128xbf16, #tpu.memory_space<vmem>>, vector<128x128xbf16>
    %c0_21 = arith.constant 0 : index
    %c0_22 = arith.constant 0 : index
    %34 = vector.load %arg2[%c0_21, %c0_22] : memref<128x128xbf16, #tpu.memory_space<vmem>>, vector<128x128xbf16>
    %cst_23 = arith.constant dense<0.000000e+00> : vector<128x128xf32>
    %35 = tpu.matmul %33, %34, %cst_23 {dimension_numbers = #tpu.dot_dimension_numbers<[1], [0], [0], [1], [0, 0, 1, 1], [], []>} : vector<128x128xbf16>, vector<128x128xbf16>, vector<128x128xf32> -> vector<128x128xf32>
    %36 = arith.negf %35 : vector<128x128xf32>
    %37 = math.exp %36 : vector<128x128xf32>
    %cst_24 = arith.constant 1.000000e+00 : f32
    %38 = vector.broadcast %cst_24 : f32 to vector<128x128xf32>
    %39 = arith.addf %38, %37 : vector<128x128xf32>
    %40 = arith.divf %38, %39 : vector<128x128xf32>
    %41 = arith.mulf %35, %40 : vector<128x128xf32>
    %42 = arith.truncf %41 : vector<128x128xf32> to vector<128x128xbf16>
    %c384_25 = arith.constant 384 : index
    %c0_26 = arith.constant 0 : index
    %43 = vector.load %arg5[%c384_25, %c0_26] : memref<544x128xbf16, #tpu.memory_space<vmem>>, vector<128x128xbf16>
    tpu.vector_store %arg5[%c384_25, %c0_26], %42 {strides = array<i32>} : memref<544x128xbf16, #tpu.memory_space<vmem>>, vector<128x128xbf16>,
    %cst_27 = arith.constant 0.000000e+00 : bf16
    %44 = vector.broadcast %cst_27 : bf16 to vector<32x128xbf16>
    %c512 = arith.constant 512 : index
    %c0_28 = arith.constant 0 : index
    %45 = vector.load %arg5[%c512, %c0_28] : memref<544x128xbf16, #tpu.memory_space<vmem>>, vector<32x128xbf16>
    tpu.vector_store %arg5[%c512, %c0_28], %44 {strides = array<i32>} : memref<544x128xbf16, #tpu.memory_space<vmem>>, vector<32x128xbf16>,
    %cst_29 = arith.constant 0.000000e+00 : f32
    %46 = vector.broadcast %cst_29 : f32 to vector<128x64xf32>
    %c0_30 = arith.constant 0 : index
    %c0_31 = arith.constant 0 : index
    %47 = vector.load %arg5[%c0_30, %c0_31] : memref<544x128xbf16, #tpu.memory_space<vmem>>, vector<128x128xbf16>
    %c0_32 = arith.constant 0 : index
    %c0_33 = arith.constant 0 : index
    %c0_34 = arith.constant 0 : index
    %48 = vector.load %arg3[%c0_32, %c0_33, %c0_34] : memref<4x128x64xbf16, #tpu.memory_space<vmem>>, vector<1x128x64xbf16>
    %49 = vector.shape_cast %48 : vector<1x128x64xbf16> to vector<128x64xbf16>
    %cst_35 = arith.constant dense<0.000000e+00> : vector<128x64xf32>
    %50 = tpu.matmul %47, %49, %cst_35 {dimension_numbers = #tpu.dot_dimension_numbers<[1], [0], [0], [1], [0, 0, 1, 1], [], []>} : vector<128x128xbf16>, vector<128x64xbf16>, vector<128x64xf32> -> vector<128x64xf32>
    %51 = arith.addf %46, %50 : vector<128x64xf32>
    %c1 = arith.constant 1 : index
    %c0_36 = arith.constant 0 : index
    %52 = vector.load %arg5[%c1, %c0_36] : memref<544x128xbf16, #tpu.memory_space<vmem>>, vector<128x128xbf16>
    %c1_37 = arith.constant 1 : index
    %c0_38 = arith.constant 0 : index
    %c0_39 = arith.constant 0 : index
    %53 = vector.load %arg3[%c1_37, %c0_38, %c0_39] : memref<4x128x64xbf16, #tpu.memory_space<vmem>>, vector<1x128x64xbf16>
    %54 = vector.shape_cast %53 : vector<1x128x64xbf16> to vector<128x64xbf16>
    %cst_40 = arith.constant dense<0.000000e+00> : vector<128x64xf32>
    %55 = tpu.matmul %52, %54, %cst_40 {dimension_numbers = #tpu.dot_dimension_numbers<[1], [0], [0], [1], [0, 0, 1, 1], [], []>} : vector<128x128xbf16>, vector<128x64xbf16>, vector<128x64xf32> -> vector<128x64xf32>
    %56 = arith.addf %51, %55 : vector<128x64xf32>
    %c16 = arith.constant 16 : index
    %c0_41 = arith.constant 0 : index
    %57 = vector.load %arg5[%c16, %c0_41] : memref<544x128xbf16, #tpu.memory_space<vmem>>, vector<128x128xbf16>
    %c2 = arith.constant 2 : index
    %c0_42 = arith.constant 0 : index
    %c0_43 = arith.constant 0 : index
    %58 = vector.load %arg3[%c2, %c0_42, %c0_43] : memref<4x128x64xbf16, #tpu.memory_space<vmem>>, vector<1x128x64xbf16>
    %59 = vector.shape_cast %58 : vector<1x128x64xbf16> to vector<128x64xbf16>
    %cst_44 = arith.constant dense<0.000000e+00> : vector<128x64xf32>
    %60 = tpu.matmul %57, %59, %cst_44 {dimension_numbers = #tpu.dot_dimension_numbers<[1], [0], [0], [1], [0, 0, 1, 1], [], []>} : vector<128x128xbf16>, vector<128x64xbf16>, vector<128x64xf32> -> vector<128x64xf32>
    %61 = arith.addf %56, %60 : vector<128x64xf32>
    %c17 = arith.constant 17 : index
    %c0_45 = arith.constant 0 : index
    %62 = vector.load %arg5[%c17, %c0_45] : memref<544x128xbf16, #tpu.memory_space<vmem>>, vector<128x128xbf16>
    %c3 = arith.constant 3 : index
    %c0_46 = arith.constant 0 : index
    %c0_47 = arith.constant 0 : index
    %63 = vector.load %arg3[%c3, %c0_46, %c0_47] : memref<4x128x64xbf16, #tpu.memory_space<vmem>>, vector<1x128x64xbf16>
    %64 = vector.shape_cast %63 : vector<1x128x64xbf16> to vector<128x64xbf16>
    %cst_48 = arith.constant dense<0.000000e+00> : vector<128x64xf32>
    %65 = tpu.matmul %62, %64, %cst_48 {dimension_numbers = #tpu.dot_dimension_numbers<[1], [0], [0], [1], [0, 0, 1, 1], [], []>} : vector<128x128xbf16>, vector<128x64xbf16>, vector<128x64xf32> -> vector<128x64xf32>
    %66 = arith.addf %61, %65 : vector<128x64xf32>
    %67 = arith.negf %66 : vector<128x64xf32>
    %68 = math.exp %67 : vector<128x64xf32>
    %cst_49 = arith.constant 1.000000e+00 : f32
    %69 = vector.broadcast %cst_49 : f32 to vector<128x64xf32>
    %70 = arith.addf %69, %68 : vector<128x64xf32>
    %71 = arith.divf %69, %70 : vector<128x64xf32>
    %72 = arith.mulf %66, %71 : vector<128x64xf32>
    %73 = arith.truncf %72 : vector<128x64xf32> to vector<128x64xbf16>
    %c0_50 = arith.constant 0 : index
    %c0_51 = arith.constant 0 : index
    %74 = vector.load %arg4[%c0_50, %c0_51] : memref<512x64xbf16, #tpu.memory_space<vmem>>, vector<128x64xbf16>
    tpu.vector_store %arg4[%c0_50, %c0_51], %73 {strides = array<i32>} : memref<512x64xbf16, #tpu.memory_space<vmem>>, vector<128x64xbf16>,
    %cst_52 = arith.constant 0.000000e+00 : f32
    %75 = vector.broadcast %cst_52 : f32 to vector<128x64xf32>
    %c128_53 = arith.constant 128 : index
    %c0_54 = arith.constant 0 : index
    %76 = vector.load %arg5[%c128_53, %c0_54] : memref<544x128xbf16, #tpu.memory_space<vmem>>, vector<128x128xbf16>
    %c0_55 = arith.constant 0 : index
    %c0_56 = arith.constant 0 : index
    %c0_57 = arith.constant 0 : index
    %77 = vector.load %arg3[%c0_55, %c0_56, %c0_57] : memref<4x128x64xbf16, #tpu.memory_space<vmem>>, vector<1x128x64xbf16>
    %78 = vector.shape_cast %77 : vector<1x128x64xbf16> to vector<128x64xbf16>
    %cst_58 = arith.constant dense<0.000000e+00> : vector<128x64xf32>
    %79 = tpu.matmul %76, %78, %cst_58 {dimension_numbers = #tpu.dot_dimension_numbers<[1], [0], [0], [1], [0, 0, 1, 1], [], []>} : vector<128x128xbf16>, vector<128x64xbf16>, vector<128x64xf32> -> vector<128x64xf32>
    %80 = arith.addf %75, %79 : vector<128x64xf32>
    %c129 = arith.constant 129 : index
    %c0_59 = arith.constant 0 : index
    %81 = vector.load %arg5[%c129, %c0_59] : memref<544x128xbf16, #tpu.memory_space<vmem>>, vector<128x128xbf16>
    %c1_60 = arith.constant 1 : index
    %c0_61 = arith.constant 0 : index
    %c0_62 = arith.constant 0 : index
    %82 = vector.load %arg3[%c1_60, %c0_61, %c0_62] : memref<4x128x64xbf16, #tpu.memory_space<vmem>>, vector<1x128x64xbf16>
    %83 = vector.shape_cast %82 : vector<1x128x64xbf16> to vector<128x64xbf16>
    %cst_63 = arith.constant dense<0.000000e+00> : vector<128x64xf32>
    %84 = tpu.matmul %81, %83, %cst_63 {dimension_numbers = #tpu.dot_dimension_numbers<[1], [0], [0], [1], [0, 0, 1, 1], [], []>} : vector<128x128xbf16>, vector<128x64xbf16>, vector<128x64xf32> -> vector<128x64xf32>
    %85 = arith.addf %80, %84 : vector<128x64xf32>
    %c144 = arith.constant 144 : index
    %c0_64 = arith.constant 0 : index
    %86 = vector.load %arg5[%c144, %c0_64] : memref<544x128xbf16, #tpu.memory_space<vmem>>, vector<128x128xbf16>
    %c2_65 = arith.constant 2 : index
    %c0_66 = arith.constant 0 : index
    %c0_67 = arith.constant 0 : index
    %87 = vector.load %arg3[%c2_65, %c0_66, %c0_67] : memref<4x128x64xbf16, #tpu.memory_space<vmem>>, vector<1x128x64xbf16>
    %88 = vector.shape_cast %87 : vector<1x128x64xbf16> to vector<128x64xbf16>
    %cst_68 = arith.constant dense<0.000000e+00> : vector<128x64xf32>
    %89 = tpu.matmul %86, %88, %cst_68 {dimension_numbers = #tpu.dot_dimension_numbers<[1], [0], [0], [1], [0, 0, 1, 1], [], []>} : vector<128x128xbf16>, vector<128x64xbf16>, vector<128x64xf32> -> vector<128x64xf32>
    %90 = arith.addf %85, %89 : vector<128x64xf32>
    %c145 = arith.constant 145 : index
    %c0_69 = arith.constant 0 : index
    %91 = vector.load %arg5[%c145, %c0_69] : memref<544x128xbf16, #tpu.memory_space<vmem>>, vector<128x128xbf16>
    %c3_70 = arith.constant 3 : index
    %c0_71 = arith.constant 0 : index
    %c0_72 = arith.constant 0 : index
    %92 = vector.load %arg3[%c3_70, %c0_71, %c0_72] : memref<4x128x64xbf16, #tpu.memory_space<vmem>>, vector<1x128x64xbf16>
    %93 = vector.shape_cast %92 : vector<1x128x64xbf16> to vector<128x64xbf16>
    %cst_73 = arith.constant dense<0.000000e+00> : vector<128x64xf32>
    %94 = tpu.matmul %91, %93, %cst_73 {dimension_numbers = #tpu.dot_dimension_numbers<[1], [0], [0], [1], [0, 0, 1, 1], [], []>} : vector<128x128xbf16>, vector<128x64xbf16>, vector<128x64xf32> -> vector<128x64xf32>
    %95 = arith.addf %90, %94 : vector<128x64xf32>
    %96 = arith.negf %95 : vector<128x64xf32>
    %97 = math.exp %96 : vector<128x64xf32>
    %cst_74 = arith.constant 1.000000e+00 : f32
    %98 = vector.broadcast %cst_74 : f32 to vector<128x64xf32>
    %99 = arith.addf %98, %97 : vector<128x64xf32>
    %100 = arith.divf %98, %99 : vector<128x64xf32>
    %101 = arith.mulf %95, %100 : vector<128x64xf32>
    %102 = arith.truncf %101 : vector<128x64xf32> to vector<128x64xbf16>
    %c128_75 = arith.constant 128 : index
    %c0_76 = arith.constant 0 : index
    %103 = vector.load %arg4[%c128_75, %c0_76] : memref<512x64xbf16, #tpu.memory_space<vmem>>, vector<128x64xbf16>
    tpu.vector_store %arg4[%c128_75, %c0_76], %102 {strides = array<i32>} : memref<512x64xbf16, #tpu.memory_space<vmem>>, vector<128x64xbf16>,
    %cst_77 = arith.constant 0.000000e+00 : f32
    %104 = vector.broadcast %cst_77 : f32 to vector<128x64xf32>
    %c256_78 = arith.constant 256 : index
    %c0_79 = arith.constant 0 : index
    %105 = vector.load %arg5[%c256_78, %c0_79] : memref<544x128xbf16, #tpu.memory_space<vmem>>, vector<128x128xbf16>
    %c0_80 = arith.constant 0 : index
    %c0_81 = arith.constant 0 : index
    %c0_82 = arith.constant 0 : index
    %106 = vector.load %arg3[%c0_80, %c0_81, %c0_82] : memref<4x128x64xbf16, #tpu.memory_space<vmem>>, vector<1x128x64xbf16>
    %107 = vector.shape_cast %106 : vector<1x128x64xbf16> to vector<128x64xbf16>
    %cst_83 = arith.constant dense<0.000000e+00> : vector<128x64xf32>
    %108 = tpu.matmul %105, %107, %cst_83 {dimension_numbers = #tpu.dot_dimension_numbers<[1], [0], [0], [1], [0, 0, 1, 1], [], []>} : vector<128x128xbf16>, vector<128x64xbf16>, vector<128x64xf32> -> vector<128x64xf32>
    %109 = arith.addf %104, %108 : vector<128x64xf32>
    %c257 = arith.constant 257 : index
    %c0_84 = arith.constant 0 : index
    %110 = vector.load %arg5[%c257, %c0_84] : memref<544x128xbf16, #tpu.memory_space<vmem>>, vector<128x128xbf16>
    %c1_85 = arith.constant 1 : index
    %c0_86 = arith.constant 0 : index
    %c0_87 = arith.constant 0 : index
    %111 = vector.load %arg3[%c1_85, %c0_86, %c0_87] : memref<4x128x64xbf16, #tpu.memory_space<vmem>>, vector<1x128x64xbf16>
    %112 = vector.shape_cast %111 : vector<1x128x64xbf16> to vector<128x64xbf16>
    %cst_88 = arith.constant dense<0.000000e+00> : vector<128x64xf32>
    %113 = tpu.matmul %110, %112, %cst_88 {dimension_numbers = #tpu.dot_dimension_numbers<[1], [0], [0], [1], [0, 0, 1, 1], [], []>} : vector<128x128xbf16>, vector<128x64xbf16>, vector<128x64xf32> -> vector<128x64xf32>
    %114 = arith.addf %109, %113 : vector<128x64xf32>
    %c272 = arith.constant 272 : index
    %c0_89 = arith.constant 0 : index
    %115 = vector.load %arg5[%c272, %c0_89] : memref<544x128xbf16, #tpu.memory_space<vmem>>, vector<128x128xbf16>
    %c2_90 = arith.constant 2 : index
    %c0_91 = arith.constant 0 : index
    %c0_92 = arith.constant 0 : index
    %116 = vector.load %arg3[%c2_90, %c0_91, %c0_92] : memref<4x128x64xbf16, #tpu.memory_space<vmem>>, vector<1x128x64xbf16>
    %117 = vector.shape_cast %116 : vector<1x128x64xbf16> to vector<128x64xbf16>
    %cst_93 = arith.constant dense<0.000000e+00> : vector<128x64xf32>
    %118 = tpu.matmul %115, %117, %cst_93 {dimension_numbers = #tpu.dot_dimension_numbers<[1], [0], [0], [1], [0, 0, 1, 1], [], []>} : vector<128x128xbf16>, vector<128x64xbf16>, vector<128x64xf32> -> vector<128x64xf32>
    %119 = arith.addf %114, %118 : vector<128x64xf32>
    %c273 = arith.constant 273 : index
    %c0_94 = arith.constant 0 : index
    %120 = vector.load %arg5[%c273, %c0_94] : memref<544x128xbf16, #tpu.memory_space<vmem>>, vector<128x128xbf16>
    %c3_95 = arith.constant 3 : index
    %c0_96 = arith.constant 0 : index
    %c0_97 = arith.constant 0 : index
    %121 = vector.load %arg3[%c3_95, %c0_96, %c0_97] : memref<4x128x64xbf16, #tpu.memory_space<vmem>>, vector<1x128x64xbf16>
    %122 = vector.shape_cast %121 : vector<1x128x64xbf16> to vector<128x64xbf16>
    %cst_98 = arith.constant dense<0.000000e+00> : vector<128x64xf32>
    %123 = tpu.matmul %120, %122, %cst_98 {dimension_numbers = #tpu.dot_dimension_numbers<[1], [0], [0], [1], [0, 0, 1, 1], [], []>} : vector<128x128xbf16>, vector<128x64xbf16>, vector<128x64xf32> -> vector<128x64xf32>
    %124 = arith.addf %119, %123 : vector<128x64xf32>
    %125 = arith.negf %124 : vector<128x64xf32>
    %126 = math.exp %125 : vector<128x64xf32>
    %cst_99 = arith.constant 1.000000e+00 : f32
    %127 = vector.broadcast %cst_99 : f32 to vector<128x64xf32>
    %128 = arith.addf %127, %126 : vector<128x64xf32>
    %129 = arith.divf %127, %128 : vector<128x64xf32>
    %130 = arith.mulf %124, %129 : vector<128x64xf32>
    %131 = arith.truncf %130 : vector<128x64xf32> to vector<128x64xbf16>
    %c256_100 = arith.constant 256 : index
    %c0_101 = arith.constant 0 : index
    %132 = vector.load %arg4[%c256_100, %c0_101] : memref<512x64xbf16, #tpu.memory_space<vmem>>, vector<128x64xbf16>
    tpu.vector_store %arg4[%c256_100, %c0_101], %131 {strides = array<i32>} : memref<512x64xbf16, #tpu.memory_space<vmem>>, vector<128x64xbf16>,
    %cst_102 = arith.constant 0.000000e+00 : f32
    %133 = vector.broadcast %cst_102 : f32 to vector<128x64xf32>
    %c384_103 = arith.constant 384 : index
    %c0_104 = arith.constant 0 : index
    %134 = vector.load %arg5[%c384_103, %c0_104] : memref<544x128xbf16, #tpu.memory_space<vmem>>, vector<128x128xbf16>
    %c0_105 = arith.constant 0 : index
    %c0_106 = arith.constant 0 : index
    %c0_107 = arith.constant 0 : index
    %135 = vector.load %arg3[%c0_105, %c0_106, %c0_107] : memref<4x128x64xbf16, #tpu.memory_space<vmem>>, vector<1x128x64xbf16>
    %136 = vector.shape_cast %135 : vector<1x128x64xbf16> to vector<128x64xbf16>
    %cst_108 = arith.constant dense<0.000000e+00> : vector<128x64xf32>
    %137 = tpu.matmul %134, %136, %cst_108 {dimension_numbers = #tpu.dot_dimension_numbers<[1], [0], [0], [1], [0, 0, 1, 1], [], []>} : vector<128x128xbf16>, vector<128x64xbf16>, vector<128x64xf32> -> vector<128x64xf32>
    %138 = arith.addf %133, %137 : vector<128x64xf32>
    %c385 = arith.constant 385 : index
    %c0_109 = arith.constant 0 : index
    %139 = vector.load %arg5[%c385, %c0_109] : memref<544x128xbf16, #tpu.memory_space<vmem>>, vector<128x128xbf16>
    %c1_110 = arith.constant 1 : index
    %c0_111 = arith.constant 0 : index
    %c0_112 = arith.constant 0 : index
    %140 = vector.load %arg3[%c1_110, %c0_111, %c0_112] : memref<4x128x64xbf16, #tpu.memory_space<vmem>>, vector<1x128x64xbf16>
    %141 = vector.shape_cast %140 : vector<1x128x64xbf16> to vector<128x64xbf16>
    %cst_113 = arith.constant dense<0.000000e+00> : vector<128x64xf32>
    %142 = tpu.matmul %139, %141, %cst_113 {dimension_numbers = #tpu.dot_dimension_numbers<[1], [0], [0], [1], [0, 0, 1, 1], [], []>} : vector<128x128xbf16>, vector<128x64xbf16>, vector<128x64xf32> -> vector<128x64xf32>
    %143 = arith.addf %138, %142 : vector<128x64xf32>
    %c400 = arith.constant 400 : index
    %c0_114 = arith.constant 0 : index
    %144 = vector.load %arg5[%c400, %c0_114] : memref<544x128xbf16, #tpu.memory_space<vmem>>, vector<128x128xbf16>
    %c2_115 = arith.constant 2 : index
    %c0_116 = arith.constant 0 : index
    %c0_117 = arith.constant 0 : index
    %145 = vector.load %arg3[%c2_115, %c0_116, %c0_117] : memref<4x128x64xbf16, #tpu.memory_space<vmem>>, vector<1x128x64xbf16>
    %146 = vector.shape_cast %145 : vector<1x128x64xbf16> to vector<128x64xbf16>
    %cst_118 = arith.constant dense<0.000000e+00> : vector<128x64xf32>
    %147 = tpu.matmul %144, %146, %cst_118 {dimension_numbers = #tpu.dot_dimension_numbers<[1], [0], [0], [1], [0, 0, 1, 1], [], []>} : vector<128x128xbf16>, vector<128x64xbf16>, vector<128x64xf32> -> vector<128x64xf32>
    %148 = arith.addf %143, %147 : vector<128x64xf32>
    %c401 = arith.constant 401 : index
    %c0_119 = arith.constant 0 : index
    %149 = vector.load %arg5[%c401, %c0_119] : memref<544x128xbf16, #tpu.memory_space<vmem>>, vector<128x128xbf16>
    %c3_120 = arith.constant 3 : index
    %c0_121 = arith.constant 0 : index
    %c0_122 = arith.constant 0 : index
    %150 = vector.load %arg3[%c3_120, %c0_121, %c0_122] : memref<4x128x64xbf16, #tpu.memory_space<vmem>>, vector<1x128x64xbf16>
    %151 = vector.shape_cast %150 : vector<1x128x64xbf16> to vector<128x64xbf16>
    %cst_123 = arith.constant dense<0.000000e+00> : vector<128x64xf32>
    %152 = tpu.matmul %149, %151, %cst_123 {dimension_numbers = #tpu.dot_dimension_numbers<[1], [0], [0], [1], [0, 0, 1, 1], [], []>} : vector<128x128xbf16>, vector<128x64xbf16>, vector<128x64xf32> -> vector<128x64xf32>
    %153 = arith.addf %148, %152 : vector<128x64xf32>
    %154 = arith.negf %153 : vector<128x64xf32>
    %155 = math.exp %154 : vector<128x64xf32>
    %cst_124 = arith.constant 1.000000e+00 : f32
    %156 = vector.broadcast %cst_124 : f32 to vector<128x64xf32>
    %157 = arith.addf %156, %155 : vector<128x64xf32>
    %158 = arith.divf %156, %157 : vector<128x64xf32>
    %159 = arith.mulf %153, %158 : vector<128x64xf32>
    %160 = arith.truncf %159 : vector<128x64xf32> to vector<128x64xbf16>
    %c384_125 = arith.constant 384 : index
    %c0_126 = arith.constant 0 : index
    %161 = vector.load %arg4[%c384_125, %c0_126] : memref<512x64xbf16, #tpu.memory_space<vmem>>, vector<128x64xbf16>
    tpu.vector_store %arg4[%c384_125, %c0_126], %160 {strides = array<i32>} : memref<512x64xbf16, #tpu.memory_space<vmem>>, vector<128x64xbf16>,
    return
  }
  func.func @transform_0(%arg0: i32) -> (i32, i32) {
    %c0_i32 = arith.constant 0 : i32
    %c0_i32_0 = arith.constant 0 : i32
    %c0_i32_1 = arith.constant 0 : i32
    return %c0_i32, %c0_i32_0 : i32, i32
  }
  func.func @transform_1(%arg0: i32) -> (i32, i32) {
    %c0_i32 = arith.constant 0 : i32
    %c0_i32_0 = arith.constant 0 : i32
    %c0_i32_1 = arith.constant 0 : i32
    return %c0_i32, %c0_i32_0 : i32, i32
  }
  func.func @transform_2(%arg0: i32) -> (i32, i32, i32) {
    %c0_i32 = arith.constant 0 : i32
    %c0_i32_0 = arith.constant 0 : i32
    %c0_i32_1 = arith.constant 0 : i32
    %c0_i32_2 = arith.constant 0 : i32
    return %c0_i32, %c0_i32_0, %c0_i32_1 : i32, i32, i32
  }
  func.func @transform_3(%arg0: i32) -> (i32, i32) {
    %c0_i32 = arith.constant 0 : i32
    %c0_i32_0 = arith.constant 0 : i32
    %c0_i32_1 = arith.constant 0 : i32
    return %c0_i32, %c0_i32_0 : i32, i32
  }
}

module attributes {stable_mosaic.version = 11 : i64} {
  func.func @_fc_heads_kernel(%arg0: i32, %arg1: memref<2x2x7424xbf16, #tpu.memory_space<vmem>>, %arg2: memref<7424x128xbf16, #tpu.memory_space<vmem>>, %arg3: memref<1x128xf32, #tpu.memory_space<vmem>>, %arg4: memref<128x128xbf16, #tpu.memory_space<vmem>>, %arg5: memref<1x128xf32, #tpu.memory_space<vmem>>, %arg6: memref<2x128xf32, #tpu.memory_space<vmem>>, %arg7: memref<2x128xf32, #tpu.memory_space<vmem>>) attributes {dimension_semantics = [#tpu.dimension_semantics<arbitrary>], iteration_bounds = array<i64: 2>, scalar_prefetch = 0 : i64, scratch_operands = 1 : i64, tpu.core_type = #tpu.core_type<tc>, window_params = [{pipeline_mode = #tpu.pipeline_mode<synchronous>, transform_indices = @transform_0, window_bounds = array<i64: 2, 2, 7424>}, {transform_indices = @transform_1, window_bounds = array<i64: 7424, 128>}, {pipeline_mode = #tpu.pipeline_mode<synchronous>, transform_indices = @transform_2, window_bounds = array<i64: 1, 128>}, {pipeline_mode = #tpu.pipeline_mode<synchronous>, transform_indices = @transform_3, window_bounds = array<i64: 128, 128>}, {pipeline_mode = #tpu.pipeline_mode<synchronous>, transform_indices = @transform_4, window_bounds = array<i64: 1, 128>}, {pipeline_mode = #tpu.pipeline_mode<synchronous>, transform_indices = @transform_5, window_bounds = array<i64: 2, 128>}]} {
    %c0_i32 = arith.constant 0 : i32
    %0 = arith.cmpi eq, %arg0, %c0_i32 : i32
    %1 = arith.extui %0 : i1 to i32
    %c0_i32_0 = arith.constant 0 : i32
    %2 = arith.cmpi ne, %1, %c0_i32_0 : i32
    scf.if %2 {
      %cst_9 = arith.constant 0.000000e+00 : f32
      %14 = vector.broadcast %cst_9 : f32 to vector<2x128xf32>
      %c0_10 = arith.constant 0 : index
      %c0_11 = arith.constant 0 : index
      %15 = vector.load %arg7[%c0_10, %c0_11] : memref<2x128xf32, #tpu.memory_space<vmem>>, vector<2x128xf32>
      tpu.vector_store %arg7[%c0_10, %c0_11], %14 {strides = array<i32>} : memref<2x128xf32, #tpu.memory_space<vmem>>, vector<2x128xf32>,
    } else {
    }
    %c0 = arith.constant 0 : index
    %c0_1 = arith.constant 0 : index
    %3 = vector.load %arg7[%c0, %c0_1] : memref<2x128xf32, #tpu.memory_space<vmem>>, vector<2x128xf32>
    %4 = arith.index_cast %arg0 : i32 to index
    %c0_2 = arith.constant 0 : index
    %c0_3 = arith.constant 0 : index
    %5 = vector.load %arg1[%4, %c0_2, %c0_3] : memref<2x2x7424xbf16, #tpu.memory_space<vmem>>, vector<1x2x7424xbf16>
    %6 = vector.shape_cast %5 : vector<1x2x7424xbf16> to vector<2x7424xbf16>
    %c0_4 = arith.constant 0 : index
    %c0_5 = arith.constant 0 : index
    %7 = vector.load %arg2[%c0_4, %c0_5] : memref<7424x128xbf16, #tpu.memory_space<vmem>>, vector<7424x128xbf16>
    %cst = arith.constant dense<0.000000e+00> : vector<2x128xf32>
    %8 = tpu.matmul %6, %7, %cst {dimension_numbers = #tpu.dot_dimension_numbers<[1], [0], [0], [1], [0, 0, 1, 1], [], []>} : vector<2x7424xbf16>, vector<7424x128xbf16>, vector<2x128xf32> -> vector<2x128xf32>
    %9 = arith.addf %3, %8 : vector<2x128xf32>
    %c0_6 = arith.constant 0 : index
    %c0_7 = arith.constant 0 : index
    %10 = vector.load %arg7[%c0_6, %c0_7] : memref<2x128xf32, #tpu.memory_space<vmem>>, vector<2x128xf32>
    tpu.vector_store %arg7[%c0_6, %c0_7], %9 {strides = array<i32>} : memref<2x128xf32, #tpu.memory_space<vmem>>, vector<2x128xf32>,
    %c1_i32 = arith.constant 1 : i32
    %11 = arith.cmpi eq, %arg0, %c1_i32 : i32
    %12 = arith.extui %11 : i1 to i32
    %c0_i32_8 = arith.constant 0 : i32
    %13 = arith.cmpi ne, %12, %c0_i32_8 : i32
    scf.if %13 {
      %c0_9 = arith.constant 0 : index
      %c0_10 = arith.constant 0 : index
      %14 = vector.load %arg7[%c0_9, %c0_10] : memref<2x128xf32, #tpu.memory_space<vmem>>, vector<2x128xf32>
      %c0_11 = arith.constant 0 : index
      %c0_12 = arith.constant 0 : index
      %15 = vector.load %arg3[%c0_11, %c0_12] : memref<1x128xf32, #tpu.memory_space<vmem>>, vector<1x128xf32>
      %16 = vector.broadcast %15 : vector<1x128xf32> to vector<2x128xf32>
      %17 = arith.addf %14, %16 : vector<2x128xf32>
      %18 = arith.negf %17 : vector<2x128xf32>
      %19 = math.exp %18 : vector<2x128xf32>
      %cst_13 = arith.constant 1.000000e+00 : f32
      %20 = vector.broadcast %cst_13 : f32 to vector<2x128xf32>
      %21 = arith.addf %20, %19 : vector<2x128xf32>
      %22 = arith.divf %20, %21 : vector<2x128xf32>
      %23 = arith.mulf %17, %22 : vector<2x128xf32>
      %24 = arith.truncf %23 : vector<2x128xf32> to vector<2x128xbf16>
      %c0_14 = arith.constant 0 : index
      %c0_15 = arith.constant 0 : index
      %25 = vector.load %arg4[%c0_14, %c0_15] : memref<128x128xbf16, #tpu.memory_space<vmem>>, vector<128x128xbf16>
      %cst_16 = arith.constant dense<0.000000e+00> : vector<2x128xf32>
      %26 = tpu.matmul %24, %25, %cst_16 {dimension_numbers = #tpu.dot_dimension_numbers<[1], [0], [0], [1], [0, 0, 1, 1], [], []>} : vector<2x128xbf16>, vector<128x128xbf16>, vector<2x128xf32> -> vector<2x128xf32>
      %c0_17 = arith.constant 0 : index
      %c0_18 = arith.constant 0 : index
      %27 = vector.load %arg5[%c0_17, %c0_18] : memref<1x128xf32, #tpu.memory_space<vmem>>, vector<1x128xf32>
      %28 = vector.broadcast %27 : vector<1x128xf32> to vector<2x128xf32>
      %29 = arith.addf %26, %28 : vector<2x128xf32>
      %c0_19 = arith.constant 0 : index
      %c0_20 = arith.constant 0 : index
      %30 = vector.load %arg6[%c0_19, %c0_20] : memref<2x128xf32, #tpu.memory_space<vmem>>, vector<2x128xf32>
      tpu.vector_store %arg6[%c0_19, %c0_20], %29 {strides = array<i32>} : memref<2x128xf32, #tpu.memory_space<vmem>>, vector<2x128xf32>,
    } else {
    }
    return
  }
  func.func @transform_0(%arg0: i32) -> (i32, i32, i32) {
    %c0_i32 = arith.constant 0 : i32
    %c0_i32_0 = arith.constant 0 : i32
    %c0_i32_1 = arith.constant 0 : i32
    %c0_i32_2 = arith.constant 0 : i32
    return %c0_i32, %c0_i32_0, %c0_i32_1 : i32, i32, i32
  }
  func.func @transform_1(%arg0: i32) -> (i32, i32) {
    %c0_i32 = arith.constant 0 : i32
    %c0_i32_0 = arith.constant 0 : i32
    return %arg0, %c0_i32 : i32, i32
  }
  func.func @transform_2(%arg0: i32) -> (i32, i32) {
    %c0_i32 = arith.constant 0 : i32
    %c0_i32_0 = arith.constant 0 : i32
    %c0_i32_1 = arith.constant 0 : i32
    return %c0_i32, %c0_i32_0 : i32, i32
  }
  func.func @transform_3(%arg0: i32) -> (i32, i32) {
    %c0_i32 = arith.constant 0 : i32
    %c0_i32_0 = arith.constant 0 : i32
    %c0_i32_1 = arith.constant 0 : i32
    return %c0_i32, %c0_i32_0 : i32, i32
  }
  func.func @transform_4(%arg0: i32) -> (i32, i32) {
    %c0_i32 = arith.constant 0 : i32
    %c0_i32_0 = arith.constant 0 : i32
    %c0_i32_1 = arith.constant 0 : i32
    return %c0_i32, %c0_i32_0 : i32, i32
  }
  func.func @transform_5(%arg0: i32) -> (i32, i32) {
    %c0_i32 = arith.constant 0 : i32
    %c0_i32_0 = arith.constant 0 : i32
    %c0_i32_1 = arith.constant 0 : i32
    return %c0_i32, %c0_i32_0 : i32, i32
  }
}

</mosaic_0001>

<bundles_post_ra>
// kernel: image_encoder_forward.2
= control target key start
LH: loop header
LB: loop body
LE: loop exit
PB: predicated region body
PF: predicated region fallthrough
CT: control target
= control target key end

     0   :  { %s13503_s1 = inlined_call_operand.vmem [shape: bf16[128,128], index: 1, kind: input, shape index: {}]   ;;  %s13504_s0 = inlined_call_operand.vmem [shape: bf16[512,128], index: 0, kind: input, shape index: {}]   ;;  %s13505_s2 = inlined_call_operand.vmem [shape: bf16[4,128,64], index: 2, kind: input, shape index: {}]   ;;  %s13506_s3 = inlined_call_operand.vmem [shape: bf16[512,64], index: 3, kind: output, shape index: {}]  }
   0x1   :  { %v8351_v0 = vld [vmem:[%s13503_s1 + $0x38] sm:$0xff]  ;;  %v8350_v3 = vld [vmem:[%s13503_s1 + $0x30] sm:$0xff]  ;;  %v8349_v6 = vld [vmem:[%s13503_s1 + $0x28] sm:$0xff] }
   0x2   :  { %v8367_v1 = vld [vmem:[%s13503_s1 + $0x38] sm:$0xff]  ;;  %143 = vmatpush.bf16.msra.mxu0 %v8351_v0  ;;  %v8366_v4 = vld [vmem:[%s13503_s1 + $0x30] sm:$0xff]  ;;  %v8365_v7 = vld [vmem:[%s13503_s1 + $0x28] sm:$0xff] }
   0x3   :  { %v8383_v2 = vld [vmem:[%s13503_s1 + $0x38] sm:$0xff]  ;;  %672 = vmatpush.bf16.msra.mxu1 %v8367_v1  ;;  %v8382_v5 = vld [vmem:[%s13503_s1 + $0x30] sm:$0xff]  ;;  %v8381_v8 = vld [vmem:[%s13503_s1 + $0x28] sm:$0xff] }
   0x4   :  { %1201 = vmatpush.bf16.msra.mxu2 %v8383_v2  ;;  %v8399_v9 = vld [vmem:[%s13503_s1 + $0x38] sm:$0xff]  ;;  %v8348_v10 = vld [vmem:[%s13503_s1 + $0x20] sm:$0xff]  ;;  %v8398_v13 = vld [vmem:[%s13503_s1 + $0x30] sm:$0xff] }
   0x5   :  { %v8364_v11 = vld [vmem:[%s13503_s1 + $0x20] sm:$0xff]  ;;  %1730 = vmatpush.bf16.msra.mxu3 %v8399_v9  ;;  %v8347_v14 = vld [vmem:[%s13503_s1 + $0x18] sm:$0xff]  ;;  %v8397_v17 = vld [vmem:[%s13503_s1 + $0x28] sm:$0xff] }
   0x6   :  { %144 = vmatpush.bf16.msra.mxu0 %v8350_v3  ;;  %v8380_v12 = vld [vmem:[%s13503_s1 + $0x20] sm:$0xff]  ;;  %v8363_v15 = vld [vmem:[%s13503_s1 + $0x18] sm:$0xff]  ;;  %v8346_v18 = vld [vmem:[%s13503_s1 + $0x10] sm:$0xff] }
   0x7   :  { %673 = vmatpush.bf16.msra.mxu1 %v8366_v4  ;;  %v8379_v16 = vld [vmem:[%s13503_s1 + $0x18] sm:$0xff]  ;;  %v8362_v19 = vld [vmem:[%s13503_s1 + $0x10] sm:$0xff]  ;;  %v8396_v21 = vld [vmem:[%s13503_s1 + $0x20] sm:$0xff] }
   0x8   :  { %1202 = vmatpush.bf16.msra.mxu2 %v8382_v5  ;;  %v8378_v20 = vld [vmem:[%s13503_s1 + $0x10] sm:$0xff]  ;;  %v8345_v22 = vld [vmem:[%s13503_s1 + $0x8] sm:$0xff]  ;;  %v8395_v25 = vld [vmem:[%s13503_s1 + $0x18] sm:$0xff] }
   0x9   :  { %1731 = vmatpush.bf16.msra.mxu3 %v8398_v13  ;;  %v8361_v23 = vld [vmem:[%s13503_s1 + $0x8] sm:$0xff]  ;;  %v8344_v26 = vld [vmem:[%s13503_s1] sm:$0xff]  ;;  %v8394_v29 = vld [vmem:[%s13503_s1 + $0x10] sm:$0xff] }
   0xa   :  { %145 = vmatpush.bf16.msra.mxu0 %v8349_v6  ;;  %v8377_v24 = vld [vmem:[%s13503_s1 + $0x8] sm:$0xff]  ;;  %v8360_v27 = vld [vmem:[%s13503_s1] sm:$0xff]  ;;  %v8338_v40 = vld [vmem:[%s13504_s0 + $0x10] sm:$0xff] }
   0xb   :  { %674 = vmatpush.bf16.msra.mxu1 %v8365_v7  ;;  %v8376_v28 = vld [vmem:[%s13503_s1] sm:$0xff]  ;;  %v8393_v33 = vld [vmem:[%s13503_s1 + $0x8] sm:$0xff]  ;;  %v8354_v41 = vld [vmem:[%s13504_s0 + $0x50] sm:$0xff] }
   0xc   :  { %1203 = vmatpush.bf16.msra.mxu2 %v8381_v8  ;;  %v8336_v30 = vld [vmem:[%s13504_s0] sm:$0xff]  ;;  %v8337_v36 = vld [vmem:[%s13504_s0 + $0x8] sm:$0xff]  ;;  %v8370_v42 = vld [vmem:[%s13504_s0 + $0x90] sm:$0xff] }
   0xd   :  { %1732 = vmatpush.bf16.msra.mxu3 %v8397_v17  ;;  %v8352_v31 = vld [vmem:[%s13504_s0 + $0x40] sm:$0xff]  ;;  %v8353_v37 = vld [vmem:[%s13504_s0 + $0x48] sm:$0xff]  ;;  %v8386_v43 = vld [vmem:[%s13504_s0 + $0xd0] sm:$0xff] }
   0xe   :  { %146 = vmatpush.bf16.msra.mxu0 %v8348_v10  ;;  %v8368_v32 = vld [vmem:[%s13504_s0 + $0x80] sm:$0xff]  ;;  %v8369_v38 = vld [vmem:[%s13504_s0 + $0x88] sm:$0xff]  ;;  %v8339_v44 = vld [vmem:[%s13504_s0 + $0x18] sm:$0xff] }
   0xf   :  { %675 = vmatpush.bf16.msra.mxu1 %v8364_v11  ;;  %v8392_v34 = vld [vmem:[%s13503_s1] sm:$0xff]  ;;  %v8385_v39 = vld [vmem:[%s13504_s0 + $0xc8] sm:$0xff]  ;;  %v8355_v45 = vld [vmem:[%s13504_s0 + $0x58] sm:$0xff] }
  0x10   :  { %1204 = vmatpush.bf16.msra.mxu2 %v8380_v12  ;;  %v8384_v35 = vld [vmem:[%s13504_s0 + $0xc0] sm:$0xff]  ;;  %v8371_v46 = vld [vmem:[%s13504_s0 + $0x98] sm:$0xff]  ;;  %v8438_v55 = vld [vmem:[%s13505_s2 + $0xb0] sm:$0xff] }
  0x11   :  { %1733 = vmatpush.bf16.msra.mxu3 %v8396_v21  ;;  %v8439_v47 = vld [vmem:[%s13505_s2 + $0xb8] sm:$0xff]  ;;  %v8340_v52 = vld [vmem:[%s13504_s0 + $0x20] sm:$0xff]  ;;  %v8454_v56 = vld [vmem:[%s13505_s2 + $0xf0] sm:$0xff] }
  0x12   :  { %147 = vmatpush.bf16.msra.mxu0 %v8347_v14  ;;  %v8455_v48 = vld [vmem:[%s13505_s2 + $0xf8] sm:$0xff]  ;;  %v8356_v53 = vld [vmem:[%s13504_s0 + $0x60] sm:$0xff]  ;;  %v8422_v57 = vld [vmem:[%s13505_s2 + $0x70] sm:$0xff] }
  0x13   :  { %676 = vmatpush.bf16.msra.mxu1 %v8363_v15  ;;  %v8423_v49 = vld [vmem:[%s13505_s2 + $0x78] sm:$0xff]  ;;  %v8372_v54 = vld [vmem:[%s13504_s0 + $0xa0] sm:$0xff]  ;;  %v8414_v58 = vld [vmem:[%s13505_s2 + $0x30] sm:$0xff] }
  0x14   :  { %1205 = vmatpush.bf16.msra.mxu2 %v8379_v16  ;;  %v8415_v50 = vld [vmem:[%s13505_s2 + $0x38] sm:$0xff]  ;;  %v8388_v59 = vld [vmem:[%s13504_s0 + $0xe0] sm:$0xff]  ;;  %v8341_v60 = vld [vmem:[%s13504_s0 + $0x28] sm:$0xff] }
  0x15   :  { %1734 = vmatpush.bf16.msra.mxu3 %v8395_v25  ;;  %v8387_v51 = vld [vmem:[%s13504_s0 + $0xd8] sm:$0xff]  ;;  %v8357_v61 = vld [vmem:[%s13504_s0 + $0x68] sm:$0xff]  ;;  %v8342_v4 = vld [vmem:[%s13504_s0 + $0x30] sm:$0xff] }
  0x16   :  { %148 = vmatpush.bf16.msra.mxu0 %v8346_v18  ;;  %v8373_v62 = vld [vmem:[%s13504_s0 + $0xa8] sm:$0xff]  ;;  %v8358_v5 = vld [vmem:[%s13504_s0 + $0x70] sm:$0xff]  ;;  %v8343_v8 = vld [vmem:[%s13504_s0 + $0x38] sm:$0xff] }
  0x17   :  { %677 = vmatpush.bf16.msra.mxu1 %v8362_v19  ;;  %v8437_v63 = vld [vmem:[%s13505_s2 + $0xa8] sm:$0xff]  ;;  %v8374_v6 = vld [vmem:[%s13504_s0 + $0xb0] sm:$0xff]  ;;  %v8359_v9 = vld [vmem:[%s13504_s0 + $0x78] sm:$0xff] }
  0x18   :  { %1206 = vmatpush.bf16.msra.mxu2 %v8378_v20  ;;  %v8453_v0 = vld [vmem:[%s13505_s2 + $0xe8] sm:$0xff]  ;;  %v8390_v7 = vld [vmem:[%s13504_s0 + $0xf0] sm:$0xff]  ;;  %v8375_v10 = vld [vmem:[%s13504_s0 + $0xb8] sm:$0xff] }
  0x19   :  { %1735 = vmatpush.bf16.msra.mxu3 %v8394_v29  ;;  %v8421_v1 = vld [vmem:[%s13505_s2 + $0x68] sm:$0xff]  ;;  %v8391_v11 = vld [vmem:[%s13504_s0 + $0xf8] sm:$0xff]  ;;  %v8412_v12 = vld [vmem:[%s13505_s2 + $0x20] sm:$0xff] }
  0x1a   :  { %149 = vmatpush.bf16.msra.mxu0 %v8345_v22  ;;  %v8413_v2 = vld [vmem:[%s13505_s2 + $0x28] sm:$0xff]  ;;  %v8436_v17 = vld [vmem:[%s13505_s2 + $0xa0] sm:$0xff] }
  0x1b   :  { %678 = vmatpush.bf16.msra.mxu1 %v8361_v23  ;;  %v8389_v3 = vld [vmem:[%s13504_s0 + $0xe8] sm:$0xff]  ;;  %v8420_v29 = vld [vmem:[%s13505_s2 + $0x60] sm:$0xff] }
  0x1c   :  { %1207 = vmatpush.bf16.msra.mxu2 %v8377_v24 }
  0x1d   :  { %1736 = vmatpush.bf16.msra.mxu3 %v8393_v33 }
  0x1e   :  { %150 = vmatpush.bf16.msra.mxu0 %v8344_v26 }
  0x1f   :  { %679 = vmatpush.bf16.msra.mxu1 %v8360_v27 }
  0x20   :  { %1208 = vmatpush.bf16.msra.mxu2 %v8376_v28  ;;  %v8452_v28 = vld [vmem:[%s13505_s2 + $0xe0] sm:$0xff] }
  0x21   :  { %151 = vmatmul.bf16.vlgmr.msra.gmra.mxu0 %v8336_v30  ;;  %1737 = vmatpush.bf16.msra.mxu3 %v8392_v34 }
  0x22   :  { %680 = vmatmul.bf16.vlgmr.msra.gmra.mxu1 %v8352_v31  ;;  %2353 = vmatpush.bf16.msrb.mxu0 %v8423_v49 }
  0x23   :  { %1209 = vmatmul.bf16.vlgmr.msra.gmra.mxu2 %v8368_v32  ;;  %2458 = vmatpush.bf16.msrb.mxu1 %v8415_v50 }
  0x24   :  { %1738 = vmatmul.bf16.vlgmr.msra.gmra.mxu3 %v8384_v35  ;;  %2636 = vmatpush.bf16.msrb.mxu2 %v8439_v47 }
  0x25   :  { %2902 = vmatpush.bf16.msrb.mxu3 %v8455_v48 }
  0x26   :  { %2354 = vmatpush.bf16.msrb.mxu0 %v8422_v57 }
  0x27   :  { %2459 = vmatpush.bf16.msrb.mxu1 %v8414_v58 }
  0x28   :  { %2637 = vmatpush.bf16.msrb.mxu2 %v8438_v55 }
  0x29   :  { %2903 = vmatpush.bf16.msrb.mxu3 %v8454_v56 }
  0x2a   :  { %2355 = vmatpush.bf16.msrb.mxu0 %v8421_v1 }
  0x2b   :  { %2460 = vmatpush.bf16.msrb.mxu1 %v8413_v2 }
  0x2c   :  { %2638 = vmatpush.bf16.msrb.mxu2 %v8437_v63 }
  0x2d   :  { %2904 = vmatpush.bf16.msrb.mxu3 %v8453_v0 }
  0x2e   :  { %2356 = vmatpush.bf16.msrb.mxu0 %v8420_v29 }
  0x2f   :  { %2461 = vmatpush.bf16.msrb.mxu1 %v8412_v12 }
  0x30   :  { %2639 = vmatpush.bf16.msrb.mxu2 %v8436_v17 }
  0x31   :  { %156 = vmatmul.bf16.gmra.mxu0 %v8337_v36  ;;  %2905 = vmatpush.bf16.msrb.mxu3 %v8452_v28  ;;  %v8411_v36 = vld [vmem:[%s13505_s2 + $0x18] sm:$0xff] }
  0x32   :  { %685 = vmatmul.bf16.gmra.mxu1 %v8353_v37 }
  0x33   :  { %1214 = vmatmul.bf16.gmra.mxu2 %v8369_v38  ;;  %2462 = vmatpush.bf16.msrb.mxu1 %v8411_v36 }
  0x34   :  { %1743 = vmatmul.bf16.gmra.mxu3 %v8385_v39 }
  0x41   :  { %161 = vmatmul.bf16.gmra.mxu0 %v8338_v40 }
  0x42   :  { %690 = vmatmul.bf16.gmra.mxu1 %v8354_v41 }
  0x43   :  { %1219 = vmatmul.bf16.gmra.mxu2 %v8370_v42 }
  0x44   :  { %1748 = vmatmul.bf16.gmra.mxu3 %v8386_v43 }
  0x51   :  { %166 = vmatmul.bf16.gmra.mxu0 %v8339_v44 }
  0x52   :  { %695 = vmatmul.bf16.gmra.mxu1 %v8355_v45 }
  0x53   :  { %1224 = vmatmul.bf16.gmra.mxu2 %v8371_v46 }
  0x54   :  { %1753 = vmatmul.bf16.gmra.mxu3 %v8387_v51 }
  0x61   :  { %171 = vmatmul.bf16.gmra.mxu0 %v8340_v52 }
  0x62   :  { %700 = vmatmul.bf16.gmra.mxu1 %v8356_v53 }
  0x63   :  { %1229 = vmatmul.bf16.gmra.mxu2 %v8372_v54 }
  0x64   :  { %1758 = vmatmul.bf16.gmra.mxu3 %v8388_v59 }
  0x71   :  { %176 = vmatmul.bf16.gmra.mxu0 %v8341_v60 }
  0x72   :  { %705 = vmatmul.bf16.gmra.mxu1 %v8357_v61  ;;  %v8435_v61 = vld [vmem:[%s13505_s2 + $0x98] sm:$0xff] }
  0x73   :  { %1234 = vmatmul.bf16.gmra.mxu2 %v8373_v62 }
  0x74   :  { %1763 = vmatmul.bf16.gmra.mxu3 %v8389_v3  ;;  %2640 = vmatpush.bf16.msrb.mxu2 %v8435_v61  ;;  %v8419_v61 = vld [vmem:[%s13505_s2 + $0x58] sm:$0xff] }
  0x75   :  { %2357 = vmatpush.bf16.msrb.mxu0 %v8419_v61 }
  0x81   :  { %181 = vmatmul.bf16.gmra.mxu0 %v8342_v4 }
  0x82   :  { %710 = vmatmul.bf16.gmra.mxu1 %v8358_v5 }
  0x83   :  { %1239 = vmatmul.bf16.gmra.mxu2 %v8374_v6 }
  0x84   :  { %1768 = vmatmul.bf16.gmra.mxu3 %v8390_v7 }
  0x91   :  { %186 = vmatmul.bf16.gmra.mxu0 %v8343_v8 }
  0x92   :  { %715 = vmatmul.bf16.gmra.mxu1 %v8359_v9 }
  0x93   :  { %1244 = vmatmul.bf16.gmra.mxu2 %v8375_v10 }
  0x94   :  { %1773 = vmatmul.bf16.gmra.mxu3 %v8391_v11 }
  0x9e   :  { %v9580_v13 = vpop.f32.mrf.mxu0 }
  0x9f   :  { %v9582_v14 = vpop.f32.mrf.mxu1  ;;  %v6928_v15 = vmul.f32 -1.442695, %v9580_v13 }
  0xa0   :  { %v7008_v16 = vmul.f32 -1.442695, %v9582_v14 }
  0xa1   :  { %8816 = vpow2.f32 %v6928_v15 }
  0xa2   :  { %8818 = vpow2.f32 %v7008_v16 }
  0xa6   :  { %v9589_v18 = vpop.f32.mrf.mxu2  ;;  %v9592_v20 = vpop.f32.mrf.mxu0 }
  0xa7   :  { %v7088_v19 = vmul.f32 -1.442695, %v9589_v18  ;;  %v8817_v21 = vpop.eup %8816  ;;  %v6929_v22 = vmul.f32 -1.442695, %v9592_v20  ;;  %v9595_v23 = vpop.f32.mrf.mxu1 }
  0xa8   :  { %v8819_v24 = vpop.eup %8818  ;;  %v9597_v25 = vadd.f32 1.0, %v8817_v21  ;;  %v7009_v26 = vmul.f32 -1.442695, %v9595_v23 }
  0xa9   :  { %8820 = vpow2.f32 %v7088_v19  ;;  %v769_v27 = vadd.f32 1.0, %v8819_v24 }
  0xaa   :  { %8822 = vpow2.f32 %v6929_v22  ;;  %v267_v38 = vand.u32 2147483648, %v9597_v25  ;;  %v265_v43 = vand.u32 2147483647, %v9597_v25  ;;  %vm261_vm0 = vweird.f32 %v9597_v25 }
  0xab   :  { %8824 = vrcp.f32 %v9597_v25  ;;  %v794_v39 = vand.u32 2147483647, %v769_v27  ;;  %vm790_vm1 = vweird.f32 %v769_v27  ;;  %v796_v51 = vand.u32 2147483648, %v769_v27 }
  0xac   :  { %8826 = vrcp.f32 %v769_v27  ;;  %v268_v48 = vor.u32 1.1754944e-38, %v267_v38  ;;  %vm9637_vm3 = vcmp.eq.f32.partialorder %v265_v43, 8.507059e+37 }
  0xad   :  { %8828 = vpow2.f32 %v7009_v26  ;;  %vm9632_vm2 = vcmp.eq.f32.partialorder %v794_v39, 8.507059e+37  ;;  %v797_v2 = vor.u32 1.1754944e-38, %v796_v51 }
  0xae   :  { %v9607_v30 = vpop.f32.mrf.mxu2  ;;  %v9610_v33 = vpop.f32.mrf.mxu0 }
  0xaf   :  { %v8821_v31 = vpop.eup %8820  ;;  %v7089_v32 = vmul.f32 -1.442695, %v9607_v30  ;;  %v6930_v44 = vmul.f32 -1.442695, %v9610_v33  ;;  %v9644_v55 = vpop.f32.mrf.mxu1 }
  0xb0   :  { %v8823_v34 = vpop.eup %8822  ;;  %v9612_v35 = vadd.f32 1.0, %v8821_v31  ;;  %v7010_v60 = vmul.f32 -1.442695, %v9644_v55 }
  0xb1   :  { %v9617_v37 = vpop.eup %8824  ;;  %v9620_v40 = vadd.f32 1.0, %v8823_v34  ;;  %8830 = vpow2.f32 %v7089_v32 }
  0xb2   :  { %v9622_v41 = vpop.eup %8826  ;;  %v257_v42 = vmul.f32 %v9617_v37, %v9597_v25  ;;  %8832 = vrcp.f32 %v9612_v35  ;;  %v1325_v58 = vand.u32 2147483648, %v9612_v35  ;;  %vm262_vm5 = vweird.f32 %v9617_v37 }
  0xb3   :  { %v8829_v45 = vpop.eup %8828  ;;  %v786_v46 = vmul.f32 %v9622_v41, %v769_v27  ;;  %8834 = vrcp.f32 %v9620_v40  ;;  %vm791_vm4 = vweird.f32 %v9622_v41  ;;  %v280_v59 = vand.u32 2147483647, %v9620_v40  ;;  %vm9676_vm9 = vmor %vm261_vm0, %vm262_vm5 }
  0xb4   :  { %v258_v47 = vsub.f32 1.0, %v257_v42  ;;  %v9642_v54 = vadd.f32 1.0, %v8829_v45  ;;  %8836 = vpow2.f32 %v6930_v44  ;;  %v282_v0 = vand.u32 2147483648, %v9620_v40  ;;  %vm9666_vm6 = vmor %vm790_vm1, %vm791_vm4 }
  0xb5   :  { %v787_v49 = vsub.f32 1.0, %v786_v46  ;;  %v1323_v4 = vand.u32 2147483647, %v9612_v35  ;;  %vm1319_vm7 = vweird.f32 %v9612_v35  ;;  %vm276_vm8 = vweird.f32 %v9620_v40 }
  0xb6   :  { %v259_v52 = vmul.f32 %v9617_v37, %v258_v47  ;;  %8838 = vrcp.f32 %v9642_v54  ;;  %v9680_v10 = vor.u32 1.1754944e-38, %v1325_v58  ;;  %vm9683_vm10 = vcmp.eq.f32.partialorder %v280_v59, 8.507059e+37  ;;  %v9687_v15 = vpop.f32.mrf.mxu2  ;;  %v9708_v32 = vpop.f32.mrf.mxu0  ;;  %v8410_v58 = vld [vmem:[%s13505_s2 + $0x10] sm:$0xff] }
  0xb7   :  { %v8831_v56 = vpop.eup %8830  ;;  %v788_v57 = vmul.f32 %v9622_v41, %v787_v49  ;;  %8840 = vpow2.f32 %v7010_v60  ;;  %v283_v19 = vor.u32 1.1754944e-38, %v282_v0  ;;  %v809_v21 = vand.u32 2147483647, %v9642_v54  ;;  %2463 = vmatpush.bf16.msrb.mxu1 %v8410_v58 }
  0xb8   :  { %v9653_v62 = vpop.eup %8832  ;;  %v260_v63 = vadd.f32 %v9617_v37, %v259_v52  ;;  %v9672_v7 = vadd.f32 1.0, %v8831_v56  ;;  %v7090_v22 = vmul.f32 -1.442695, %v9687_v15  ;;  %vm9698_vm11 = vcmp.eq.f32.partialorder %v1323_v4, 8.507059e+37 }
  0xb9   :  { %v789_v1 = vadd.f32 %v9622_v41, %v788_v57  ;;  %v1315_v3 = vmul.f32 %v9653_v62, %v9612_v35  ;;  %v8835_v5 = vpop.eup %8834  ;;  %vm1320_vm12 = vweird.f32 %v9653_v62  ;;  %vm805_vm13 = vweird.f32 %v9642_v54 }
  0xba   :  { %v272_v11 = vmul.f32 %v8835_v5, %v9620_v40  ;;  %v8837_v16 = vpop.eup %8836  ;;  %v264_v17 = vsel %vm9676_vm9, %v9617_v37, %v260_v63  ;;  %8842 = vrcp.f32 %v9672_v7  ;;  %v811_v29 = vand.u32 2147483648, %v9642_v54  ;;  %vm9726_vm0 = vmor %vm1319_vm7, %vm1320_vm12  ;;  %v8434_v63 = vld [vmem:[%s13505_s2 + $0x90] sm:$0xff] }
  0xbb   :  { %v1316_v9 = vsub.f32 1.0, %v1315_v3  ;;  %v793_v24 = vsel %vm9666_vm6, %v9622_v41, %v789_v1  ;;  %v9706_v31 = vadd.f32 1.0, %v8837_v16  ;;  %v269_v34 = vsel %vm9637_vm3, %v268_v48, %v264_v17  ;;  %2641 = vmatpush.bf16.msrb.mxu2 %v8434_v63  ;;  %v8409_v16 = vld [vmem:[%s13505_s2 + $0x8] sm:$0xff] }
  0xbc   :  { %v273_v27 = vsub.f32 1.0, %v272_v11  ;;  %v8839_v28 = vpop.eup %8838  ;;  %vm277_vm14 = vweird.f32 %v8835_v5  ;;  %v798_v39 = vsel %vm9632_vm2, %v797_v2, %v793_v24  ;;  %vm9715_vm15 = vcmp.eq.f32.partialorder %v809_v21, 8.507059e+37  ;;  %2464 = vmatpush.bf16.msrb.mxu1 %v8409_v16 }
  0xbd   :  { %v1317_v25 = vmul.f32 %v9653_v62, %v1316_v9  ;;  %v801_v37 = vmul.f32 %v8839_v28, %v9642_v54  ;;  %v8841_v38 = vpop.eup %8840  ;;  %v1338_v42 = vand.u32 2147483647, %v9672_v7  ;;  %8844 = vrcp.f32 %v9706_v31  ;;  %vm278_vm2 = vmor %vm276_vm8, %vm277_vm14 }
  0xbe   :  { %v274_v36 = vmul.f32 %v8835_v5, %v273_v27  ;;  %vm806_vm1 = vweird.f32 %v8839_v28  ;;  %v496_v47 = vmul.f32 %v269_v34, %v9580_v13  ;;  %v1340_v48 = vand.u32 2147483648, %v9672_v7  ;;  %v9781_v12 = vpop.f32.mrf.mxu0 }
  0xbf   :  { %v1318_v43 = vadd.f32 %v9653_v62, %v1317_v25  ;;  %v802_v46 = vsub.f32 1.0, %v801_v37  ;;  %v9734_v49 = vadd.f32 1.0, %v8841_v38  ;;  %8846 = vpow2.f32 %v7090_v22  ;;  %vm9741_vm3 = vmor %vm805_vm13, %vm806_vm1  ;;  %v9796_v22 = vpop.f32.mrf.mxu2 }
  0xc0   :  { %v275_v45 = vadd.f32 %v8835_v5, %v274_v36  ;;  %v8843_v50 = vpop.eup %8842  ;;  %v1025_v35 = vmul.f32 %v798_v39, %v9582_v14  ;;  %v812_v53 = vor.u32 1.1754944e-38, %v811_v29  ;;  %vm1334_vm4 = vweird.f32 %v9672_v7  ;;  %v9751_v14 = vpop.f32.mrf.mxu1  ;;  %v8451_v29 = vld [vmem:[%s13505_s2 + $0xd8] sm:$0xff] }
  0xc1   :  { %v803_v52 = vmul.f32 %v8839_v28, %v802_v46  ;;  %v1330_v40 = vmul.f32 %v8843_v50, %v9672_v7  ;;  %vm9747_vm5 = vcmp.eq.f32.partialorder %v1338_v42, 8.507059e+37  ;;  %v1322_v54 = vsel %vm9726_vm0, %v9653_v62, %v1318_v43  ;;  %2906 = vmatpush.bf16.msrb.mxu3 %v8451_v29 }
  0xc2   :  { %v279_v51 = vsel %vm278_vm2, %v8835_v5, %v275_v45  ;;  %8848 = vrcp.f32 %v9734_v49  ;;  %vm1335_vm6 = vweird.f32 %v8843_v50  ;;  %v1341_v2 = vor.u32 1.1754944e-38, %v1340_v48 }
  0xc3   :  { %v284_v56 = vsel %vm9683_vm10, %v283_v19, %v279_v51  ;;  %v804_v60 = vadd.f32 %v8839_v28, %v803_v52  ;;  %v9767_v0 = vpop.eup %8844  ;;  %v1331_v1 = vsub.f32 1.0, %v1330_v40  ;;  %v6931_v62 = vmul.f32 -1.442695, %v9708_v32  ;;  %vm9790_vm8 = vmor %vm1334_vm4, %vm1335_vm6  ;;  %v9839_v52 = vpop.f32.mrf.mxu3 }
  0xc4   :  { %v497_v59 = vmul.f32 %v284_v56, %v9592_v20  ;;  %v287_v4 = vmul.f32 %v9767_v0, %v9706_v31  ;;  %vm291_vm7 = vweird.f32 %v9706_v31  ;;  %v1327_v6 = vsel %vm9698_vm11, %v9680_v10, %v1322_v54 }
  0xc5   :  { %v808_v3 = vsel %vm9741_vm3, %v8839_v28, %v804_v60  ;;  %v8847_v5 = vpop.eup %8846  ;;  %v1332_v9 = vmul.f32 %v8843_v50, %v1331_v1  ;;  %v295_v11 = vand.u32 2147483647, %v9706_v31  ;;  %8850 = vpow2.f32 %v6931_v62 }
  0xc6   :  { %v8627_v20 = vpack.c.bf16 %v497_v59, %v496_v47  ;;  %v813_v8 = vsel %vm9715_vm15, %v812_v53, %v808_v3  ;;  %v288_v19 = vsub.f32 1.0, %v287_v4  ;;  %v9794_v21 = vadd.f32 1.0, %v8847_v5  ;;  %v8408_v59 = vld [vmem:[%s13505_s2] sm:$0xff] }
  0xc7   :  { %v1026_v17 = vmul.f32 %v813_v8, %v9595_v23  ;;  %v1333_v24 = vadd.f32 %v8843_v50, %v1332_v9  ;;  %v297_v25 = vand.u32 2147483648, %v9706_v31  ;;  %v7011_v26 = vmul.f32 -1.442695, %v9751_v14  ;;  %2465 = vmatpush.bf16.msrb.mxu1 %v8408_v59 }
  0xc8   :  { %8628 = vst [vmem:[#allocation2] sm:$0xff] %v8627_v20   ;;  %v7091_v23 = vmul.f32 -1.442695, %v9796_v22  ;;  %v9801_v27 = vpop.eup %8848  ;;  %v289_v28 = vmul.f32 %v9767_v0, %v288_v19  ;;  %8852 = vrcp.f32 %v9794_v21  ;;  %v6932_v34 = vmul.f32 -1.442695, %v9781_v12  ;;  %v9821_v44 = vpop.f32.mrf.mxu1 }
  0xc9   :  { %v8667_v7 = vpack.c.bf16 %v1026_v17, %v1025_v35  ;;  %v1554_v36 = vmul.f32 %v1327_v6, %v9589_v18  ;;  %v1337_v37 = vsel %vm9790_vm8, %v8843_v50, %v1333_v24  ;;  %v816_v38 = vmul.f32 %v9801_v27, %v9734_v49  ;;  %v9873_v20 = vpop.f32.mrf.mxu0 }
  0xca   :  { %vm820_vm9 = vweird.f32 %v9734_v49  ;;  %v1342_v39 = vsel %vm9747_vm5, %v1341_v2, %v1337_v37  ;;  %v290_v41 = vadd.f32 %v9767_v0, %v289_v28  ;;  %vm292_vm10 = vweird.f32 %v9767_v0 }
  0xcb   :  { %8791 = vst [vmem:[#allocation2 + $0x40] sm:$0xff] %v8667_v7   ;;  %8854 = vpow2.f32 %v7011_v26  ;;  %v1555_v18 = vmul.f32 %v1342_v39, %v9607_v30  ;;  %v817_v42 = vsub.f32 1.0, %v816_v38  ;;  %v824_v43 = vand.u32 2147483647, %v9734_v49  ;;  %v8851_v45 = vpop.eup %8850  ;;  %vm9828_vm12 = vmor %vm291_vm7, %vm292_vm10  ;;  %v8418_v38 = vld [vmem:[%s13505_s2 + $0x50] sm:$0xff] }
  0xcc   :  { %8856 = vpow2.f32 %v7091_v23  ;;  %vm821_vm11 = vweird.f32 %v9801_v27  ;;  %v826_v46 = vand.u32 2147483648, %v9734_v49  ;;  %v7012_v47 = vmul.f32 -1.442695, %v9821_v44  ;;  %2358 = vmatpush.bf16.msrb.mxu0 %v8418_v38 }
  0xcd   :  { %8858 = vpow2.f32 %v6932_v34  ;;  %v8707_v48 = vpack.c.bf16 %v1555_v18, %v1554_v36  ;;  %vm9832_vm13 = vcmp.eq.f32.partialorder %v295_v11, 8.507059e+37  ;;  %v818_v35 = vmul.f32 %v9801_v27, %v817_v42  ;;  %vm9853_vm14 = vmor %vm820_vm9, %vm821_vm11 }
  0xce   :  { %v9837_v51 = vadd.f32 1.0, %v8851_v45  ;;  %v9841_v53 = vpop.eup %8852  ;;  %v294_v31 = vsel %vm9828_vm12, %v9767_v0, %v290_v41  ;;  %v1353_v56 = vand.u32 2147483647, %v9794_v21  ;;  %8860 = vpow2.f32 %v7012_v47 }
  0xcf   :  { %v7168_v13 = vmul.f32 -1.442695, %v9839_v52  ;;  %8799 = vst [vmem:[#allocation2 + $0x80] sm:$0xff] %v8707_v48   ;;  %v298_v40 = vor.u32 1.1754944e-38, %v297_v25  ;;  %v819_v57 = vadd.f32 %v9801_v27, %v818_v35  ;;  %v1345_v54 = vmul.f32 %v9841_v53, %v9794_v21  ;;  %v9885_v9 = vld [vmem:[#allocation2] sm:$0xff] }
  0xd0   :  { %8862 = vrcp.f32 %v9837_v51  ;;  %vm9863_vm15 = vcmp.eq.f32.partialorder %v824_v43, 8.507059e+37  ;;  %v827_v63 = vor.u32 1.1754944e-38, %v826_v46  ;;  %v1355_v49 = vand.u32 2147483648, %v9794_v21  ;;  %2466 = vmatmul.bf16.vlgmr.msrb.gmra.mxu1 %v9885_v9 }
  0xd1   :  { %v8855_v60 = vpop.eup %8854  ;;  %8864 = vpow2.f32 %v7168_v13  ;;  %v299_v1 = vsel %vm9832_vm13, %v298_v40, %v294_v31  ;;  %v1346_v2 = vsub.f32 1.0, %v1345_v54  ;;  %vm1349_vm0 = vweird.f32 %v9794_v21  ;;  %v8433_v13 = vld [vmem:[%s13505_s2 + $0x88] sm:$0xff] }
  0xd2   :  { %v8857_v0 = vpop.eup %8856  ;;  %v9871_v62 = vadd.f32 1.0, %v8855_v60  ;;  %v823_v4 = vsel %vm9853_vm14, %v9801_v27, %v819_v57  ;;  %vm9878_vm1 = vcmp.eq.f32.partialorder %v1353_v56, 8.507059e+37  ;;  %v310_v6 = vand.u32 2147483647, %v9837_v51  ;;  %2642 = vmatpush.bf16.msrb.mxu2 %v8433_v13 }
  0xd3   :  { %v8859_v3 = vpop.eup %8858  ;;  %v9883_v8 = vadd.f32 1.0, %v8857_v0  ;;  %v1347_v11 = vmul.f32 %v9841_v53, %v1346_v2  ;;  %vm1350_vm2 = vweird.f32 %v9841_v53  ;;  %v312_v16 = vand.u32 2147483648, %v9837_v51 }
  0xd4   :  { %8866 = vrcp.f32 %v9871_v62  ;;  %v8861_v17 = vpop.eup %8860  ;;  %v9892_v10 = vmul.f32 %v299_v1, %v9610_v33  ;;  %v1356_v19 = vor.u32 1.1754944e-38, %v1355_v49  ;;  %v9896_v24 = vmul.f32 -1.442695, %v9873_v20  ;;  %v9905_v33 = vpop.f32.mrf.mxu2  ;;  %vm9911_vm4 = vmor %vm1349_vm0, %vm1350_vm2 }
  0xd5   :  { %8868 = vrcp.f32 %v9883_v8  ;;  %v828_v26 = vsel %vm9863_vm15, %v827_v63, %v823_v4  ;;  %v1348_v23 = vadd.f32 %v9841_v53, %v1347_v11  ;;  %vm306_vm3 = vweird.f32 %v9837_v51 }
  0xd6   :  { %v8863_v25 = vpop.eup %8862  ;;  %v9903_v27 = vadd.f32 1.0, %v8859_v3  ;;  %vm9916_vm5 = vcmp.eq.f32.partialorder %v310_v6, 8.507059e+37  ;;  %v839_v36 = vand.u32 2147483647, %v9871_v62  ;;  %v7092_v37 = vmul.f32 -1.442695, %v9905_v33 }
  0xd7   :  { %v8865_v7 = vpop.eup %8864  ;;  %v302_v29 = vmul.f32 %v8863_v25, %v9837_v51  ;;  %v313_v39 = vor.u32 1.1754944e-38, %v312_v16  ;;  %v841_v21 = vand.u32 2147483648, %v9871_v62  ;;  %v1368_v41 = vand.u32 2147483647, %v9883_v8 }
  0xd8   :  { %8870 = vrcp.f32 %v9903_v27  ;;  %v9929_v18 = vmul.f32 %v828_v26, %v9644_v55  ;;  %vm835_vm6 = vweird.f32 %v9871_v62  ;;  %vm1364_vm7 = vweird.f32 %v9883_v8 }
  0xd9   :  { %v303_v42 = vsub.f32 1.0, %v302_v29  ;;  %v1352_v45 = vsel %vm9911_vm4, %v9841_v53, %v1348_v23  ;;  %v1370_v46 = vand.u32 2147483648, %v9883_v8  ;;  %v9937_v47 = vadd.f32 1.0, %v8861_v17 }
  0xda   :  { %v8867_v43 = vpop.eup %8866  ;;  %v9939_v48 = vadd.f32 1.0, %v8865_v7  ;;  %vm307_vm8 = vweird.f32 %v8863_v25  ;;  %vm9942_vm9 = vcmp.eq.f32.partialorder %v839_v36, 8.507059e+37  ;;  %v842_v31 = vor.u32 1.1754944e-38, %v841_v21 }
  0xdb   :  { %v8869_v50 = vpop.eup %8868  ;;  %v304_v55 = vmul.f32 %v8863_v25, %v303_v42  ;;  %v831_v30 = vmul.f32 %v8867_v43, %v9871_v62  ;;  %vm9947_vm10 = vcmp.eq.f32.partialorder %v1368_v41, 8.507059e+37  ;;  %8872 = vrcp.f32 %v9937_v47  ;;  %vm308_vm12 = vmor %vm306_vm3, %vm307_vm8  ;;  %v10016_v42 = vpop.f32.mrf.mxu0 }
  0xdc   :  { %v1360_v56 = vmul.f32 %v8869_v50, %v9883_v8  ;;  %v1357_v40 = vsel %vm9878_vm1, %v1356_v19, %v1352_v45  ;;  %vm836_vm11 = vweird.f32 %v8867_v43  ;;  %vm1365_vm13 = vweird.f32 %v8869_v50  ;;  %v9989_v19 = vpop.f32.mrf.mxu1  ;;  %v10042_v53 = vpop.f32.mrf.mxu2 }
  0xdd   :  { %v305_v57 = vadd.f32 %v8863_v25, %v304_v55  ;;  %v832_v58 = vsub.f32 1.0, %v831_v30  ;;  %v1371_v60 = vor.u32 1.1754944e-38, %v1370_v46  ;;  %8874 = vrcp.f32 %v9939_v48  ;;  %vm9970_vm14 = vmor %vm835_vm6, %vm836_vm11 }
  0xde   :  { %v9957_v54 = vpop.eup %8870  ;;  %v1361_v59 = vsub.f32 1.0, %v1360_v56  ;;  %v325_v0 = vand.u32 2147483647, %v9903_v27  ;;  %v1556_v1 = vmul.f32 %v1357_v40, %v9687_v15  ;;  %v327_v4 = vand.u32 2147483648, %v9903_v27  ;;  %vm9979_vm15 = vmor %vm1364_vm7, %vm1365_vm13 }
  0xdf   :  { %v309_v61 = vsel %vm308_vm12, %v8863_v25, %v305_v57  ;;  %v833_v63 = vmul.f32 %v8867_v43, %v832_v58  ;;  %v317_v49 = vmul.f32 %v9957_v54, %v9903_v27  ;;  %vm321_vm0 = vweird.f32 %v9903_v27 }
  0xe0   :  { %v314_v2 = vsel %vm9916_vm5, %v313_v39, %v309_v61  ;;  %v1362_v3 = vmul.f32 %v8869_v50, %v1361_v59  ;;  %vm850_vm1 = vweird.f32 %v9937_v47  ;;  %v854_v17 = vand.u32 2147483647, %v9937_v47 }
  0xe1   :  { %v499_v5 = vmul.f32 %v314_v2, %v9708_v32  ;;  %v834_v6 = vadd.f32 %v8867_v43, %v833_v63  ;;  %v318_v11 = vsub.f32 1.0, %v317_v49  ;;  %v9985_v62 = vpop.eup %8872  ;;  %v856_v32 = vand.u32 2147483648, %v9937_v47 }
  0xe2   :  { %v1363_v16 = vadd.f32 %v8869_v50, %v1362_v3  ;;  %8876 = vpow2.f32 %v7092_v37  ;;  %v846_v23 = vmul.f32 %v9985_v62, %v9937_v47  ;;  %vm322_vm2 = vweird.f32 %v9957_v54 }
  0xe3   :  { %v8632_v8 = vpack.c.bf16 %v499_v5, %v9892_v10  ;;  %v838_v25 = vsel %vm9970_vm14, %v8867_v43, %v834_v6  ;;  %v319_v26 = vmul.f32 %v9957_v54, %v318_v11  ;;  %v9997_v7 = vpop.eup %8874  ;;  %vm1848_vm3 = vweird.f32 %v9939_v48  ;;  %v10005_v10 = vpop.f32.mrf.mxu3  ;;  %vm10048_vm7 = vmor %vm321_vm0, %vm322_vm2 }
  0xe4   :  { %v843_v28 = vsel %vm9942_vm9, %v842_v31, %v838_v25  ;;  %v1367_v29 = vsel %vm9979_vm15, %v8869_v50, %v1363_v16  ;;  %v847_v37 = vsub.f32 1.0, %v846_v23  ;;  %v7169_v38 = vmul.f32 -1.442695, %v10005_v10 }
  0xe5   :  { %8784 = vst [vmem:[#allocation2 + $0x8] sm:$0xff] %v8632_v8   ;;  %v1028_v34 = vmul.f32 %v843_v28, %v9751_v14  ;;  %v1372_v36 = vsel %vm9947_vm10, %v1371_v60, %v1367_v29  ;;  %vm851_vm4 = vweird.f32 %v9985_v62  ;;  %v1844_v21 = vmul.f32 %v9997_v7, %v9939_v48  ;;  %v8417_v14 = vld [vmem:[%s13505_s2 + $0x48] sm:$0xff]  ;;  %v8416_v60 = vld [vmem:[%s13505_s2 + $0x40] sm:$0xff] }
  0xe6   :  { %v1557_v39 = vmul.f32 %v1372_v36, %v9796_v22  ;;  %v1852_v41 = vand.u32 2147483647, %v9939_v48  ;;  %v320_v45 = vadd.f32 %v9957_v54, %v319_v26  ;;  %v848_v46 = vmul.f32 %v9985_v62, %v847_v37  ;;  %v8450_v22 = vld [vmem:[%s13505_s2 + $0xd0] sm:$0xff]  ;;  %2359 = vmatpush.bf16.msrb.mxu0 %v8417_v14  ;;  %vm10035_vm6 = vmor %vm850_vm1, %vm851_vm4 }
  0xe7   :  { %v8672_v43 = vpack.c.bf16 %v1028_v34, %v9929_v18  ;;  %8878 = vpow2.f32 %v9896_v24  ;;  %v1845_v30 = vsub.f32 1.0, %v1844_v21  ;;  %vm1849_vm5 = vweird.f32 %v9997_v7  ;;  %2907 = vmatpush.bf16.msrb.mxu3 %v8450_v22 }
  0xe8   :  { %v8877_v50 = vpop.eup %8876  ;;  %v8712_v55 = vpack.c.bf16 %v1557_v39, %v1556_v1  ;;  %v7013_v35 = vmul.f32 -1.442695, %v9989_v19  ;;  %v849_v18 = vadd.f32 %v9985_v62, %v848_v46  ;;  %v1854_v31 = vand.u32 2147483648, %v9939_v48  ;;  %vm10063_vm9 = vmor %vm1848_vm3, %vm1849_vm5  ;;  %v10075_v1 = vpop.f32.mrf.mxu1 }
  0xe9   :  { %8792 = vst [vmem:[#allocation2 + $0x48] sm:$0xff] %v8672_v43   ;;  %v10040_v56 = vadd.f32 1.0, %v8877_v50  ;;  %8880 = vpow2.f32 %v7169_v38  ;;  %v1846_v47 = vmul.f32 %v9997_v7, %v1845_v30  ;;  %v7093_v40 = vmul.f32 -1.442695, %v10042_v53 }
  0xea   :  { %8800 = vst [vmem:[#allocation2 + $0x88] sm:$0xff] %v8712_v55   ;;  %8882 = vpow2.f32 %v7013_v35  ;;  %v6934_v57 = vmul.f32 -1.442695, %v10016_v42  ;;  %vm10055_vm8 = vcmp.eq.f32.partialorder %v854_v17, 8.507059e+37  ;;  %v857_v59 = vor.u32 1.1754944e-38, %v856_v32  ;;  %v8449_v55 = vld [vmem:[%s13505_s2 + $0xc8] sm:$0xff]  ;;  %2360 = vmatpush.bf16.msrb.mxu0 %v8416_v60 }
  0xeb   :  { %8884 = vrcp.f32 %v10040_v56  ;;  %v324_v61 = vsel %vm10048_vm7, %v9957_v54, %v320_v45  ;;  %v853_v63 = vsel %vm10035_vm6, %v9985_v62, %v849_v18  ;;  %v1847_v49 = vadd.f32 %v9997_v7, %v1846_v47  ;;  %v10092_v27 = vpop.f32.mrf.mxu3  ;;  %2908 = vmatpush.bf16.msrb.mxu3 %v8449_v55 }
  0xec   :  { %8886 = vpow2.f32 %v7093_v40  ;;  %v328_v2 = vor.u32 1.1754944e-38, %v327_v4  ;;  %v1855_v51 = vor.u32 1.1754944e-38, %v1854_v31  ;;  %v7014_v3 = vmul.f32 -1.442695, %v10075_v1  ;;  %v10147_v24 = vld [vmem:[#allocation2 + $0x8] sm:$0xff] }
  0xed   :  { %v8879_v48 = vpop.eup %8878  ;;  %8888 = vpow2.f32 %v6934_v57  ;;  %vm326_vm10 = vcmp.eq.f32.partialorder %v325_v0, 8.507059e+37  ;;  %v1851_v54 = vsel %vm10063_vm9, %v9997_v7, %v1847_v49  ;;  %vm1853_vm11 = vcmp.eq.f32.partialorder %v1852_v41, 8.507059e+37  ;;  %v10094_v0 = vpop.f32.mrf.mxu0  ;;  %v8432_v41 = vld [vmem:[%s13505_s2 + $0x80] sm:$0xff]  ;;  %v8424_v31 = vld [vmem:[#allocation2 + $0x8] sm:$0xff]  ;;  %2471 = vmatmul.bf16.gmra.mxu1 %v10147_v24 }
  0xee   :  { %v10085_v5 = vadd.f32 1.0, %v8879_v48  ;;  %v329_v15 = vsel %vm326_vm10, %v328_v2, %v324_v61  ;;  %v858_v11 = vsel %vm10055_vm8, %v857_v59, %v853_v63  ;;  %v1385_v4 = vand.u32 2147483648, %v10040_v56  ;;  %2643 = vmatpush.bf16.msrb.mxu2 %v8432_v41 }
  0xef   :  { %v8881_v6 = vpop.eup %8880  ;;  %8890 = vpow2.f32 %v7014_v3  ;;  %v1383_v16 = vand.u32 2147483647, %v10040_v56  ;;  %v1856_v32 = vsel %vm1853_vm11, %v1855_v51, %v1851_v54  ;;  %v7170_v26 = vmul.f32 -1.442695, %v10092_v27 }
  0xf0   :  { %v8883_v62 = vpop.eup %8882  ;;  %8892 = vrcp.f32 %v10085_v5  ;;  %v10100_v25 = vadd.f32 1.0, %v8881_v6  ;;  %v10104_v7 = vmul.f32 %v329_v15, %v9781_v12  ;;  %v10107_v28 = vmul.f32 %v858_v11, %v9821_v44 }
  0xf1   :  { %v10096_v17 = vpop.eup %8884  ;;  %v10098_v8 = vadd.f32 1.0, %v8883_v62  ;;  %vm1379_vm12 = vweird.f32 %v10040_v56  ;;  %v10112_v36 = vor.u32 1.1754944e-38, %v1385_v4  ;;  %v340_v37 = vand.u32 2147483647, %v10085_v5  ;;  %2644 = vmatmul.bf16.vlgmr.msrb.gmra.mxu2 %v8424_v31 }
  0xf2   :  { %v8887_v23 = vpop.eup %8886  ;;  %v1375_v29 = vmul.f32 %v10096_v17, %v10040_v56  ;;  %v6935_v38 = vmul.f32 -1.442695, %v10094_v0  ;;  %v10118_v12 = vmul.f32 %v1856_v32, %v9839_v52  ;;  %vm10120_vm13 = vcmp.eq.f32.partialorder %v1383_v16, 8.507059e+37 }
  0xf3   :  { %v8889_v34 = vpop.eup %8888  ;;  %8894 = vrcp.f32 %v10098_v8  ;;  %v342_v21 = vand.u32 2147483648, %v10085_v5  ;;  %vm1380_vm14 = vweird.f32 %v10096_v17  ;;  %vm336_vm15 = vweird.f32 %v10085_v5 }
  0xf4   :  { %v1376_v39 = vsub.f32 1.0, %v1375_v29  ;;  %8896 = vrcp.f32 %v10100_v25  ;;  %v10131_v52 = vadd.f32 1.0, %v8887_v23  ;;  %v869_v46 = vand.u32 2147483647, %v10098_v8  ;;  %vm10156_vm2 = vmor %vm1379_vm12, %vm1380_vm14 }
  0xf5   :  { %v8891_v14 = vpop.eup %8890  ;;  %8898 = vpow2.f32 %v7170_v26  ;;  %v871_v22 = vand.u32 2147483648, %v10098_v8  ;;  %v10136_v50 = vadd.f32 1.0, %v8889_v34  ;;  %vm10142_vm0 = vcmp.eq.f32.partialorder %v340_v37, 8.507059e+37 }
  0xf6   :  { %v8893_v43 = vpop.eup %8892  ;;  %v1377_v45 = vmul.f32 %v10096_v17, %v1376_v39  ;;  %v1867_v18 = vand.u32 2147483647, %v10100_v25  ;;  %8900 = vpow2.f32 %v6935_v38  ;;  %v343_v47 = vor.u32 1.1754944e-38, %v342_v21 }
  0xf7   :  { %v332_v30 = vmul.f32 %v8893_v43, %v10085_v5  ;;  %vm865_vm1 = vweird.f32 %v10098_v8  ;;  %8902 = vrcp.f32 %v10131_v52  ;;  %vm1863_vm3 = vweird.f32 %v10100_v25 }
  0xf8   :  { %v1378_v13 = vadd.f32 %v10096_v17, %v1377_v45  ;;  %8904 = vrcp.f32 %v10136_v50  ;;  %v10162_v59 = vadd.f32 1.0, %v8891_v14  ;;  %vm10169_vm4 = vcmp.eq.f32.partialorder %v869_v46, 8.507059e+37 }
  0xf9   :  { %v8895_v40 = vpop.eup %8894  ;;  %v333_v58 = vsub.f32 1.0, %v332_v30  ;;  %v872_v49 = vor.u32 1.1754944e-38, %v871_v22  ;;  %v1869_v48 = vand.u32 2147483648, %v10100_v25  ;;  %vm337_vm5 = vweird.f32 %v8893_v43 }
  0xfa   :  { %v8897_v61 = vpop.eup %8896  ;;  %v861_v56 = vmul.f32 %v8895_v40, %v10098_v8  ;;  %vm10175_vm6 = vcmp.eq.f32.partialorder %v1867_v18, 8.507059e+37  ;;  %v1382_v6 = vsel %vm10156_vm2, %v10096_v17, %v1378_v13  ;;  %vm866_vm7 = vweird.f32 %v8895_v40  ;;  %vm338_vm9 = vmor %vm336_vm15, %vm337_vm5  ;;  %v10227_v13 = vpop.f32.mrf.mxu2 }
  0xfb   :  { %v8899_v2 = vpop.eup %8898  ;;  %v334_v51 = vmul.f32 %v8893_v43, %v333_v58  ;;  %v1859_v3 = vmul.f32 %v8897_v61, %v10100_v25  ;;  %v1398_v11 = vand.u32 2147483647, %v10131_v52  ;;  %vm1864_vm8 = vweird.f32 %v8897_v61  ;;  %vm10196_vm11 = vmor %vm865_vm1, %vm866_vm7 }
  0xfc   :  { %v862_v15 = vsub.f32 1.0, %v861_v56  ;;  %v8901_v4 = vpop.eup %8900  ;;  %8906 = vrcp.f32 %v10162_v59  ;;  %v1870_v23 = vor.u32 1.1754944e-38, %v1869_v48  ;;  %vm1394_vm10 = vweird.f32 %v10131_v52  ;;  %vm10206_vm12 = vmor %vm1863_vm3, %vm1864_vm8 }
  0xfd   :  { %v335_v62 = vadd.f32 %v8893_v43, %v334_v51  ;;  %v1860_v16 = vsub.f32 1.0, %v1859_v3  ;;  %v8903_v32 = vpop.eup %8902  ;;  %v1400_v17 = vand.u32 2147483648, %v10131_v52  ;;  %v1387_v34 = vsel %vm10120_vm13, %v10112_v36, %v1382_v6  ;;  %v10268_v6 = vpop.f32.mrf.mxu1 }
  0xfe   :  { %v863_v26 = vmul.f32 %v8895_v40, %v862_v15  ;;  %v10188_v29 = vpop.eup %8904  ;;  %v1390_v39 = vmul.f32 %v8903_v32, %v10131_v52  ;;  %vm10210_vm13 = vcmp.eq.f32.partialorder %v1398_v11, 8.507059e+37  ;;  %vm1395_vm14 = vweird.f32 %v8903_v32 }
  0xff   :  { %v339_v37 = vsel %vm338_vm9, %v8893_v43, %v335_v62  ;;  %v1861_v5 = vmul.f32 %v8897_v61, %v1860_v16  ;;  %v347_v44 = vmul.f32 %v10188_v29, %v10136_v50  ;;  %v1558_v46 = vmul.f32 %v1387_v34, %v9905_v33  ;;  %vm10234_vm15 = vmor %vm1394_vm10, %vm1395_vm14 }
 0x100   :  { %v344_v21 = vsel %vm10142_vm0, %v343_v47, %v339_v37  ;;  %v864_v41 = vadd.f32 %v8895_v40, %v863_v26  ;;  %v1391_v45 = vsub.f32 1.0, %v1390_v39  ;;  %v1401_v22 = vor.u32 1.1754944e-38, %v1400_v17 }
 0x101   :  { %v501_v14 = vmul.f32 %v344_v21, %v9873_v20  ;;  %v1862_v43 = vadd.f32 %v8897_v61, %v1861_v5  ;;  %v348_v55 = vsub.f32 1.0, %v347_v44  ;;  %vm352_vm0 = vweird.f32 %v10188_v29 }
 0x102   :  { %v868_v25 = vsel %vm10196_vm11, %v8895_v40, %v864_v41  ;;  %v10220_v30 = vpop.eup %8906  ;;  %v1392_v31 = vmul.f32 %v8903_v32, %v1391_v45  ;;  %v10246_v63 = vadd.f32 1.0, %v8899_v2  ;;  %v7094_v51 = vmul.f32 -1.442695, %v10227_v13  ;;  %v10282_v17 = vpop.f32.mrf.mxu2 }
 0x103   :  { %v8637_v35 = vpack.c.bf16 %v501_v14, %v10104_v7  ;;  %v873_v18 = vsel %vm10169_vm4, %v872_v49, %v868_v25  ;;  %v1866_v20 = vsel %vm10206_vm12, %v8897_v61, %v1862_v43  ;;  %v349_v7 = vmul.f32 %v10188_v29, %v348_v55 }
 0x104   :  { %v1030_v33 = vmul.f32 %v873_v18, %v9989_v19  ;;  %v1871_v47 = vsel %vm10175_vm6, %v1870_v23, %v1866_v20  ;;  %v876_v57 = vmul.f32 %v10220_v30, %v10162_v59  ;;  %v1393_v60 = vadd.f32 %v8903_v32, %v1392_v31 }
 0x105   :  { %8785 = vst [vmem:[#allocation2 + $0x10] sm:$0xff] %v8637_v35   ;;  %v2084_v58 = vmul.f32 %v1871_v47, %v10005_v10  ;;  %v357_v19 = vand.u32 2147483648, %v10136_v50  ;;  %v350_v52 = vadd.f32 %v10188_v29, %v349_v7  ;;  %v10252_v10 = vadd.f32 1.0, %v8901_v4  ;;  %v10324_v18 = vpop.f32.mrf.mxu1 }
 0x106   :  { %v8677_v61 = vpack.c.bf16 %v1030_v33, %v10107_v28  ;;  %v877_v56 = vsub.f32 1.0, %v876_v57  ;;  %v1397_v48 = vsel %vm10234_vm15, %v8903_v32, %v1393_v60  ;;  %vm351_vm1 = vweird.f32 %v10136_v50 }
 0x107   :  { %v8747_v49 = vpack.c.bf16 %v2084_v58, %v10118_v12  ;;  %v1402_v3 = vsel %vm10210_vm13, %v1401_v22, %v1397_v48  ;;  %v355_v28 = vand.u32 2147483647, %v10136_v50  ;;  %8908 = vrcp.f32 %v10246_v63  ;;  %vm10262_vm2 = vmor %vm351_vm1, %vm352_vm0 }
 0x108   :  { %8793 = vst [vmem:[#allocation2 + $0x50] sm:$0xff] %v8677_v61   ;;  %v1559_v12 = vmul.f32 %v1402_v3, %v10042_v53  ;;  %v878_v54 = vmul.f32 %v10220_v30, %v877_v56  ;;  %vm880_vm3 = vweird.f32 %v10162_v59  ;;  %v354_v50 = vsel %vm10262_vm2, %v10188_v29, %v350_v52  ;;  %v10274_v53 = vpop.f32.mrf.mxu3  ;;  %v10284_v29 = vpop.f32.mrf.mxu0 }
 0x109   :  { %8807 = vst [vmem:[#allocation2 + $0xc0] sm:$0xff] %v8747_v49   ;;  %v358_v15 = vor.u32 1.1754944e-38, %v357_v19  ;;  %v884_v11 = vand.u32 2147483647, %v10162_v59  ;;  %8910 = vpow2.f32 %v7094_v51  ;;  %vm881_vm4 = vweird.f32 %v10220_v30 }
 0x10a   :  { %v8717_v4 = vpack.c.bf16 %v1559_v12, %v1558_v46  ;;  %v886_v62 = vand.u32 2147483648, %v10162_v59  ;;  %8912 = vrcp.f32 %v10252_v10  ;;  %vm356_vm5 = vcmp.eq.f32.partialorder %v355_v28, 8.507059e+37  ;;  %vm10290_vm6 = vmor %vm880_vm3, %vm881_vm4  ;;  %v10357_v2 = vpop.f32.mrf.mxu2 }
 0x10b   :  { %v359_v16 = vsel %vm356_vm5, %v358_v15, %v354_v50  ;;  %v879_v32 = vadd.f32 %v10220_v30, %v878_v54  ;;  %v7015_v26 = vmul.f32 -1.442695, %v10268_v6  ;;  %v7171_v23 = vmul.f32 -1.442695, %v10274_v53 }
 0x10c   :  { %8801 = vst [vmem:[#allocation2 + $0x90] sm:$0xff] %v8717_v4   ;;  %v2232_v38 = vshll.u32 %v9885_v9, 16  ;;  %v1882_v5 = vand.u32 2147483647, %v10246_v63  ;;  %v7095_v39 = vmul.f32 -1.442695, %v10282_v17  ;;  %v10304_v8 = vmul.f32 %v359_v16, %v10016_v42 }
 0x10d   :  { %v10286_v34 = vpop.eup %8908  ;;  %vm10297_vm7 = vcmp.eq.f32.partialorder %v884_v11, 8.507059e+37  ;;  %v887_v41 = vor.u32 1.1754944e-38, %v886_v62  ;;  %8914 = vpow2.f32 %v7015_v26  ;;  %vm1878_vm8 = vweird.f32 %v10246_v63 }
 0x10e   :  { %v1874_v36 = vmul.f32 %v10286_v34, %v10246_v63  ;;  %8916 = vpow2.f32 %v7171_v23  ;;  %v6936_v44 = vmul.f32 -1.442695, %v10284_v29  ;;  %v883_v43 = vsel %vm10290_vm6, %v10220_v30, %v879_v32 }
 0x10f   :  { %v8911_v59 = vpop.eup %8910  ;;  %v1884_v46 = vand.u32 2147483648, %v10246_v63  ;;  %vm10314_vm9 = vcmp.eq.f32.partialorder %v1882_v5, 8.507059e+37  ;;  %v370_v55 = vand.u32 2147483647, %v10252_v10  ;;  %8918 = vpow2.f32 %v7095_v39 }
 0x110   :  { %v8913_v14 = vpop.eup %8912  ;;  %v1875_v45 = vsub.f32 1.0, %v1874_v36  ;;  %v10312_v25 = vadd.f32 1.0, %v8911_v59  ;;  %vm1879_vm10 = vweird.f32 %v10286_v34  ;;  %v372_v30 = vand.u32 2147483648, %v10252_v10  ;;  %v10329_v47 = vpop.f32.mrf.mxu3 }
 0x111   :  { %v362_v42 = vmul.f32 %v8913_v14, %v10252_v10  ;;  %v888_v20 = vsel %vm10297_vm7, %v887_v41, %v883_v43  ;;  %v7016_v33 = vmul.f32 -1.442695, %v10324_v18  ;;  %v1885_v57 = vor.u32 1.1754944e-38, %v1884_v46  ;;  %vm10338_vm12 = vmor %vm1878_vm8, %vm1879_vm10  ;;  %v10353_v51 = vpop.f32.mrf.mxu0  ;;  %v10500_v46 = vpop.f32.mrf.mxu1 }
 0x112   :  { %v1876_v35 = vmul.f32 %v10286_v34, %v1875_v45  ;;  %8920 = vrcp.f32 %v10312_v25  ;;  %vm366_vm11 = vweird.f32 %v10252_v10  ;;  %v7172_v58 = vmul.f32 -1.442695, %v10329_v47 }
 0x113   :  { %v363_v31 = vsub.f32 1.0, %v362_v42  ;;  %8922 = vpow2.f32 %v6936_v44  ;;  %v8915_v40 = vpop.eup %8914  ;;  %vm367_vm13 = vweird.f32 %v8913_v14  ;;  %v10345_v56 = vmul.f32 %v888_v20, %v10075_v1  ;;  %v8448_v20 = vld [vmem:[%s13505_s2 + $0xc0] sm:$0xff] }
 0x114   :  { %v1877_v7 = vadd.f32 %v10286_v34, %v1876_v35  ;;  %v8917_v60 = vpop.eup %8916  ;;  %v10342_v52 = vadd.f32 1.0, %v8915_v40  ;;  %8924 = vpow2.f32 %v7016_v33  ;;  %vm10347_vm14 = vcmp.eq.f32.partialorder %v370_v55, 8.507059e+37  ;;  %vm368_vm15 = vmor %vm366_vm11, %vm367_vm13  ;;  %2909 = vmatpush.bf16.msrb.mxu3 %v8448_v20 }
 0x115   :  { %v364_v61 = vmul.f32 %v8913_v14, %v363_v31  ;;  %v10351_v48 = vadd.f32 1.0, %v8917_v60  ;;  %v2230_v63 = vshrl.u32 %v9885_v9, 16  ;;  %v8919_v3 = vpop.eup %8918  ;;  %v373_v12 = vor.u32 1.1754944e-38, %v372_v30 }
 0x116   :  { %8926 = vrcp.f32 %v10342_v52  ;;  %v2234_v54 = vrot.slane %v2232_v38, 1  ;;  %v1881_v50 = vsel %vm10338_vm12, %v10286_v34, %v1877_v7  ;;  %v1415_v15 = vand.u32 2147483648, %v10312_v25 }
 0x117   :  { %v365_v28 = vadd.f32 %v8913_v14, %v364_v61  ;;  %8928 = vrcp.f32 %v10351_v48  ;;  %v7096_v9 = vmul.f32 -1.442695, %v10357_v2  ;;  %v10373_v16 = vmul.f32 -1.442695, %v10353_v51 }
 0x118   :  { %v10359_v1 = vpop.eup %8920  ;;  %8930 = vpow2.f32 %v7172_v58  ;;  %vm1409_vm0 = vweird.f32 %v10312_v25  ;;  %v1413_v32 = vand.u32 2147483647, %v10312_v25  ;;  %v2237_v26 = vshll.u32 %v10147_v24, 16 }
 0x119   :  { %v8923_v11 = vpop.eup %8922  ;;  %v1405_v4 = vmul.f32 %v10359_v1, %v10312_v25  ;;  %v369_v62 = vsel %vm368_vm15, %v8913_v14, %v365_v28  ;;  %v1886_v34 = vsel %vm10314_vm9, %v1885_v57, %v1881_v50  ;;  %v10383_v5 = vadd.f32 1.0, %v8919_v3  ;;  %v10395_v14 = vld [vmem:[#allocation2 + $0x10] sm:$0xff]  ;;  %v10539_v50 = vpop.f32.mrf.mxu3 }
 0x11a   :  { %v374_v10 = vsel %vm10347_vm14, %v373_v12, %v369_v62  ;;  %v8925_v23 = vpop.eup %8924  ;;  %v10385_v39 = vor.u32 1.1754944e-38, %v1415_v15  ;;  %v10387_v21 = vadd.f32 1.0, %v8923_v11  ;;  %8932 = vpow2.f32 %v7096_v9  ;;  %2476 = vmatmul.bf16.gmra.mxu1 %v10395_v14 }
 0x11b   :  { %v1406_v37 = vsub.f32 1.0, %v1405_v4  ;;  %v503_v38 = vmul.f32 %v374_v10, %v10094_v0  ;;  %v10389_v41 = vor.u32 %v2234_v54, %v2230_v63  ;;  %vm895_vm1 = vweird.f32 %v10342_v52  ;;  %v8425_v0 = vld [vmem:[#allocation2 + $0x10] sm:$0xff] }
 0x11c   :  { %v8927_v36 = vpop.eup %8926  ;;  %8934 = vrcp.f32 %v10383_v5  ;;  %v10398_v45 = vmul.f32 %v1886_v34, %v10092_v27  ;;  %vm10400_vm2 = vcmp.eq.f32.partialorder %v1413_v32, 8.507059e+37  ;;  %v899_v42 = vand.u32 2147483647, %v10342_v52  ;;  %2649 = vmatmul.bf16.gmra.mxu2 %v8425_v0 }
 0x11d   :  { %v1407_v59 = vmul.f32 %v10359_v1, %v1406_v37  ;;  %v8642_v44 = vpack.c.bf16 %v503_v38, %v10304_v8  ;;  %v8929_v43 = vpop.eup %8928  ;;  %v891_v22 = vmul.f32 %v8927_v36, %v10342_v52  ;;  %v10406_v8 = vadd.f32 1.0, %v8925_v23 }
 0x11e   :  { %v8931_v55 = vpop.eup %8930  ;;  %vm1410_vm3 = vweird.f32 %v10359_v1  ;;  %v901_v35 = vand.u32 2147483648, %v10342_v52  ;;  %v1889_v30 = vmul.f32 %v8929_v43, %v10351_v48  ;;  %v1897_v27 = vand.u32 2147483647, %v10351_v48 }
 0x11f   :  { %8786 = vst [vmem:[#allocation2 + $0x18] sm:$0xff] %v8642_v44   ;;  %v892_v31 = vsub.f32 1.0, %v891_v22  ;;  %vm896_vm4 = vweird.f32 %v8927_v36  ;;  %v1899_v33 = vand.u32 2147483648, %v10351_v48  ;;  %8936 = vrcp.f32 %v10387_v21  ;;  %vm10424_vm7 = vmor %vm1409_vm0, %vm1410_vm3 }
 0x120   :  { %v1408_v40 = vadd.f32 %v10359_v1, %v1407_v59  ;;  %v1890_v7 = vsub.f32 1.0, %v1889_v30  ;;  %vm1893_vm5 = vweird.f32 %v10351_v48  ;;  %vm1894_vm6 = vweird.f32 %v8929_v43  ;;  %v8933_v57 = vpop.eup %8932  ;;  %vm10438_vm9 = vmor %vm895_vm1, %vm896_vm4 }
 0x121   :  { %v893_v60 = vmul.f32 %v8927_v36, %v892_v31  ;;  %vm10428_vm8 = vcmp.eq.f32.partialorder %v899_v42, 8.507059e+37  ;;  %8938 = vrcp.f32 %v10406_v8  ;;  %v10433_v61 = vadd.f32 1.0, %v8931_v55  ;;  %vm10450_vm11 = vmor %vm1893_vm5, %vm1894_vm6 }
 0x122   :  { %v8935_v49 = vpop.eup %8934  ;;  %v902_v25 = vor.u32 1.1754944e-38, %v901_v35  ;;  %v1891_v3 = vmul.f32 %v8929_v43, %v1890_v7  ;;  %vm10442_vm10 = vcmp.eq.f32.partialorder %v1897_v27, 8.507059e+37  ;;  %v1428_v12 = vand.u32 2147483647, %v10383_v5 }
 0x123   :  { %v894_v54 = vadd.f32 %v8927_v36, %v893_v60  ;;  %v1900_v52 = vor.u32 1.1754944e-38, %v1899_v33  ;;  %v1420_v15 = vmul.f32 %v8935_v49, %v10383_v5  ;;  %v1430_v9 = vand.u32 2147483648, %v10383_v5 }
 0x124   :  { %v1412_v11 = vsel %vm10424_vm7, %v10359_v1, %v1408_v40  ;;  %v1892_v4 = vadd.f32 %v8929_v43, %v1891_v3  ;;  %vm1424_vm12 = vweird.f32 %v10383_v5  ;;  %vm1425_vm13 = vweird.f32 %v8935_v49  ;;  %v10532_v3 = vpop.f32.mrf.mxu2 }
 0x125   :  { %v10460_v62 = vpop.eup %8936  ;;  %v898_v48 = vsel %vm10438_vm9, %v8927_v36, %v894_v54  ;;  %v1421_v32 = vsub.f32 1.0, %v1420_v15  ;;  %v10464_v10 = vadd.f32 1.0, %v8933_v57  ;;  %8940 = vrcp.f32 %v10433_v61  ;;  %vm10489_vm0 = vmor %vm1424_vm12, %vm1425_vm13 }
 0x126   :  { %v903_v23 = vsel %vm10428_vm8, %v902_v25, %v898_v48  ;;  %v1896_v1 = vsel %vm10450_vm11, %v8929_v43, %v1892_v4  ;;  %vm10471_vm14 = vcmp.eq.f32.partialorder %v1428_v12, 8.507059e+37  ;;  %v377_v37 = vmul.f32 %v10460_v62, %v10387_v21 }
 0x127   :  { %v10477_v38 = vpop.eup %8938  ;;  %v1032_v36 = vmul.f32 %v903_v23, %v10268_v6  ;;  %v1901_v59 = vsel %vm10442_vm10, %v1900_v52, %v1896_v1  ;;  %v1422_v44 = vmul.f32 %v8935_v49, %v1421_v32  ;;  %v1431_v0 = vor.u32 1.1754944e-38, %v1430_v9  ;;  %v10541_v52 = vpop.f32.mrf.mxu0 }
 0x128   :  { %vm2228_vm15 = vsmask.f32 7424  ;;  %v1417_v43 = vsel %vm10400_vm2, %v10385_v39, %v1412_v11  ;;  %v2086_v22 = vmul.f32 %v1901_v59, %v10274_v53  ;;  %v378_v6 = vsub.f32 1.0, %v377_v37 }
 0x129   :  { %v906_v55 = vmul.f32 %v10477_v38, %v10406_v8  ;;  %v8682_v35 = vpack.c.bf16 %v1032_v36, %v10345_v56  ;;  %v1423_v30 = vadd.f32 %v8935_v49, %v1422_v44  ;;  %v387_v27 = vand.u32 2147483648, %v10387_v21 }
 0x12a   :  { %8942 = vrcp.f32 %v10464_v10  ;;  %v8752_v53 = vpack.c.bf16 %v2086_v22, %v10398_v45  ;;  %v914_v5 = vand.u32 2147483647, %v10406_v8  ;;  %v10504_v20 = vrot.slane %v2237_v26, 1 }
 0x12b   :  { %v907_v39 = vsub.f32 1.0, %v906_v55  ;;  %v10506_v31 = vpop.eup %8940  ;;  %v1560_v56 = vmul.f32 %v1417_v43, %v10227_v13  ;;  %8794 = vst [vmem:[#allocation2 + $0x58] sm:$0xff] %v8682_v35   ;;  %v1427_v33 = vsel %vm10489_vm0, %v8935_v49, %v1423_v30  ;;  %vm381_vm1 = vweird.f32 %v10387_v21 }
 0x12c   :  { %v916_v45 = vand.u32 2147483648, %v10406_v8  ;;  %8808 = vst [vmem:[#allocation2 + $0xc8] sm:$0xff] %v8752_v53   ;;  %v1432_v40 = vsel %vm10471_vm14, %v1431_v0, %v1427_v33  ;;  %v379_v7 = vmul.f32 %v10460_v62, %v378_v6  ;;  %v385_v26 = vand.u32 2147483647, %v10387_v21  ;;  %v10576_v21 = vpop.f32.mrf.mxu1 }
 0x12d   :  { %v1904_v57 = vmul.f32 %v10506_v31, %v10433_v61  ;;  %v1561_v13 = vmul.f32 %v1432_v40, %v10282_v17  ;;  %v388_v58 = vor.u32 1.1754944e-38, %v387_v27  ;;  %v908_v60 = vmul.f32 %v10477_v38, %v907_v39  ;;  %v10611_v39 = vpop.f32.mrf.mxu2  ;;  %v10619_v40 = vpop.f32.mrf.mxu3 }
 0x12e   :  { %vm910_vm2 = vweird.f32 %v10406_v8  ;;  %vm382_vm3 = vweird.f32 %v10460_v62  ;;  %vm10523_vm4 = vcmp.eq.f32.partialorder %v914_v5, 8.507059e+37  ;;  %vm1908_vm5 = vweird.f32 %v10433_v61 }
 0x12f   :  { %v1905_v49 = vsub.f32 1.0, %v1904_v57  ;;  %v8722_v25 = vpack.c.bf16 %v1561_v13, %v1560_v56  ;;  %vm911_vm6 = vweird.f32 %v10477_v38  ;;  %v917_v17 = vor.u32 1.1754944e-38, %v916_v45  ;;  %vm10564_vm9 = vmor %vm381_vm1, %vm382_vm3 }
 0x130   :  { %v10528_v63 = vpop.eup %8942  ;;  %8944 = vpow2.f32 %v10373_v16  ;;  %v380_v28 = vadd.f32 %v10460_v62, %v379_v7  ;;  %vm1439_vm7 = vweird.f32 %v10464_v10  ;;  %v1443_v54 = vand.u32 2147483647, %v10464_v10  ;;  %vm10551_vm8 = vmor %vm910_vm2, %vm911_vm6  ;;  %v10621_v7 = vpop.f32.mrf.mxu0 }
 0x131   :  { %v1435_v12 = vmul.f32 %v10528_v63, %v10464_v10  ;;  %8802 = vst [vmem:[#allocation2 + $0x98] sm:$0xff] %v8722_v25   ;;  %v909_v15 = vadd.f32 %v10477_v38, %v908_v60  ;;  %v1445_v16 = vand.u32 2147483648, %v10464_v10  ;;  %v1912_v9 = vand.u32 2147483647, %v10433_v61 }
 0x132   :  { %v7017_v11 = vmul.f32 -1.442695, %v10500_v46  ;;  %v1906_v32 = vmul.f32 %v10506_v31, %v1905_v49  ;;  %v2240_v23 = vsel %vm2228_vm15, %v10389_v41, %v10504_v20  ;;  %v7097_v1 = vmul.f32 -1.442695, %v10532_v3 }
 0x133   :  { %v1436_v48 = vsub.f32 1.0, %v1435_v12  ;;  %vm1440_vm10 = vweird.f32 %v10528_v63  ;;  %2361 = vmatmul.bf16.vlgmr.msrb.gmra.mxu0 %v2240_v23  ;;  %v7173_v8 = vmul.f32 -1.442695, %v10539_v50  ;;  %v6938_v37 = vmul.f32 -1.442695, %v10541_v52 }
 0x134   :  { %8946 = vpow2.f32 %v7017_v11  ;;  %v384_v41 = vsel %vm10564_vm9, %v10460_v62, %v380_v28  ;;  %vm1909_vm11 = vweird.f32 %v10506_v31  ;;  %v913_v44 = vsel %vm10551_vm8, %v10477_v38, %v909_v15  ;;  %vm10588_vm12 = vmor %vm1439_vm7, %vm1440_vm10 }
 0x135   :  { %v1437_v36 = vmul.f32 %v10528_v63, %v1436_v48  ;;  %8948 = vpow2.f32 %v7097_v1  ;;  %v1914_v0 = vand.u32 2147483648, %v10433_v61  ;;  %v7018_v43 = vmul.f32 -1.442695, %v10576_v21  ;;  %vm10597_vm14 = vmor %vm1908_vm5, %vm1909_vm11 }
 0x136   :  { %v8945_v59 = vpop.eup %8944  ;;  %8950 = vpow2.f32 %v7173_v8  ;;  %v1907_v42 = vadd.f32 %v10506_v31, %v1906_v32  ;;  %vm386_vm13 = vcmp.eq.f32.partialorder %v385_v26, 8.507059e+37  ;;  %vm10601_vm0 = vcmp.eq.f32.partialorder %v1443_v54, 8.507059e+37 }
 0x137   :  { %v1438_v22 = vadd.f32 %v10528_v63, %v1437_v36  ;;  %v10593_v6 = vadd.f32 1.0, %v8945_v59  ;;  %8952 = vpow2.f32 %v6938_v37  ;;  %v389_v55 = vsel %vm386_vm13, %v388_v58, %v384_v41  ;;  %v8495_v58 = vld [vmem:[%s13505_s2 + $0xb8] sm:$0xff] }
 0x138   :  { %v1446_v10 = vor.u32 1.1754944e-38, %v1445_v16  ;;  %v918_v27 = vsel %vm10523_vm4, %v917_v17, %v913_v44  ;;  %v1915_v53 = vor.u32 1.1754944e-38, %v1914_v0  ;;  %v1911_v56 = vsel %vm10597_vm14, %v10506_v31, %v1907_v42  ;;  %3818 = vmatpush.bf16.msra.mxu2 %v8495_v58 }
 0x139   :  { %8954 = vrcp.f32 %v10593_v6  ;;  %v1442_v61 = vsel %vm10588_vm12, %v10528_v63, %v1438_v22  ;;  %vm1913_vm1 = vcmp.eq.f32.partialorder %v1912_v9, 8.507059e+37  ;;  %v7098_v45 = vmul.f32 -1.442695, %v10611_v39 }
 0x13a   :  { %v8947_v30 = vpop.eup %8946  ;;  %8956 = vpow2.f32 %v7018_v43  ;;  %v10624_v57 = vmul.f32 %v389_v55, %v10284_v29  ;;  %v7174_v31 = vmul.f32 -1.442695, %v10619_v40  ;;  %v10633_v19 = vmul.f32 %v918_v27, %v10324_v18 }
 0x13b   :  { %v8949_v5 = vpop.eup %8948  ;;  %v10616_v33 = vadd.f32 1.0, %v8947_v30  ;;  %v1447_v49 = vsel %vm10601_vm0, %v1446_v10, %v1442_v61  ;;  %v400_v63 = vand.u32 2147483647, %v10593_v6  ;;  %v10639_v29 = vsel %vm1913_vm1, %v1915_v53, %v1911_v56 }
 0x13c   :  { %v8951_v26 = vpop.eup %8950  ;;  %v10626_v13 = vadd.f32 1.0, %v8949_v5  ;;  %v402_v25 = vand.u32 2147483648, %v10593_v6  ;;  %v6939_v17 = vmul.f32 -1.442695, %v10621_v7  ;;  %v2245_v54 = vshll.u32 %v10395_v14, 16 }
 0x13d   :  { %v8953_v60 = vpop.eup %8952  ;;  %8958 = vrcp.f32 %v10616_v33  ;;  %v10644_v12 = vadd.f32 1.0, %v8951_v26  ;;  %v10650_v16 = vmul.f32 %v1447_v49, %v10357_v2  ;;  %vm396_vm2 = vweird.f32 %v10593_v6 }
 0x13e   :  { %8960 = vrcp.f32 %v10626_v13  ;;  %v10646_v18 = vadd.f32 1.0, %v8953_v60  ;;  %vm10654_vm3 = vcmp.eq.f32.partialorder %v400_v63, 8.507059e+37  ;;  %v929_v4 = vand.u32 2147483647, %v10616_v33 }
 0x13f   :  { %v8955_v28 = vpop.eup %8954  ;;  %8962 = vpow2.f32 %v7098_v45  ;;  %v931_v48 = vand.u32 2147483648, %v10616_v33  ;;  %v403_v23 = vor.u32 1.1754944e-38, %v402_v25  ;;  %v1460_v2 = vand.u32 2147483648, %v10626_v13 }
 0x140   :  { %v8957_v15 = vpop.eup %8956  ;;  %v392_v9 = vmul.f32 %v8955_v28, %v10593_v6  ;;  %8964 = vpow2.f32 %v7174_v31  ;;  %vm925_vm4 = vweird.f32 %v10616_v33  ;;  %vm1454_vm5 = vweird.f32 %v10626_v13  ;;  %v8471_v6 = vld [vmem:[%s13505_s2 + $0x38] sm:$0xff] }
 0x141   :  { %8966 = vrcp.f32 %v10644_v12  ;;  %v10665_v34 = vadd.f32 1.0, %v8957_v15  ;;  %vm397_vm6 = vweird.f32 %v8955_v28  ;;  %v1458_v36 = vand.u32 2147483647, %v10626_v13  ;;  %3641 = vmatpush.bf16.msra.mxu1 %v8471_v6  ;;  %v8494_v6 = vld [vmem:[%s13505_s2 + $0xb0] sm:$0xff] }
 0x142   :  { %v393_v32 = vsub.f32 1.0, %v392_v9  ;;  %8968 = vrcp.f32 %v10646_v18  ;;  %vm10669_vm7 = vcmp.eq.f32.partialorder %v929_v4, 8.507059e+37  ;;  %v932_v0 = vor.u32 1.1754944e-38, %v931_v48  ;;  %vm398_vm9 = vmor %vm396_vm2, %vm397_vm6  ;;  %3819 = vmatpush.bf16.msra.mxu2 %v8494_v6 }
 0x143   :  { %v8959_v1 = vpop.eup %8958  ;;  %8970 = vpow2.f32 %v6939_v17  ;;  %v1461_v38 = vor.u32 1.1754944e-38, %v1460_v2  ;;  %vm1923_vm11 = vweird.f32 %v10644_v12  ;;  %v1927_v10 = vand.u32 2147483647, %v10644_v12 }
 0x144   :  { %v8961_v8 = vpop.eup %8960  ;;  %v394_v37 = vmul.f32 %v8955_v28, %v393_v32  ;;  %v921_v41 = vmul.f32 %v8959_v1, %v10616_v33  ;;  %8972 = vrcp.f32 %v10665_v34  ;;  %vm926_vm8 = vweird.f32 %v8959_v1 }
 0x145   :  { %v8963_v59 = vpop.eup %8962  ;;  %v1450_v43 = vmul.f32 %v8961_v8, %v10626_v13  ;;  %vm1455_vm10 = vweird.f32 %v8961_v8  ;;  %v1929_v5 = vand.u32 2147483648, %v10644_v12  ;;  %vm10688_vm12 = vmor %vm925_vm4, %vm926_vm8  ;;  %vm1459_vm0 = vcmp.eq.f32.partialorder %v1458_v36, 8.507059e+37 }
 0x146   :  { %v8965_v22 = vpop.eup %8964  ;;  %v395_v62 = vadd.f32 %v8955_v28, %v394_v37  ;;  %v922_v42 = vsub.f32 1.0, %v921_v41  ;;  %v10694_v31 = vadd.f32 1.0, %v8963_v59  ;;  %vm10700_vm13 = vmor %vm1454_vm5, %vm1455_vm10  ;;  %vm10706_vm1 = vcmp.eq.f32.partialorder %v1927_v10, 8.507059e+37  ;;  %v8440_v10 = vld [vmem:[#allocation2 + $0x8] sm:$0xff] }
 0x147   :  { %v8967_v55 = vpop.eup %8966  ;;  %v1451_v35 = vsub.f32 1.0, %v1450_v43  ;;  %v1930_v11 = vor.u32 1.1754944e-38, %v1929_v5  ;;  %v10729_v41 = vadd.f32 1.0, %v8965_v22  ;;  %v2241_v44 = vshrl.u32 %v10147_v24, 16  ;;  %v10748_v24 = vpop.f32.mrf.mxu1 }
 0x148   :  { %v10679_v30 = vpop.eup %8968  ;;  %v399_v27 = vsel %vm398_vm9, %v8955_v28, %v395_v62  ;;  %v923_v61 = vmul.f32 %v8959_v1, %v922_v42  ;;  %v1919_v53 = vmul.f32 %v8967_v55, %v10644_v12  ;;  %vm1924_vm14 = vweird.f32 %v8967_v55 }
 0x149   :  { %v8971_v56 = vpop.eup %8970  ;;  %v404_v45 = vsel %vm10654_vm3, %v403_v23, %v399_v27  ;;  %v1452_v26 = vmul.f32 %v8961_v8, %v1451_v35  ;;  %v407_v58 = vmul.f32 %v10679_v30, %v10646_v18  ;;  %vm10719_vm2 = vmor %vm1923_vm11, %vm1924_vm14  ;;  %8974 = vrcp.f32 %v10694_v31  ;;  %v10768_v27 = vld [vmem:[#allocation2 + $0x10] sm:$0xff] }
 0x14a   :  { %v505_v60 = vmul.f32 %v404_v45, %v10353_v51  ;;  %v924_v49 = vadd.f32 %v8959_v1, %v923_v61  ;;  %v1920_v33 = vsub.f32 1.0, %v1919_v53  ;;  %v10704_v25 = vpop.eup %8972  ;;  %v2087_v12 = vmul.f32 %v10639_v29, %v10329_v47  ;;  %v8479_v45 = vld [vmem:[%s13505_s2 + $0x78] sm:$0xff] }
 0x14b   :  { %v1453_v17 = vadd.f32 %v8961_v8, %v1452_v26  ;;  %v408_v15 = vsub.f32 1.0, %v407_v58  ;;  %v415_v43 = vand.u32 2147483647, %v10646_v18  ;;  %vm412_vm3 = vweird.f32 %v10679_v30  ;;  %v10792_v58 = vld [vmem:[#allocation2 + $0x18] sm:$0xff]  ;;  %3536 = vmatpush.bf16.msra.mxu0 %v8479_v45 }
 0x14c   :  { %v8647_v51 = vpack.c.bf16 %v505_v60, %v10624_v57  ;;  %v928_v13 = vsel %vm10688_vm12, %v8959_v1, %v924_v49  ;;  %v1921_v9 = vmul.f32 %v8967_v55, %v1920_v33  ;;  %v936_v57 = vmul.f32 %v10704_v25, %v10665_v34  ;;  %v8426_v60 = vld [vmem:[#allocation2 + $0x18] sm:$0xff]  ;;  %2481 = vmatmul.bf16.gmra.mxu1 %v10792_v58 }
 0x14d   :  { %v933_v4 = vsel %vm10669_vm7, %v932_v0, %v928_v13  ;;  %v1457_v48 = vsel %vm10700_vm13, %v8961_v8, %v1453_v17  ;;  %v409_v37 = vmul.f32 %v10679_v30, %v408_v15  ;;  %v417_v22 = vand.u32 2147483648, %v10646_v18  ;;  %v10805_v13 = vpop.f32.mrf.mxu3  ;;  %2654 = vmatmul.bf16.gmra.mxu2 %v8426_v60 }
 0x14e   :  { %8787 = vst [vmem:[#allocation2 + $0x20] sm:$0xff] %v8647_v51   ;;  %v1034_v23 = vmul.f32 %v933_v4, %v10500_v46  ;;  %v1462_v2 = vsel %vm1459_vm0, %v1461_v38, %v1457_v48  ;;  %v1922_v1 = vadd.f32 %v8967_v55, %v1921_v9  ;;  %v937_v29 = vsub.f32 1.0, %v936_v57  ;;  %v10811_v48 = vpop.f32.mrf.mxu0 }
 0x14f   :  { %v1563_v8 = vmul.f32 %v1462_v2, %v10532_v3  ;;  %v10743_v3 = vrot.slane %v2245_v54, 1  ;;  %8976 = vrcp.f32 %v10729_v41  ;;  %v2243_v54 = vor.u32 %v2241_v44, %v10504_v20  ;;  %v10770_v20 = vpop.f32.mrf.mxu2 }
 0x150   :  { %v8687_v36 = vpack.c.bf16 %v1034_v23, %v10633_v19  ;;  %v1926_v59 = vsel %vm10719_vm2, %v8967_v55, %v1922_v1  ;;  %v410_v19 = vadd.f32 %v10679_v30, %v409_v37  ;;  %vm411_vm4 = vweird.f32 %v10646_v18 }
 0x151   :  { %v8727_v46 = vpack.c.bf16 %v1563_v8, %v10650_v16  ;;  %v1931_v0 = vsel %vm10706_vm1, %v1930_v11, %v1926_v59  ;;  %v10750_v16 = vpop.eup %8974  ;;  %v946_v42 = vand.u32 2147483648, %v10665_v34  ;;  %vm10758_vm5 = vmor %vm411_vm4, %vm412_vm3  ;;  %vm10762_vm6 = vcmp.eq.f32.partialorder %v415_v43, 8.507059e+37 }
 0x152   :  { %8795 = vst [vmem:[#allocation2 + $0x60] sm:$0xff] %v8687_v36   ;;  %v2088_v47 = vmul.f32 %v1931_v0, %v10539_v50  ;;  %v944_v50 = vand.u32 2147483647, %v10665_v34  ;;  %v10766_v35 = vadd.f32 1.0, %v8971_v56  ;;  %v414_v18 = vsel %vm10758_vm5, %v10679_v30, %v410_v19  ;;  %v8511_v56 = vld [vmem:[%s13505_s2 + $0xf8] sm:$0xff]  ;;  %v10830_v36 = vpop.f32.mrf.mxu1 }
 0x153   :  { %8803 = vst [vmem:[#allocation2 + $0xa0] sm:$0xff] %v8727_v46   ;;  %v938_v61 = vmul.f32 %v10704_v25, %v937_v29  ;;  %v7019_v53 = vmul.f32 -1.442695, %v10748_v24  ;;  %v2248_v5 = vsel %vm2228_vm15, %v2243_v54, %v10743_v3  ;;  %v418_v30 = vor.u32 1.1754944e-38, %v417_v22  ;;  %4083 = vmatpush.bf16.msra.mxu3 %v8511_v56 }
 0x154   :  { %v8757_v62 = vpack.c.bf16 %v2088_v47, %v2087_v12  ;;  %vm940_vm7 = vweird.f32 %v10665_v34  ;;  %v1465_v26 = vmul.f32 %v10750_v16, %v10694_v31  ;;  %8978 = vrcp.f32 %v10766_v35  ;;  %2366 = vmatmul.bf16.gmra.mxu0 %v2248_v5 }
 0x155   :  { %vm941_vm8 = vweird.f32 %v10704_v25  ;;  %vm10795_vm9 = vcmp.eq.f32.partialorder %v944_v50, 8.507059e+37  ;;  %v947_v63 = vor.u32 1.1754944e-38, %v946_v42  ;;  %8980 = vpow2.f32 %v7019_v53  ;;  %v10799_v33 = vpop.eup %8976 }
 0x156   :  { %8809 = vst [vmem:[#allocation2 + $0xd0] sm:$0xff] %v8757_v62   ;;  %v419_v17 = vsel %vm10762_vm6, %v418_v30, %v414_v18  ;;  %v2781_v28 = vshll.u32 %v8440_v10, 16  ;;  %v2786_v15 = vshll.u32 %v10768_v27, 16  ;;  %v7099_v51 = vmul.f32 -1.442695, %v10770_v20  ;;  %vm10818_vm11 = vmor %vm940_vm7, %vm941_vm8  ;;  %v10868_v30 = vpop.f32.mrf.mxu3 }
 0x157   :  { %v939_v9 = vadd.f32 %v10704_v25, %v938_v61  ;;  %vm1469_vm10 = vweird.f32 %v10694_v31  ;;  %v1473_v11 = vand.u32 2147483647, %v10694_v31  ;;  %v1475_v4 = vand.u32 2147483648, %v10694_v31  ;;  %v10846_v54 = vpop.f32.mrf.mxu2 }
 0x158   :  { %v1466_v57 = vsub.f32 1.0, %v1465_v26  ;;  %v2779_v23 = vshrl.u32 %v8440_v10, 16  ;;  %v2783_v2 = vrot.slane %v2781_v28, 1  ;;  %v10822_v1 = vrot.slane %v2786_v15, 1 }
 0x159   :  { %v10825_v37 = vmul.f32 %v419_v17, %v10541_v52  ;;  %v1934_v8 = vmul.f32 %v10799_v33, %v10729_v41  ;;  %8982 = vpow2.f32 %v7099_v51  ;;  %v7175_v12 = vmul.f32 -1.442695, %v10805_v13 }
 0x15a   :  { %v8979_v34 = vpop.eup %8978  ;;  %vm1470_vm12 = vweird.f32 %v10750_v16  ;;  %v2784_v59 = vor.u32 %v2783_v2, %v2779_v23  ;;  %v6940_v44 = vmul.f32 -1.442695, %v10811_v48  ;;  %v7020_v46 = vmul.f32 -1.442695, %v10830_v36 }
 0x15b   :  { %v8981_v0 = vpop.eup %8980  ;;  %v943_v52 = vsel %vm10818_vm11, %v10704_v25, %v939_v9  ;;  %v10838_v43 = vor.u32 1.1754944e-38, %v1475_v4  ;;  %v422_v47 = vmul.f32 %v8979_v34, %v10766_v35  ;;  %8984 = vpow2.f32 %v7175_v12  ;;  %vm10874_vm2 = vmor %vm1469_vm10, %vm1470_vm12  ;;  %v10890_v4 = vpop.f32.mrf.mxu0 }
 0x15c   :  { %v1467_v19 = vmul.f32 %v10750_v16, %v1466_v57  ;;  %v10842_v29 = vadd.f32 1.0, %v8981_v0  ;;  %v2789_v22 = vsel %vm2228_vm15, %v2784_v59, %v10822_v1  ;;  %8986 = vpow2.f32 %v6940_v44 }
 0x15d   :  { %v1935_v62 = vsub.f32 1.0, %v1934_v8  ;;  %v423_v50 = vsub.f32 1.0, %v422_v47  ;;  %2910 = vmatmul.bf16.vlgmr.msrb.gmra.mxu3 %v2789_v22  ;;  %8988 = vpow2.f32 %v7020_v46  ;;  %v7100_v25 = vmul.f32 -1.442695, %v10846_v54 }
 0x15e   :  { %v948_v42 = vsel %vm10795_vm9, %v947_v63, %v943_v52  ;;  %vm10851_vm13 = vcmp.eq.f32.partialorder %v1473_v11, 8.507059e+37  ;;  %vm1938_vm14 = vweird.f32 %v10729_v41  ;;  %v432_v55 = vand.u32 2147483648, %v10766_v35 }
 0x15f   :  { %8990 = vrcp.f32 %v10842_v29  ;;  %v8983_v10 = vpop.eup %8982  ;;  %v1942_v18 = vand.u32 2147483647, %v10729_v41  ;;  %v424_v61 = vmul.f32 %v8979_v34, %v423_v50  ;;  %vm427_vm0 = vweird.f32 %v8979_v34 }
 0x160   :  { %v430_v53 = vand.u32 2147483647, %v10766_v35  ;;  %v1468_v5 = vadd.f32 %v10750_v16, %v1467_v19  ;;  %v1944_v56 = vand.u32 2147483648, %v10729_v41  ;;  %vm426_vm1 = vweird.f32 %v10766_v35 }
 0x161   :  { %v10863_v45 = vadd.f32 1.0, %v8983_v10  ;;  %v8985_v26 = vpop.eup %8984  ;;  %v1936_v49 = vmul.f32 %v10799_v33, %v1935_v62  ;;  %v425_v35 = vadd.f32 %v8979_v34, %v424_v61  ;;  %8992 = vpow2.f32 %v7100_v25  ;;  %vm428_vm4 = vmor %vm426_vm1, %vm427_vm0 }
 0x162   :  { %v7176_v63 = vmul.f32 -1.442695, %v10868_v30  ;;  %v8987_v17 = vpop.eup %8986  ;;  %v10881_v28 = vmul.f32 %v948_v42, %v10576_v21  ;;  %vm1939_vm3 = vweird.f32 %v10799_v33  ;;  %v433_v15 = vor.u32 1.1754944e-38, %v432_v55 }
 0x163   :  { %8994 = vrcp.f32 %v10863_v45  ;;  %v8989_v31 = vpop.eup %8988  ;;  %v429_v51 = vsel %vm428_vm4, %v8979_v34, %v425_v35  ;;  %vm431_vm5 = vcmp.eq.f32.partialorder %v430_v53, 8.507059e+37  ;;  %v10886_v9 = vadd.f32 1.0, %v8985_v26  ;;  %vm10909_vm7 = vmor %vm1938_vm14, %vm1939_vm3 }
 0x164   :  { %v10888_v11 = vadd.f32 1.0, %v8987_v17  ;;  %v1472_v21 = vsel %vm10874_vm2, %v10750_v16, %v1468_v5  ;;  %v434_v57 = vsel %vm431_vm5, %v433_v15, %v429_v51  ;;  %v10895_v23 = vadd.f32 1.0, %v8989_v31 }
 0x165   :  { %v8991_v32 = vpop.eup %8990  ;;  %8996 = vpow2.f32 %v7176_v63  ;;  %v1937_v2 = vadd.f32 %v10799_v33, %v1936_v49  ;;  %vm10898_vm6 = vcmp.eq.f32.partialorder %v1942_v18, 8.507059e+37  ;;  %v507_v12 = vmul.f32 %v434_v57, %v10621_v7 }
 0x166   :  { %v951_v34 = vmul.f32 %v8991_v32, %v10842_v29  ;;  %8998 = vrcp.f32 %v10886_v9  ;;  %v959_v59 = vand.u32 2147483647, %v10842_v29  ;;  %v961_v44 = vand.u32 2147483648, %v10842_v29 }
 0x167   :  { %9000 = vrcp.f32 %v10888_v11  ;;  %v6941_v7 = vmul.f32 -1.442695, %v10890_v4  ;;  %v8993_v46 = vpop.eup %8992  ;;  %v8652_v0 = vpack.c.bf16 %v507_v12, %v10825_v37  ;;  %vm955_vm8 = vweird.f32 %v10842_v29 }
 0x168   :  { %v952_v52 = vsub.f32 1.0, %v951_v34  ;;  %vm956_vm9 = vweird.f32 %v8991_v32  ;;  %v1945_v47 = vor.u32 1.1754944e-38, %v1944_v56  ;;  %v1488_v19 = vand.u32 2147483647, %v10863_v45 }
 0x169   :  { %v8995_v41 = vpop.eup %8994  ;;  %v1490_v22 = vand.u32 2147483648, %v10863_v45  ;;  %9002 = vrcp.f32 %v10895_v23  ;;  %v1477_v62 = vsel %vm10851_vm13, %v10838_v43, %v1472_v21  ;;  %v1941_v37 = vsel %vm10909_vm7, %v10799_v33, %v1937_v2  ;;  %8788 = vst [vmem:[#allocation2 + $0x28] sm:$0xff] %v8652_v0   ;;  %vm10929_vm10 = vmor %vm955_vm8, %vm956_vm9 }
 0x16a   :  { %v953_v50 = vmul.f32 %v8991_v32, %v952_v52  ;;  %v1480_v29 = vmul.f32 %v8995_v41, %v10863_v45  ;;  %vm10933_vm11 = vcmp.eq.f32.partialorder %v959_v59, 8.507059e+37  ;;  %v962_v10 = vor.u32 1.1754944e-38, %v961_v44  ;;  %v11058_v59 = vpop.f32.mrf.mxu0 }
 0x16b   :  { %v8997_v25 = vpop.eup %8996  ;;  %vm1484_vm12 = vweird.f32 %v10863_v45  ;;  %9004 = vpow2.f32 %v6941_v7  ;;  %vm1485_vm13 = vweird.f32 %v8995_v41  ;;  %v10938_v18 = vadd.f32 1.0, %v8993_v46 }
 0x16c   :  { %v8999_v43 = vpop.eup %8998  ;;  %v954_v38 = vadd.f32 %v8991_v32, %v953_v50  ;;  %v1481_v33 = vsub.f32 1.0, %v1480_v29  ;;  %vm10942_vm14 = vcmp.eq.f32.partialorder %v1488_v19, 8.507059e+37  ;;  %v1491_v5 = vor.u32 1.1754944e-38, %v1490_v22  ;;  %vm10958_vm1 = vmor %vm1484_vm12, %vm1485_vm13 }
 0x16d   :  { %v10940_v61 = vpop.eup %9000  ;;  %v1949_v56 = vmul.f32 %v8999_v43, %v10886_v9  ;;  %vm1953_vm0 = vweird.f32 %v10886_v9  ;;  %v1957_v60 = vand.u32 2147483647, %v10886_v9  ;;  %v1959_v49 = vand.u32 2147483648, %v10886_v9 }
 0x16e   :  { %v958_v6 = vsel %vm10929_vm10, %v8991_v32, %v954_v38  ;;  %v1482_v26 = vmul.f32 %v8995_v41, %v1481_v33  ;;  %vm1954_vm2 = vweird.f32 %v8999_v43  ;;  %9006 = vrcp.f32 %v10938_v18 }
 0x16f   :  { %v10952_v35 = vpop.eup %9002  ;;  %v963_v63 = vsel %vm10933_vm11, %v962_v10, %v958_v6  ;;  %v1950_v15 = vsub.f32 1.0, %v1949_v56  ;;  %v437_v32 = vmul.f32 %v10940_v61, %v10888_v11  ;;  %v10966_v21 = vadd.f32 1.0, %v8997_v25  ;;  %vm10977_vm3 = vmor %vm1953_vm0, %vm1954_vm2  ;;  %v11010_v10 = vpop.f32.mrf.mxu2 }
 0x170   :  { %v1036_v31 = vmul.f32 %v963_v63, %v10748_v24  ;;  %v1483_v51 = vadd.f32 %v8995_v41, %v1482_v26  ;;  %v1564_v2 = vmul.f32 %v1477_v62, %v10611_v39  ;;  %v1946_v45 = vsel %vm10898_vm6, %v1945_v47, %v1941_v37  ;;  %v8478_v63 = vld [vmem:[%s13505_s2 + $0x70] sm:$0xff] }
 0x171   :  { %v9005_v57 = vpop.eup %9004  ;;  %v1951_v12 = vmul.f32 %v8999_v43, %v1950_v15  ;;  %v2249_v34 = vshrl.u32 %v10395_v14, 16  ;;  %v1960_v44 = vor.u32 1.1754944e-38, %v1959_v49  ;;  %v966_v39 = vmul.f32 %v10952_v35, %v10895_v23  ;;  %v8510_v49 = vld [vmem:[%s13505_s2 + $0xf0] sm:$0xff]  ;;  %3537 = vmatpush.bf16.msra.mxu0 %v8478_v63 }
 0x172   :  { %v8692_v16 = vpack.c.bf16 %v1036_v31, %v10881_v28  ;;  %v1487_v24 = vsel %vm10958_vm1, %v8995_v41, %v1483_v51  ;;  %vm1958_vm4 = vcmp.eq.f32.partialorder %v1957_v60, 8.507059e+37  ;;  %v447_v14 = vand.u32 2147483648, %v10888_v11  ;;  %v11028_v60 = vld [vmem:[#allocation2 + $0x18] sm:$0xff]  ;;  %4084 = vmatpush.bf16.msra.mxu3 %v8510_v49 }
 0x173   :  { %v1492_v8 = vsel %vm10942_vm14, %v1491_v5, %v1487_v24  ;;  %v1952_v7 = vadd.f32 %v8999_v43, %v1951_v12  ;;  %v438_v46 = vsub.f32 1.0, %v437_v32  ;;  %v976_v9 = vand.u32 2147483648, %v10895_v23  ;;  %v8470_v32 = vld [vmem:[%s13505_s2 + $0x30] sm:$0xff] }
 0x174   :  { %8796 = vst [vmem:[#allocation2 + $0x68] sm:$0xff] %v8692_v16   ;;  %v1565_v28 = vmul.f32 %v1492_v8, %v10770_v20  ;;  %9008 = vrcp.f32 %v10966_v21  ;;  %v10989_v0 = vpop.eup %9006  ;;  %v2089_v52 = vmul.f32 %v1946_v45, %v10619_v40  ;;  %v2251_v47 = vor.u32 %v2249_v34, %v10743_v3  ;;  %v10996_v20 = vpop.f32.mrf.mxu1  ;;  %3642 = vmatpush.bf16.msra.mxu1 %v8470_v32 }
 0x175   :  { %v1956_v41 = vsel %vm10977_vm3, %v8999_v43, %v1952_v7  ;;  %v967_v62 = vsub.f32 1.0, %v966_v39  ;;  %v974_v37 = vand.u32 2147483647, %v10895_v23  ;;  %vm441_vm5 = vweird.f32 %v10888_v11  ;;  %v8427_v43 = vld [vmem:[#allocation2 + $0x20] sm:$0xff]  ;;  %v11052_v45 = vpop.f32.mrf.mxu3 }
 0x176   :  { %v8732_v19 = vpack.c.bf16 %v1565_v28, %v1564_v2  ;;  %v1961_v22 = vsel %vm1958_vm4, %v1960_v44, %v1956_v41  ;;  %v445_v29 = vand.u32 2147483647, %v10888_v11  ;;  %v11001_v25 = vor.u32 1.1754944e-38, %v447_v14  ;;  %2659 = vmatmul.bf16.gmra.mxu2 %v8427_v43 }
 0x177   :  { %v2090_v50 = vmul.f32 %v1961_v22, %v10805_v13  ;;  %v1495_v40 = vmul.f32 %v10989_v0, %v10938_v18  ;;  %v439_v3 = vmul.f32 %v10940_v61, %v438_v46  ;;  %vm970_vm6 = vweird.f32 %v10895_v23  ;;  %v11012_v13 = vld [vmem:[#allocation2 + $0x20] sm:$0xff] }
 0x178   :  { %8804 = vst [vmem:[#allocation2 + $0xa8] sm:$0xff] %v8732_v19   ;;  %v11007_v42 = vor.u32 1.1754944e-38, %v976_v9  ;;  %v1505_v55 = vand.u32 2147483648, %v10938_v18  ;;  %vm442_vm7 = vweird.f32 %v10940_v61  ;;  %vm1499_vm8 = vweird.f32 %v10938_v18  ;;  %2486 = vmatmul.bf16.gmra.mxu1 %v11012_v13 }
 0x179   :  { %v8762_v38 = vpack.c.bf16 %v2090_v50, %v2089_v52  ;;  %v11016_v33 = vadd.f32 1.0, %v9005_v57  ;;  %v968_v5 = vmul.f32 %v10952_v35, %v967_v62  ;;  %vm971_vm9 = vweird.f32 %v10952_v35  ;;  %vm11081_vm14 = vmor %vm441_vm5, %vm442_vm7 }
 0x17a   :  { %v11018_v53 = vpop.eup %9008  ;;  %vm11022_vm10 = vcmp.eq.f32.partialorder %v974_v37, 8.507059e+37  ;;  %v7021_v6 = vmul.f32 -1.442695, %v10996_v20  ;;  %v2253_v26 = vshll.u32 %v10792_v58, 16  ;;  %vm11037_vm11 = vcmp.eq.f32.partialorder %v445_v29, 8.507059e+37  ;;  %vm11068_vm13 = vmor %vm970_vm6, %vm971_vm9 }
 0x17b   :  { %8810 = vst [vmem:[#allocation2 + $0xd8] sm:$0xff] %v8762_v38   ;;  %v1496_v15 = vsub.f32 1.0, %v1495_v40  ;;  %v1503_v31 = vand.u32 2147483647, %v10938_v18  ;;  %v1964_v51 = vmul.f32 %v11018_v53, %v10966_v21  ;;  %9010 = vrcp.f32 %v11016_v33 }
 0x17c   :  { %v440_v57 = vadd.f32 %v10940_v61, %v439_v3  ;;  %v11049_v2 = vor.u32 1.1754944e-38, %v1505_v55  ;;  %vm1968_vm12 = vweird.f32 %v10966_v21  ;;  %9012 = vpow2.f32 %v7021_v6  ;;  %v11093_v19 = vpop.f32.mrf.mxu1  ;;  %v11107_v3 = vpop.f32.mrf.mxu2 }
 0x17d   :  { %v1965_v12 = vsub.f32 1.0, %v1964_v51  ;;  %v1972_v34 = vand.u32 2147483647, %v10966_v21  ;;  %v11055_v16 = vrot.slane %v2253_v26, 1  ;;  %v2790_v24 = vshrl.u32 %v10768_v27, 16  ;;  %v8493_v26 = vld [vmem:[%s13505_s2 + $0xa8] sm:$0xff]  ;;  %v11152_v32 = vpop.f32.mrf.mxu3 }
 0x17e   :  { %v969_v44 = vadd.f32 %v10952_v35, %v968_v5  ;;  %v1974_v39 = vand.u32 2147483648, %v10966_v21  ;;  %v2794_v8 = vshll.u32 %v11028_v60, 16  ;;  %v7101_v7 = vmul.f32 -1.442695, %v11010_v10  ;;  %3820 = vmatpush.bf16.msra.mxu2 %v8493_v26 }
 0x17f   :  { %v1497_v27 = vmul.f32 %v10989_v0, %v1496_v15  ;;  %v2256_v28 = vsel %vm2228_vm15, %v2251_v47, %v11055_v16  ;;  %v2792_v46 = vor.u32 %v2790_v24, %v10822_v1  ;;  %v7177_v9 = vmul.f32 -1.442695, %v11052_v45 }
 0x180   :  { %vm11085_vm0 = vcmp.eq.f32.partialorder %v1503_v31, 8.507059e+37  ;;  %v1966_v41 = vmul.f32 %v11018_v53, %v1965_v12  ;;  %2371 = vmatmul.bf16.gmra.mxu0 %v2256_v28  ;;  %v11090_v47 = vrot.slane %v2794_v8, 1  ;;  %9014 = vpow2.f32 %v7101_v7 }
 0x181   :  { %v6942_v1 = vmul.f32 -1.442695, %v11058_v59  ;;  %v9011_v22 = vpop.eup %9010  ;;  %v444_v11 = vsel %vm11081_vm14, %v10940_v61, %v440_v57  ;;  %vm1500_vm1 = vweird.f32 %v10989_v0  ;;  %9016 = vpow2.f32 %v7177_v9 }
 0x182   :  { %v7022_v62 = vmul.f32 -1.442695, %v11093_v19  ;;  %v9013_v37 = vpop.eup %9012  ;;  %v973_v50 = vsel %vm11068_vm13, %v10952_v35, %v969_v44  ;;  %vm1969_vm2 = vweird.f32 %v11018_v53  ;;  %v452_v29 = vmul.f32 %v9011_v22, %v11016_v33  ;;  %vm11120_vm3 = vmor %vm1499_vm8, %vm1500_vm1 }
 0x183   :  { %v2797_v40 = vsel %vm2228_vm15, %v2792_v46, %v11090_v47  ;;  %v1498_v61 = vadd.f32 %v10989_v0, %v1497_v27  ;;  %v11110_v55 = vadd.f32 1.0, %v9013_v37  ;;  %9018 = vpow2.f32 %v6942_v1  ;;  %vm11135_vm4 = vmor %vm1968_vm12, %vm1969_vm2 }
 0x184   :  { %2915 = vmatmul.bf16.gmra.mxu3 %v2797_v40  ;;  %v7102_v43 = vmul.f32 -1.442695, %v11107_v3  ;;  %v449_v35 = vsel %vm11037_vm11, %v11001_v25, %v444_v11  ;;  %v1967_v5 = vadd.f32 %v11018_v53, %v1966_v41  ;;  %v453_v6 = vsub.f32 1.0, %v452_v29  ;;  %v11170_v27 = vpop.f32.mrf.mxu1 }
 0x185   :  { %9020 = vpow2.f32 %v7022_v62  ;;  %v978_v25 = vsel %vm11022_vm10, %v11007_v42, %v973_v50  ;;  %vm11139_vm5 = vcmp.eq.f32.partialorder %v1972_v34, 8.507059e+37  ;;  %v462_v63 = vand.u32 2147483648, %v11016_v33 }
 0x186   :  { %9022 = vrcp.f32 %v11110_v55  ;;  %v9015_v17 = vpop.eup %9014  ;;  %v454_v15 = vmul.f32 %v9011_v22, %v453_v6  ;;  %vm457_vm6 = vweird.f32 %v9011_v22  ;;  %v460_v42 = vand.u32 2147483647, %v11016_v33 }
 0x187   :  { %9024 = vpow2.f32 %v7102_v43  ;;  %v9017_v21 = vpop.eup %9016  ;;  %v1502_v56 = vsel %vm11120_vm3, %v10989_v0, %v1498_v61  ;;  %v1975_v31 = vor.u32 1.1754944e-38, %v1974_v39  ;;  %vm456_vm7 = vweird.f32 %v11016_v33  ;;  %v11166_v39 = vpop.f32.mrf.mxu0 }
 0x188   :  { %v11150_v51 = vadd.f32 1.0, %v9015_v17  ;;  %v1971_v57 = vsel %vm11135_vm4, %v11018_v53, %v1967_v5  ;;  %v455_v12 = vadd.f32 %v9011_v22, %v454_v15  ;;  %v11157_v34 = vadd.f32 1.0, %v9017_v21  ;;  %vm458_vm8 = vmor %vm456_vm7, %vm457_vm6 }
 0x189   :  { %v7178_v24 = vmul.f32 -1.442695, %v11152_v32  ;;  %v9019_v44 = vpop.eup %9018  ;;  %v508_v8 = vmul.f32 %v449_v35, %v10811_v48  ;;  %v11162_v0 = vmul.f32 %v978_v25, %v10830_v36  ;;  %v463_v33 = vor.u32 1.1754944e-38, %v462_v63 }
 0x18a   :  { %9026 = vrcp.f32 %v11150_v51  ;;  %v459_v53 = vsel %vm458_vm8, %v9011_v22, %v455_v12  ;;  %vm461_vm9 = vcmp.eq.f32.partialorder %v460_v42, 8.507059e+37  ;;  %v989_v14 = vand.u32 2147483647, %v11110_v55 }
 0x18b   :  { %v9021_v7 = vpop.eup %9020  ;;  %9028 = vrcp.f32 %v11157_v34  ;;  %v1507_v36 = vsel %vm11085_vm0, %v11049_v2, %v1502_v56  ;;  %v11177_v28 = vsel %vm11139_vm5, %v1975_v31, %v1971_v57  ;;  %v464_v46 = vsel %vm461_vm9, %v463_v33, %v459_v53  ;;  %v11326_v53 = vld [vmem:[#allocation2 + $0x20] sm:$0xff] }
 0x18c   :  { %v9023_v48 = vpop.eup %9022  ;;  %v991_v9 = vand.u32 2147483648, %v11110_v55  ;;  %v509_v41 = vmul.f32 %v464_v46, %v10890_v4  ;;  %9030 = vpow2.f32 %v7178_v24  ;;  %v6943_v22 = vmul.f32 -1.442695, %v11166_v39 }
 0x18d   :  { %v9025_v52 = vpop.eup %9024  ;;  %v981_v1 = vmul.f32 %v9023_v48, %v11110_v55  ;;  %vm985_vm10 = vweird.f32 %v11110_v55  ;;  %v11184_v11 = vadd.f32 1.0, %v9019_v44  ;;  %v11186_v2 = vadd.f32 1.0, %v9021_v7 }
 0x18e   :  { %v7023_v23 = vmul.f32 -1.442695, %v11170_v27  ;;  %v8657_v62 = vpack.c.bf16 %v509_v41, %v508_v8  ;;  %vm986_vm11 = vweird.f32 %v9023_v48  ;;  %vm11189_vm12 = vcmp.eq.f32.partialorder %v989_v14, 8.507059e+37  ;;  %v8477_v41 = vld [vmem:[%s13505_s2 + $0x68] sm:$0xff] }
 0x18f   :  { %v982_v37 = vsub.f32 1.0, %v981_v1  ;;  %v992_v29 = vor.u32 1.1754944e-38, %v991_v9  ;;  %v1518_v40 = vand.u32 2147483647, %v11150_v51  ;;  %9032 = vrcp.f32 %v11184_v11  ;;  %vm11202_vm13 = vmor %vm985_vm10, %vm986_vm11  ;;  %3538 = vmatpush.bf16.msra.mxu0 %v8477_v41 }
 0x190   :  { %v9027_v4 = vpop.eup %9026  ;;  %v11195_v61 = vadd.f32 1.0, %v9025_v52  ;;  %8789 = vst [vmem:[#allocation2 + $0x30] sm:$0xff] %v8657_v62   ;;  %v1520_v5 = vand.u32 2147483648, %v11150_v51  ;;  %9034 = vrcp.f32 %v11186_v2  ;;  %vm1514_vm14 = vweird.f32 %v11150_v51  ;;  %v11334_v52 = vpop.f32.mrf.mxu2 }
 0x191   :  { %v9029_v43 = vpop.eup %9028  ;;  %v983_v35 = vmul.f32 %v9023_v48, %v982_v37  ;;  %v1510_v38 = vmul.f32 %v9027_v4, %v11150_v51  ;;  %vm1983_vm0 = vweird.f32 %v11157_v34  ;;  %9036 = vpow2.f32 %v6943_v22 }
 0x192   :  { %v1979_v26 = vmul.f32 %v9029_v43, %v11157_v34  ;;  %v9031_v25 = vpop.eup %9030  ;;  %vm1515_vm1 = vweird.f32 %v9027_v4  ;;  %v1989_v63 = vand.u32 2147483648, %v11157_v34  ;;  %vm1984_vm2 = vweird.f32 %v9029_v43 }
 0x193   :  { %v984_v18 = vadd.f32 %v9023_v48, %v983_v35  ;;  %v1511_v49 = vsub.f32 1.0, %v1510_v38  ;;  %v1987_v55 = vand.u32 2147483647, %v11157_v34  ;;  %9038 = vrcp.f32 %v11195_v61  ;;  %vm11224_vm4 = vmor %vm1514_vm14, %vm1515_vm1  ;;  %v8509_v34 = vld [vmem:[%s13505_s2 + $0xe8] sm:$0xff] }
 0x194   :  { %v1980_v17 = vsub.f32 1.0, %v1979_v26  ;;  %vm11214_vm3 = vcmp.eq.f32.partialorder %v1518_v40, 8.507059e+37  ;;  %v1521_v56 = vor.u32 1.1754944e-38, %v1520_v5  ;;  %v11228_v44 = vadd.f32 1.0, %v9031_v25  ;;  %vm11236_vm5 = vmor %vm1983_vm0, %vm1984_vm2  ;;  %4085 = vmatpush.bf16.msra.mxu3 %v8509_v34 }
 0x195   :  { %v988_v15 = vsel %vm11202_vm13, %v9023_v48, %v984_v18  ;;  %v1512_v42 = vmul.f32 %v9027_v4, %v1511_v49  ;;  %v11218_v31 = vpop.eup %9032  ;;  %9040 = vpow2.f32 %v7023_v23  ;;  %v1990_v51 = vor.u32 1.1754944e-38, %v1989_v63  ;;  %v8469_v23 = vld [vmem:[%s13505_s2 + $0x28] sm:$0xff] }
 0x196   :  { %v993_v57 = vsel %vm11189_vm12, %v992_v29, %v988_v15  ;;  %v1981_v24 = vmul.f32 %v9029_v43, %v1980_v17  ;;  %v11230_v8 = vpop.eup %9034  ;;  %v467_v14 = vmul.f32 %v11218_v31, %v11184_v11  ;;  %v1566_v46 = vmul.f32 %v1507_v36, %v10846_v54  ;;  %3643 = vmatpush.bf16.msra.mxu1 %v8469_v23 }
 0x197   :  { %v1038_v33 = vmul.f32 %v993_v57, %v10996_v20  ;;  %v1513_v7 = vadd.f32 %v9027_v4, %v1512_v42  ;;  %v9037_v48 = vpop.eup %9036  ;;  %vm11243_vm6 = vcmp.eq.f32.partialorder %v1987_v55, 8.507059e+37  ;;  %v996_v20 = vmul.f32 %v11230_v8, %v11186_v2  ;;  %v8468_v55 = vld [vmem:[%s13505_s2 + $0x20] sm:$0xff] }
 0x198   :  { %v1982_v9 = vadd.f32 %v9029_v43, %v1981_v24  ;;  %v2091_v1 = vmul.f32 %v11177_v28, %v10868_v30  ;;  %v468_v22 = vsub.f32 1.0, %v467_v14  ;;  %9042 = vrcp.f32 %v11228_v44  ;;  %v11315_v24 = vpop.f32.mrf.mxu3  ;;  %v8428_v14 = vld [vmem:[#allocation2 + $0x28] sm:$0xff] }
 0x199   :  { %v8697_v54 = vpack.c.bf16 %v1038_v33, %v11162_v0  ;;  %v1517_v36 = vsel %vm11224_vm4, %v9027_v4, %v1513_v7  ;;  %v11263_v62 = vpop.eup %9038  ;;  %v997_v29 = vsub.f32 1.0, %v996_v20  ;;  %v475_v35 = vand.u32 2147483647, %v11184_v11  ;;  %2664 = vmatmul.bf16.gmra.mxu2 %v8428_v14 }
 0x19a   :  { %v1522_v37 = vsel %vm11214_vm3, %v1521_v56, %v1517_v36  ;;  %v1986_v50 = vsel %vm11236_vm5, %v9029_v43, %v1982_v9  ;;  %v469_v28 = vmul.f32 %v11218_v31, %v468_v22  ;;  %vm1000_vm7 = vweird.f32 %v11186_v2  ;;  %3644 = vmatpush.bf16.msra.mxu1 %v8468_v55 }
 0x19b   :  { %8797 = vst [vmem:[#allocation2 + $0x70] sm:$0xff] %v8697_v54   ;;  %v1567_v30 = vmul.f32 %v1522_v37, %v11010_v10  ;;  %v1991_v0 = vsel %vm11243_vm6, %v1990_v51, %v1986_v50  ;;  %v9041_v4 = vpop.eup %9040  ;;  %v998_v43 = vmul.f32 %v11230_v8, %v997_v29  ;;  %vm1001_vm8 = vweird.f32 %v11230_v8  ;;  %v11328_v51 = vld [vmem:[#allocation2 + $0x28] sm:$0xff] }
 0x19c   :  { %v2092_v40 = vmul.f32 %v1991_v0, %v11052_v45  ;;  %v1006_v10 = vand.u32 2147483648, %v11186_v2  ;;  %v1525_v5 = vmul.f32 %v11263_v62, %v11195_v61  ;;  %v470_v26 = vadd.f32 %v11218_v31, %v469_v28  ;;  %vm11298_vm11 = vmor %vm1000_vm7, %vm1001_vm8  ;;  %2491 = vmatmul.bf16.gmra.mxu1 %v11328_v51 }
 0x19d   :  { %v8737_v38 = vpack.c.bf16 %v1567_v30, %v1566_v46  ;;  %vm472_vm9 = vweird.f32 %v11218_v31  ;;  %v11284_v45 = vadd.f32 1.0, %v9037_v48  ;;  %v477_v25 = vand.u32 2147483648, %v11184_v11 }
 0x19e   :  { %v8767_v6 = vpack.c.bf16 %v2092_v40, %v2091_v1  ;;  %v999_v18 = vadd.f32 %v11230_v8, %v998_v43  ;;  %v1004_v49 = vand.u32 2147483647, %v11186_v2  ;;  %v11289_v63 = vadd.f32 1.0, %v9041_v4  ;;  %v11291_v17 = vpop.eup %9042  ;;  %v8475_v43 = vld [vmem:[%s13505_s2 + $0x58] sm:$0xff] }
 0x19f   :  { %8805 = vst [vmem:[#allocation2 + $0xb0] sm:$0xff] %v8737_v38   ;;  %vm471_vm10 = vweird.f32 %v11184_v11  ;;  %v1535_v15 = vand.u32 2147483648, %v11195_v61  ;;  %9044 = vrcp.f32 %v11284_v45  ;;  %v1526_v21 = vsub.f32 1.0, %v1525_v5 }
 0x1a0   :  { %8811 = vst [vmem:[#allocation2 + $0xe0] sm:$0xff] %v8767_v6   ;;  %vm11304_vm12 = vmor %vm471_vm10, %vm472_vm9  ;;  %v1994_v11 = vmul.f32 %v11291_v17, %v11228_v44  ;;  %v2257_v56 = vshrl.u32 %v10792_v58, 16  ;;  %vm476_vm13 = vcmp.eq.f32.partialorder %v475_v35, 8.507059e+37  ;;  %v1007_v57 = vor.u32 1.1754944e-38, %v1006_v10  ;;  %v11374_v5 = vpop.f32.mrf.mxu3  ;;  %v8508_v6 = vld [vmem:[%s13505_s2 + $0xe0] sm:$0xff] }
 0x1a1   :  { %v474_v2 = vsel %vm11304_vm12, %v11218_v31, %v470_v26  ;;  %v2004_v12 = vand.u32 2147483648, %v11228_v44  ;;  %v478_v33 = vor.u32 1.1754944e-38, %v477_v25  ;;  %v1003_v7 = vsel %vm11298_vm11, %v11230_v8, %v999_v18  ;;  %v8476_v26 = vld [vmem:[%s13505_s2 + $0x60] sm:$0xff]  ;;  %4086 = vmatpush.bf16.msra.mxu3 %v8508_v6 }
 0x1a2   :  { %vm1005_vm14 = vcmp.eq.f32.partialorder %v1004_v49, 8.507059e+37  ;;  %9046 = vrcp.f32 %v11289_v63  ;;  %vm1529_vm0 = vweird.f32 %v11195_v61  ;;  %vm1530_vm1 = vweird.f32 %v11263_v62  ;;  %3539 = vmatpush.bf16.msra.mxu0 %v8476_v26 }
 0x1a3   :  { %v1533_v58 = vand.u32 2147483647, %v11195_v61  ;;  %v11324_v31 = vor.u32 1.1754944e-38, %v1535_v15  ;;  %v11330_v48 = vsel %vm476_vm13, %v478_v33, %v474_v2  ;;  %v1527_v8 = vmul.f32 %v11263_v62, %v1526_v21  ;;  %vm11400_vm8 = vmor %vm1529_vm0, %vm1530_vm1 }
 0x1a4   :  { %v1995_v46 = vsub.f32 1.0, %v1994_v11  ;;  %v2002_v9 = vand.u32 2147483647, %v11228_v44  ;;  %v11338_v34 = vsel %vm1005_vm14, %v1007_v57, %v1003_v7  ;;  %vm1998_vm2 = vweird.f32 %v11228_v44 }
 0x1a5   :  { %v11336_v20 = vpop.eup %9044  ;;  %v11341_v41 = vor.u32 1.1754944e-38, %v2004_v12  ;;  %v490_v1 = vand.u32 2147483647, %v11284_v45  ;;  %v2261_v54 = vshll.u32 %v11012_v13, 16  ;;  %v492_v22 = vand.u32 2147483648, %v11284_v45  ;;  %v11412_v12 = vld [vmem:[#allocation2 + $0x28] sm:$0xff] }
 0x1a6   :  { %v482_v36 = vmul.f32 %v11336_v20, %v11284_v45  ;;  %vm1015_vm3 = vweird.f32 %v11289_v63  ;;  %v1019_v23 = vand.u32 2147483647, %v11289_v63  ;;  %v2259_v37 = vor.u32 %v2257_v56, %v11055_v16  ;;  %3540 = vmatpush.bf16.msra.mxu0 %v8475_v43 }
 0x1a7   :  { %v11352_v50 = vrot.slane %v2261_v54, 1  ;;  %v2802_v29 = vshll.u32 %v11326_v53, 16  ;;  %v7103_v30 = vmul.f32 -1.442695, %v11334_v52  ;;  %v1996_v28 = vmul.f32 %v11291_v17, %v1995_v46 }
 0x1a8   :  { %v11356_v0 = vpop.eup %9046  ;;  %v483_v4 = vsub.f32 1.0, %v482_v36  ;;  %v2798_v40 = vshrl.u32 %v11028_v60, 16  ;;  %v7179_v35 = vmul.f32 -1.442695, %v11315_v24  ;;  %vm11361_vm4 = vcmp.eq.f32.partialorder %v1533_v58, 8.507059e+37  ;;  %v8492_v60 = vld [vmem:[%s13505_s2 + $0xa0] sm:$0xff] }
 0x1a9   :  { %vm487_vm5 = vweird.f32 %v11336_v20  ;;  %v1011_v16 = vmul.f32 %v11356_v0, %v11289_v63  ;;  %v1021_v38 = vand.u32 2147483648, %v11289_v63  ;;  %v2264_v10 = vsel %vm2228_vm15, %v2259_v37, %v11352_v50  ;;  %3821 = vmatpush.bf16.msra.mxu2 %v8492_v60 }
 0x1aa   :  { %v484_v25 = vmul.f32 %v11336_v20, %v483_v4  ;;  %2376 = vmatmul.bf16.gmra.mxu0 %v2264_v10  ;;  %v2800_v18 = vor.u32 %v2798_v40, %v11090_v47  ;;  %v11384_v49 = vrot.slane %v2802_v29, 1  ;;  %9048 = vpow2.f32 %v7103_v30  ;;  %v11465_v4 = vld [vmem:[#allocation2 + $0x30] sm:$0xff] }
 0x1ab   :  { %vm11389_vm6 = vcmp.eq.f32.partialorder %v2002_v9, 8.507059e+37  ;;  %v1012_v42 = vsub.f32 1.0, %v1011_v16  ;;  %vm1016_vm7 = vweird.f32 %v11356_v0  ;;  %9050 = vpow2.f32 %v7179_v35  ;;  %v8429_v40 = vld [vmem:[#allocation2 + $0x30] sm:$0xff] }
 0x1ac   :  { %v7180_v21 = vmul.f32 -1.442695, %v11374_v5  ;;  %v1528_v47 = vadd.f32 %v11263_v62, %v1527_v8  ;;  %v485_v56 = vadd.f32 %v11336_v20, %v484_v25  ;;  %vm486_vm9 = vweird.f32 %v11284_v45  ;;  %vm11419_vm13 = vmor %vm1015_vm3, %vm1016_vm7  ;;  %2496 = vmatmul.bf16.gmra.mxu1 %v11465_v4  ;;  %2669 = vmatmul.bf16.gmra.mxu2 %v8429_v40 }
 0x1ad   :  { %v2805_v2 = vsel %vm2228_vm15, %v2800_v18, %v11384_v49  ;;  %vm1999_vm10 = vweird.f32 %v11291_v17  ;;  %vm488_vm11 = vmor %vm486_vm9, %vm487_vm5  ;;  %v493_v57 = vor.u32 1.1754944e-38, %v492_v22  ;;  %v1013_v61 = vmul.f32 %v11356_v0, %v1012_v42 }
 0x1ae   :  { %2920 = vmatmul.bf16.gmra.mxu3 %v2805_v2  ;;  %9052 = vpow2.f32 %v7180_v21  ;;  %v489_v33 = vsel %vm488_vm11, %v11336_v20, %v485_v56  ;;  %vm491_vm12 = vcmp.eq.f32.partialorder %v490_v1, 8.507059e+37  ;;  %vm11423_vm14 = vcmp.eq.f32.partialorder %v1019_v23, 8.507059e+37  ;;  %vm11441_vm0 = vmor %vm1998_vm2, %vm1999_vm10 }
 0x1af   :  { %v1022_v58 = vor.u32 1.1754944e-38, %v1021_v38  ;;  %v1997_v14 = vadd.f32 %v11291_v17, %v1996_v28  ;;  %v494_v8 = vsel %vm491_vm12, %v493_v57, %v489_v33  ;;  %v1014_v46 = vadd.f32 %v11356_v0, %v1013_v61 }
 0x1b0   :  { %v2269_v9 = vshll.u32 %v11328_v51, 16  ;;  %v9049_v20 = vpop.eup %9048  ;;  %v510_v63 = vmul.f32 %v11330_v48, %v11058_v59  ;;  %v1039_v1 = vmul.f32 %v11338_v34, %v11093_v19  ;;  %v1532_v54 = vsel %vm11400_vm8, %v11263_v62, %v1528_v47  ;;  %v11453_v34 = vpop.f32.mrf.mxu3 }
 0x1b1   :  { %v511_v22 = vmul.f32 %v494_v8, %v11166_v39  ;;  %v9051_v23 = vpop.eup %9050  ;;  %v1018_v59 = vsel %vm11419_vm13, %v11356_v0, %v1014_v46  ;;  %v11449_v19 = vadd.f32 1.0, %v9049_v20  ;;  %v2265_v48 = vshrl.u32 %v11012_v13, 16 }
 0x1b2   :  { %v2810_v62 = vshll.u32 %v11412_v12, 16  ;;  %v1023_v37 = vsel %vm11423_vm14, %v1022_v58, %v1018_v59  ;;  %v11457_v29 = vadd.f32 1.0, %v9051_v23  ;;  %v7181_v39 = vmul.f32 -1.442695, %v11453_v34  ;;  %v8488_v23 = vld [vmem:[%s13505_s2 + $0x80] sm:$0xff] }
 0x1b3   :  { %v8662_v44 = vpack.c.bf16 %v511_v22, %v510_v63  ;;  %v2001_v0 = vsel %vm11441_vm0, %v11291_v17, %v1997_v14  ;;  %v1040_v28 = vmul.f32 %v1023_v37, %v11170_v27  ;;  %9054 = vrcp.f32 %v11449_v19  ;;  %v8491_v17 = vld [vmem:[%s13505_s2 + $0x98] sm:$0xff]  ;;  %v11523_v14 = vld [vmem:[#allocation2 + $0x30] sm:$0xff] }
 0x1b4   :  { %v9053_v30 = vpop.eup %9052  ;;  %v2271_v13 = vrot.slane %v2269_v9, 1  ;;  %v1537_v35 = vsel %vm11361_vm4, %v11324_v31, %v1532_v54  ;;  %9056 = vrcp.f32 %v11457_v29  ;;  %v2267_v16 = vor.u32 %v2265_v48, %v11352_v50  ;;  %3822 = vmatpush.bf16.msra.mxu2 %v8491_v17  ;;  %v8507_v50 = vld [vmem:[%s13505_s2 + $0xd8] sm:$0xff] }
 0x1b5   :  { %8790 = vst [vmem:[#allocation2 + $0x38] sm:$0xff] %v8662_v44   ;;  %v8702_v27 = vpack.c.bf16 %v1040_v28, %v1039_v1  ;;  %v11475_v38 = vadd.f32 1.0, %v9053_v30  ;;  %v2806_v10 = vshrl.u32 %v11326_v53, 16  ;;  %v11478_v60 = vrot.slane %v2810_v62, 1  ;;  %v8467_v53 = vld [vmem:[%s13505_s2 + $0x18] sm:$0xff]  ;;  %4087 = vmatpush.bf16.msra.mxu3 %v8507_v50  ;;  %v8506_v50 = vld [vmem:[%s13505_s2 + $0xd0] sm:$0xff] }
 0x1b6   :  { %v2006_v31 = vsel %vm11389_vm6, %v11341_v41, %v2001_v0  ;;  %9058 = vpow2.f32 %v7181_v39  ;;  %v2272_v6 = vsel %vm2228_vm15, %v2267_v16, %v2271_v13  ;;  %v11497_v26 = vmul.f32 %v1537_v35, %v11107_v3  ;;  %3645 = vmatpush.bf16.msra.mxu1 %v8467_v53  ;;  %v8490_v35 = vld [vmem:[%s13505_s2 + $0x90] sm:$0xff] }
 0x1b7   :  { %8798 = vst [vmem:[#allocation2 + $0x78] sm:$0xff] %v8702_v27   ;;  %9060 = vrcp.f32 %v11475_v38  ;;  %v2808_v41 = vor.u32 %v2806_v10, %v11384_v49  ;;  %v11500_v18 = vmul.f32 %v2006_v31, %v11152_v32  ;;  %v2273_v42 = vshrl.u32 %v11328_v51, 16  ;;  %v8466_v31 = vld [vmem:[%s13505_s2 + $0x10] sm:$0xff] }
 0x1b8   :  { %v11504_v15 = vpop.f32.mrf.mxu3  ;;  %v2814_v21 = vshrl.u32 %v11412_v12, 16  ;;  %v1548_v47 = vand.u32 2147483647, %v11449_v19  ;;  %v1550_v11 = vand.u32 2147483648, %v11449_v19  ;;  %vm1544_vm1 = vweird.f32 %v11449_v19  ;;  %3823 = vmatpush.bf16.msra.mxu2 %v8490_v35  ;;  %v8465_v12 = vld [vmem:[%s13505_s2 + $0x8] sm:$0xff] }
 0x1b9   :  { %v9055_v25 = vpop.eup %9054  ;;  %v2813_v55 = vsel %vm2228_vm15, %v2808_v41, %v11478_v60  ;;  %v7182_v32 = vmul.f32 -1.442695, %v11504_v15  ;;  %v2017_v2 = vand.u32 2147483647, %v11457_v29  ;;  %v11515_v51 = vor.u32 %v2273_v42, %v2271_v13  ;;  %v8474_v41 = vld [vmem:[%s13505_s2 + $0x50] sm:$0xff]  ;;  %4088 = vmatpush.bf16.msra.mxu3 %v8506_v50 }
 0x1ba   :  { %v9057_v49 = vpop.eup %9056  ;;  %v1540_v3 = vmul.f32 %v9055_v25, %v11449_v19  ;;  %2381 = vmatmul.bf16.gmra.mxu0 %v2272_v6  ;;  %vm1545_vm2 = vweird.f32 %v9055_v25  ;;  %v2019_v33 = vand.u32 2147483648, %v11457_v29  ;;  %vm2013_vm3 = vweird.f32 %v11457_v29  ;;  %3646 = vmatpush.bf16.msra.mxu1 %v8466_v31  ;;  %v11670_v31 = vld [vmem:[#allocation2 + $0x40] sm:$0xff]  ;;  %v11721_v50 = vld [vmem:[#allocation2 + $0x50] sm:$0xff] }
 0x1bb   :  { %v2009_v56 = vmul.f32 %v9057_v49, %v11457_v29  ;;  %9062 = vpow2.f32 %v7182_v32  ;;  %vm2014_vm4 = vweird.f32 %v9057_v49  ;;  %vm11525_vm5 = vcmp.eq.f32.partialorder %v1548_v47, 8.507059e+37  ;;  %vm11533_vm6 = vmor %vm1544_vm1, %vm1545_vm2  ;;  %3541 = vmatpush.bf16.msra.mxu0 %v8474_v41 }
 0x1bc   :  { %v9059_v57 = vpop.eup %9058  ;;  %v1541_v61 = vsub.f32 1.0, %v1540_v3  ;;  %v1551_v9 = vor.u32 1.1754944e-38, %v1550_v11  ;;  %vm11537_vm7 = vcmp.eq.f32.partialorder %v2017_v2, 8.507059e+37  ;;  %v2277_v36 = vshll.u32 %v11465_v4, 16  ;;  %vm11545_vm8 = vmor %vm2013_vm3, %vm2014_vm4  ;;  %v11560_v13 = vld [vmem:[#allocation2 + $0x38] sm:$0xff] }
 0x1bd   :  { %v11518_v45 = vpop.eup %9060  ;;  %v2010_v7 = vsub.f32 1.0, %v2009_v56  ;;  %v11521_v58 = vadd.f32 1.0, %v9059_v57  ;;  %v2020_v59 = vor.u32 1.1754944e-38, %v2019_v33  ;;  %vm2028_vm9 = vweird.f32 %v11475_v38  ;;  %v8430_v40 = vld [vmem:[#allocation2 + $0x38] sm:$0xff]  ;;  %2501 = vmatmul.bf16.gmra.mxu1 %v11560_v13 }
 0x1be   :  { %2925 = vmatmul.bf16.gmra.mxu3 %v2813_v55  ;;  %v1542_v8 = vmul.f32 %v9055_v25, %v1541_v61  ;;  %v2024_v20 = vmul.f32 %v11518_v45, %v11475_v38  ;;  %v2032_v62 = vand.u32 2147483647, %v11475_v38  ;;  %v2034_v44 = vand.u32 2147483648, %v11475_v38  ;;  %2674 = vmatmul.bf16.gmra.mxu2 %v8430_v40  ;;  %v11638_v63 = vld [vmem:[#allocation2 + $0x38] sm:$0xff] }
 0x1bf   :  { %v2011_v1 = vmul.f32 %v9057_v49, %v2010_v7  ;;  %9064 = vrcp.f32 %v11521_v58  ;;  %v2818_v37 = vshll.u32 %v11523_v14, 16  ;;  %vm2029_vm10 = vweird.f32 %v11518_v45  ;;  %3647 = vmatpush.bf16.msra.mxu1 %v8465_v12  ;;  %v2362_v7 = vpop.f32.mrf.mxu0 }
 0x1c0   :  { %v1543_v22 = vadd.f32 %v9055_v25, %v1542_v8  ;;  %v2025_v19 = vsub.f32 1.0, %v2024_v20  ;;  %v11553_v39 = vpop.f32.mrf.mxu3  ;;  %v11571_v10 = vrot.slane %v2277_v36, 1  ;;  %vm11591_vm11 = vmor %vm2028_vm9, %vm2029_vm10  ;;  %vm11595_vm12 = vcmp.eq.f32.partialorder %v2032_v62, 8.507059e+37 }
 0x1c1   :  { %v2012_v48 = vadd.f32 %v9057_v49, %v2011_v1  ;;  %v9063_v30 = vpop.eup %9062  ;;  %v7183_v28 = vmul.f32 -1.442695, %v11553_v39  ;;  %v2035_v3 = vor.u32 1.1754944e-38, %v2034_v44  ;;  %v11609_v11 = vrot.slane %v2818_v37, 1  ;;  %v8505_v1 = vld [vmem:[%s13505_s2 + $0xc8] sm:$0xff]  ;;  %v11659_v37 = vpop.f32.mrf.mxu1 }
 0x1c2   :  { %v1547_v29 = vsel %vm11533_vm6, %v9055_v25, %v1543_v22  ;;  %v2026_v0 = vmul.f32 %v11518_v45, %v2025_v19  ;;  %v11569_v27 = vadd.f32 1.0, %v9063_v30  ;;  %vm2043_vm13 = vweird.f32 %v11521_v58  ;;  %4089 = vmatpush.bf16.msra.mxu3 %v8505_v1  ;;  %v2645_v1 = vpop.f32.mrf.mxu2 }
 0x1c3   :  { %v1552_v16 = vsel %vm11525_vm5, %v1551_v9, %v1547_v29  ;;  %v2016_v17 = vsel %vm11545_vm8, %v9057_v49, %v2012_v48  ;;  %9066 = vpow2.f32 %v7183_v28  ;;  %v2816_v49 = vor.u32 %v2814_v21, %v11478_v60 }
 0x1c4   :  { %v1569_v43 = vmul.f32 %v1552_v16, %v11334_v52  ;;  %v2021_v53 = vsel %vm11537_vm7, %v2020_v59, %v2016_v17  ;;  %v2027_v6 = vadd.f32 %v11518_v45, %v2026_v0  ;;  %9068 = vrcp.f32 %v11569_v27  ;;  %v8431_v17 = vld [vmem:[#allocation2 + $0x40] sm:$0xff] }
 0x1c5   :  { %v9065_v25 = vpop.eup %9064  ;;  %v2094_v55 = vmul.f32 %v2021_v53, %v11315_v24  ;;  %v8489_v24 = vld [vmem:[%s13505_s2 + $0x88] sm:$0xff]  ;;  %v2049_v21 = vand.u32 2147483648, %v11521_v58  ;;  %v2047_v2 = vand.u32 2147483647, %v11521_v58  ;;  %v2821_v61 = vsel %vm2228_vm15, %v2816_v49, %v11609_v11 }
 0x1c6   :  { %v8742_v38 = vpack.c.bf16 %v1569_v43, %v11497_v26  ;;  %v2039_v47 = vmul.f32 %v9065_v25, %v11521_v58  ;;  %v2280_v26 = vsel %vm2228_vm15, %v11515_v51, %v11571_v10  ;;  %v2031_v32 = vsel %vm11591_vm11, %v11518_v45, %v2027_v6  ;;  %3824 = vmatpush.bf16.msra.mxu2 %v8489_v24  ;;  %v8464_v51 = vld [vmem:[%s13505_s2] sm:$0xff]  ;;  %v8473_v58 = vld [vmem:[%s13505_s2 + $0x48] sm:$0xff] }
 0x1c7   :  { %v8772_v60 = vpack.c.bf16 %v2094_v55, %v11500_v18  ;;  %vm2044_vm14 = vweird.f32 %v9065_v25  ;;  %v2036_v45 = vsel %vm11595_vm12, %v2035_v3, %v2031_v32  ;;  %v2050_v8 = vor.u32 1.1754944e-38, %v2049_v21  ;;  %3648 = vmatpush.bf16.msra.mxu1 %v8464_v51  ;;  %3542 = vmatpush.bf16.msra.mxu0 %v8473_v58  ;;  %v2167_v24 = vld [vmem:[#allocation2 + $0x40] sm:$0x1] }
 0x1c8   :  { %8806 = vst [vmem:[#allocation2 + $0xb8] sm:$0xff] %v8742_v38   ;;  %v2040_v56 = vsub.f32 1.0, %v2039_v47  ;;  %vm11633_vm0 = vmor %vm2043_vm13, %vm2044_vm14  ;;  %vm2048_vm1 = vcmp.eq.f32.partialorder %v2047_v2, 8.507059e+37  ;;  %v2095_v54 = vmul.f32 %v2036_v45, %v11374_v5  ;;  %vm2058_vm2 = vweird.f32 %v11569_v27  ;;  %v8472_v5 = vld [vmem:[%s13505_s2 + $0x40] sm:$0xff]  ;;  %v8480_v45 = vld [vmem:[#allocation2 + $0x48] sm:$0xff] }
 0x1c9   :  { %8812 = vst [vmem:[#allocation2 + $0xe8] sm:$0xff] %v8772_v60   ;;  %v9067_v18 = vpop.eup %9066  ;;  %v2285_v19 = vshll.u32 %v11560_v13, 16  ;;  %v2062_v44 = vand.u32 2147483647, %v11569_v27  ;;  %v2064_v30 = vand.u32 2147483648, %v11569_v27  ;;  %v2826_v29 = vshll.u32 %v11638_v63, 16  ;;  %v2469_v12 = vpop.f32.mrf.mxu1 }
 0x1ca   :  { %v2041_v57 = vmul.f32 %v9065_v25, %v2040_v56  ;;  %2386 = vmatmul.bf16.gmra.mxu0 %v2280_v26  ;;  %v9069_v33 = vpop.eup %9068  ;;  %v1842_v46 = vadd.f32 1.0, %v9067_v18  ;;  %3825 = vmatpush.bf16.msra.mxu2 %v8488_v23  ;;  %v2281_v40 = vshrl.u32 %v11465_v4, 16  ;;  %v2822_v53 = vshrl.u32 %v11523_v14, 16  ;;  %v8551_v56 = vld [vmem:[%s13505_s2 + $0xb8] sm:$0xff] }
 0x1cb   :  { %v2054_v20 = vmul.f32 %v9069_v33, %v11569_v27  ;;  %vm2059_vm3 = vweird.f32 %v9069_v33  ;;  %v2287_v16 = vrot.slane %v2285_v19, 1  ;;  %3543 = vmatpush.bf16.msra.mxu0 %v8472_v5  ;;  %vm11672_vm5 = vcmp.eq.f32.partialorder %v2062_v44, 8.507059e+37  ;;  %v8527_v44 = vld [vmem:[%s13505_s2 + $0x38] sm:$0xff] }
 0x1cc   :  { %v2042_v9 = vadd.f32 %v9065_v25, %v2041_v57  ;;  %9070 = vrcp.f32 %v1842_v46  ;;  %vm11666_vm4 = vmor %vm2058_vm2, %vm2059_vm3  ;;  %v2283_v4 = vor.u32 %v2281_v40, %v11571_v10  ;;  %v2065_v27 = vor.u32 1.1754944e-38, %v2064_v30  ;;  %4821 = vmatpush.bf16.msrb.mxu1 %v8527_v44 }
 0x1cd   :  { %v2055_v22 = vsub.f32 1.0, %v2054_v20  ;;  %vm2073_vm6 = vweird.f32 %v1842_v46  ;;  %v2079_v6 = vand.u32 2147483648, %v1842_v46  ;;  %v2828_v41 = vrot.slane %v2826_v29, 1  ;;  %3649 = vmatmul.bf16.vlgmr.msra.gmra.mxu1 %v11670_v31 }
 0x1ce   :  { %2930 = vmatmul.bf16.gmra.mxu3 %v2821_v61  ;;  %v2046_v36 = vsel %vm11633_vm0, %v9065_v25, %v2042_v9  ;;  %2679 = vmatmul.bf16.gmra.mxu2 %v8431_v17  ;;  %v2077_v52 = vand.u32 2147483647, %v1842_v46  ;;  %v2288_v42 = vsel %vm2228_vm15, %v2283_v4, %v2287_v16  ;;  %v2824_v10 = vor.u32 %v2822_v53, %v11609_v11  ;;  %v8504_v11 = vld [vmem:[%s13505_s2 + $0xc0] sm:$0xff]  ;;  %v2647_v17 = vpop.f32.mrf.mxu2 }
 0x1cf   :  { %v2051_v59 = vsel %vm2048_vm1, %v2050_v8, %v2046_v36  ;;  %v2056_v62 = vmul.f32 %v9069_v33, %v2055_v22  ;;  %v2080_v38 = vor.u32 1.1754944e-38, %v2079_v6  ;;  %v2218_v60 = vunpack.c.l.b16 %v2167_v24  ;;  %4090 = vmatpush.bf16.msra.mxu3 %v8504_v11  ;;  %4998 = vmatpush.bf16.msrb.mxu2 %v8551_v56  ;;  %v8447_v61 = vld [vmem:[#allocation2 + $0x40] sm:$0xff]  ;;  %v2717_v36 = vld [vmem:[#allocation2 + $0x48] sm:$0x1]  ;;  %v8550_v24 = vld [vmem:[%s13505_s2 + $0xb0] sm:$0xff] }
 0x1d0   :  { %v2096_v48 = vmul.f32 %v2051_v59, %v11453_v34  ;;  %vm2078_vm9 = vcmp.eq.f32.partialorder %v2077_v52, 8.507059e+37  ;;  %v2829_v47 = vsel %vm2228_vm15, %v2824_v10, %v2828_v41  ;;  %v2834_v9 = vshll.u32 %v8447_v61, 16  ;;  %v11743_v56 = vld [vmem:[#allocation2 + $0x50] sm:$0xff] }
 0x1d1   :  { %v2057_v28 = vadd.f32 %v9069_v33, %v2056_v62  ;;  %v2227_v18 = vpack.c.b16 %v2218_v60, %v2218_v60  ;;  %v11697_v8 = vpop.f32.mrf.mxu1  ;;  %v2768_v19 = vunpack.c.l.b16 %v2717_v36  ;;  %v3415_v5 = vshll.u32 %v11670_v31, 16  ;;  %v8535_v62 = vld [vmem:[%s13505_s2 + $0x78] sm:$0xff]  ;;  %v8566_v60 = vld [vmem:[%s13505_s2 + $0xf0] sm:$0xff] }
 0x1d2   :  { %v8777_v0 = vpack.c.bf16 %v2096_v48, %v2095_v54  ;;  %v9071_v35 = vpop.eup %9070  ;;  %v2468_v54 = vadd.f32 %v11659_v37, %v2362_v7  ;;  %v2836_v22 = vrot.slane %v2834_v9, 1  ;;  %v2364_v48 = vpop.f32.mrf.mxu0  ;;  %4716 = vmatpush.bf16.msrb.mxu0 %v8535_v62  ;;  %v3413_v34 = vshrl.u32 %v11670_v31, 16 }
 0x1d3   :  { %v2069_v43 = vmul.f32 %v9071_v35, %v1842_v46  ;;  %v2061_v25 = vsel %vm11666_vm4, %v9069_v33, %v2057_v28  ;;  %vm2074_vm7 = vweird.f32 %v9071_v35  ;;  %v2293_v51 = vshll.u32 %v2227_v18, 16  ;;  %v11695_v33 = vld [vmem:[#allocation2 + $0x48] sm:$0xff]  ;;  %4999 = vmatpush.bf16.msrb.mxu2 %v8550_v24  ;;  %v11784_v24 = vld [vmem:[#allocation2 + $0x58] sm:$0xff] }
 0x1d4   :  { %8813 = vst [vmem:[#allocation2 + $0xf0] sm:$0xff] %v8777_v0   ;;  %v2066_v14 = vsel %vm11672_vm5, %v2065_v27, %v2061_v25  ;;  %vm2075_vm8 = vmor %vm2073_vm6, %vm2074_vm7  ;;  %v2685_v59 = vadd.f32 %v2645_v1, %v2468_v54  ;;  %v2777_v0 = vpack.c.b16 %v2768_v19, %v2768_v19  ;;  %v2470_v28 = vadd.f32 %v2469_v12, %v2364_v48  ;;  %v8496_v12 = vld [vmem:[#allocation2 + $0x48] sm:$0xff] }
 0x1d5   :  { %v2070_v55 = vsub.f32 1.0, %v2069_v43  ;;  %v2097_v21 = vmul.f32 %v2066_v14, %v11504_v15  ;;  %v2289_v15 = vshrl.u32 %v11560_v13, 16  ;;  %v2295_v20 = vrot.slane %v2293_v51, 1  ;;  %v8481_v43 = vld [vmem:[#allocation2 + $0x50] sm:$0xff] }
 0x1d6   :  { %v2838_v4 = vshrl.u32 %v8447_v61, 16  ;;  %v2842_v53 = vshll.u32 %v2777_v0, 16  ;;  %v2686_v27 = vadd.f32 %v2647_v17, %v2470_v28  ;;  %v2650_v11 = vpop.f32.mrf.mxu2  ;;  %v3424_v61 = vshrl.u32 %v11695_v33, 16 }
 0x1d7   :  { %v2071_v49 = vmul.f32 %v9071_v35, %v2070_v55  ;;  %v2291_v46 = vor.u32 %v2289_v15, %v2287_v16  ;;  %v3417_v16 = vrot.slane %v3415_v5, 1  ;;  %v3428_v15 = vshll.u32 %v11721_v50, 16 }
 0x1d8   :  { %v2844_v31 = vrot.slane %v2842_v53, 1  ;;  %v3960_v9 = vshrl.u32 %v8496_v12, 16  ;;  %v3967_v1 = vshll.u32 %v11743_v56, 16  ;;  %vm3303_vm14 = vcmask 519168  }
 0x1d9   :  { %v2072_v3 = vadd.f32 %v9071_v35, %v2071_v49  ;;  %v2296_v13 = vsel %vm2228_vm15, %v2291_v46, %v2295_v20  ;;  %v11714_v30 = vpop.f32.mrf.mxu1  ;;  %v11753_v46 = vld [vmem:[#allocation2 + $0x58] sm:$0xff] }
 0x1da   :  { %2391 = vmatmul.bf16.gmra.mxu0 %v2288_v42  ;;  %v2840_v42 = vor.u32 %v2838_v4, %v2836_v22  ;;  %v11761_v48 = vrot.slane %v3967_v1, 1 }
 0x1db   :  { %v2076_v26 = vsel %vm2075_vm8, %v9071_v35, %v2072_v3  ;;  %v3420_v35 = vshll.u32 %v11695_v33, 16 }
 0x1dc   :  { %v2081_v32 = vsel %vm2078_vm9, %v2080_v38, %v2076_v26  ;;  %v2845_v3 = vsel %vm2228_vm15, %v2840_v42, %v2844_v31  ;;  %v8526_v26 = vld [vmem:[%s13505_s2 + $0x30] sm:$0xff]  ;;  %v3432_v31 = vshrl.u32 %v11721_v50, 16 }
 0x1dd   :  { %v2098_v2 = vmul.f32 %v2081_v32, %v11553_v39  ;;  %3654 = vmatmul.bf16.gmra.mxu1 %v11695_v33  ;;  %v2830_v39 = vshrl.u32 %v11638_v63, 16  ;;  %v8567_v63 = vld [vmem:[%s13505_s2 + $0xf8] sm:$0xff]  ;;  %v3422_v6 = vrot.slane %v3420_v35, 1  ;;  %v11756_v33 = vrot.slane %v3428_v15, 1 }
 0x1de   :  { %2935 = vmatmul.bf16.gmra.mxu3 %v2829_v47  ;;  %3826 = vmatmul.bf16.vlgmr.msra.gmra.mxu2 %v8480_v45  ;;  %v2367_v47 = vpop.f32.mrf.mxu0  ;;  %v2652_v35 = vpop.f32.mrf.mxu2 }
 0x1df   :  { %v8782_v57 = vpack.c.bf16 %v2098_v2, %v2097_v21  ;;  %v2832_v58 = vor.u32 %v2830_v39, %v2828_v41  ;;  %5263 = vmatpush.bf16.msrb.mxu3 %v8567_v63  ;;  %v3418_v41 = vor.u32 %v3417_v16, %v3413_v34  ;;  %v8534_v21 = vld [vmem:[%s13505_s2 + $0x70] sm:$0xff]  ;;  %v3962_v2 = vshll.u32 %v8496_v12, 16  ;;  %4822 = vmatpush.bf16.msrb.mxu1 %v8526_v26  ;;  %v8482_v39 = vld [vmem:[#allocation2 + $0x58] sm:$0xff]  ;;  %v8565_v12 = vld [vmem:[%s13505_s2 + $0xe8] sm:$0xff] }
 0x1e0   :  { %v2911_v37 = vpop.f32.mrf.mxu3  ;;  %4717 = vmatpush.bf16.msrb.mxu0 %v8534_v21  ;;  %v3426_v54 = vor.u32 %v3424_v61, %v3422_v6  ;;  %v8525_v26 = vld [vmem:[%s13505_s2 + $0x28] sm:$0xff]  ;;  %v3975_v61 = vshll.u32 %v11784_v24, 16 }
 0x1e1   :  { %8814 = vst [vmem:[#allocation2 + $0xf8] sm:$0xff] %v8782_v57   ;;  %v2837_v23 = vsel %vm2228_vm15, %v2832_v58, %v2836_v22  ;;  %v11716_v29 = vadd.f32 %v2911_v37, %v2685_v59  ;;  %v11726_v49 = vpop.f32.mrf.mxu1  ;;  %v3423_v14 = vsel %vm2228_vm15, %v3418_v41, %v3422_v6  ;;  %v2473_v57 = vadd.f32 %v11697_v8, %v2367_v47  ;;  %v8549_v47 = vld [vmem:[%s13505_s2 + $0xa8] sm:$0xff] }
 0x1e2   :  { %v3964_v20 = vrot.slane %v3962_v2, 1  ;;  %v3431_v44 = vsel %vm2228_vm15, %v3426_v54, %v11756_v33  ;;  %v8483_v2 = vld [vmem:[#allocation2 + $0x60] sm:$0xff]  ;;  %5000 = vmatpush.bf16.msrb.mxu2 %v8549_v47 }
 0x1e3   :  { %v7456_v40 = vmul.f32 -1.442695, %v11716_v29  ;;  %5264 = vmatpush.bf16.msrb.mxu3 %v8566_v60  ;;  %v2687_v8 = vadd.f32 %v2650_v11, %v2473_v57  ;;  %v11799_v11 = vld [vmem:[#allocation2 + $0x60] sm:$0xff]  ;;  %v3971_v57 = vshrl.u32 %v11743_v56, 16  ;;  %4823 = vmatpush.bf16.msrb.mxu1 %v8525_v26  ;;  %v3977_v56 = vrot.slane %v3975_v61, 1  ;;  %v11847_v61 = vld [vmem:[#allocation2 + $0x68] sm:$0xff] }
 0x1e4   :  { %v3965_v5 = vor.u32 %v3964_v20, %v3960_v9 }
 0x1e5   :  { %9072 = vpow2.f32 %v7456_v40 }
 0x1e6   :  { %v3970_v17 = vsel %vm2228_vm15, %v3965_v5, %v11761_v48 }
 0x1e7   :  { %5265 = vmatpush.bf16.msrb.mxu3 %v8565_v12 }
 0x1e8   :  { %v2913_v25 = vpop.f32.mrf.mxu3 }
 0x1e9   :  { %v11724_v55 = vadd.f32 %v2913_v25, %v2686_v27  ;;  %v11750_v45 = vpop.f32.mrf.mxu1 }
 0x1ea   :  { %2396 = vmatmul.bf16.gmra.mxu0 %v2296_v13 }
 0x1eb   :  { %v9073_v52 = vpop.eup %9072  ;;  %v7457_v10 = vmul.f32 -1.442695, %v11724_v55 }
 0x1ec   :  { %v3015_v38 = vadd.f32 1.0, %v9073_v52 }
 0x1ed   :  { %3659 = vmatmul.bf16.gmra.mxu1 %v11721_v50  ;;  %9074 = vpow2.f32 %v7457_v10  ;;  %v3436_v10 = vshll.u32 %v11753_v46, 16  ;;  %v8533_v50 = vld [vmem:[%s13505_s2 + $0x68] sm:$0xff] }
 0x1ee   :  { %2940 = vmatmul.bf16.gmra.mxu3 %v2837_v23  ;;  %3831 = vmatmul.bf16.gmra.mxu2 %v8481_v43  ;;  %9076 = vrcp.f32 %v3015_v38  ;;  %v3042_v13 = vand.u32 2147483648, %v3015_v38  ;;  %v3040_v22 = vand.u32 2147483647, %v3015_v38  ;;  %v2369_v23 = vpop.f32.mrf.mxu0  ;;  %vm3036_vm11 = vweird.f32 %v3015_v38 }
 0x1ef   :  { %v2475_v0 = vadd.f32 %v11714_v30, %v2369_v23  ;;  %4718 = vmatpush.bf16.msrb.mxu0 %v8533_v50 }
 0x1f0   :  { %v3043_v37 = vor.u32 1.1754944e-38, %v3042_v13  ;;  %vm3041_vm13 = vcmp.eq.f32.partialorder %v3040_v22, 8.507059e+37 }
 0x1f1   :  { %v11771_v4 = vpop.f32.mrf.mxu1  ;;  %v2688_v30 = vadd.f32 %v2652_v35, %v2475_v0  ;;  %v3444_v0 = vshll.u32 %v11799_v11, 16 }
 0x1f3   :  { %v9075_v32 = vpop.eup %9074 }
 0x1f4   :  { %v9077_v18 = vpop.eup %9076  ;;  %v11748_v51 = vadd.f32 1.0, %v9075_v32 }
 0x1f5   :  { %v3032_v7 = vmul.f32 %v9077_v18, %v3015_v38  ;;  %vm3037_vm10 = vweird.f32 %v9077_v18 }
 0x1f6   :  { %9078 = vrcp.f32 %v11748_v51  ;;  %vm3038_vm12 = vmor %vm3036_vm11, %vm3037_vm10  ;;  %v3057_v27 = vand.u32 2147483648, %v11748_v51  ;;  %v3055_v25 = vand.u32 2147483647, %v11748_v51  ;;  %vm3051_vm1 = vweird.f32 %v11748_v51 }
 0x1f7   :  { %v3033_v58 = vsub.f32 1.0, %v3032_v7  ;;  %v3434_v7 = vor.u32 %v3432_v31, %v11756_v33 }
 0x1f8   :  { %v3058_v38 = vor.u32 1.1754944e-38, %v3057_v27  ;;  %vm3056_vm3 = vcmp.eq.f32.partialorder %v3055_v25, 8.507059e+37 }
 0x1f9   :  { %v3034_v36 = vmul.f32 %v9077_v18, %v3033_v58  ;;  %v11810_v20 = vpop.f32.mrf.mxu1 }
 0x1fa   :  { %3544 = vmatmul.bf16.vlgmr.msra.gmra.mxu0 %v3423_v14 }
 0x1fb   :  { %v3035_v63 = vadd.f32 %v9077_v18, %v3034_v36 }
 0x1fc   :  { %v9079_v62 = vpop.eup %9078 }
 0x1fd   :  { %3664 = vmatmul.bf16.gmra.mxu1 %v11753_v46  ;;  %v3039_v40 = vsel %vm3038_vm12, %v9077_v18, %v3035_v63  ;;  %v3047_v34 = vmul.f32 %v9079_v62, %v11748_v51  ;;  %vm3052_vm0 = vweird.f32 %v9079_v62  ;;  %v11804_v15 = vpop.f32.mrf.mxu0  ;;  %v11806_v51 = vpop.f32.mrf.mxu2 }
 0x1fe   :  { %2945 = vmatmul.bf16.gmra.mxu3 %v2845_v3  ;;  %3836 = vmatmul.bf16.gmra.mxu2 %v8482_v39  ;;  %v3044_v16 = vsel %vm3041_vm13, %v3043_v37, %v3039_v40  ;;  %vm3053_vm2 = vmor %vm3051_vm1, %vm3052_vm0  ;;  %v3438_v39 = vrot.slane %v3436_v10, 1  ;;  %v3440_v37 = vshrl.u32 %v11753_v46, 16  ;;  %v2478_v50 = vadd.f32 %v11726_v49, %v11804_v15 }
 0x1ff   :  { %v3271_v43 = vmul.f32 %v3044_v16, %v11716_v29  ;;  %v3048_v53 = vsub.f32 1.0, %v3047_v34  ;;  %v11827_v16 = vld [vmem:[#allocation2 + $0x68] sm:$0xff]  ;;  %v3448_v15 = vshrl.u32 %v11799_v11, 16 }
 0x200   :  { %v3439_v58 = vsel %vm2228_vm15, %v3434_v7, %v3438_v39  ;;  %v3442_v46 = vor.u32 %v3440_v37, %v3438_v39  ;;  %v3452_v7 = vshll.u32 %v11827_v16, 16 }
 0x201   :  { %v3287_v6 = vpack.c.bf16 %v3271_v43, %v3271_v43  ;;  %v3049_v41 = vmul.f32 %v9079_v62, %v3048_v53  ;;  %v3979_v53 = vshrl.u32 %v11784_v24, 16 }
 0x203   :  { %3304 = vst.msk [vmem:[%s13506_s3] sm:$0xf] %vm3303_vm14, %v3287_v6  ;;  %v3050_v29 = vadd.f32 %v9079_v62, %v3049_v41  ;;  %v3446_v41 = vrot.slane %v3444_v0, 1  ;;  %v3981_v10 = vor.u32 %v3979_v53, %v3977_v56 }
 0x205   :  { %v3054_v60 = vsel %vm3053_vm2, %v9079_v62, %v3050_v29  ;;  %v2374_v5 = vpop.f32.mrf.mxu0  ;;  %v11819_v63 = vpop.f32.mrf.mxu2  ;;  %v11823_v62 = vld [vmem:[#allocation2 + $0x60] sm:$0xff] }
 0x206   :  { %v3059_v32 = vsel %vm3056_vm3, %v3058_v38, %v3054_v60 }
 0x207   :  { %v2916_v59 = vpop.f32.mrf.mxu3  ;;  %v3272_v18 = vmul.f32 %v3059_v32, %v11724_v55  ;;  %v3973_v55 = vor.u32 %v3971_v57, %v11761_v48  ;;  %v11821_v48 = vpop.f32.mrf.mxu1 }
 0x208   :  { %v11759_v19 = vadd.f32 %v2916_v59, %v2687_v8 }
 0x209   :  { %v3288_v9 = vpack.c.bf16 %v3272_v18, %v3272_v18  ;;  %v3978_v13 = vsel %vm2228_vm15, %v3973_v55, %v3977_v56  ;;  %v11861_v55 = vld [vmem:[#allocation2 + $0x70] sm:$0xff] }
 0x20a   :  { %v7458_v28 = vmul.f32 -1.442695, %v11759_v19  ;;  %3549 = vmatmul.bf16.gmra.mxu0 %v3431_v44  ;;  %v8485_v56 = vld [vmem:[#allocation2 + $0x70] sm:$0xff] }
 0x20b   :  { %3305 = vst.msk [vmem:[%s13506_s3 + $0x4] sm:$0xf] %vm3303_vm14, %v3288_v9 }
 0x20c   :  { %9080 = vpow2.f32 %v7458_v28 }
 0x20d   :  { %3669 = vmatmul.bf16.gmra.mxu1 %v11799_v11  ;;  %v11837_v38 = vpop.f32.mrf.mxu2  ;;  %v3450_v11 = vor.u32 %v3448_v15, %v3446_v41 }
 0x20e   :  { %4091 = vmatmul.bf16.vlgmr.msra.gmra.mxu3 %v3970_v17  ;;  %3841 = vmatmul.bf16.gmra.mxu2 %v8483_v2  ;;  %v8484_v17 = vld [vmem:[#allocation2 + $0x68] sm:$0xff]  ;;  %v2689_v2 = vadd.f32 %v11806_v51, %v2478_v50 }
 0x20f   :  { %v2918_v52 = vpop.f32.mrf.mxu3  ;;  %v11840_v12 = vpop.f32.mrf.mxu1 }
 0x210   :  { %v11776_v42 = vadd.f32 %v2918_v52, %v2688_v30  ;;  %v3983_v30 = vshll.u32 %v11823_v62, 16 }
 0x212   :  { %v9081_v14 = vpop.eup %9080  ;;  %v7459_v3 = vmul.f32 -1.442695, %v11776_v42 }
 0x213   :  { %v3017_v21 = vadd.f32 1.0, %v9081_v14  ;;  %v3985_v14 = vrot.slane %v3983_v30, 1  ;;  %v3456_v30 = vshrl.u32 %v11827_v16, 16 }
 0x214   :  { %9082 = vpow2.f32 %v7459_v3  ;;  %v3447_v3 = vsel %vm2228_vm15, %v3442_v46, %v3446_v41 }
 0x215   :  { %9084 = vrcp.f32 %v3017_v21  ;;  %v3072_v22 = vand.u32 2147483648, %v3017_v21  ;;  %v3070_v59 = vand.u32 2147483647, %v3017_v21  ;;  %vm3066_vm5 = vweird.f32 %v3017_v21  ;;  %v11859_v9 = vpop.f32.mrf.mxu2 }
 0x216   :  { %v3986_v26 = vsel %vm2228_vm15, %v3981_v10, %v3985_v14  ;;  %v3995_v10 = vshrl.u32 %v11847_v61, 16 }
 0x217   :  { %v3073_v40 = vor.u32 1.1754944e-38, %v3072_v22  ;;  %vm3071_vm7 = vcmp.eq.f32.partialorder %v3070_v59, 8.507059e+37  ;;  %v9328_v22 = vmov 0  }
 0x218   :  { %2131 = vst [vmem:[#allocation2 + $0x100] sm:$0xf] %v9328_v22 }
 0x219   :  { %2132 = vst [vmem:[#allocation2 + $0x104] sm:$0xf] %v9328_v22 }
 0x21a   :  { %v9083_v1 = vpop.eup %9082  ;;  %3554 = vmatmul.bf16.gmra.mxu0 %v3439_v58  ;;  %v3987_v58 = vshrl.u32 %v11823_v62, 16  ;;  %2133 = vst [vmem:[#allocation2 + $0x108] sm:$0xf] %v9328_v22  ;;  %v8523_v22 = vld [vmem:[%s13505_s2 + $0x18] sm:$0xff] }
 0x21b   :  { %v9085_v8 = vpop.eup %9084  ;;  %v3018_v54 = vadd.f32 1.0, %v9083_v1  ;;  %v11863_v1 = vpop.f32.mrf.mxu1 }
 0x21c   :  { %v3062_v33 = vmul.f32 %v9085_v8, %v3017_v21  ;;  %vm3067_vm4 = vweird.f32 %v9085_v8 }
 0x21d   :  { %9086 = vrcp.f32 %v3018_v54  ;;  %vm3068_vm6 = vmor %vm3066_vm5, %vm3067_vm4  ;;  %3674 = vmatmul.bf16.gmra.mxu1 %v11827_v16  ;;  %v3087_v25 = vand.u32 2147483648, %v3018_v54  ;;  %v3085_v31 = vand.u32 2147483647, %v3018_v54  ;;  %vm3081_vm9 = vweird.f32 %v3018_v54  ;;  %v11874_v0 = vpop.f32.mrf.mxu2  ;;  %v8486_v16 = vld [vmem:[#allocation2 + $0x78] sm:$0xff] }
 0x21e   :  { %4096 = vmatmul.bf16.gmra.mxu3 %v3978_v13  ;;  %v3063_v36 = vsub.f32 1.0, %v3062_v33  ;;  %3846 = vmatmul.bf16.gmra.mxu2 %v8484_v17  ;;  %v3989_v13 = vor.u32 %v3987_v58, %v3985_v14  ;;  %v8524_v17 = vld [vmem:[%s13505_s2 + $0x20] sm:$0xff]  ;;  %v11908_v14 = vld [vmem:[#allocation2 + $0x78] sm:$0xff] }
 0x21f   :  { %v3088_v47 = vor.u32 1.1754944e-38, %v3087_v25  ;;  %vm3086_vm11 = vcmp.eq.f32.partialorder %v3085_v31, 8.507059e+37  ;;  %4824 = vmatpush.bf16.msrb.mxu1 %v8524_v17 }
 0x220   :  { %v3064_v23 = vmul.f32 %v9085_v8, %v3063_v36 }
 0x222   :  { %v3065_v44 = vadd.f32 %v9085_v8, %v3064_v23 }
 0x223   :  { %v9087_v28 = vpop.eup %9086  ;;  %4825 = vmatpush.bf16.msrb.mxu1 %v8523_v22  ;;  %v8546_v22 = vld [vmem:[%s13505_s2 + $0x90] sm:$0xff] }
 0x224   :  { %v3069_v35 = vsel %vm3068_vm6, %v9085_v8, %v3065_v44  ;;  %v3077_v34 = vmul.f32 %v9087_v28, %v3018_v54  ;;  %vm3082_vm8 = vweird.f32 %v9087_v28  ;;  %v3991_v8 = vshll.u32 %v11847_v61, 16 }
 0x225   :  { %v3074_v43 = vsel %vm3071_vm7, %v3073_v40, %v3069_v35  ;;  %vm3083_vm10 = vmor %vm3081_vm9, %vm3082_vm8  ;;  %v3454_v54 = vrot.slane %v3452_v7, 1  ;;  %v8532_v40 = vld [vmem:[%s13505_s2 + $0x60] sm:$0xff]  ;;  %v11905_v31 = vpop.f32.mrf.mxu2 }
 0x226   :  { %v3273_v27 = vmul.f32 %v3074_v43, %v11759_v19  ;;  %v3078_v6 = vsub.f32 1.0, %v3077_v34  ;;  %v3993_v36 = vrot.slane %v3991_v8, 1  ;;  %4719 = vmatpush.bf16.msrb.mxu0 %v8532_v40  ;;  %v8547_v8 = vld [vmem:[%s13505_s2 + $0x98] sm:$0xff] }
 0x227   :  { %v2377_v19 = vpop.f32.mrf.mxu0  ;;  %v3455_v59 = vsel %vm2228_vm15, %v3450_v11, %v3454_v54  ;;  %v8563_v11 = vld [vmem:[%s13505_s2 + $0xd8] sm:$0xff] }
 0x228   :  { %v3289_v52 = vpack.c.bf16 %v3273_v27, %v3273_v27  ;;  %v3079_v29 = vmul.f32 %v9087_v28, %v3078_v6  ;;  %v2483_v62 = vadd.f32 %v11771_v4, %v2377_v19  ;;  %v11887_v4 = vpop.f32.mrf.mxu1  ;;  %v3994_v34 = vsel %vm2228_vm15, %v3989_v13, %v3993_v36  ;;  %v11897_v6 = vld [vmem:[#allocation2 + $0x70] sm:$0xff] }
 0x229   :  { %v3460_v27 = vshll.u32 %v11861_v55, 16 }
 0x22a   :  { %3306 = vst.msk [vmem:[%s13506_s3 + $0x8] sm:$0xf] %vm3303_vm14, %v3289_v52  ;;  %v3080_v24 = vadd.f32 %v9087_v28, %v3079_v29  ;;  %3559 = vmatmul.bf16.gmra.mxu0 %v3447_v3  ;;  %v2691_v43 = vadd.f32 %v11837_v38, %v2483_v62  ;;  %v3458_v3 = vor.u32 %v3456_v30, %v3454_v54  ;;  %v8531_v54 = vld [vmem:[%s13505_s2 + $0x58] sm:$0xff]  ;;  %v3468_v30 = vshll.u32 %v11908_v14, 16 }
 0x22b   :  { %4720 = vmatpush.bf16.msrb.mxu0 %v8531_v54 }
 0x22c   :  { %v3084_v60 = vsel %vm3083_vm10, %v9087_v28, %v3080_v24  ;;  %v8564_v28 = vld [vmem:[%s13505_s2 + $0xe0] sm:$0xff] }
 0x22d   :  { %v3089_v21 = vsel %vm3086_vm11, %v3088_v47, %v3084_v60  ;;  %3679 = vmatmul.bf16.gmra.mxu1 %v11861_v55  ;;  %5266 = vmatpush.bf16.msrb.mxu3 %v8564_v28  ;;  %v11914_v47 = vrot.slane %v3460_v27, 1  ;;  %v11965_v27 = vld [vmem:[#allocation2 + $0x78] sm:$0xff] }
 0x22e   :  { %v3274_v32 = vmul.f32 %v3089_v21, %v11776_v42  ;;  %4101 = vmatmul.bf16.gmra.mxu3 %v3986_v26  ;;  %v2480_v42 = vadd.f32 %v11750_v45, %v2374_v5  ;;  %3851 = vmatmul.bf16.gmra.mxu2 %v8485_v56 }
 0x22f   :  { %v2379_v51 = vpop.f32.mrf.mxu0  ;;  %v11934_v58 = vpop.f32.mrf.mxu2 }
 0x230   :  { %v3290_v18 = vpack.c.bf16 %v3274_v32, %v3274_v32  ;;  %v2690_v45 = vadd.f32 %v11819_v63, %v2480_v42  ;;  %v8548_v63 = vld [vmem:[%s13505_s2 + $0xa0] sm:$0xff]  ;;  %v2485_v25 = vadd.f32 %v11810_v20, %v2379_v51  ;;  %v11912_v38 = vpop.f32.mrf.mxu1  ;;  %v3999_v20 = vshll.u32 %v11897_v6, 16 }
 0x231   :  { %v2921_v57 = vpop.f32.mrf.mxu3  ;;  %5001 = vmatpush.bf16.msrb.mxu2 %v8548_v63  ;;  %5267 = vmatpush.bf16.msrb.mxu3 %v8563_v11 }
 0x232   :  { %3307 = vst.msk [vmem:[%s13506_s3 + $0xc] sm:$0xf] %vm3303_vm14, %v3290_v18  ;;  %v11853_v49 = vadd.f32 %v2921_v57, %v2689_v2  ;;  %v2692_v21 = vadd.f32 %v11859_v9, %v2485_v25  ;;  %v3463_v2 = vsel %vm2228_vm15, %v3458_v3, %v11914_v47  ;;  %v3997_v18 = vor.u32 %v3995_v10, %v3993_v36  ;;  %v8487_v10 = vld [vmem:[#allocation2 + $0x80] sm:$0xff] }
 0x233   :  { %v11924_v57 = vrot.slane %v3999_v20, 1 }
 0x234   :  { %v7460_v39 = vmul.f32 -1.442695, %v11853_v49 }
 0x235   :  { %v4002_v36 = vsel %vm2228_vm15, %v3997_v18, %v11924_v57  ;;  %5002 = vmatpush.bf16.msrb.mxu2 %v8547_v8  ;;  %v3352_v18 = vld [vmem:[#allocation2 + $0x80] sm:$0x1] }
 0x236   :  { %9088 = vpow2.f32 %v7460_v39 }
 0x237   :  { %v2382_v37 = vpop.f32.mrf.mxu0 }
 0x238   :  { %v2488_v51 = vadd.f32 %v11821_v48, %v2382_v37  ;;  %v11948_v13 = vpop.f32.mrf.mxu1 }
 0x239   :  { %v2923_v33 = vpop.f32.mrf.mxu3  ;;  %5003 = vmatpush.bf16.msrb.mxu2 %v8546_v22 }
 0x23a   :  { %v11869_v23 = vadd.f32 %v2923_v33, %v2690_v45  ;;  %3564 = vmatmul.bf16.gmra.mxu0 %v3455_v59  ;;  %v2693_v63 = vadd.f32 %v11874_v0, %v2488_v51 }
 0x23c   :  { %v9089_v5 = vpop.eup %9088  ;;  %v7461_v44 = vmul.f32 -1.442695, %v11869_v23 }
 0x23d   :  { %v11885_v35 = vadd.f32 1.0, %v9089_v5  ;;  %3684 = vmatmul.bf16.gmra.mxu1 %v11908_v14 }
 0x23e   :  { %9090 = vpow2.f32 %v7461_v44  ;;  %4106 = vmatmul.bf16.gmra.mxu3 %v3994_v34  ;;  %3856 = vmatmul.bf16.gmra.mxu2 %v8486_v16  ;;  %v3464_v34 = vshrl.u32 %v11861_v55, 16 }
 0x23f   :  { %9092 = vrcp.f32 %v11885_v35  ;;  %v11903_v29 = vpop.f32.mrf.mxu0  ;;  %v3102_v26 = vand.u32 2147483648, %v11885_v35  ;;  %v3100_v15 = vand.u32 2147483647, %v11885_v35  ;;  %vm3096_vm13 = vweird.f32 %v11885_v35 }
 0x240   :  { %v2490_v55 = vadd.f32 %v11840_v12, %v11903_v29  ;;  %v11981_v20 = vpop.f32.mrf.mxu1 }
 0x241   :  { %v2926_v53 = vpop.f32.mrf.mxu3  ;;  %v3103_v48 = vor.u32 1.1754944e-38, %v3102_v26  ;;  %vm3101_vm1 = vcmp.eq.f32.partialorder %v3100_v15, 8.507059e+37  ;;  %v4007_v26 = vshll.u32 %v11965_v27, 16 }
 0x242   :  { %v11899_v46 = vadd.f32 %v2926_v53, %v2691_v43 }
 0x244   :  { %v9091_v41 = vpop.eup %9090  ;;  %v7462_v52 = vmul.f32 -1.442695, %v11899_v46 }
 0x245   :  { %v9093_v24 = vpop.eup %9092  ;;  %v11910_v19 = vadd.f32 1.0, %v9091_v41 }
 0x246   :  { %v3092_v50 = vmul.f32 %v9093_v24, %v11885_v35  ;;  %9094 = vpow2.f32 %v7462_v52  ;;  %vm3097_vm12 = vweird.f32 %v9093_v24  ;;  %v11977_v52 = vpop.f32.mrf.mxu2 }
 0x247   :  { %9096 = vrcp.f32 %v11910_v19  ;;  %v11932_v56 = vpop.f32.mrf.mxu0  ;;  %vm3098_vm0 = vmor %vm3096_vm13, %vm3097_vm12  ;;  %v3115_v28 = vand.u32 2147483647, %v11910_v19  ;;  %v3117_v40 = vand.u32 2147483648, %v11910_v19  ;;  %vm3111_vm3 = vweird.f32 %v11910_v19 }
 0x248   :  { %v3093_v60 = vsub.f32 1.0, %v3092_v50  ;;  %v3466_v50 = vor.u32 %v3464_v34, %v11914_v47  ;;  %v2694_v47 = vadd.f32 %v11905_v31, %v2490_v55  ;;  %v3402_v31 = vunpack.c.l.b16 %v3352_v18 }
 0x249   :  { %v2928_v32 = vpop.f32.mrf.mxu3  ;;  %vm3116_vm5 = vcmp.eq.f32.partialorder %v3115_v28, 8.507059e+37  ;;  %v3472_v55 = vshrl.u32 %v11908_v14, 16 }
 0x24a   :  { %v3094_v61 = vmul.f32 %v9093_v24, %v3093_v60  ;;  %v11927_v7 = vadd.f32 %v2928_v32, %v2692_v21  ;;  %3569 = vmatmul.bf16.gmra.mxu0 %v3463_v2  ;;  %v11987_v21 = vrot.slane %v3468_v30, 1 }
 0x24c   :  { %v9095_v42 = vpop.eup %9094  ;;  %v3095_v39 = vadd.f32 %v9093_v24, %v3094_v61  ;;  %v7463_v9 = vmul.f32 -1.442695, %v11927_v7 }
 0x24d   :  { %v9097_v45 = vpop.eup %9096  ;;  %v11946_v33 = vadd.f32 1.0, %v9095_v42  ;;  %v3471_v42 = vsel %vm2228_vm15, %v3466_v50, %v11987_v21  ;;  %v12041_v50 = vld [vmem:[#allocation2 + $0x80] sm:$0xff] }
 0x24e   :  { %v3099_v59 = vsel %vm3098_vm0, %v9093_v24, %v3095_v39  ;;  %v3107_v5 = vmul.f32 %v9097_v45, %v11910_v19  ;;  %9098 = vpow2.f32 %v7463_v9  ;;  %4111 = vmatmul.bf16.gmra.mxu3 %v4002_v36  ;;  %vm3112_vm2 = vweird.f32 %v9097_v45  ;;  %3861 = vmatmul.bf16.gmra.mxu2 %v8487_v10  ;;  %v12011_v36 = vpop.f32.mrf.mxu2 }
 0x24f   :  { %v3104_v62 = vsel %vm3101_vm1, %v3103_v48, %v3099_v59  ;;  %9100 = vrcp.f32 %v11946_v33  ;;  %v11975_v25 = vpop.f32.mrf.mxu0  ;;  %vm3113_vm4 = vmor %vm3111_vm3, %vm3112_vm2  ;;  %v3118_v24 = vor.u32 1.1754944e-38, %v3117_v40  ;;  %v4003_v19 = vshrl.u32 %v11897_v6, 16  ;;  %v8522_v59 = vld [vmem:[%s13505_s2 + $0x10] sm:$0xff] }
 0x250   :  { %v3275_v44 = vmul.f32 %v3104_v62, %v11853_v49  ;;  %v3108_v37 = vsub.f32 1.0, %v3107_v5  ;;  %v3130_v6 = vand.u32 2147483647, %v11946_v33  ;;  %v3132_v61 = vand.u32 2147483648, %v11946_v33  ;;  %4826 = vmatpush.bf16.msrb.mxu1 %v8522_v59  ;;  %v3899_v59 = vld [vmem:[#allocation2 + $0x88] sm:$0x1] }
 0x251   :  { %v2931_v35 = vpop.f32.mrf.mxu3  ;;  %v4005_v39 = vor.u32 %v4003_v19, %v11924_v57  ;;  %vm3126_vm7 = vweird.f32 %v11946_v33  ;;  %v2493_v57 = vadd.f32 %v11863_v1, %v11932_v56  ;;  %v12022_v1 = vpop.f32.mrf.mxu1  ;;  %v2495_v14 = vadd.f32 %v11887_v4, %v11975_v25 }
 0x252   :  { %v3291_v17 = vpack.c.bf16 %v3275_v44, %v3275_v44  ;;  %v3109_v43 = vmul.f32 %v9097_v45, %v3108_v37  ;;  %v11962_v53 = vadd.f32 %v2931_v35, %v2693_v63  ;;  %v8562_v44 = vld [vmem:[%s13505_s2 + $0xd0] sm:$0xff]  ;;  %vm3131_vm9 = vcmp.eq.f32.partialorder %v3130_v6, 8.507059e+37  ;;  %v8520_v6 = vld [vmem:[%s13505_s2] sm:$0xff] }
 0x253   :  { %v8530_v37 = vld [vmem:[%s13505_s2 + $0x50] sm:$0xff]  ;;  %5268 = vmatpush.bf16.msrb.mxu3 %v8562_v44  ;;  %v3411_v35 = vpack.c.b16 %v3402_v31, %v3402_v31  ;;  %v4011_v4 = vshrl.u32 %v11965_v27, 16  ;;  %v2696_v27 = vadd.f32 %v11977_v52, %v2495_v14 }
 0x254   :  { %v9099_v49 = vpop.eup %9098  ;;  %3308 = vst.msk [vmem:[%s13506_s3 + $0x10] sm:$0xf] %vm3303_vm14, %v3291_v17  ;;  %v3110_v0 = vadd.f32 %v9097_v45, %v3109_v43  ;;  %v7464_v41 = vmul.f32 -1.442695, %v11962_v53  ;;  %v2695_v43 = vadd.f32 %v11934_v58, %v2493_v57  ;;  %4721 = vmatpush.bf16.msrb.mxu0 %v8530_v37 }
 0x255   :  { %v9101_v16 = vpop.eup %9100  ;;  %v11979_v3 = vadd.f32 1.0, %v9099_v49 }
 0x256   :  { %v3114_v60 = vsel %vm3113_vm4, %v9097_v45, %v3110_v0  ;;  %v3122_v12 = vmul.f32 %v9101_v16, %v11946_v33  ;;  %9102 = vpow2.f32 %v7464_v41  ;;  %vm3127_vm6 = vweird.f32 %v9101_v16 }
 0x257   :  { %v3119_v29 = vsel %vm3116_vm5, %v3118_v24, %v3114_v60  ;;  %9104 = vrcp.f32 %v11979_v3  ;;  %v12009_v48 = vpop.f32.mrf.mxu0  ;;  %vm3128_vm8 = vmor %vm3126_vm7, %vm3127_vm6  ;;  %v3133_v33 = vor.u32 1.1754944e-38, %v3132_v61  ;;  %v3145_v30 = vand.u32 2147483647, %v11979_v3  ;;  %v8521_v60 = vld [vmem:[%s13505_s2 + $0x8] sm:$0xff] }
 0x258   :  { %v3276_v32 = vmul.f32 %v3119_v29, %v11869_v23  ;;  %v3123_v2 = vsub.f32 1.0, %v3122_v12  ;;  %v11999_v23 = vrot.slane %v4007_v26, 1  ;;  %v3147_v49 = vand.u32 2147483648, %v11979_v3  ;;  %v12056_v29 = vpop.f32.mrf.mxu2  ;;  %4827 = vmatpush.bf16.msrb.mxu1 %v8521_v60 }
 0x259   :  { %v2933_v15 = vpop.f32.mrf.mxu3  ;;  %v3476_v24 = vshll.u32 %v3411_v35, 16  ;;  %vm3141_vm11 = vweird.f32 %v11979_v3  ;;  %vm3146_vm13 = vcmp.eq.f32.partialorder %v3145_v30, 8.507059e+37 }
 0x25a   :  { %v3292_v51 = vpack.c.bf16 %v3276_v32, %v3276_v32  ;;  %v3124_v9 = vmul.f32 %v9101_v16, %v3123_v2  ;;  %v11997_v8 = vadd.f32 %v2933_v15, %v2694_v47  ;;  %3574 = vmatmul.bf16.gmra.mxu0 %v3471_v42  ;;  %v4010_v56 = vsel %vm2228_vm15, %v4005_v39, %v11999_v23  ;;  %v12060_v47 = vpop.f32.mrf.mxu1 }
 0x25b   :  { %v3148_v32 = vor.u32 1.1754944e-38, %v3147_v49  ;;  %v3478_v15 = vrot.slane %v3476_v24, 1  ;;  %v4015_v42 = vshll.u32 %v12041_v50, 16 }
 0x25c   :  { %v9103_v11 = vpop.eup %9102  ;;  %3309 = vst.msk [vmem:[%s13506_s3 + $0x14] sm:$0xf] %vm3303_vm14, %v3292_v51  ;;  %v3125_v54 = vadd.f32 %v9101_v16, %v3124_v9  ;;  %v7465_v45 = vmul.f32 -1.442695, %v11997_v8  ;;  %4828 = vmatpush.bf16.msrb.mxu1 %v8520_v6 }
 0x25d   :  { %v9105_v5 = vpop.eup %9104  ;;  %v12020_v62 = vadd.f32 1.0, %v9103_v11  ;;  %v12080_v52 = vrot.slane %v4015_v42, 1 }
 0x25e   :  { %v3129_v63 = vsel %vm3128_vm8, %v9101_v16, %v3125_v54  ;;  %v3137_v28 = vmul.f32 %v9105_v5, %v11979_v3  ;;  %9106 = vpow2.f32 %v7465_v45  ;;  %4116 = vmatmul.bf16.gmra.mxu3 %v4010_v56  ;;  %vm3142_vm10 = vweird.f32 %v9105_v5 }
 0x25f   :  { %v3134_v40 = vsel %vm3131_vm9, %v3133_v33, %v3129_v63  ;;  %9108 = vrcp.f32 %v12020_v62  ;;  %v12054_v12 = vpop.f32.mrf.mxu0  ;;  %vm3143_vm12 = vmor %vm3141_vm11, %vm3142_vm10  ;;  %v3474_v3 = vor.u32 %v3472_v55, %v11987_v21  ;;  %v3160_v51 = vand.u32 2147483647, %v12020_v62  ;;  %v8545_v63 = vld [vmem:[%s13505_s2 + $0x88] sm:$0xff] }
 0x260   :  { %v3277_v34 = vmul.f32 %v3134_v40, %v11899_v46  ;;  %v3138_v17 = vsub.f32 1.0, %v3137_v28  ;;  %v3162_v9 = vand.u32 2147483648, %v12020_v62  ;;  %v4013_v54 = vor.u32 %v4011_v4, %v11999_v23  ;;  %v12092_v37 = vpop.f32.mrf.mxu2  ;;  %v8561_v28 = vld [vmem:[%s13505_s2 + $0xc8] sm:$0xff]  ;;  %5004 = vmatpush.bf16.msrb.mxu2 %v8545_v63 }
 0x261   :  { %v2936_v0 = vpop.f32.mrf.mxu3  ;;  %v3479_v11 = vsel %vm2228_vm15, %v3474_v3, %v3478_v15  ;;  %vm3156_vm1 = vweird.f32 %v12020_v62  ;;  %v2498_v23 = vadd.f32 %v11912_v38, %v12009_v48  ;;  %vm3161_vm3 = vcmp.eq.f32.partialorder %v3160_v51, 8.507059e+37  ;;  %5269 = vmatpush.bf16.msrb.mxu3 %v8561_v28 }
 0x262   :  { %v3293_v41 = vpack.c.bf16 %v3277_v34, %v3277_v34  ;;  %v3139_v10 = vmul.f32 %v9105_v5, %v3138_v17  ;;  %v12039_v16 = vadd.f32 %v2936_v0, %v2695_v43  ;;  %v12104_v38 = vpop.f32.mrf.mxu1  ;;  %v4018_v48 = vsel %vm2228_vm15, %v4013_v54, %v12080_v52  ;;  %v8529_v34 = vld [vmem:[%s13505_s2 + $0x48] sm:$0xff] }
 0x263   :  { %v3949_v17 = vunpack.c.l.b16 %v3899_v59  ;;  %4722 = vmatpush.bf16.msrb.mxu0 %v8529_v34  ;;  %v12113_v0 = vld [vmem:[#allocation2 + $0x88] sm:$0xff]  ;;  %v8528_v34 = vld [vmem:[%s13505_s2 + $0x40] sm:$0xff] }
 0x264   :  { %v9107_v46 = vpop.eup %9106  ;;  %3310 = vst.msk [vmem:[%s13506_s3 + $0x18] sm:$0xf] %vm3303_vm14, %v3293_v41  ;;  %v3140_v58 = vadd.f32 %v9105_v5, %v3139_v10  ;;  %v7466_v19 = vmul.f32 -1.442695, %v12039_v16  ;;  %v2697_v10 = vadd.f32 %v12011_v36, %v2498_v23  ;;  %v2500_v36 = vadd.f32 %v11948_v13, %v12054_v12 }
 0x265   :  { %v9109_v26 = vpop.eup %9108  ;;  %v12058_v2 = vadd.f32 1.0, %v9107_v46  ;;  %v3958_v14 = vpack.c.b16 %v3949_v17, %v3949_v17 }
 0x266   :  { %v3144_v25 = vsel %vm3143_vm12, %v9105_v5, %v3140_v58  ;;  %v3152_v18 = vmul.f32 %v9109_v26, %v12020_v62  ;;  %9110 = vpow2.f32 %v7466_v19  ;;  %vm3157_vm0 = vweird.f32 %v9109_v26 }
 0x267   :  { %v3149_v61 = vsel %vm3146_vm13, %v3148_v32, %v3144_v25  ;;  %9112 = vrcp.f32 %v12058_v2  ;;  %v12090_v44 = vpop.f32.mrf.mxu0  ;;  %vm3158_vm2 = vmor %vm3156_vm1, %vm3157_vm0  ;;  %v3163_v62 = vor.u32 1.1754944e-38, %v3162_v9  ;;  %v3175_v24 = vand.u32 2147483647, %v12058_v2  ;;  %v8536_v9 = vld [vmem:[#allocation2 + $0x88] sm:$0xff]  ;;  %4723 = vmatpush.bf16.msrb.mxu0 %v8528_v34 }
 0x268   :  { %v3278_v21 = vmul.f32 %v3149_v61, %v11927_v7  ;;  %v3153_v39 = vsub.f32 1.0, %v3152_v18  ;;  %v12078_v7 = vld [vmem:[#allocation2 + $0x80] sm:$0xff]  ;;  %v3177_v46 = vand.u32 2147483648, %v12058_v2  ;;  %v4600_v32 = vshll.u32 %v12113_v0, 16  ;;  %v12133_v6 = vpop.f32.mrf.mxu2 }
 0x269   :  { %v2938_v31 = vpop.f32.mrf.mxu3  ;;  %4829 = vmatmul.bf16.vlgmr.msrb.gmra.mxu1 %v12078_v7  ;;  %v4595_v3 = vshll.u32 %v12078_v7, 16  ;;  %vm3171_vm5 = vweird.f32 %v12058_v2  ;;  %v8544_v61 = vld [vmem:[%s13505_s2 + $0x80] sm:$0xff]  ;;  %v4023_v13 = vshll.u32 %v3958_v14, 16  ;;  %vm3176_vm7 = vcmp.eq.f32.partialorder %v3175_v24, 8.507059e+37 }
 0x26a   :  { %v3294_v57 = vpack.c.bf16 %v3278_v21, %v3278_v21  ;;  %v3154_v45 = vmul.f32 %v9109_v26, %v3153_v39  ;;  %v12076_v22 = vadd.f32 %v2938_v31, %v2696_v27  ;;  %3579 = vmatmul.bf16.gmra.mxu0 %v3479_v11  ;;  %v3178_v42 = vor.u32 1.1754944e-38, %v3177_v46  ;;  %v12140_v39 = vpop.f32.mrf.mxu1  ;;  %5005 = vmatpush.bf16.msrb.mxu2 %v8544_v61 }
 0x26b   :  { %v4593_v31 = vshrl.u32 %v12078_v7, 16  ;;  %v4597_v11 = vrot.slane %v4595_v3, 1  ;;  %v4025_v23 = vrot.slane %v4023_v13, 1  ;;  %v12153_v7 = vrot.slane %v4600_v32, 1 }
 0x26c   :  { %v9111_v5 = vpop.eup %9110  ;;  %3311 = vst.msk [vmem:[%s13506_s3 + $0x1c] sm:$0xf] %vm3303_vm14, %v3294_v57  ;;  %v3155_v33 = vadd.f32 %v9109_v26, %v3154_v45  ;;  %v7467_v56 = vmul.f32 -1.442695, %v12076_v22  ;;  %v2698_v45 = vadd.f32 %v12056_v29, %v2500_v36 }
 0x26d   :  { %v9113_v40 = vpop.eup %9112  ;;  %v12101_v35 = vadd.f32 1.0, %v9111_v5  ;;  %5006 = vmatmul.bf16.vlgmr.msrb.gmra.mxu2 %v8536_v9 }
 0x26e   :  { %v3159_v43 = vsel %vm3158_vm2, %v9109_v26, %v3155_v33  ;;  %v3167_v30 = vmul.f32 %v9113_v40, %v12058_v2  ;;  %9114 = vpow2.f32 %v7467_v56  ;;  %4121 = vmatmul.bf16.gmra.mxu3 %v4018_v48  ;;  %vm3172_vm4 = vweird.f32 %v9113_v40 }
 0x26f   :  { %v3164_v49 = vsel %vm3161_vm3, %v3163_v62, %v3159_v43  ;;  %9116 = vrcp.f32 %v12101_v35  ;;  %v12131_v18 = vpop.f32.mrf.mxu0  ;;  %vm3173_vm6 = vmor %vm3171_vm5, %vm3172_vm4  ;;  %v4019_v2 = vshrl.u32 %v12041_v50, 16  ;;  %v3190_v50 = vand.u32 2147483647, %v12101_v35  ;;  %v8560_v43 = vld [vmem:[%s13505_s2 + $0xc0] sm:$0xff] }
 0x270   :  { %v3279_v55 = vmul.f32 %v3164_v49, %v11962_v53  ;;  %v3168_v41 = vsub.f32 1.0, %v3167_v30  ;;  %v3192_v59 = vand.u32 2147483648, %v12101_v35  ;;  %vm3186_vm9 = vweird.f32 %v12101_v35  ;;  %v12168_v17 = vpop.f32.mrf.mxu2  ;;  %5270 = vmatpush.bf16.msrb.mxu3 %v8560_v43 }
 0x271   :  { %v2941_v58 = vpop.f32.mrf.mxu3  ;;  %v4021_v33 = vor.u32 %v4019_v2, %v12080_v52  ;;  %v2503_v52 = vadd.f32 %v11981_v20, %v12090_v44  ;;  %vm3191_vm11 = vcmp.eq.f32.partialorder %v3190_v50, 8.507059e+37  ;;  %v2505_v2 = vadd.f32 %v12022_v1, %v12131_v18 }
 0x272   :  { %v3295_v19 = vpack.c.bf16 %v3279_v55, %v3279_v55  ;;  %v3169_v60 = vmul.f32 %v9113_v40, %v3168_v41  ;;  %v12119_v26 = vadd.f32 %v2941_v58, %v2697_v10  ;;  %v12177_v20 = vpop.f32.mrf.mxu1  ;;  %v8552_v55 = vld [vmem:[#allocation2 + $0x88] sm:$0xff]  ;;  %v4604_v50 = vshrl.u32 %v12113_v0, 16 }
 0x273   :  { %v4026_v44 = vsel %vm2228_vm15, %v4021_v33, %v4025_v23  ;;  %v2699_v14 = vadd.f32 %v12092_v37, %v2503_v52  ;;  %v5140_v37 = vshrl.u32 %v8552_v55, 16  ;;  %v2700_v23 = vadd.f32 %v12133_v6, %v2505_v2 }
 0x274   :  { %v9115_v4 = vpop.eup %9114  ;;  %3312 = vst.msk [vmem:[%s13506_s3 + $0x20] sm:$0xf] %vm3303_vm14, %v3295_v19  ;;  %v3170_v53 = vadd.f32 %v9113_v40, %v3169_v60  ;;  %v7468_v25 = vmul.f32 -1.442695, %v12119_v26  ;;  %v4606_v34 = vor.u32 %v4604_v50, %v12153_v7 }
 0x275   :  { %v9117_v15 = vpop.eup %9116  ;;  %v12138_v21 = vadd.f32 1.0, %v9115_v4  ;;  %v12188_v4 = vld [vmem:[#allocation2 + $0x90] sm:$0xff] }
 0x276   :  { %v3174_v12 = vsel %vm3173_vm6, %v9113_v40, %v3170_v53  ;;  %v3182_v27 = vmul.f32 %v9117_v15, %v12101_v35  ;;  %9118 = vpow2.f32 %v7468_v25  ;;  %vm3187_vm8 = vweird.f32 %v9117_v15 }
 0x277   :  { %v3179_v51 = vsel %vm3176_vm7, %v3178_v42, %v3174_v12  ;;  %9120 = vrcp.f32 %v12138_v21  ;;  %v12163_v48 = vpop.f32.mrf.mxu0  ;;  %vm3188_vm10 = vmor %vm3186_vm9, %vm3187_vm8  ;;  %v3193_v35 = vor.u32 1.1754944e-38, %v3192_v59  ;;  %v3205_v60 = vand.u32 2147483647, %v12138_v21 }
 0x278   :  { %v3280_v54 = vmul.f32 %v3179_v51, %v11997_v8  ;;  %v3183_v57 = vsub.f32 1.0, %v3182_v27  ;;  %v4598_v8 = vor.u32 %v4597_v11, %v4593_v31  ;;  %v3207_v32 = vand.u32 2147483648, %v12138_v21  ;;  %v12204_v27 = vpop.f32.mrf.mxu2 }
 0x279   :  { %v2943_v5 = vpop.f32.mrf.mxu3  ;;  %4834 = vmatmul.bf16.gmra.mxu1 %v12113_v0  ;;  %v5142_v53 = vshll.u32 %v8552_v55, 16  ;;  %vm3201_vm13 = vweird.f32 %v12138_v21  ;;  %vm3206_vm1 = vcmp.eq.f32.partialorder %v3205_v60, 8.507059e+37 }
 0x27a   :  { %v3296_v56 = vpack.c.bf16 %v3280_v54, %v3280_v54  ;;  %v3184_v63 = vmul.f32 %v9117_v15, %v3183_v57  ;;  %v12151_v28 = vadd.f32 %v2943_v5, %v2698_v45  ;;  %v4603_v19 = vsel %vm2228_vm15, %v4598_v8, %v12153_v7  ;;  %v12208_v11 = vpop.f32.mrf.mxu1  ;;  %v8537_v45 = vld [vmem:[#allocation2 + $0x90] sm:$0xff]  ;;  %v8607_v7 = vld [vmem:[%s13505_s2 + $0xb8] sm:$0xff] }
 0x27b   :  { %4724 = vmatmul.bf16.vlgmr.msrb.gmra.mxu0 %v4603_v19  ;;  %v3208_v9 = vor.u32 1.1754944e-38, %v3207_v32  ;;  %v5144_v54 = vrot.slane %v5142_v53, 1  ;;  %v5147_v57 = vshll.u32 %v12188_v4, 16  ;;  %6178 = vmatpush.bf16.msra.mxu2 %v8607_v7 }
 0x27c   :  { %v9119_v40 = vpop.eup %9118  ;;  %3313 = vst.msk [vmem:[%s13506_s3 + $0x24] sm:$0xf] %vm3303_vm14, %v3296_v56  ;;  %v3185_v29 = vadd.f32 %v9117_v15, %v3184_v63  ;;  %v7469_v62 = vmul.f32 -1.442695, %v12151_v28 }
 0x27d   :  { %v9121_v30 = vpop.eup %9120  ;;  %v12174_v49 = vadd.f32 1.0, %v9119_v40  ;;  %5011 = vmatmul.bf16.gmra.mxu2 %v8537_v45  ;;  %v5145_v40 = vor.u32 %v5144_v54, %v5140_v37 }
 0x27e   :  { %v3189_v41 = vsel %vm3188_vm10, %v9117_v15, %v3185_v29  ;;  %v3197_v10 = vmul.f32 %v9121_v30, %v12138_v21  ;;  %9122 = vpow2.f32 %v7469_v62  ;;  %4126 = vmatmul.bf16.gmra.mxu3 %v4026_v44  ;;  %vm3202_vm12 = vweird.f32 %v9121_v30 }
 0x27f   :  { %v3194_v24 = vsel %vm3191_vm11, %v3193_v35, %v3189_v41  ;;  %9124 = vrcp.f32 %v12174_v49  ;;  %v12202_v12 = vpop.f32.mrf.mxu0  ;;  %vm3203_vm0 = vmor %vm3201_vm13, %vm3202_vm12  ;;  %v3220_v56 = vand.u32 2147483647, %v12174_v49  ;;  %v3222_v63 = vand.u32 2147483648, %v12174_v49  ;;  %v8623_v41 = vld [vmem:[%s13505_s2 + $0xf8] sm:$0xff] }
 0x280   :  { %v3281_v46 = vmul.f32 %v3194_v24, %v12039_v16  ;;  %v3198_v58 = vsub.f32 1.0, %v3197_v10  ;;  %v12192_v16 = vld [vmem:[#allocation2 + $0x90] sm:$0xff]  ;;  %v12219_v29 = vrot.slane %v5147_v57, 1  ;;  %vm3216_vm3 = vweird.f32 %v12174_v49  ;;  %v12236_v55 = vpop.f32.mrf.mxu2  ;;  %6443 = vmatpush.bf16.msra.mxu3 %v8623_v41 }
 0x281   :  { %v2946_v3 = vpop.f32.mrf.mxu3  ;;  %v4608_v59 = vshll.u32 %v12192_v16, 16  ;;  %vm3221_vm5 = vcmp.eq.f32.partialorder %v3220_v56, 8.507059e+37  ;;  %v3653_v54 = vadd.f32 %v12104_v38, %v12202_v12  ;;  %v4612_v56 = vshrl.u32 %v12192_v16, 16 }
 0x282   :  { %v3297_v36 = vpack.c.bf16 %v3281_v46, %v3281_v46  ;;  %v3199_v25 = vmul.f32 %v9121_v30, %v3198_v58  ;;  %v12190_v61 = vadd.f32 %v2946_v3, %v2699_v14  ;;  %v8591_v46 = vld [vmem:[%s13505_s2 + $0x78] sm:$0xff] }
 0x283   :  { %v8583_v58 = vld [vmem:[%s13505_s2 + $0x38] sm:$0xff]  ;;  %5896 = vmatpush.bf16.msra.mxu0 %v8591_v46  ;;  %v8622_v46 = vld [vmem:[%s13505_s2 + $0xf0] sm:$0xff] }
 0x284   :  { %v9123_v15 = vpop.eup %9122  ;;  %3314 = vst.msk [vmem:[%s13506_s3 + $0x28] sm:$0xf] %vm3303_vm14, %v3297_v36  ;;  %v3200_v42 = vadd.f32 %v9121_v30, %v3199_v25  ;;  %v7470_v13 = vmul.f32 -1.442695, %v12190_v61  ;;  %6001 = vmatpush.bf16.msra.mxu1 %v8583_v58  ;;  %6444 = vmatpush.bf16.msra.mxu3 %v8622_v46 }
 0x285   :  { %v9125_v51 = vpop.eup %9124  ;;  %v12206_v31 = vadd.f32 1.0, %v9123_v15 }
 0x286   :  { %v3204_v21 = vsel %vm3203_vm0, %v9121_v30, %v3200_v42  ;;  %v3212_v1 = vmul.f32 %v9125_v51, %v12174_v49  ;;  %9126 = vpow2.f32 %v7470_v13  ;;  %vm3217_vm2 = vweird.f32 %v9125_v51  ;;  %v12266_v42 = vld [vmem:[#allocation2 + $0x98] sm:$0xff] }
 0x287   :  { %v3209_v18 = vsel %vm3206_vm1, %v3208_v9, %v3204_v21  ;;  %9128 = vrcp.f32 %v12206_v31  ;;  %v3651_v30 = vadd.f32 %v12060_v47, %v12163_v48  ;;  %v12234_v44 = vpop.f32.mrf.mxu0  ;;  %vm3218_vm4 = vmor %vm3216_vm3, %vm3217_vm2  ;;  %v3223_v49 = vor.u32 1.1754944e-38, %v3222_v63  ;;  %v12248_v47 = vpop.f32.mrf.mxu1 }
 0x288   :  { %v3282_v5 = vmul.f32 %v3209_v18, %v12076_v22  ;;  %v3213_v33 = vsub.f32 1.0, %v3212_v1  ;;  %v12224_v22 = vrot.slane %v4608_v59, 1  ;;  %v5150_v48 = vsel %vm2228_vm15, %v5145_v40, %v12219_v29  ;;  %v12282_v1 = vpop.f32.mrf.mxu2 }
 0x289   :  { %v2948_v8 = vpop.f32.mrf.mxu3  ;;  %4839 = vmatmul.bf16.gmra.mxu1 %v12192_v16  ;;  %v3867_v53 = vadd.f32 %v12168_v17, %v3651_v30  ;;  %v3235_v25 = vand.u32 2147483647, %v12206_v31  ;;  %v3237_v37 = vand.u32 2147483648, %v12206_v31  ;;  %vm3231_vm7 = vweird.f32 %v12206_v31 }
 0x28a   :  { %v3298_v52 = vpack.c.bf16 %v3282_v5, %v3282_v5  ;;  %v3214_v62 = vmul.f32 %v9125_v51, %v3213_v33  ;;  %v12221_v0 = vadd.f32 %v2948_v8, %v2700_v23  ;;  %v4611_v36 = vsel %vm2228_vm15, %v4606_v34, %v12224_v22  ;;  %v8538_v23 = vld [vmem:[#allocation2 + $0x98] sm:$0xff] }
 0x28b   :  { %4729 = vmatmul.bf16.gmra.mxu0 %v4611_v36  ;;  %v3238_v45 = vor.u32 1.1754944e-38, %v3237_v37  ;;  %v5151_v5 = vshrl.u32 %v12188_v4, 16  ;;  %vm3236_vm9 = vcmp.eq.f32.partialorder %v3235_v25, 8.507059e+37  ;;  %v3868_v4 = vadd.f32 %v12204_v27, %v3653_v54 }
 0x28c   :  { %v9127_v43 = vpop.eup %9126  ;;  %3315 = vst.msk [vmem:[%s13506_s3 + $0x2c] sm:$0xf] %vm3303_vm14, %v3298_v52  ;;  %v3215_v6 = vadd.f32 %v9125_v51, %v3214_v62  ;;  %v7471_v35 = vmul.f32 -1.442695, %v12221_v0 }
 0x28d   :  { %v9129_v10 = vpop.eup %9128  ;;  %v12245_v24 = vadd.f32 1.0, %v9127_v43  ;;  %5016 = vmatmul.bf16.gmra.mxu2 %v8538_v23  ;;  %v5153_v43 = vor.u32 %v5151_v5, %v12219_v29  ;;  %v3656_v29 = vadd.f32 %v12140_v39, %v12234_v44 }
 0x28e   :  { %v3219_v14 = vsel %vm3218_vm4, %v9125_v51, %v3215_v6  ;;  %v3227_v19 = vmul.f32 %v9129_v10, %v12206_v31  ;;  %9130 = vpow2.f32 %v7471_v35  ;;  %5271 = vmatmul.bf16.vlgmr.msrb.gmra.mxu3 %v5150_v48  ;;  %vm3232_vm6 = vweird.f32 %v9129_v10 }
 0x28f   :  { %v3224_v60 = vsel %vm3221_vm5, %v3223_v49, %v3219_v14  ;;  %9132 = vrcp.f32 %v12245_v24  ;;  %v12280_v21 = vpop.f32.mrf.mxu0  ;;  %vm3233_vm8 = vmor %vm3231_vm7, %vm3232_vm6  ;;  %v12286_v59 = vpop.f32.mrf.mxu1  ;;  %v5155_v31 = vshll.u32 %v12266_v42, 16  ;;  %v3250_v52 = vand.u32 2147483647, %v12245_v24 }
 0x290   :  { %v3283_v32 = vmul.f32 %v3224_v60, %v12119_v26  ;;  %v3228_v3 = vsub.f32 1.0, %v3227_v19  ;;  %v12270_v26 = vld [vmem:[#allocation2 + $0x98] sm:$0xff]  ;;  %v3252_v62 = vand.u32 2147483648, %v12245_v24  ;;  %vm3246_vm11 = vweird.f32 %v12245_v24  ;;  %v12316_v48 = vpop.f32.mrf.mxu2  ;;  %v8590_v19 = vld [vmem:[%s13505_s2 + $0x70] sm:$0xff] }
 0x291   :  { %v4092_v15 = vpop.f32.mrf.mxu3  ;;  %v4616_v63 = vshll.u32 %v12270_v26, 16  ;;  %v12299_v6 = vrot.slane %v5155_v31, 1  ;;  %v8582_v60 = vld [vmem:[%s13505_s2 + $0x30] sm:$0xff]  ;;  %vm3251_vm13 = vcmp.eq.f32.partialorder %v3250_v52, 8.507059e+37  ;;  %5897 = vmatpush.bf16.msra.mxu0 %v8590_v19  ;;  %v3869_v37 = vadd.f32 %v12236_v55, %v3656_v29  ;;  %v8621_v19 = vld [vmem:[%s13505_s2 + $0xe8] sm:$0xff] }
 0x292   :  { %v3299_v2 = vpack.c.bf16 %v3283_v32, %v3283_v32  ;;  %v3229_v13 = vmul.f32 %v9129_v10, %v3228_v3  ;;  %v12268_v51 = vadd.f32 %v4092_v15, %v3867_v53  ;;  %6002 = vmatpush.bf16.msra.mxu1 %v8582_v60  ;;  %v3658_v5 = vadd.f32 %v12177_v20, %v12280_v21 }
 0x293   :  { %v12304_v7 = vrot.slane %v4616_v63, 1  ;;  %v5158_v44 = vsel %vm2228_vm15, %v5153_v43, %v12299_v6  ;;  %v4620_v52 = vshrl.u32 %v12270_v26, 16  ;;  %6445 = vmatpush.bf16.msra.mxu3 %v8621_v19 }
 0x294   :  { %v9131_v17 = vpop.eup %9130  ;;  %3316 = vst.msk [vmem:[%s13506_s3 + $0x30] sm:$0xf] %vm3303_vm14, %v3299_v2  ;;  %v3230_v9 = vadd.f32 %v9129_v10, %v3229_v13  ;;  %v7744_v57 = vmul.f32 -1.442695, %v12268_v51 }
 0x295   :  { %v9133_v18 = vpop.eup %9132  ;;  %v12284_v50 = vadd.f32 1.0, %v9131_v17 }
 0x296   :  { %v3234_v33 = vsel %vm3233_vm8, %v9129_v10, %v3230_v9  ;;  %v3242_v38 = vmul.f32 %v9133_v18, %v12245_v24  ;;  %9134 = vpow2.f32 %v7744_v57  ;;  %vm3247_vm10 = vweird.f32 %v9133_v18  ;;  %v12346_v9 = vld [vmem:[#allocation2 + $0xa0] sm:$0xff] }
 0x297   :  { %v3239_v12 = vsel %vm3236_vm9, %v3238_v45, %v3234_v33  ;;  %9136 = vrcp.f32 %v12284_v50  ;;  %v12314_v49 = vpop.f32.mrf.mxu0  ;;  %vm3248_vm12 = vmor %vm3246_vm11, %vm3247_vm10  ;;  %v3253_v24 = vor.u32 1.1754944e-38, %v3252_v62  ;;  %v12328_v39 = vpop.f32.mrf.mxu1  ;;  %v3265_v2 = vand.u32 2147483647, %v12284_v50 }
 0x298   :  { %v3284_v8 = vmul.f32 %v3239_v12, %v12151_v28  ;;  %v3243_v40 = vsub.f32 1.0, %v3242_v38  ;;  %v4614_v28 = vor.u32 %v4612_v56, %v12224_v22  ;;  %v8606_v22 = vld [vmem:[%s13505_s2 + $0xb0] sm:$0xff]  ;;  %v3267_v13 = vand.u32 2147483648, %v12284_v50  ;;  %v12362_v38 = vpop.f32.mrf.mxu2 }
 0x299   :  { %v4094_v34 = vpop.f32.mrf.mxu3  ;;  %4844 = vmatmul.bf16.gmra.mxu1 %v12270_v26  ;;  %6179 = vmatpush.bf16.msra.mxu2 %v8606_v22  ;;  %vm3261_vm1 = vweird.f32 %v12284_v50  ;;  %vm3266_vm3 = vcmp.eq.f32.partialorder %v3265_v2, 8.507059e+37 }
 0x29a   :  { %v3300_v30 = vpack.c.bf16 %v3284_v8, %v3284_v8  ;;  %v3244_v35 = vmul.f32 %v9133_v18, %v3243_v40  ;;  %v12301_v16 = vadd.f32 %v4094_v34, %v3868_v4  ;;  %v4619_v15 = vsel %vm2228_vm15, %v4614_v28, %v12304_v7  ;;  %v8539_v4 = vld [vmem:[#allocation2 + $0xa0] sm:$0xff] }
 0x29b   :  { %4734 = vmatmul.bf16.gmra.mxu0 %v4619_v15  ;;  %v3268_v23 = vor.u32 1.1754944e-38, %v3267_v13  ;;  %v5159_v8 = vshrl.u32 %v12266_v42, 16  ;;  %v3870_v42 = vadd.f32 %v12282_v1, %v3658_v5 }
 0x29c   :  { %v9135_v27 = vpop.eup %9134  ;;  %3317 = vst.msk [vmem:[%s13506_s3 + $0x34] sm:$0xf] %vm3303_vm14, %v3300_v30  ;;  %v3245_v41 = vadd.f32 %v9133_v18, %v3244_v35  ;;  %v7745_v10 = vmul.f32 -1.442695, %v12301_v16 }
 0x29d   :  { %v9137_v58 = vpop.eup %9136  ;;  %v12325_v14 = vadd.f32 1.0, %v9135_v27  ;;  %5021 = vmatmul.bf16.gmra.mxu2 %v8539_v4  ;;  %v5161_v27 = vor.u32 %v5159_v8, %v12299_v6  ;;  %v3661_v6 = vadd.f32 %v12208_v11, %v12314_v49 }
 0x29e   :  { %v3249_v32 = vsel %vm3248_vm12, %v9133_v18, %v3245_v41  ;;  %v3257_v3 = vmul.f32 %v9137_v58, %v12284_v50  ;;  %9138 = vpow2.f32 %v7745_v10  ;;  %5276 = vmatmul.bf16.gmra.mxu3 %v5158_v44  ;;  %vm3262_vm0 = vweird.f32 %v9137_v58 }
 0x29f   :  { %v3254_v53 = vsel %vm3251_vm13, %v3253_v24, %v3249_v32  ;;  %9140 = vrcp.f32 %v12325_v14  ;;  %v12360_v33 = vpop.f32.mrf.mxu0  ;;  %vm3263_vm2 = vmor %vm3261_vm1, %vm3262_vm0  ;;  %v12366_v63 = vpop.f32.mrf.mxu1  ;;  %v5163_v50 = vshll.u32 %v12346_v9, 16  ;;  %v4221_v30 = vand.u32 2147483647, %v12325_v14 }
 0x2a0   :  { %v3285_v36 = vmul.f32 %v3254_v53, %v12190_v61  ;;  %v3258_v25 = vsub.f32 1.0, %v3257_v3  ;;  %v12350_v61 = vld [vmem:[#allocation2 + $0xa0] sm:$0xff]  ;;  %v4223_v35 = vand.u32 2147483648, %v12325_v14  ;;  %vm4217_vm5 = vweird.f32 %v12325_v14  ;;  %v12396_v44 = vpop.f32.mrf.mxu2  ;;  %v8589_v3 = vld [vmem:[%s13505_s2 + $0x68] sm:$0xff] }
 0x2a1   :  { %v4097_v17 = vpop.f32.mrf.mxu3  ;;  %v4624_v62 = vshll.u32 %v12350_v61, 16  ;;  %v12379_v41 = vrot.slane %v5163_v50, 1  ;;  %v8581_v53 = vld [vmem:[%s13505_s2 + $0x28] sm:$0xff]  ;;  %vm4222_vm7 = vcmp.eq.f32.partialorder %v4221_v30, 8.507059e+37  ;;  %5898 = vmatpush.bf16.msra.mxu0 %v8589_v3  ;;  %v3871_v13 = vadd.f32 %v12316_v48, %v3661_v6  ;;  %v8620_v3 = vld [vmem:[%s13505_s2 + $0xe0] sm:$0xff] }
 0x2a2   :  { %v3301_v54 = vpack.c.bf16 %v3285_v36, %v3285_v36  ;;  %v3259_v57 = vmul.f32 %v9137_v58, %v3258_v25  ;;  %v12348_v18 = vadd.f32 %v4097_v17, %v3869_v37  ;;  %6003 = vmatpush.bf16.msra.mxu1 %v8581_v53  ;;  %v3663_v8 = vadd.f32 %v12248_v47, %v12360_v33 }
 0x2a3   :  { %v12384_v22 = vrot.slane %v4624_v62, 1  ;;  %v5166_v49 = vsel %vm2228_vm15, %v5161_v27, %v12379_v41  ;;  %v4628_v30 = vshrl.u32 %v12350_v61, 16  ;;  %6446 = vmatpush.bf16.msra.mxu3 %v8620_v3 }
 0x2a4   :  { %v9139_v55 = vpop.eup %9138  ;;  %3318 = vst.msk [vmem:[%s13506_s3 + $0x38] sm:$0xf] %vm3303_vm14, %v3301_v54  ;;  %v3260_v45 = vadd.f32 %v9137_v58, %v3259_v57  ;;  %v7746_v31 = vmul.f32 -1.442695, %v12348_v18 }
 0x2a5   :  { %v9141_v12 = vpop.eup %9140  ;;  %v12364_v56 = vadd.f32 1.0, %v9139_v55 }
 0x2a6   :  { %v3264_v40 = vsel %vm3263_vm2, %v9137_v58, %v3260_v45  ;;  %v4213_v20 = vmul.f32 %v9141_v12, %v12325_v14  ;;  %9142 = vpow2.f32 %v7746_v31  ;;  %vm4218_vm4 = vweird.f32 %v9141_v12  ;;  %v12426_v45 = vld [vmem:[#allocation2 + $0xa8] sm:$0xff] }
 0x2a7   :  { %v3269_v21 = vsel %vm3266_vm3, %v3268_v23, %v3264_v40  ;;  %9144 = vrcp.f32 %v12364_v56  ;;  %v12394_v24 = vpop.f32.mrf.mxu0  ;;  %vm4219_vm6 = vmor %vm4217_vm5, %vm4218_vm4  ;;  %v4224_v14 = vor.u32 1.1754944e-38, %v4223_v35  ;;  %v12408_v11 = vpop.f32.mrf.mxu1  ;;  %v4236_v54 = vand.u32 2147483647, %v12364_v56 }
 0x2a8   :  { %v3286_v34 = vmul.f32 %v3269_v21, %v12221_v0  ;;  %v4214_v43 = vsub.f32 1.0, %v4213_v20  ;;  %v4622_v0 = vor.u32 %v4620_v52, %v12304_v7  ;;  %v8605_v7 = vld [vmem:[%s13505_s2 + $0xa8] sm:$0xff]  ;;  %v4238_v57 = vand.u32 2147483648, %v12364_v56  ;;  %v12442_v20 = vpop.f32.mrf.mxu2 }
 0x2a9   :  { %v4099_v28 = vpop.f32.mrf.mxu3  ;;  %4849 = vmatmul.bf16.gmra.mxu1 %v12350_v61  ;;  %6180 = vmatpush.bf16.msra.mxu2 %v8605_v7  ;;  %vm4232_vm9 = vweird.f32 %v12364_v56  ;;  %vm4237_vm11 = vcmp.eq.f32.partialorder %v4236_v54, 8.507059e+37 }
 0x2aa   :  { %v3302_v29 = vpack.c.bf16 %v3286_v34, %v3286_v34  ;;  %v4215_v10 = vmul.f32 %v9141_v12, %v4214_v43  ;;  %v12381_v26 = vadd.f32 %v4099_v28, %v3870_v42  ;;  %v4627_v17 = vsel %vm2228_vm15, %v4622_v0, %v12384_v22  ;;  %v8540_v42 = vld [vmem:[#allocation2 + $0xa8] sm:$0xff] }
 0x2ab   :  { %4739 = vmatmul.bf16.gmra.mxu0 %v4627_v17  ;;  %v4239_v4 = vor.u32 1.1754944e-38, %v4238_v57  ;;  %v5167_v34 = vshrl.u32 %v12346_v9, 16  ;;  %v3872_v9 = vadd.f32 %v12362_v38, %v3663_v8 }
 0x2ac   :  { %v9143_v1 = vpop.eup %9142  ;;  %3319 = vst.msk [vmem:[%s13506_s3 + $0x3c] sm:$0xf] %vm3303_vm14, %v3302_v29  ;;  %v4216_v46 = vadd.f32 %v9141_v12, %v4215_v10  ;;  %v7747_v58 = vmul.f32 -1.442695, %v12381_v26 }
 0x2ad   :  { %v9145_v60 = vpop.eup %9144  ;;  %v12405_v32 = vadd.f32 1.0, %v9143_v1  ;;  %5026 = vmatmul.bf16.gmra.mxu2 %v8540_v42  ;;  %v5169_v1 = vor.u32 %v5167_v34, %v12379_v41  ;;  %v3666_v41 = vadd.f32 %v12286_v59, %v12394_v24 }
 0x2ae   :  { %v4220_v36 = vsel %vm4219_vm6, %v9141_v12, %v4216_v46  ;;  %v4228_v25 = vmul.f32 %v9145_v60, %v12364_v56  ;;  %9146 = vpow2.f32 %v7747_v58  ;;  %5281 = vmatmul.bf16.gmra.mxu3 %v5166_v49  ;;  %vm4233_vm8 = vweird.f32 %v9145_v60 }
 0x2af   :  { %v4225_v37 = vsel %vm4222_vm7, %v4224_v14, %v4220_v36  ;;  %9148 = vrcp.f32 %v12405_v32  ;;  %v12440_v40 = vpop.f32.mrf.mxu0  ;;  %vm4234_vm10 = vmor %vm4232_vm9, %vm4233_vm8  ;;  %v12446_v62 = vpop.f32.mrf.mxu1  ;;  %v5171_v56 = vshll.u32 %v12426_v45, 16  ;;  %v4251_v29 = vand.u32 2147483647, %v12405_v32 }
 0x2b0   :  { %v4452_v15 = vmul.f32 %v4225_v37, %v12268_v51  ;;  %v4229_v2 = vsub.f32 1.0, %v4228_v25  ;;  %v12430_v51 = vld [vmem:[#allocation2 + $0xa8] sm:$0xff]  ;;  %v4253_v10 = vand.u32 2147483648, %v12405_v32  ;;  %vm4247_vm13 = vweird.f32 %v12405_v32  ;;  %v12476_v49 = vpop.f32.mrf.mxu2  ;;  %v8588_v25 = vld [vmem:[%s13505_s2 + $0x60] sm:$0xff] }
 0x2b1   :  { %v4102_v55 = vpop.f32.mrf.mxu3  ;;  %v4632_v35 = vshll.u32 %v12430_v51, 16  ;;  %v12459_v46 = vrot.slane %v5171_v56, 1  ;;  %v8580_v37 = vld [vmem:[%s13505_s2 + $0x20] sm:$0xff]  ;;  %vm4252_vm1 = vcmp.eq.f32.partialorder %v4251_v29, 8.507059e+37  ;;  %5899 = vmatpush.bf16.msra.mxu0 %v8588_v25  ;;  %v3873_v57 = vadd.f32 %v12396_v44, %v3666_v41  ;;  %v8619_v25 = vld [vmem:[%s13505_s2 + $0xd8] sm:$0xff] }
 0x2b2   :  { %v4468_v5 = vpack.c.bf16 %v4452_v15, %v4452_v15  ;;  %v4230_v31 = vmul.f32 %v9145_v60, %v4229_v2  ;;  %v12428_v12 = vadd.f32 %v4102_v55, %v3871_v13  ;;  %6004 = vmatpush.bf16.msra.mxu1 %v8580_v37  ;;  %v3668_v34 = vadd.f32 %v12328_v39, %v12440_v40 }
 0x2b3   :  { %v12464_v7 = vrot.slane %v4632_v35, 1  ;;  %v5174_v24 = vsel %vm2228_vm15, %v5169_v1, %v12459_v46  ;;  %v4636_v29 = vshrl.u32 %v12430_v51, 16  ;;  %6447 = vmatpush.bf16.msra.mxu3 %v8619_v25 }
 0x2b4   :  { %v9147_v48 = vpop.eup %9146  ;;  %4484 = vst.msk [vmem:[%s13506_s3 + $0x40] sm:$0xf] %vm3303_vm14, %v4468_v5  ;;  %v4231_v23 = vadd.f32 %v9145_v60, %v4230_v31  ;;  %v7748_v50 = vmul.f32 -1.442695, %v12428_v12 }
 0x2b5   :  { %v9149_v21 = vpop.eup %9148  ;;  %v12444_v52 = vadd.f32 1.0, %v9147_v48 }
 0x2b6   :  { %v4235_v43 = vsel %vm4234_vm10, %v9145_v60, %v4231_v23  ;;  %v4243_v47 = vmul.f32 %v9149_v21, %v12405_v32  ;;  %9150 = vpow2.f32 %v7748_v50  ;;  %vm4248_vm12 = vweird.f32 %v9149_v21  ;;  %v12506_v23 = vld [vmem:[#allocation2 + $0xb0] sm:$0xff] }
 0x2b7   :  { %v4240_v33 = vsel %vm4237_vm11, %v4239_v4, %v4235_v43  ;;  %9152 = vrcp.f32 %v12444_v52  ;;  %v12474_v14 = vpop.f32.mrf.mxu0  ;;  %vm4249_vm0 = vmor %vm4247_vm13, %vm4248_vm12  ;;  %v4254_v32 = vor.u32 1.1754944e-38, %v4253_v10  ;;  %v12488_v59 = vpop.f32.mrf.mxu1  ;;  %v4266_v5 = vand.u32 2147483647, %v12444_v52 }
 0x2b8   :  { %v4453_v28 = vmul.f32 %v4240_v33, %v12301_v16  ;;  %v4244_v27 = vsub.f32 1.0, %v4243_v47  ;;  %v4630_v16 = vor.u32 %v4628_v30, %v12384_v22  ;;  %v8604_v22 = vld [vmem:[%s13505_s2 + $0xa0] sm:$0xff]  ;;  %v4268_v31 = vand.u32 2147483648, %v12444_v52  ;;  %v12522_v47 = vpop.f32.mrf.mxu2 }
 0x2b9   :  { %v4104_v0 = vpop.f32.mrf.mxu3  ;;  %4854 = vmatmul.bf16.gmra.mxu1 %v12430_v51  ;;  %6181 = vmatpush.bf16.msra.mxu2 %v8604_v22  ;;  %vm4262_vm3 = vweird.f32 %v12444_v52  ;;  %vm4267_vm5 = vcmp.eq.f32.partialorder %v4266_v5, 8.507059e+37 }
 0x2ba   :  { %v4469_v6 = vpack.c.bf16 %v4453_v28, %v4453_v28  ;;  %v4245_v58 = vmul.f32 %v9149_v21, %v4244_v27  ;;  %v12461_v61 = vadd.f32 %v4104_v0, %v3872_v9  ;;  %v4635_v55 = vsel %vm2228_vm15, %v4630_v16, %v12464_v7  ;;  %v8541_v9 = vld [vmem:[#allocation2 + $0xb0] sm:$0xff] }
 0x2bb   :  { %4744 = vmatmul.bf16.gmra.mxu0 %v4635_v55  ;;  %v4269_v42 = vor.u32 1.1754944e-38, %v4268_v31  ;;  %v5175_v28 = vshrl.u32 %v12426_v45, 16  ;;  %v3874_v45 = vadd.f32 %v12442_v20, %v3668_v34 }
 0x2bc   :  { %v9151_v38 = vpop.eup %9150  ;;  %4485 = vst.msk [vmem:[%s13506_s3 + $0x44] sm:$0xf] %vm3303_vm14, %v4469_v6  ;;  %v4246_v19 = vadd.f32 %v9149_v21, %v4245_v58  ;;  %v7749_v60 = vmul.f32 -1.442695, %v12461_v61 }
 0x2bd   :  { %v9153_v53 = vpop.eup %9152  ;;  %v12485_v36 = vadd.f32 1.0, %v9151_v38  ;;  %5031 = vmatmul.bf16.gmra.mxu2 %v8541_v9  ;;  %v5177_v38 = vor.u32 %v5175_v28, %v12459_v46  ;;  %v3671_v46 = vadd.f32 %v12366_v63, %v12474_v14 }
 0x2be   :  { %v4250_v15 = vsel %vm4249_vm0, %v9149_v21, %v4246_v19  ;;  %v4258_v2 = vmul.f32 %v9153_v53, %v12444_v52  ;;  %9154 = vpow2.f32 %v7749_v60  ;;  %5286 = vmatmul.bf16.gmra.mxu3 %v5174_v24  ;;  %vm4263_vm2 = vweird.f32 %v9153_v53 }
 0x2bf   :  { %v4255_v13 = vsel %vm4252_vm1, %v4254_v32, %v4250_v15  ;;  %9156 = vrcp.f32 %v12485_v36  ;;  %v12520_v43 = vpop.f32.mrf.mxu0  ;;  %vm4264_vm4 = vmor %vm4262_vm3, %vm4263_vm2  ;;  %v12526_v35 = vpop.f32.mrf.mxu1  ;;  %v5179_v52 = vshll.u32 %v12506_v23, 16  ;;  %v4281_v6 = vand.u32 2147483647, %v12485_v36 }
 0x2c0   :  { %v4454_v17 = vmul.f32 %v4255_v13, %v12348_v18  ;;  %v4259_v54 = vsub.f32 1.0, %v4258_v2  ;;  %v12510_v18 = vld [vmem:[#allocation2 + $0xb0] sm:$0xff]  ;;  %v4283_v58 = vand.u32 2147483648, %v12485_v36  ;;  %vm4277_vm7 = vweird.f32 %v12485_v36  ;;  %v12556_v24 = vpop.f32.mrf.mxu2  ;;  %v8587_v2 = vld [vmem:[%s13505_s2 + $0x58] sm:$0xff] }
 0x2c1   :  { %v4107_v48 = vpop.f32.mrf.mxu3  ;;  %v4640_v10 = vshll.u32 %v12510_v18, 16  ;;  %v12539_v19 = vrot.slane %v5179_v52, 1  ;;  %v8579_v13 = vld [vmem:[%s13505_s2 + $0x18] sm:$0xff]  ;;  %vm4282_vm9 = vcmp.eq.f32.partialorder %v4281_v6, 8.507059e+37  ;;  %5900 = vmatpush.bf16.msra.mxu0 %v8587_v2  ;;  %v3875_v31 = vadd.f32 %v12476_v49, %v3671_v46 }
 0x2c2   :  { %v4470_v8 = vpack.c.bf16 %v4454_v17, %v4454_v17  ;;  %v4260_v50 = vmul.f32 %v9153_v53, %v4259_v54  ;;  %v12508_v21 = vadd.f32 %v4107_v48, %v3873_v57  ;;  %6005 = vmatpush.bf16.msra.mxu1 %v8579_v13 }
 0x2c3   :  { %v12544_v22 = vrot.slane %v4640_v10, 1  ;;  %v5182_v14 = vsel %vm2228_vm15, %v5177_v38, %v12539_v19  ;;  %v5183_v10 = vshrl.u32 %v12506_v23, 16 }
 0x2c4   :  { %v9155_v44 = vpop.eup %9154  ;;  %4486 = vst.msk [vmem:[%s13506_s3 + $0x48] sm:$0xf] %vm3303_vm14, %v4470_v8  ;;  %v4261_v4 = vadd.f32 %v9153_v53, %v4260_v50  ;;  %v7750_v56 = vmul.f32 -1.442695, %v12508_v21 }
 0x2c5   :  { %v9157_v33 = vpop.eup %9156  ;;  %v12524_v30 = vadd.f32 1.0, %v9155_v44 }
 0x2c6   :  { %v4265_v27 = vsel %vm4264_vm4, %v9153_v53, %v4261_v4  ;;  %v4273_v39 = vmul.f32 %v9157_v33, %v12485_v36  ;;  %9158 = vpow2.f32 %v7750_v56  ;;  %vm4278_vm6 = vweird.f32 %v9157_v33 }
 0x2c7   :  { %v4270_v40 = vsel %vm4267_vm5, %v4269_v42, %v4265_v27  ;;  %9160 = vrcp.f32 %v12524_v30  ;;  %v12554_v32 = vpop.f32.mrf.mxu0  ;;  %vm4279_vm8 = vmor %vm4277_vm7, %vm4278_vm6  ;;  %v4284_v36 = vor.u32 1.1754944e-38, %v4283_v58  ;;  %v12568_v63 = vpop.f32.mrf.mxu1  ;;  %v4296_v8 = vand.u32 2147483647, %v12524_v30 }
 0x2c8   :  { %v4455_v0 = vmul.f32 %v4270_v40, %v12381_v26  ;;  %v4274_v1 = vsub.f32 1.0, %v4273_v39  ;;  %v4638_v26 = vor.u32 %v4636_v29, %v12464_v7  ;;  %v8603_v7 = vld [vmem:[%s13505_s2 + $0x98] sm:$0xff]  ;;  %v4298_v50 = vand.u32 2147483648, %v12524_v30  ;;  %v12600_v27 = vpop.f32.mrf.mxu2 }
 0x2c9   :  { %v4109_v16 = vpop.f32.mrf.mxu3  ;;  %4859 = vmatmul.bf16.gmra.mxu1 %v12510_v18  ;;  %6182 = vmatpush.bf16.msra.mxu2 %v8603_v7  ;;  %vm4292_vm11 = vweird.f32 %v12524_v30  ;;  %v3673_v42 = vadd.f32 %v12408_v11, %v12520_v43  ;;  %v12604_v29 = vld [vmem:[#allocation2 + $0xb8] sm:$0xff]  ;;  %vm4297_vm13 = vcmp.eq.f32.partialorder %v4296_v8, 8.507059e+37 }
 0x2ca   :  { %v4471_v41 = vpack.c.bf16 %v4455_v0, %v4455_v0  ;;  %v4275_v60 = vmul.f32 %v9157_v33, %v4274_v1  ;;  %v12541_v51 = vadd.f32 %v4109_v16, %v3874_v45  ;;  %v4643_v48 = vsel %vm2228_vm15, %v4638_v26, %v12544_v22  ;;  %v8542_v1 = vld [vmem:[#allocation2 + $0xb8] sm:$0xff] }
 0x2cb   :  { %4749 = vmatmul.bf16.gmra.mxu0 %v4643_v48  ;;  %v4299_v40 = vor.u32 1.1754944e-38, %v4298_v50  ;;  %v4644_v45 = vshrl.u32 %v12510_v18, 16  ;;  %v3876_v23 = vadd.f32 %v12522_v47, %v3673_v42  ;;  %v4648_v26 = vshll.u32 %v12604_v29, 16 }
 0x2cc   :  { %v9159_v20 = vpop.eup %9158  ;;  %4487 = vst.msk [vmem:[%s13506_s3 + $0x4c] sm:$0xf] %vm3303_vm14, %v4471_v41  ;;  %v4276_v3 = vadd.f32 %v9157_v33, %v4275_v60  ;;  %v7751_v53 = vmul.f32 -1.442695, %v12541_v51 }
 0x2cd   :  { %v9161_v37 = vpop.eup %9160  ;;  %v12565_v15 = vadd.f32 1.0, %v9159_v20  ;;  %5036 = vmatmul.bf16.gmra.mxu2 %v8542_v1  ;;  %v5185_v20 = vor.u32 %v5183_v10, %v12539_v19  ;;  %v3676_v19 = vadd.f32 %v12446_v62, %v12554_v32  ;;  %v12650_v13 = vrot.slane %v4648_v26, 1  ;;  %v12674_v10 = vld [vmem:[#allocation2 + $0xc0] sm:$0xff]  ;;  %v8577_v1 = vld [vmem:[%s13505_s2 + $0x8] sm:$0xff] }
 0x2ce   :  { %v4280_v17 = vsel %vm4279_vm8, %v9157_v33, %v4276_v3  ;;  %v4288_v54 = vmul.f32 %v9161_v37, %v12524_v30  ;;  %9162 = vpow2.f32 %v7751_v53  ;;  %5291 = vmatmul.bf16.gmra.mxu3 %v5182_v14  ;;  %vm4293_vm10 = vweird.f32 %v9161_v37  ;;  %v12588_v33 = vld [vmem:[#allocation2 + $0xb8] sm:$0xff]  ;;  %v8578_v14 = vld [vmem:[%s13505_s2 + $0x10] sm:$0xff]  ;;  %v8543_v26 = vld [vmem:[#allocation2 + $0xc0] sm:$0xff] }
 0x2cf   :  { %v4285_v57 = vsel %vm4282_vm9, %v4284_v36, %v4280_v17  ;;  %9164 = vrcp.f32 %v12565_v15  ;;  %v12598_v52 = vpop.f32.mrf.mxu0  ;;  %vm4294_vm12 = vmor %vm4292_vm11, %vm4293_vm10  ;;  %v12608_v11 = vpop.f32.mrf.mxu1  ;;  %v5187_v6 = vshll.u32 %v12588_v33, 16  ;;  %v4311_v38 = vand.u32 2147483647, %v12565_v15  ;;  %6006 = vmatpush.bf16.msra.mxu1 %v8578_v14 }
 0x2d0   :  { %v4456_v55 = vmul.f32 %v4285_v57, %v12428_v12  ;;  %v4289_v5 = vsub.f32 1.0, %v4288_v54  ;;  %v4313_v41 = vand.u32 2147483648, %v12565_v15  ;;  %vm4307_vm1 = vweird.f32 %v12565_v15  ;;  %v12634_v36 = vpop.f32.mrf.mxu2  ;;  %v8618_v54 = vld [vmem:[%s13505_s2 + $0xd0] sm:$0xff] }
 0x2d1   :  { %v4112_v44 = vpop.f32.mrf.mxu3  ;;  %v12622_v53 = vrot.slane %v5187_v6, 1  ;;  %v8586_v57 = vld [vmem:[%s13505_s2 + $0x50] sm:$0xff]  ;;  %vm4312_vm3 = vcmp.eq.f32.partialorder %v4311_v38, 8.507059e+37  ;;  %6448 = vmatpush.bf16.msra.mxu3 %v8618_v54  ;;  %v5191_v38 = vshrl.u32 %v12588_v33, 16 }
 0x2d2   :  { %v4472_v4 = vpack.c.bf16 %v4456_v55, %v4456_v55  ;;  %v4290_v34 = vmul.f32 %v9161_v37, %v4289_v5  ;;  %v12586_v56 = vadd.f32 %v4112_v44, %v3875_v31  ;;  %v4314_v62 = vor.u32 1.1754944e-38, %v4313_v41  ;;  %v4532_v31 = vld [vmem:[#allocation2 + $0xc0] sm:$0x1]  ;;  %5901 = vmatpush.bf16.msra.mxu0 %v8586_v57 }
 0x2d3   :  { %v5190_v17 = vsel %vm2228_vm15, %v5185_v20, %v12622_v53  ;;  %v3877_v44 = vadd.f32 %v12556_v24, %v3676_v19  ;;  %6007 = vmatpush.bf16.msra.mxu1 %v8577_v1  ;;  %v8576_v41 = vld [vmem:[%s13505_s2] sm:$0xff]  ;;  %v4652_v20 = vshrl.u32 %v12604_v29, 16  ;;  %v5193_v14 = vor.u32 %v5191_v38, %v12622_v53 }
 0x2d4   :  { %v9163_v12 = vpop.eup %9162  ;;  %4488 = vst.msk [vmem:[%s13506_s3 + $0x50] sm:$0xf] %vm3303_vm14, %v4472_v4  ;;  %v4291_v49 = vadd.f32 %v9161_v37, %v4290_v34  ;;  %v7752_v28 = vmul.f32 -1.442695, %v12586_v56 }
 0x2d5   :  { %v9165_v39 = vpop.eup %9164  ;;  %v12602_v9 = vadd.f32 1.0, %v9163_v12 }
 0x2d6   :  { %v4295_v0 = vsel %vm4294_vm12, %v9161_v37, %v4291_v49  ;;  %v4303_v30 = vmul.f32 %v9165_v39, %v12565_v15  ;;  %9166 = vpow2.f32 %v7752_v28  ;;  %vm4308_vm0 = vweird.f32 %v9165_v39 }
 0x2d7   :  { %v4300_v43 = vsel %vm4297_vm13, %v4299_v40, %v4295_v0  ;;  %9168 = vrcp.f32 %v12602_v9  ;;  %v12632_v37 = vpop.f32.mrf.mxu0  ;;  %vm12643_vm2 = vmor %vm4307_vm1, %vm4308_vm0  ;;  %v12666_v4 = vpop.f32.mrf.mxu1  ;;  %v4326_v12 = vand.u32 2147483647, %v12602_v9  ;;  %v4328_v49 = vand.u32 2147483648, %v12602_v9  ;;  %6008 = vmatpush.bf16.msra.mxu1 %v8576_v41 }
 0x2d8   :  { %v4457_v58 = vmul.f32 %v4300_v43, %v12461_v61  ;;  %v4304_v16 = vsub.f32 1.0, %v4303_v30  ;;  %v4646_v61 = vor.u32 %v4644_v45, %v12544_v22  ;;  %v8602_v22 = vld [vmem:[%s13505_s2 + $0x90] sm:$0xff]  ;;  %v4582_v28 = vunpack.c.l.b16 %v4532_v31  ;;  %v12689_v6 = vpop.f32.mrf.mxu2 }
 0x2d9   :  { %v4114_v60 = vpop.f32.mrf.mxu3  ;;  %4864 = vmatmul.bf16.gmra.mxu1 %v12604_v29  ;;  %6183 = vmatpush.bf16.msra.mxu2 %v8602_v22  ;;  %vm4322_vm5 = vweird.f32 %v12602_v9  ;;  %v3678_v30 = vadd.f32 %v12488_v59, %v12598_v52  ;;  %vm4327_vm7 = vcmp.eq.f32.partialorder %v4326_v12, 8.507059e+37 }
 0x2da   :  { %v4473_v3 = vpack.c.bf16 %v4457_v58, %v4457_v58  ;;  %v4305_v46 = vmul.f32 %v9165_v39, %v4304_v16  ;;  %v12619_v18 = vadd.f32 %v4114_v60, %v3876_v23  ;;  %v4651_v34 = vsel %vm2228_vm15, %v4646_v61, %v12650_v13 }
 0x2db   :  { %4754 = vmatmul.bf16.gmra.mxu0 %v4651_v34  ;;  %v4329_v16 = vor.u32 1.1754944e-38, %v4328_v49  ;;  %v3878_v61 = vadd.f32 %v12600_v27, %v3678_v30  ;;  %v12715_v27 = vld [vmem:[#allocation2 + $0xc0] sm:$0xff]  ;;  %v8585_v34 = vld [vmem:[%s13505_s2 + $0x48] sm:$0xff] }
 0x2dc   :  { %v9167_v47 = vpop.eup %9166  ;;  %4489 = vst.msk [vmem:[%s13506_s3 + $0x54] sm:$0xf] %vm3303_vm14, %v4473_v3  ;;  %v4306_v7 = vadd.f32 %v9165_v39, %v4305_v46  ;;  %v7753_v25 = vmul.f32 -1.442695, %v12619_v18  ;;  %v5195_v3 = vshll.u32 %v12674_v10, 16  ;;  %5902 = vmatpush.bf16.msra.mxu0 %v8585_v34  ;;  %v8616_v34 = vld [vmem:[%s13505_s2 + $0xc0] sm:$0xff] }
 0x2dd   :  { %v9169_v2 = vpop.eup %9168  ;;  %v12647_v32 = vadd.f32 1.0, %v9167_v47  ;;  %v5079_v47 = vld [vmem:[#allocation2 + $0xc8] sm:$0x1]  ;;  %5041 = vmatmul.bf16.gmra.mxu2 %v8543_v26 }
 0x2de   :  { %v4310_v55 = vsel %vm12643_vm2, %v9165_v39, %v4306_v7  ;;  %v4318_v5 = vmul.f32 %v9169_v2, %v12602_v9  ;;  %9170 = vpow2.f32 %v7753_v25  ;;  %5296 = vmatmul.bf16.gmra.mxu3 %v5190_v17  ;;  %vm4323_vm4 = vweird.f32 %v9169_v2 }
 0x2df   :  { %v4315_v48 = vsel %vm4312_vm3, %v4314_v62, %v4310_v55  ;;  %9172 = vrcp.f32 %v12647_v32  ;;  %v12687_v45 = vpop.f32.mrf.mxu0  ;;  %vm4324_vm6 = vmor %vm4322_vm5, %vm4323_vm4  ;;  %v4591_v9 = vpack.c.b16 %v4582_v28, %v4582_v28  ;;  %v4341_v7 = vand.u32 2147483647, %v12647_v32 }
 0x2e0   :  { %v4458_v8 = vmul.f32 %v4315_v48, %v12508_v21  ;;  %v4319_v50 = vsub.f32 1.0, %v4318_v5  ;;  %v4343_v19 = vand.u32 2147483648, %v12647_v32  ;;  %v4654_v62 = vor.u32 %v4652_v20, %v12650_v13  ;;  %v12731_v13 = vpop.f32.mrf.mxu2  ;;  %v8601_v48 = vld [vmem:[%s13505_s2 + $0x88] sm:$0xff] }
 0x2e1   :  { %v4117_v42 = vpop.f32.mrf.mxu3  ;;  %v4656_v22 = vshll.u32 %v4591_v9, 16  ;;  %v12718_v17 = vrot.slane %v5195_v3, 1  ;;  %v5129_v54 = vunpack.c.l.b16 %v5079_v47  ;;  %vm4337_vm9 = vweird.f32 %v12647_v32  ;;  %6184 = vmatpush.bf16.msra.mxu2 %v8601_v48  ;;  %v8600_v3 = vld [vmem:[%s13505_s2 + $0x80] sm:$0xff] }
 0x2e2   :  { %v4474_v39 = vpack.c.bf16 %v4458_v8, %v4458_v8  ;;  %v4320_v40 = vmul.f32 %v9169_v2, %v4319_v50  ;;  %v12672_v21 = vadd.f32 %v4117_v42, %v3877_v44  ;;  %v3681_v55 = vadd.f32 %v12526_v35, %v12632_v37  ;;  %v8617_v8 = vld [vmem:[%s13505_s2 + $0xc8] sm:$0xff] }
 0x2e3   :  { %v4658_v37 = vrot.slane %v4656_v22, 1  ;;  %v5198_v44 = vsel %vm2228_vm15, %v5193_v14, %v12718_v17  ;;  %vm4342_vm11 = vcmp.eq.f32.partialorder %v4341_v7, 8.507059e+37  ;;  %6449 = vmatpush.bf16.msra.mxu3 %v8617_v8  ;;  %v5138_v1 = vpack.c.b16 %v5129_v54, %v5129_v54 }
 0x2e4   :  { %v9171_v24 = vpop.eup %9170  ;;  %4490 = vst.msk [vmem:[%s13506_s3 + $0x58] sm:$0xf] %vm3303_vm14, %v4474_v39  ;;  %v4321_v0 = vadd.f32 %v9169_v2, %v4320_v40  ;;  %v7754_v43 = vmul.f32 -1.442695, %v12672_v21  ;;  %v3879_v40 = vadd.f32 %v12634_v36, %v3681_v55  ;;  %v5775_v36 = vshll.u32 %v12715_v27, 16 }
 0x2e5   :  { %v12691_v58 = vpop.eup %9172  ;;  %v12693_v23 = vadd.f32 1.0, %v9171_v24  ;;  %v4659_v24 = vsel %vm2228_vm15, %v4654_v62, %v4658_v37  ;;  %v3683_v41 = vadd.f32 %v12568_v63, %v12687_v45  ;;  %v5203_v47 = vshll.u32 %v5138_v1, 16  ;;  %6185 = vmatpush.bf16.msra.mxu2 %v8600_v3  ;;  %v12825_v1 = vld [vmem:[#allocation2 + $0xd0] sm:$0xff] }
 0x2e6   :  { %v4325_v59 = vsel %vm4324_vm6, %v9169_v2, %v4321_v0  ;;  %v4333_v52 = vmul.f32 %v12691_v58, %v12647_v32  ;;  %9174 = vpow2.f32 %v7754_v43  ;;  %vm4338_vm8 = vweird.f32 %v12691_v58  ;;  %v12711_v15 = vpop.f32.mrf.mxu1 }
 0x2e7   :  { %v4330_v60 = vsel %vm4327_vm7, %v4329_v16, %v4325_v59  ;;  %9176 = vrcp.f32 %v12693_v23  ;;  %v12729_v31 = vpop.f32.mrf.mxu0  ;;  %vm4339_vm10 = vmor %vm4337_vm9, %vm4338_vm8  ;;  %v4344_v32 = vor.u32 1.1754944e-38, %v4343_v19  ;;  %v4356_v0 = vand.u32 2147483647, %v12693_v23  ;;  %6450 = vmatpush.bf16.msra.mxu3 %v8616_v34 }
 0x2e8   :  { %v4459_v33 = vmul.f32 %v4330_v60, %v12541_v51  ;;  %v4334_v46 = vsub.f32 1.0, %v4333_v52  ;;  %v4358_v30 = vand.u32 2147483648, %v12693_v23  ;;  %vm4352_vm13 = vweird.f32 %v12693_v23  ;;  %v12774_v20 = vpop.f32.mrf.mxu2 }
 0x2e9   :  { %v4119_v25 = vpop.f32.mrf.mxu3  ;;  %6009 = vmatmul.bf16.vlgmr.msra.gmra.mxu1 %v12715_v27  ;;  %vm4357_vm1 = vcmp.eq.f32.partialorder %v4356_v0, 8.507059e+37  ;;  %v5773_v22 = vshrl.u32 %v12715_v27, 16  ;;  %v5205_v55 = vrot.slane %v5203_v47, 1 }
 0x2ea   :  { %v4475_v2 = vpack.c.bf16 %v4459_v33, %v4459_v33  ;;  %v4335_v29 = vmul.f32 %v12691_v58, %v4334_v46  ;;  %v12713_v51 = vadd.f32 %v4119_v25, %v3878_v61  ;;  %v4359_v46 = vor.u32 1.1754944e-38, %v4358_v30  ;;  %v8592_v25 = vld [vmem:[#allocation2 + $0xc8] sm:$0xff] }
 0x2eb   :  { %4759 = vmatmul.bf16.gmra.mxu0 %v4659_v24 }
 0x2ec   :  { %v9175_v57 = vpop.eup %9174  ;;  %4491 = vst.msk [vmem:[%s13506_s3 + $0x5c] sm:$0xf] %vm3303_vm14, %v4475_v2  ;;  %v4336_v53 = vadd.f32 %v12691_v58, %v4335_v29  ;;  %v7755_v5 = vmul.f32 -1.442695, %v12713_v51  ;;  %v5777_v29 = vrot.slane %v5775_v36, 1 }
 0x2ed   :  { %v9177_v50 = vpop.eup %9176  ;;  %v12741_v35 = vadd.f32 1.0, %v9175_v57  ;;  %6186 = vmatmul.bf16.vlgmr.msra.gmra.mxu2 %v8592_v25 }
 0x2ee   :  { %v4340_v12 = vsel %vm4339_vm10, %v12691_v58, %v4336_v53  ;;  %v4348_v49 = vmul.f32 %v9177_v50, %v12693_v23  ;;  %9178 = vpow2.f32 %v7755_v5  ;;  %5301 = vmatmul.bf16.gmra.mxu3 %v5198_v44  ;;  %vm4353_vm12 = vweird.f32 %v9177_v50  ;;  %v12757_v9 = vpop.f32.mrf.mxu1 }
 0x2ef   :  { %v4345_v42 = vsel %vm4342_vm11, %v4344_v32, %v4340_v12  ;;  %9180 = vrcp.f32 %v12741_v35  ;;  %v12772_v26 = vpop.f32.mrf.mxu0  ;;  %vm4354_vm0 = vmor %vm4352_vm13, %vm4353_vm12  ;;  %v5199_v23 = vshrl.u32 %v12674_v10, 16  ;;  %v3880_v10 = vadd.f32 %v12689_v6, %v3683_v41  ;;  %v8584_v32 = vld [vmem:[%s13505_s2 + $0x40] sm:$0xff] }
 0x2f0   :  { %v4460_v28 = vmul.f32 %v4345_v42, %v12586_v56  ;;  %v4349_v39 = vsub.f32 1.0, %v4348_v49  ;;  %v12761_v56 = vld [vmem:[#allocation2 + $0xc8] sm:$0xff]  ;;  %v4371_v62 = vand.u32 2147483647, %v12741_v35  ;;  %v4373_v54 = vand.u32 2147483648, %v12741_v35  ;;  %v12807_v37 = vpop.f32.mrf.mxu2  ;;  %5903 = vmatpush.bf16.msra.mxu0 %v8584_v32 }
 0x2f1   :  { %v4122_v43 = vpop.f32.mrf.mxu3  ;;  %v5780_v19 = vshll.u32 %v12761_v56, 16  ;;  %v5201_v53 = vor.u32 %v5199_v23, %v12718_v17  ;;  %vm4367_vm3 = vweird.f32 %v12741_v35  ;;  %v5778_v44 = vor.u32 %v5777_v29, %v5773_v22 }
 0x2f2   :  { %v4476_v58 = vpack.c.bf16 %v4460_v28, %v4460_v28  ;;  %v4350_v16 = vmul.f32 %v9177_v50, %v4349_v39  ;;  %v12759_v38 = vadd.f32 %v4122_v43, %v3879_v40  ;;  %v4374_v49 = vor.u32 1.1754944e-38, %v4373_v54  ;;  %v8608_v39 = vld [vmem:[#allocation2 + $0xc8] sm:$0xff] }
 0x2f3   :  { %v3686_v42 = vadd.f32 %v12608_v11, %v12729_v31  ;;  %v5206_v28 = vsel %vm2228_vm15, %v5201_v53, %v5205_v55  ;;  %vm4372_vm5 = vcmp.eq.f32.partialorder %v4371_v62, 8.507059e+37  ;;  %v3688_v47 = vadd.f32 %v12666_v4, %v12772_v26  ;;  %v8593_v4 = vld [vmem:[#allocation2 + $0xd0] sm:$0xff] }
 0x2f4   :  { %v9179_v59 = vpop.eup %9178  ;;  %4492 = vst.msk [vmem:[%s13506_s3 + $0x60] sm:$0xf] %vm3303_vm14, %v4476_v58  ;;  %v4351_v52 = vadd.f32 %v9177_v50, %v4350_v16  ;;  %v7756_v60 = vmul.f32 -1.442695, %v12759_v38  ;;  %v5784_v26 = vshrl.u32 %v12761_v56, 16 }
 0x2f5   :  { %v9181_v33 = vpop.eup %9180  ;;  %v12780_v61 = vadd.f32 1.0, %v9179_v59  ;;  %v3881_v16 = vadd.f32 %v12731_v13, %v3686_v42  ;;  %v6322_v59 = vshll.u32 %v8608_v39, 16  ;;  %v3882_v53 = vadd.f32 %v12774_v20, %v3688_v47 }
 0x2f6   :  { %v4355_v63 = vsel %vm4354_vm0, %v9177_v50, %v4351_v52  ;;  %v4363_v45 = vmul.f32 %v9181_v33, %v12741_v35  ;;  %9182 = vpow2.f32 %v7756_v60  ;;  %vm4368_vm2 = vweird.f32 %v9181_v33  ;;  %v12792_v8 = vpop.f32.mrf.mxu1 }
 0x2f7   :  { %v4360_v7 = vsel %vm4357_vm1, %v4359_v46, %v4355_v63  ;;  %9184 = vrcp.f32 %v12780_v61  ;;  %vm4369_vm4 = vmor %vm4367_vm3, %vm4368_vm2  ;;  %v4388_v58 = vand.u32 2147483648, %v12780_v61  ;;  %v4386_v60 = vand.u32 2147483647, %v12780_v61 }
 0x2f8   :  { %v4461_v14 = vmul.f32 %v4360_v7, %v12619_v18  ;;  %v4364_v2 = vsub.f32 1.0, %v4363_v45  ;;  %v12796_v18 = vrot.slane %v5780_v19, 1  ;;  %v12819_v0 = vpop.f32.mrf.mxu0  ;;  %v6320_v46 = vshrl.u32 %v8608_v39, 16 }
 0x2f9   :  { %v4124_v57 = vpop.f32.mrf.mxu3  ;;  %6014 = vmatmul.bf16.gmra.mxu1 %v12761_v56  ;;  %vm4382_vm7 = vweird.f32 %v12780_v61  ;;  %v6327_v63 = vshll.u32 %v12825_v1, 16  ;;  %v4389_v7 = vor.u32 1.1754944e-38, %v4388_v58  ;;  %v6324_v22 = vrot.slane %v6322_v59, 1 }
 0x2fa   :  { %v4477_v5 = vpack.c.bf16 %v4461_v14, %v4461_v14  ;;  %v4365_v48 = vmul.f32 %v9181_v33, %v4364_v2  ;;  %v12794_v27 = vadd.f32 %v4124_v57, %v3880_v10  ;;  %v5783_v43 = vsel %vm2228_vm15, %v5778_v44, %v12796_v18 }
 0x2fb   :  { %5904 = vmatmul.bf16.vlgmr.msra.gmra.mxu0 %v5783_v43  ;;  %vm4387_vm9 = vcmp.eq.f32.partialorder %v4386_v60, 8.507059e+37 }
 0x2fc   :  { %v9183_v6 = vpop.eup %9182  ;;  %4493 = vst.msk [vmem:[%s13506_s3 + $0x64] sm:$0xf] %vm3303_vm14, %v4477_v5  ;;  %v4366_v50 = vadd.f32 %v9181_v33, %v4365_v48  ;;  %v7757_v17 = vmul.f32 -1.442695, %v12794_v27 }
 0x2fd   :  { %v9185_v12 = vpop.eup %9184  ;;  %v12814_v35 = vadd.f32 1.0, %v9183_v6  ;;  %6191 = vmatmul.bf16.gmra.mxu2 %v8593_v4  ;;  %v6325_v6 = vor.u32 %v6324_v22, %v6320_v46 }
 0x2fe   :  { %v4370_v40 = vsel %vm4369_vm4, %v9181_v33, %v4366_v50  ;;  %v4378_v24 = vmul.f32 %v9185_v12, %v12780_v61  ;;  %9186 = vpow2.f32 %v7757_v17  ;;  %5306 = vmatmul.bf16.gmra.mxu3 %v5206_v28  ;;  %vm4383_vm6 = vweird.f32 %v9185_v12  ;;  %v12830_v3 = vpop.f32.mrf.mxu1  ;;  %v12834_v33 = vld [vmem:[#allocation2 + $0xd0] sm:$0xff]  ;;  %v12850_v61 = vpop.f32.mrf.mxu2 }
 0x2ff   :  { %v4375_v30 = vsel %vm4372_vm5, %v4374_v49, %v4370_v40  ;;  %9188 = vrcp.f32 %v12814_v35  ;;  %vm4384_vm8 = vmor %vm4382_vm7, %vm4383_vm6  ;;  %v5788_v62 = vshll.u32 %v12834_v33, 16  ;;  %v4401_v55 = vand.u32 2147483647, %v12814_v35 }
 0x300   :  { %v4462_v11 = vmul.f32 %v4375_v30, %v12672_v21  ;;  %v4379_v31 = vsub.f32 1.0, %v4378_v24  ;;  %v12848_v10 = vpop.f32.mrf.mxu0  ;;  %v4403_v5 = vand.u32 2147483648, %v12814_v35  ;;  %v12859_v50 = vrot.slane %v6327_v63, 1 }
 0x301   :  { %v4127_v36 = vpop.f32.mrf.mxu3  ;;  %v12866_v20 = vrot.slane %v5788_v62, 1  ;;  %vm4397_vm11 = vweird.f32 %v12814_v35  ;;  %vm4402_vm13 = vcmp.eq.f32.partialorder %v4401_v55, 8.507059e+37  ;;  %v4833_v47 = vadd.f32 %v12757_v9, %v12848_v10  ;;  %v8594_v9 = vld [vmem:[#allocation2 + $0xd8] sm:$0xff] }
 0x302   :  { %v4478_v52 = vpack.c.bf16 %v4462_v11, %v4462_v11  ;;  %v4380_v41 = vmul.f32 %v9185_v12, %v4379_v31  ;;  %v12832_v21 = vadd.f32 %v4127_v36, %v3881_v16  ;;  %v4404_v28 = vor.u32 1.1754944e-38, %v4403_v5 }
 0x303   :  { %v5792_v10 = vshrl.u32 %v12834_v33, 16 }
 0x304   :  { %v9187_v23 = vpop.eup %9186  ;;  %4494 = vst.msk [vmem:[%s13506_s3 + $0x68] sm:$0xf] %vm3303_vm14, %v4478_v52  ;;  %v4381_v13 = vadd.f32 %v9185_v12, %v4380_v41  ;;  %v7758_v25 = vmul.f32 -1.442695, %v12832_v21  ;;  %v12891_v52 = vld [vmem:[#allocation2 + $0xd8] sm:$0xff] }
 0x305   :  { %v9189_v45 = vpop.eup %9188  ;;  %v12844_v19 = vadd.f32 1.0, %v9187_v23  ;;  %v6335_v22 = vshll.u32 %v12891_v52, 16 }
 0x306   :  { %v4385_v14 = vsel %vm4384_vm8, %v9185_v12, %v4381_v13  ;;  %v4393_v2 = vmul.f32 %v9189_v45, %v12814_v35  ;;  %vm4398_vm10 = vweird.f32 %v9189_v45  ;;  %v12861_v56 = vpop.f32.mrf.mxu1  ;;  %v4831_v12 = vadd.f32 %v12711_v15, %v12819_v0  ;;  %v12880_v30 = vpop.f32.mrf.mxu2 }
 0x307   :  { %v4390_v29 = vsel %vm4387_vm9, %v4389_v7, %v4385_v14  ;;  %9190 = vrcp.f32 %v12844_v19  ;;  %vm4399_vm12 = vmor %vm4397_vm11, %vm4398_vm10  ;;  %v4416_v16 = vand.u32 2147483647, %v12844_v19  ;;  %v4418_v36 = vand.u32 2147483648, %v12844_v19 }
 0x308   :  { %v4463_v54 = vmul.f32 %v4390_v29, %v12713_v51  ;;  %v4394_v57 = vsub.f32 1.0, %v4393_v2  ;;  %9192 = vpow2.f32 %v7758_v25  ;;  %v5786_v51 = vor.u32 %v5784_v26, %v12796_v18  ;;  %v4730_v35 = vpop.f32.mrf.mxu0 }
 0x309   :  { %v4129_v48 = vpop.f32.mrf.mxu3  ;;  %6019 = vmatmul.bf16.gmra.mxu1 %v12834_v33  ;;  %v6330_v18 = vsel %vm2228_vm15, %v6325_v6, %v12859_v50  ;;  %v5047_v43 = vadd.f32 %v12807_v37, %v4831_v12  ;;  %v12897_v37 = vld [vmem:[#allocation2 + $0xd8] sm:$0xff]  ;;  %vm4412_vm1 = vweird.f32 %v12844_v19  ;;  %v6331_v25 = vshrl.u32 %v12825_v1, 16 }
 0x30a   :  { %v4479_v17 = vpack.c.bf16 %v4463_v54, %v4463_v54  ;;  %v4395_v32 = vmul.f32 %v9189_v45, %v4394_v57  ;;  %v12863_v44 = vadd.f32 %v4129_v48, %v3882_v53  ;;  %v5791_v58 = vsel %vm2228_vm15, %v5786_v51, %v12866_v20 }
 0x30b   :  { %5909 = vmatmul.bf16.gmra.mxu0 %v5791_v58  ;;  %vm4417_vm3 = vcmp.eq.f32.partialorder %v4416_v16, 8.507059e+37  ;;  %v5796_v26 = vshll.u32 %v12897_v37, 16  ;;  %v5048_v54 = vadd.f32 %v12850_v61, %v4833_v47  ;;  %v6333_v53 = vor.u32 %v6331_v25, %v12859_v50  ;;  %v12956_v16 = vld [vmem:[#allocation2 + $0xe0] sm:$0xff] }
 0x30c   :  { %4495 = vst.msk [vmem:[%s13506_s3 + $0x6c] sm:$0xf] %vm3303_vm14, %v4479_v17  ;;  %v4396_v34 = vadd.f32 %v9189_v45, %v4395_v32  ;;  %v7759_v49 = vmul.f32 -1.442695, %v12863_v44  ;;  %v12922_v55 = vrot.slane %v6335_v22, 1  ;;  %v5794_v32 = vor.u32 %v5792_v10, %v12866_v20 }
 0x30d   :  { %v9191_v42 = vpop.eup %9190  ;;  %6196 = vmatmul.bf16.gmra.mxu2 %v8594_v9  ;;  %v12931_v51 = vrot.slane %v5796_v26, 1 }
 0x30e   :  { %v9193_v39 = vpop.eup %9192  ;;  %v4400_v40 = vsel %vm4399_vm12, %v9189_v45, %v4396_v34  ;;  %v4408_v24 = vmul.f32 %v9191_v42, %v12844_v19  ;;  %9194 = vpow2.f32 %v7759_v49  ;;  %6451 = vmatmul.bf16.vlgmr.msra.gmra.mxu3 %v6330_v18  ;;  %vm4413_vm0 = vweird.f32 %v9191_v42  ;;  %v12913_v29 = vpop.f32.mrf.mxu2 }
 0x30f   :  { %v4405_v15 = vsel %vm4402_vm13, %v4404_v28, %v4400_v40  ;;  %v12882_v0 = vadd.f32 1.0, %v9193_v39  ;;  %vm4414_vm2 = vmor %vm4412_vm1, %vm4413_vm0  ;;  %v4419_v45 = vor.u32 1.1754944e-38, %v4418_v36 }
 0x310   :  { %v4464_v11 = vmul.f32 %v4405_v15, %v12759_v38  ;;  %v4409_v31 = vsub.f32 1.0, %v4408_v24  ;;  %v12893_v38 = vpop.f32.mrf.mxu1  ;;  %v12911_v2 = vpop.f32.mrf.mxu0  ;;  %v5799_v24 = vsel %vm2228_vm15, %v5794_v32, %v12931_v51 }
 0x311   :  { %9196 = vrcp.f32 %v12882_v0  ;;  %v5272_v59 = vpop.f32.mrf.mxu3  ;;  %v4433_v33 = vand.u32 2147483648, %v12882_v0  ;;  %v4431_v34 = vand.u32 2147483647, %v12882_v0  ;;  %vm4427_vm5 = vweird.f32 %v12882_v0 }
 0x312   :  { %v4480_v41 = vpack.c.bf16 %v4464_v11, %v4464_v11  ;;  %v4410_v60 = vmul.f32 %v9191_v42, %v4409_v31  ;;  %v12895_v46 = vadd.f32 %v5272_v59, %v5047_v43  ;;  %v4838_v22 = vadd.f32 %v12830_v3, %v12911_v2  ;;  %v8595_v3 = vld [vmem:[#allocation2 + $0xe0] sm:$0xff] }
 0x313   :  { %v4434_v40 = vor.u32 1.1754944e-38, %v4433_v33  ;;  %vm4432_vm7 = vcmp.eq.f32.partialorder %v4431_v34, 8.507059e+37  ;;  %v5800_v2 = vshrl.u32 %v12897_v37, 16 }
 0x314   :  { %v9195_v23 = vpop.eup %9194  ;;  %4496 = vst.msk [vmem:[%s13506_s3 + $0x70] sm:$0xf] %vm3303_vm14, %v4480_v41  ;;  %v4411_v13 = vadd.f32 %v9191_v42, %v4410_v60  ;;  %v8032_v63 = vmul.f32 -1.442695, %v12895_v46 }
 0x315   :  { %v12907_v7 = vadd.f32 1.0, %v9195_v23  ;;  %v12963_v23 = vld [vmem:[#allocation2 + $0xe0] sm:$0xff] }
 0x316   :  { %v4415_v14 = vsel %vm4414_vm2, %v9191_v42, %v4411_v13  ;;  %9198 = vpow2.f32 %v8032_v63  ;;  %v12948_v39 = vpop.f32.mrf.mxu2  ;;  %v5804_v26 = vshll.u32 %v12963_v23, 16 }
 0x317   :  { %v9197_v19 = vpop.eup %9196  ;;  %v4420_v4 = vsel %vm4417_vm3, %v4419_v45, %v4415_v14  ;;  %9200 = vrcp.f32 %v12907_v7  ;;  %v4446_v31 = vand.u32 2147483647, %v12907_v7  ;;  %v4448_v43 = vand.u32 2147483648, %v12907_v7 }
 0x318   :  { %v4465_v1 = vmul.f32 %v4420_v4, %v12794_v27  ;;  %v4423_v62 = vmul.f32 %v9197_v19, %v12882_v0  ;;  %v12924_v6 = vpop.f32.mrf.mxu1  ;;  %v4836_v27 = vadd.f32 %v12792_v8, %v4730_v35  ;;  %vm4428_vm4 = vweird.f32 %v9197_v19  ;;  %v12946_v18 = vpop.f32.mrf.mxu0 }
 0x319   :  { %v5274_v57 = vpop.f32.mrf.mxu3  ;;  %6024 = vmatmul.bf16.gmra.mxu1 %v12897_v37  ;;  %v6338_v8 = vsel %vm2228_vm15, %v6333_v53, %v12922_v55  ;;  %vm4429_vm6 = vmor %vm4427_vm5, %vm4428_vm4  ;;  %vm4442_vm9 = vweird.f32 %v12907_v7  ;;  %vm4447_vm11 = vcmp.eq.f32.partialorder %v4446_v31, 8.507059e+37  ;;  %v4841_v34 = vadd.f32 %v12861_v56, %v12946_v18 }
 0x31a   :  { %v4481_v5 = vpack.c.bf16 %v4465_v1, %v4465_v1  ;;  %v4424_v48 = vsub.f32 1.0, %v4423_v62  ;;  %v12926_v17 = vadd.f32 %v5274_v57, %v5048_v54  ;;  %v5049_v0 = vadd.f32 %v12880_v30, %v4836_v27 }
 0x31b   :  { %5914 = vmatmul.bf16.gmra.mxu0 %v5799_v24  ;;  %v6339_v30 = vshrl.u32 %v12891_v52, 16  ;;  %v5050_v57 = vadd.f32 %v12913_v29, %v4838_v22 }
 0x31c   :  { %v9199_v61 = vpop.eup %9198  ;;  %4497 = vst.msk [vmem:[%s13506_s3 + $0x74] sm:$0xf] %vm3303_vm14, %v4481_v5  ;;  %v4425_v50 = vmul.f32 %v9197_v19, %v4424_v48  ;;  %v8033_v12 = vmul.f32 -1.442695, %v12926_v17 }
 0x31d   :  { %v9201_v49 = vpop.eup %9200  ;;  %v12939_v42 = vadd.f32 1.0, %v9199_v61  ;;  %6201 = vmatmul.bf16.gmra.mxu2 %v8595_v3  ;;  %v6341_v5 = vor.u32 %v6339_v30, %v12922_v55 }
 0x31e   :  { %v4426_v20 = vadd.f32 %v9197_v19, %v4425_v50  ;;  %v4438_v28 = vmul.f32 %v9201_v49, %v12907_v7  ;;  %9202 = vpow2.f32 %v8033_v12  ;;  %6456 = vmatmul.bf16.gmra.mxu3 %v6338_v8  ;;  %vm4443_vm8 = vweird.f32 %v9201_v49  ;;  %v12980_v9 = vpop.f32.mrf.mxu2 }
 0x31f   :  { %9204 = vrcp.f32 %v12939_v42  ;;  %vm4444_vm10 = vmor %vm4442_vm9, %vm4443_vm8  ;;  %v5403_v54 = vand.u32 2147483648, %v12939_v42  ;;  %v5401_v37 = vand.u32 2147483647, %v12939_v42  ;;  %v12997_v50 = vrot.slane %v5804_v26, 1 }
 0x320   :  { %v4430_v35 = vsel %vm4429_vm6, %v9197_v19, %v4426_v20  ;;  %v4439_v15 = vsub.f32 1.0, %v4438_v28  ;;  %v12959_v41 = vpop.f32.mrf.mxu1  ;;  %v6343_v19 = vshll.u32 %v12956_v16, 16  ;;  %v12978_v4 = vpop.f32.mrf.mxu0  ;;  %vm5397_vm13 = vweird.f32 %v12939_v42 }
 0x321   :  { %v4435_v11 = vsel %vm4432_vm7, %v4434_v40, %v4430_v35  ;;  %v5277_v58 = vpop.f32.mrf.mxu3  ;;  %vm5402_vm1 = vcmp.eq.f32.partialorder %v5401_v37, 8.507059e+37 }
 0x322   :  { %v4466_v36 = vmul.f32 %v4435_v11, %v12832_v21  ;;  %v4440_v59 = vmul.f32 %v9201_v49, %v4439_v15  ;;  %v12961_v60 = vadd.f32 %v5277_v58, %v5049_v0  ;;  %v4449_v21 = vor.u32 1.1754944e-38, %v4448_v43  ;;  %v13024_v58 = vld [vmem:[#allocation2 + $0xe8] sm:$0xff] }
 0x323   :  { %v12989_v48 = vrot.slane %v6343_v19, 1  ;;  %v5051_v0 = vadd.f32 %v12948_v39, %v4841_v34  ;;  %v6347_v39 = vshrl.u32 %v12956_v16, 16  ;;  %v6351_v22 = vshll.u32 %v13024_v58, 16 }
 0x324   :  { %v9203_v13 = vpop.eup %9202  ;;  %v4482_v47 = vpack.c.bf16 %v4466_v36, %v4466_v36  ;;  %v4441_v63 = vadd.f32 %v9201_v49, %v4440_v59  ;;  %v8034_v45 = vmul.f32 -1.442695, %v12961_v60 }
 0x325   :  { %v9205_v25 = vpop.eup %9204  ;;  %v12970_v14 = vadd.f32 1.0, %v9203_v13  ;;  %v6346_v20 = vsel %vm2228_vm15, %v6341_v5, %v12989_v48 }
 0x326   :  { %4498 = vst.msk [vmem:[%s13506_s3 + $0x78] sm:$0xf] %vm3303_vm14, %v4482_v47  ;;  %v4445_v52 = vsel %vm4444_vm10, %v9201_v49, %v4441_v63  ;;  %v5393_v7 = vmul.f32 %v9205_v25, %v12939_v42  ;;  %9206 = vpow2.f32 %v8034_v45  ;;  %vm5398_vm12 = vweird.f32 %v9205_v25  ;;  %v13015_v24 = vpop.f32.mrf.mxu2 }
 0x327   :  { %v4450_v10 = vsel %vm4447_vm11, %v4449_v21, %v4445_v52  ;;  %9208 = vrcp.f32 %v12970_v14  ;;  %vm5399_vm0 = vmor %vm5397_vm13, %vm5398_vm12  ;;  %v5404_v49 = vor.u32 1.1754944e-38, %v5403_v54  ;;  %v5416_v11 = vand.u32 2147483647, %v12970_v14 }
 0x328   :  { %v4467_v1 = vmul.f32 %v4450_v10, %v12863_v44  ;;  %v5394_v62 = vsub.f32 1.0, %v5393_v7  ;;  %v12992_v32 = vpop.f32.mrf.mxu1  ;;  %v5802_v44 = vor.u32 %v5800_v2, %v12931_v51  ;;  %v13013_v42 = vpop.f32.mrf.mxu0  ;;  %v5418_v31 = vand.u32 2147483648, %v12970_v14 }
 0x329   :  { %v5279_v53 = vpop.f32.mrf.mxu3  ;;  %6029 = vmatmul.bf16.gmra.mxu1 %v12963_v23  ;;  %vm5412_vm3 = vweird.f32 %v12970_v14  ;;  %v4843_v63 = vadd.f32 %v12893_v38, %v12978_v4  ;;  %vm5417_vm5 = vcmp.eq.f32.partialorder %v5416_v11, 8.507059e+37  ;;  %v8596_v38 = vld [vmem:[#allocation2 + $0xe8] sm:$0xff]  ;;  %v5808_v4 = vshrl.u32 %v12963_v23, 16 }
 0x32a   :  { %v4483_v33 = vpack.c.bf16 %v4467_v1, %v4467_v1  ;;  %v5395_v27 = vmul.f32 %v9205_v25, %v5394_v62  ;;  %v12994_v61 = vadd.f32 %v5279_v53, %v5050_v57  ;;  %v5807_v18 = vsel %vm2228_vm15, %v5802_v44, %v12997_v50 }
 0x32b   :  { %5919 = vmatmul.bf16.gmra.mxu0 %v5807_v18  ;;  %v5419_v21 = vor.u32 1.1754944e-38, %v5418_v31  ;;  %v5052_v62 = vadd.f32 %v12980_v9, %v4843_v63  ;;  %v6349_v54 = vor.u32 %v6347_v39, %v12989_v48  ;;  %v5810_v9 = vor.u32 %v5808_v4, %v12997_v50 }
 0x32c   :  { %v9207_v29 = vpop.eup %9206  ;;  %4499 = vst.msk [vmem:[%s13506_s3 + $0x7c] sm:$0xf] %vm3303_vm14, %v4483_v33  ;;  %v5396_v55 = vadd.f32 %v9205_v25, %v5395_v27  ;;  %v8035_v51 = vmul.f32 -1.442695, %v12994_v61  ;;  %v13055_v33 = vrot.slane %v6351_v22, 1 }
 0x32d   :  { %v9209_v12 = vpop.eup %9208  ;;  %v13006_v8 = vadd.f32 1.0, %v9207_v29  ;;  %6206 = vmatmul.bf16.gmra.mxu2 %v8596_v38 }
 0x32e   :  { %v5400_v28 = vsel %vm5399_vm0, %v9205_v25, %v5396_v55  ;;  %v5408_v40 = vmul.f32 %v9209_v12, %v12970_v14  ;;  %6461 = vmatmul.bf16.gmra.mxu3 %v6346_v20  ;;  %vm5413_vm2 = vweird.f32 %v9209_v12  ;;  %v13043_v10 = vpop.f32.mrf.mxu2  ;;  %v4846_v55 = vadd.f32 %v12924_v6, %v13013_v42 }
 0x32f   :  { %v5405_v56 = vsel %vm5402_vm1, %v5404_v49, %v5400_v28  ;;  %9210 = vrcp.f32 %v13006_v8  ;;  %vm5414_vm4 = vmor %vm5412_vm3, %vm5413_vm2  ;;  %v5431_v57 = vand.u32 2147483647, %v13006_v8  ;;  %v5433_v53 = vand.u32 2147483648, %v13006_v8 }
 0x330   :  { %v5632_v35 = vmul.f32 %v5405_v56, %v12895_v46  ;;  %v5409_v15 = vsub.f32 1.0, %v5408_v40  ;;  %9212 = vpow2.f32 %v8035_v51  ;;  %v13026_v30 = vpop.f32.mrf.mxu1  ;;  %v13030_v46 = vld [vmem:[#allocation2 + $0xe8] sm:$0xff]  ;;  %v4742_v7 = vpop.f32.mrf.mxu0  ;;  %vm5427_vm7 = vweird.f32 %v13006_v8 }
 0x331   :  { %v5282_v43 = vpop.f32.mrf.mxu3  ;;  %v5812_v2 = vshll.u32 %v13030_v46, 16  ;;  %v6354_v50 = vsel %vm2228_vm15, %v6349_v54, %v13055_v33  ;;  %vm5432_vm9 = vcmp.eq.f32.partialorder %v5431_v57, 8.507059e+37  ;;  %v5053_v56 = vadd.f32 %v13015_v24, %v4846_v55 }
 0x332   :  { %v5648_v36 = vpack.c.bf16 %v5632_v35, %v5632_v35  ;;  %v5410_v59 = vmul.f32 %v9209_v12, %v5409_v15  ;;  %v13028_v13 = vadd.f32 %v5282_v43, %v5051_v0  ;;  %v13087_v15 = vld [vmem:[#allocation2 + $0xf0] sm:$0xff]  ;;  %v6355_v24 = vshrl.u32 %v13024_v58, 16 }
 0x333   :  { %v13062_v48 = vrot.slane %v5812_v2, 1  ;;  %v6359_v22 = vshll.u32 %v13087_v15, 16 }
 0x334   :  { %5664 = vst.msk [vmem:[%s13506_s3 + $0x80] sm:$0xf] %vm3303_vm14, %v5648_v36  ;;  %v5411_v47 = vadd.f32 %v9209_v12, %v5410_v59  ;;  %v8036_v45 = vmul.f32 -1.442695, %v13028_v13  ;;  %v13095_v59 = vld [vmem:[#allocation2 + $0xf0] sm:$0xff] }
 0x335   :  { %v9211_v25 = vpop.eup %9210  ;;  %v5815_v18 = vsel %vm2228_vm15, %v5810_v9, %v13062_v48  ;;  %v5820_v38 = vshll.u32 %v13095_v59, 16  ;;  %v13120_v57 = vrot.slane %v6359_v22, 1 }
 0x336   :  { %v9213_v19 = vpop.eup %9212  ;;  %v5415_v16 = vsel %vm5414_vm4, %v9209_v12, %v5411_v47  ;;  %v5423_v52 = vmul.f32 %v9211_v25, %v13006_v8  ;;  %9214 = vpow2.f32 %v8036_v45  ;;  %vm5428_vm6 = vweird.f32 %v9211_v25  ;;  %v13079_v8 = vpop.f32.mrf.mxu2 }
 0x337   :  { %v5420_v14 = vsel %vm5417_vm5, %v5419_v21, %v5415_v16  ;;  %v13045_v3 = vadd.f32 1.0, %v9213_v19  ;;  %vm5429_vm8 = vmor %vm5427_vm7, %vm5428_vm6  ;;  %v5434_v12 = vor.u32 1.1754944e-38, %v5433_v53 }
 0x338   :  { %v5633_v26 = vmul.f32 %v5420_v14, %v12926_v17  ;;  %v5424_v1 = vsub.f32 1.0, %v5423_v52  ;;  %v13057_v37 = vpop.f32.mrf.mxu1  ;;  %v13077_v20 = vpop.f32.mrf.mxu0  ;;  %v8597_v14 = vld [vmem:[#allocation2 + $0xf0] sm:$0xff] }
 0x339   :  { %9216 = vrcp.f32 %v13045_v3  ;;  %v5284_v5 = vpop.f32.mrf.mxu3  ;;  %6034 = vmatmul.bf16.gmra.mxu1 %v13030_v46  ;;  %v5448_v36 = vand.u32 2147483648, %v13045_v3  ;;  %v5446_v63 = vand.u32 2147483647, %v13045_v3  ;;  %vm5442_vm11 = vweird.f32 %v13045_v3 }
 0x33a   :  { %v5649_v23 = vpack.c.bf16 %v5633_v26, %v5633_v26  ;;  %v5425_v27 = vmul.f32 %v9211_v25, %v5424_v1  ;;  %v13059_v17 = vadd.f32 %v5284_v5, %v5052_v62 }
 0x33b   :  { %5924 = vmatmul.bf16.gmra.mxu0 %v5815_v18  ;;  %vm5447_vm13 = vcmp.eq.f32.partialorder %v5446_v63, 8.507059e+37 }
 0x33c   :  { %v9215_v44 = vpop.eup %9214  ;;  %5665 = vst.msk [vmem:[%s13506_s3 + $0x84] sm:$0xf] %vm3303_vm14, %v5649_v23  ;;  %v5426_v29 = vadd.f32 %v9211_v25, %v5425_v27  ;;  %v8037_v34 = vmul.f32 -1.442695, %v13059_v17 }
 0x33d   :  { %v13072_v49 = vadd.f32 1.0, %v9215_v44  ;;  %6211 = vmatmul.bf16.gmra.mxu2 %v8597_v14 }
 0x33e   :  { %v5430_v51 = vsel %vm5429_vm8, %v9211_v25, %v5426_v29  ;;  %9218 = vpow2.f32 %v8037_v34  ;;  %6466 = vmatmul.bf16.gmra.mxu3 %v6354_v50  ;;  %v13112_v52 = vpop.f32.mrf.mxu2 }
 0x33f   :  { %v9217_v6 = vpop.eup %9216  ;;  %v5435_v28 = vsel %vm5432_vm9, %v5434_v12, %v5430_v51  ;;  %9220 = vrcp.f32 %v13072_v49  ;;  %v5461_v1 = vand.u32 2147483647, %v13072_v49  ;;  %v5463_v62 = vand.u32 2147483648, %v13072_v49 }
 0x340   :  { %v5634_v40 = vmul.f32 %v5435_v28, %v12961_v60  ;;  %v5438_v42 = vmul.f32 %v9217_v6, %v13045_v3  ;;  %v13089_v31 = vpop.f32.mrf.mxu1  ;;  %v4848_v60 = vadd.f32 %v12959_v41, %v4742_v7  ;;  %vm5443_vm10 = vweird.f32 %v9217_v6  ;;  %v13110_v16 = vpop.f32.mrf.mxu0 }
 0x341   :  { %v5287_v35 = vpop.f32.mrf.mxu3  ;;  %v5816_v41 = vshrl.u32 %v13030_v46, 16  ;;  %vm5444_vm12 = vmor %vm5442_vm11, %vm5443_vm10  ;;  %v5449_v7 = vor.u32 1.1754944e-38, %v5448_v36  ;;  %v6357_v46 = vor.u32 %v6355_v24, %v13055_v33  ;;  %vm5457_vm1 = vweird.f32 %v13072_v49 }
 0x342   :  { %v5650_v0 = vpack.c.bf16 %v5634_v40, %v5634_v40  ;;  %v5439_v11 = vsub.f32 1.0, %v5438_v42  ;;  %v13091_v43 = vadd.f32 %v5287_v35, %v5053_v56  ;;  %v5054_v3 = vadd.f32 %v13043_v10, %v4848_v60 }
 0x343   :  { %v5818_v27 = vor.u32 %v5816_v41, %v13062_v48  ;;  %v13128_v10 = vrot.slane %v5820_v38, 1  ;;  %v4851_v12 = vadd.f32 %v12992_v32, %v13077_v20  ;;  %v6362_v48 = vsel %vm2228_vm15, %v6357_v46, %v13120_v57 }
 0x344   :  { %v9219_v39 = vpop.eup %9218  ;;  %5666 = vst.msk [vmem:[%s13506_s3 + $0x88] sm:$0xf] %vm3303_vm14, %v5650_v0  ;;  %v5440_v47 = vmul.f32 %v9217_v6, %v5439_v11  ;;  %v8038_v45 = vmul.f32 -1.442695, %v13091_v43  ;;  %vm5462_vm3 = vcmp.eq.f32.partialorder %v5461_v1, 8.507059e+37  ;;  %v13152_v0 = vld [vmem:[#allocation2 + $0xf8] sm:$0xff]  ;;  %v4853_v63 = vadd.f32 %v13026_v30, %v13110_v16 }
 0x345   :  { %v9221_v25 = vpop.eup %9220  ;;  %v13104_v21 = vadd.f32 1.0, %v9219_v39  ;;  %v5823_v42 = vsel %vm2228_vm15, %v5818_v27, %v13128_v10  ;;  %v5055_v18 = vadd.f32 %v13079_v8, %v4851_v12  ;;  %v13159_v39 = vld [vmem:[#allocation2 + $0xf8] sm:$0xff]  ;;  %v5824_v16 = vshrl.u32 %v13095_v59, 16 }
 0x346   :  { %v5441_v58 = vadd.f32 %v9217_v6, %v5440_v47  ;;  %v5453_v19 = vmul.f32 %v9221_v25, %v13072_v49  ;;  %9222 = vpow2.f32 %v8038_v45  ;;  %vm5458_vm0 = vweird.f32 %v9221_v25  ;;  %v13144_v28 = vpop.f32.mrf.mxu2 }
 0x347   :  { %9224 = vrcp.f32 %v13104_v21  ;;  %vm5459_vm2 = vmor %vm5457_vm1, %vm5458_vm0  ;;  %v5478_v56 = vand.u32 2147483648, %v13104_v21  ;;  %v5476_v60 = vand.u32 2147483647, %v13104_v21  ;;  %vm5472_vm5 = vweird.f32 %v13104_v21 }
 0x348   :  { %v5445_v4 = vsel %vm5444_vm12, %v9217_v6, %v5441_v58  ;;  %v5454_v2 = vsub.f32 1.0, %v5453_v19  ;;  %v13123_v23 = vpop.f32.mrf.mxu1  ;;  %v4750_v6 = vpop.f32.mrf.mxu0  ;;  %v6363_v45 = vshrl.u32 %v13087_v15, 16  ;;  %v6367_v19 = vshll.u32 %v13152_v0, 16  ;;  %v8598_v15 = vld [vmem:[#allocation2 + $0xf8] sm:$0xff] }
 0x349   :  { %v5450_v26 = vsel %vm5447_vm13, %v5449_v7, %v5445_v4  ;;  %v5289_v54 = vpop.f32.mrf.mxu3  ;;  %6039 = vmatmul.bf16.gmra.mxu1 %v13095_v59  ;;  %v5479_v41 = vor.u32 1.1754944e-38, %v5478_v56  ;;  %vm5477_vm7 = vcmp.eq.f32.partialorder %v5476_v60, 8.507059e+37  ;;  %v5828_v46 = vshll.u32 %v13159_v39, 16 }
 0x34a   :  { %v5635_v53 = vmul.f32 %v5450_v26, %v12994_v61  ;;  %v5455_v5 = vmul.f32 %v9221_v25, %v5454_v2  ;;  %v13125_v33 = vadd.f32 %v5289_v54, %v5054_v3  ;;  %v5464_v61 = vor.u32 1.1754944e-38, %v5463_v62 }
 0x34b   :  { %5929 = vmatmul.bf16.gmra.mxu0 %v5823_v42  ;;  %v5056_v3 = vadd.f32 %v13112_v52, %v4853_v63  ;;  %v6365_v54 = vor.u32 %v6363_v45, %v13120_v57  ;;  %v4856_v57 = vadd.f32 %v13057_v37, %v4750_v6 }
 0x34c   :  { %v9223_v9 = vpop.eup %9222  ;;  %v5651_v44 = vpack.c.bf16 %v5635_v53, %v5635_v53  ;;  %v5456_v29 = vadd.f32 %v9221_v25, %v5455_v5  ;;  %v8039_v55 = vmul.f32 -1.442695, %v13125_v33  ;;  %v13186_v53 = vrot.slane %v6367_v19, 1 }
 0x34d   :  { %v9225_v34 = vpop.eup %9224  ;;  %v13134_v50 = vadd.f32 1.0, %v9223_v9  ;;  %6216 = vmatmul.bf16.gmra.mxu2 %v8598_v15  ;;  %v13191_v9 = vrot.slane %v5828_v46, 1  ;;  %v5057_v42 = vadd.f32 %v13144_v28, %v4856_v57  ;;  %v6371_v19 = vshrl.u32 %v13152_v0, 16 }
 0x34e   :  { %5667 = vst.msk [vmem:[%s13506_s3 + $0x8c] sm:$0xf] %vm3303_vm14, %v5651_v44  ;;  %v5460_v49 = vsel %vm5459_vm2, %v9221_v25, %v5456_v29  ;;  %v5468_v51 = vmul.f32 %v9225_v34, %v13104_v21  ;;  %9226 = vpow2.f32 %v8039_v55  ;;  %6471 = vmatmul.bf16.gmra.mxu3 %v6362_v48  ;;  %vm5473_vm4 = vweird.f32 %v9225_v34  ;;  %v13176_v21 = vpop.f32.mrf.mxu2  ;;  %v5712_v29 = vld [vmem:[#allocation2 + $0x100] sm:$0x1] }
 0x34f   :  { %v5465_v32 = vsel %vm5462_vm3, %v5464_v61, %v5460_v49  ;;  %9228 = vrcp.f32 %v13134_v50  ;;  %vm5474_vm6 = vmor %vm5472_vm5, %vm5473_vm4  ;;  %v5491_v26 = vand.u32 2147483647, %v13134_v50  ;;  %v5493_v1 = vand.u32 2147483648, %v13134_v50 }
 0x350   :  { %v5636_v20 = vmul.f32 %v5465_v32, %v13028_v13  ;;  %v5469_v40 = vsub.f32 1.0, %v5468_v51  ;;  %v13155_v24 = vpop.f32.mrf.mxu1  ;;  %v13174_v38 = vpop.f32.mrf.mxu0  ;;  %vm5487_vm9 = vweird.f32 %v13134_v50  ;;  %v5762_v32 = vunpack.c.l.b16 %v5712_v29 }
 0x351   :  { %v5292_v35 = vpop.f32.mrf.mxu3  ;;  %vm5492_vm11 = vcmp.eq.f32.partialorder %v5491_v26, 8.507059e+37  ;;  %v4858_v45 = vadd.f32 %v13089_v31, %v13174_v38  ;;  %v5832_v38 = vshrl.u32 %v13159_v39, 16  ;;  %v6373_v26 = vor.u32 %v6371_v19, %v13186_v53 }
 0x352   :  { %v5652_v11 = vpack.c.bf16 %v5636_v20, %v5636_v20  ;;  %v5470_v36 = vmul.f32 %v9225_v34, %v5469_v40  ;;  %v13157_v13 = vadd.f32 %v5292_v35, %v5055_v18 }
 0x354   :  { %v9227_v47 = vpop.eup %9226  ;;  %5668 = vst.msk [vmem:[%s13506_s3 + $0x90] sm:$0xf] %vm3303_vm14, %v5652_v11  ;;  %v5471_v8 = vadd.f32 %v9225_v34, %v5470_v36  ;;  %v8040_v58 = vmul.f32 -1.442695, %v13157_v13  ;;  %v13217_v36 = vld [vmem:[#allocation2 + $0x100] sm:$0xff] }
 0x355   :  { %v9229_v25 = vpop.eup %9228  ;;  %v13169_v22 = vadd.f32 1.0, %v9227_v47 }
 0x356   :  { %v5475_v7 = vsel %vm5474_vm6, %v9225_v34, %v5471_v8  ;;  %v5483_v14 = vmul.f32 %v9229_v25, %v13134_v50  ;;  %vm5488_vm8 = vweird.f32 %v9229_v25  ;;  %v5494_v34 = vor.u32 1.1754944e-38, %v5493_v1  ;;  %v13206_v49 = vpop.f32.mrf.mxu2 }
 0x357   :  { %v5480_v30 = vsel %vm5477_vm7, %v5479_v41, %v5475_v7  ;;  %9230 = vrcp.f32 %v13169_v22  ;;  %vm5489_vm10 = vmor %vm5487_vm9, %vm5488_vm8  ;;  %v5506_v18 = vand.u32 2147483647, %v13169_v22  ;;  %v5508_v35 = vand.u32 2147483648, %v13169_v22 }
 0x358   :  { %v5637_v4 = vmul.f32 %v5480_v30, %v13059_v17  ;;  %v5484_v2 = vsub.f32 1.0, %v5483_v14  ;;  %9232 = vpow2.f32 %v8040_v58  ;;  %v5826_v17 = vor.u32 %v5824_v16, %v13128_v10  ;;  %v13200_v61 = vpop.f32.mrf.mxu1  ;;  %v4755_v37 = vpop.f32.mrf.mxu0 }
 0x359   :  { %v5294_v62 = vpop.f32.mrf.mxu3  ;;  %6044 = vmatmul.bf16.gmra.mxu1 %v13159_v39  ;;  %v6370_v10 = vsel %vm2228_vm15, %v6365_v54, %v13186_v53  ;;  %v5771_v8 = vpack.c.b16 %v5762_v32, %v5762_v32  ;;  %vm5502_vm13 = vweird.f32 %v13169_v22  ;;  %v5509_v41 = vor.u32 1.1754944e-38, %v5508_v35 }
 0x35a   :  { %v5653_v5 = vpack.c.bf16 %v5637_v4, %v5637_v4  ;;  %v5485_v59 = vmul.f32 %v9229_v25, %v5484_v2  ;;  %v13188_v27 = vadd.f32 %v5294_v62, %v5056_v3  ;;  %v5831_v56 = vsel %vm2228_vm15, %v5826_v17, %v13191_v9 }
 0x35b   :  { %5934 = vmatmul.bf16.gmra.mxu0 %v5831_v56  ;;  %v6375_v7 = vshll.u32 %v13217_v36, 16  ;;  %vm5507_vm1 = vcmp.eq.f32.partialorder %v5506_v18, 8.507059e+37  ;;  %v5836_v46 = vshll.u32 %v5771_v8, 16  ;;  %v5058_v2 = vadd.f32 %v13176_v21, %v4858_v45 }
 0x35c   :  { %5669 = vst.msk [vmem:[%s13506_s3 + $0x94] sm:$0xf] %vm3303_vm14, %v5653_v5  ;;  %v5486_v52 = vadd.f32 %v9229_v25, %v5485_v59  ;;  %v8041_v44 = vmul.f32 -1.442695, %v13188_v27  ;;  %v5834_v17 = vor.u32 %v5832_v38, %v13191_v9  ;;  %v4861_v53 = vadd.f32 %v13123_v23, %v4755_v37 }
 0x35d   :  { %v9231_v55 = vpop.eup %9230  ;;  %v13245_v1 = vrot.slane %v6375_v7, 1 }
 0x35e   :  { %v9233_v12 = vpop.eup %9232  ;;  %v5490_v48 = vsel %vm5489_vm10, %v9229_v25, %v5486_v52  ;;  %v5498_v50 = vmul.f32 %v9231_v55, %v13169_v22  ;;  %9234 = vpow2.f32 %v8041_v44  ;;  %6476 = vmatmul.bf16.gmra.mxu3 %v6370_v10  ;;  %vm5503_vm12 = vweird.f32 %v9231_v55  ;;  %v13235_v15 = vpop.f32.mrf.mxu2  ;;  %v8599_v44 = vld [vmem:[#allocation2 + $0x100] sm:$0xff] }
 0x35f   :  { %v5495_v51 = vsel %vm5492_vm11, %v5494_v34, %v5490_v48  ;;  %v13208_v6 = vadd.f32 1.0, %v9233_v12  ;;  %vm5504_vm0 = vmor %vm5502_vm13, %vm5503_vm12  ;;  %v6378_v9 = vsel %vm2228_vm15, %v6373_v26, %v13245_v1  ;;  %6221 = vmatmul.bf16.gmra.mxu2 %v8599_v44 }
 0x360   :  { %v5638_v20 = vmul.f32 %v5495_v51, %v13091_v43  ;;  %v5499_v40 = vsub.f32 1.0, %v5498_v50  ;;  %v13233_v30 = vpop.f32.mrf.mxu0  ;;  %v13238_v31 = vpop.f32.mrf.mxu1 }
 0x361   :  { %9236 = vrcp.f32 %v13208_v6  ;;  %v5297_v11 = vpop.f32.mrf.mxu3  ;;  %v5521_v59 = vand.u32 2147483647, %v13208_v6  ;;  %v5523_v39 = vand.u32 2147483648, %v13208_v6  ;;  %vm5517_vm3 = vweird.f32 %v13208_v6 }
 0x362   :  { %v5654_v60 = vpack.c.bf16 %v5638_v20, %v5638_v20  ;;  %v5500_v47 = vmul.f32 %v9231_v55, %v5499_v40  ;;  %v13219_v43 = vadd.f32 %v5297_v11, %v5057_v42  ;;  %v4863_v45 = vadd.f32 %v13155_v24, %v13233_v30 }
 0x363   :  { %v5524_v23 = vor.u32 1.1754944e-38, %v5523_v39  ;;  %vm5522_vm5 = vcmp.eq.f32.partialorder %v5521_v59, 8.507059e+37 }
 0x364   :  { %v9235_v28 = vpop.eup %9234  ;;  %5670 = vst.msk [vmem:[%s13506_s3 + $0x98] sm:$0xf] %vm3303_vm14, %v5654_v60  ;;  %v5501_v63 = vadd.f32 %v9231_v55, %v5500_v47  ;;  %v8042_v25 = vmul.f32 -1.442695, %v13219_v43  ;;  %v5060_v30 = vadd.f32 %v13235_v15, %v4863_v45 }
 0x365   :  { %v13229_v58 = vadd.f32 1.0, %v9235_v28 }
 0x366   :  { %v5505_v14 = vsel %vm5504_vm0, %v9231_v55, %v5501_v63  ;;  %9238 = vpow2.f32 %v8042_v25  ;;  %v13264_v48 = vpop.f32.mrf.mxu2 }
 0x367   :  { %v9237_v22 = vpop.eup %9236  ;;  %v5510_v16 = vsel %vm5507_vm1, %v5509_v41, %v5505_v14  ;;  %9240 = vrcp.f32 %v13229_v58  ;;  %v5536_v20 = vand.u32 2147483647, %v13229_v58  ;;  %v5538_v40 = vand.u32 2147483648, %v13229_v58 }
 0x368   :  { %v5639_v0 = vmul.f32 %v5510_v16, %v13125_v33  ;;  %v5513_v4 = vmul.f32 %v9237_v22, %v13208_v6  ;;  %v5838_v33 = vrot.slane %v5836_v46, 1  ;;  %vm5518_vm2 = vweird.f32 %v9237_v22  ;;  %v4760_v12 = vpop.f32.mrf.mxu0  ;;  %v13272_v42 = vpop.f32.mrf.mxu1 }
 0x369   :  { %v5299_v3 = vpop.f32.mrf.mxu3  ;;  %vm5519_vm4 = vmor %vm5517_vm3, %vm5518_vm2  ;;  %v5059_v6 = vadd.f32 %v13206_v49, %v4861_v53  ;;  %vm5532_vm7 = vweird.f32 %v13229_v58  ;;  %v5539_v63 = vor.u32 1.1754944e-38, %v5538_v40  ;;  %vm5537_vm9 = vcmp.eq.f32.partialorder %v5536_v20, 8.507059e+37 }
 0x36a   :  { %v5655_v62 = vpack.c.bf16 %v5639_v0, %v5639_v0  ;;  %v5514_v54 = vsub.f32 1.0, %v5513_v4  ;;  %v13247_v5 = vadd.f32 %v5299_v3, %v5058_v2  ;;  %v5839_v50 = vsel %vm2228_vm15, %v5834_v17, %v5838_v33 }
 0x36b   :  { %5939 = vmatmul.bf16.gmra.mxu0 %v5839_v50  ;;  %v4866_v15 = vadd.f32 %v13200_v61, %v4760_v12 }
 0x36c   :  { %v9239_v52 = vpop.eup %9238  ;;  %5671 = vst.msk [vmem:[%s13506_s3 + $0x9c] sm:$0xf] %vm3303_vm14, %v5655_v62  ;;  %v5515_v21 = vmul.f32 %v9237_v22, %v5514_v54  ;;  %v8043_v57 = vmul.f32 -1.442695, %v13247_v5 }
 0x36d   :  { %v9241_v29 = vpop.eup %9240  ;;  %v13258_v55 = vadd.f32 1.0, %v9239_v52  ;;  %v5061_v44 = vadd.f32 %v13264_v48, %v4866_v15 }
 0x36e   :  { %v5516_v34 = vadd.f32 %v9237_v22, %v5515_v21  ;;  %v5528_v10 = vmul.f32 %v9241_v29, %v13229_v58  ;;  %9242 = vpow2.f32 %v8043_v57  ;;  %6481 = vmatmul.bf16.gmra.mxu3 %v6378_v9  ;;  %vm5533_vm6 = vweird.f32 %v9241_v29  ;;  %v13286_v19 = vpop.f32.mrf.mxu2  ;;  %v6259_v21 = vld [vmem:[#allocation2 + $0x108] sm:$0x1] }
 0x36f   :  { %9244 = vrcp.f32 %v13258_v55  ;;  %vm5534_vm8 = vmor %vm5532_vm7, %vm5533_vm6  ;;  %v5553_v24 = vand.u32 2147483648, %v13258_v55  ;;  %v5551_v0 = vand.u32 2147483647, %v13258_v55  ;;  %vm5547_vm11 = vweird.f32 %v13258_v55 }
 0x370   :  { %v5520_v37 = vsel %vm5519_vm4, %v9237_v22, %v5516_v34  ;;  %v5529_v51 = vsub.f32 1.0, %v5528_v10  ;;  %v4762_v58 = vpop.f32.mrf.mxu0  ;;  %v13292_v4 = vpop.f32.mrf.mxu1  ;;  %v6309_v9 = vunpack.c.l.b16 %v6259_v21 }
 0x371   :  { %v5525_v32 = vsel %vm5522_vm5, %v5524_v23, %v5520_v37  ;;  %v5302_v56 = vpop.f32.mrf.mxu3  ;;  %v5554_v62 = vor.u32 1.1754944e-38, %v5553_v24  ;;  %vm5552_vm13 = vcmp.eq.f32.partialorder %v5551_v0, 8.507059e+37  ;;  %v6379_v23 = vshrl.u32 %v13217_v36, 16 }
 0x372   :  { %v5640_v18 = vmul.f32 %v5525_v32, %v13157_v13  ;;  %v5530_v35 = vmul.f32 %v9241_v29, %v5529_v51  ;;  %v13275_v11 = vadd.f32 %v5302_v56, %v5059_v6  ;;  %v6318_v37 = vpack.c.b16 %v6309_v9, %v6309_v9 }
 0x373   :  { %v4868_v32 = vadd.f32 %v13238_v31, %v4762_v58 }
 0x374   :  { %v9243_v60 = vpop.eup %9242  ;;  %v5656_v47 = vpack.c.bf16 %v5640_v18, %v5640_v18  ;;  %v5531_v8 = vadd.f32 %v9241_v29, %v5530_v35  ;;  %v8044_v49 = vmul.f32 -1.442695, %v13275_v11  ;;  %v6383_v20 = vshll.u32 %v6318_v37, 16 }
 0x375   :  { %v9245_v28 = vpop.eup %9244  ;;  %v5387_v25 = vadd.f32 1.0, %v9243_v60  ;;  %v6381_v35 = vor.u32 %v6379_v23, %v13245_v1 }
 0x376   :  { %5672 = vst.msk [vmem:[%s13506_s3 + $0xa0] sm:$0xf] %vm3303_vm14, %v5656_v47  ;;  %v5535_v13 = vsel %vm5534_vm8, %v9241_v29, %v5531_v8  ;;  %v5543_v41 = vmul.f32 %v9245_v28, %v13258_v55  ;;  %9246 = vpow2.f32 %v8044_v49  ;;  %vm5548_vm10 = vweird.f32 %v9245_v28  ;;  %v13305_v52 = vpop.f32.mrf.mxu2 }
 0x377   :  { %v5540_v7 = vsel %vm5537_vm9, %v5539_v63, %v5535_v13  ;;  %9248 = vrcp.f32 %v5387_v25  ;;  %vm5549_vm12 = vmor %vm5547_vm11, %vm5548_vm10  ;;  %v5566_v29 = vand.u32 2147483647, %v5387_v25  ;;  %v5568_v55 = vand.u32 2147483648, %v5387_v25 }
 0x378   :  { %v5641_v14 = vmul.f32 %v5540_v7, %v13188_v27  ;;  %v5544_v22 = vsub.f32 1.0, %v5543_v41  ;;  %v5905_v33 = vpop.f32.mrf.mxu0  ;;  %vm5562_vm1 = vweird.f32 %v5387_v25  ;;  %v13320_v36 = vpop.f32.mrf.mxu1  ;;  %v5062_v13 = vadd.f32 %v13286_v19, %v4868_v32 }
 0x379   :  { %v5304_v16 = vpop.f32.mrf.mxu3  ;;  %vm5567_vm3 = vcmp.eq.f32.partialorder %v5566_v29, 8.507059e+37  ;;  %v5569_v6 = vor.u32 1.1754944e-38, %v5568_v55  ;;  %v6011_v19 = vadd.f32 %v13272_v42, %v5905_v33 }
 0x37a   :  { %v5657_v38 = vpack.c.bf16 %v5641_v14, %v5641_v14  ;;  %v5545_v46 = vmul.f32 %v9245_v28, %v5544_v22  ;;  %v13294_v2 = vadd.f32 %v5304_v16, %v5060_v30 }
 0x37c   :  { %v9247_v3 = vpop.eup %9246  ;;  %5673 = vst.msk [vmem:[%s13506_s3 + $0xa4] sm:$0xf] %vm3303_vm14, %v5657_v38  ;;  %v5546_v27 = vadd.f32 %v9245_v28, %v5545_v46  ;;  %v8045_v59 = vmul.f32 -1.442695, %v13294_v2 }
 0x37d   :  { %v9249_v26 = vpop.eup %9248  ;;  %v13302_v54 = vadd.f32 1.0, %v9247_v3 }
 0x37e   :  { %v5550_v39 = vsel %vm5549_vm12, %v9245_v28, %v5546_v27  ;;  %v5558_v17 = vmul.f32 %v9249_v26, %v5387_v25  ;;  %vm5563_vm0 = vweird.f32 %v9249_v26  ;;  %v13324_v47 = vpop.f32.mrf.mxu2  ;;  %v6385_v28 = vrot.slane %v6383_v20, 1 }
 0x37f   :  { %v5555_v53 = vsel %vm5552_vm13, %v5554_v62, %v5550_v39  ;;  %9250 = vrcp.f32 %v13302_v54  ;;  %vm5564_vm2 = vmor %vm5562_vm1, %vm5563_vm0  ;;  %v5581_v31 = vand.u32 2147483647, %v13302_v54  ;;  %v5583_v25 = vand.u32 2147483648, %v13302_v54 }
 0x380   :  { %v5642_v57 = vmul.f32 %v5555_v53, %v13219_v43  ;;  %v5559_v61 = vsub.f32 1.0, %v5558_v17  ;;  %9252 = vpow2.f32 %v8045_v59  ;;  %v5907_v60 = vpop.f32.mrf.mxu0  ;;  %v6386_v7 = vsel %vm2228_vm15, %v6381_v35, %v6385_v28 }
 0x381   :  { %v5307_v34 = vpop.f32.mrf.mxu3  ;;  %6486 = vmatmul.bf16.gmra.mxu3 %v6386_v7  ;;  %vm5577_vm5 = vweird.f32 %v13302_v54  ;;  %v5584_v24 = vor.u32 1.1754944e-38, %v5583_v25  ;;  %vm5582_vm15 = vcmp.eq.f32.partialorder %v5581_v31, 8.507059e+37  ;;  %v6227_v62 = vadd.f32 %v13305_v52, %v6011_v19 }
 0x382   :  { %v5658_v10 = vpack.c.bf16 %v5642_v57, %v5642_v57  ;;  %v5560_v12 = vmul.f32 %v9249_v26, %v5559_v61  ;;  %v13311_v50 = vadd.f32 %v5307_v34, %v5061_v44  ;;  %v6013_v57 = vadd.f32 %v13292_v4, %v5907_v60 }
 0x384   :  { %5674 = vst.msk [vmem:[%s13506_s3 + $0xa8] sm:$0xf] %vm3303_vm14, %v5658_v10  ;;  %v5561_v43 = vadd.f32 %v9249_v26, %v5560_v12  ;;  %v8046_v48 = vmul.f32 -1.442695, %v13311_v50 }
 0x385   :  { %v9251_v51 = vpop.eup %9250 }
 0x386   :  { %v9253_v40 = vpop.eup %9252  ;;  %v5565_v56 = vsel %vm5564_vm2, %v9249_v26, %v5561_v43  ;;  %v5573_v18 = vmul.f32 %v9251_v51, %v13302_v54  ;;  %9254 = vpow2.f32 %v8046_v48  ;;  %vm5578_vm4 = vweird.f32 %v9251_v51  ;;  %v6192_v27 = vpop.f32.mrf.mxu2 }
 0x387   :  { %v5570_v8 = vsel %vm5567_vm3, %v5569_v6, %v5565_v56  ;;  %v5389_v49 = vadd.f32 1.0, %v9253_v40  ;;  %vm5579_vm6 = vmor %vm5577_vm5, %vm5578_vm4  ;;  %v13342_v54 = vpop.f32.mrf.mxu1 }
 0x388   :  { %v5643_v63 = vmul.f32 %v5570_v8, %v13247_v5  ;;  %v5574_v45 = vsub.f32 1.0, %v5573_v18  ;;  %v5910_v3 = vpop.f32.mrf.mxu0 }
 0x389   :  { %9256 = vrcp.f32 %v5389_v49  ;;  %v5309_v41 = vpop.f32.mrf.mxu3  ;;  %v5598_v33 = vand.u32 2147483648, %v5389_v49  ;;  %vm5592_vm8 = vweird.f32 %v5389_v49  ;;  %v6016_v60 = vadd.f32 %v13320_v36, %v5910_v3 }
 0x38a   :  { %v5659_v58 = vpack.c.bf16 %v5643_v63, %v5643_v63  ;;  %v5575_v1 = vmul.f32 %v9251_v51, %v5574_v45  ;;  %v13331_v14 = vadd.f32 %v5309_v41, %v5062_v13 }
 0x38b   :  { %v5599_v55 = vor.u32 1.1754944e-38, %v5598_v33  ;;  %v6229_v36 = vadd.f32 %v6192_v27, %v6016_v60 }
 0x38c   :  { %v9255_v22 = vpop.eup %9254  ;;  %5675 = vst.msk [vmem:[%s13506_s3 + $0xac] sm:$0xf] %vm3303_vm14, %v5659_v58  ;;  %v5576_v5 = vadd.f32 %v9251_v51, %v5575_v1  ;;  %v8047_v16 = vmul.f32 -1.442695, %v13331_v14 }
 0x38d   :  { %v5390_v30 = vadd.f32 1.0, %v9255_v22 }
 0x38e   :  { %v5580_v38 = vsel %vm5579_vm6, %v9251_v51, %v5576_v5  ;;  %v6194_v34 = vpop.f32.mrf.mxu2  ;;  %v6228_v51 = vadd.f32 %v13324_v47, %v6013_v57 }
 0x38f   :  { %v9257_v46 = vpop.eup %9256  ;;  %v5585_v0 = vsel %vm5582_vm15, %v5584_v24, %v5580_v38  ;;  %9258 = vrcp.f32 %v5390_v30  ;;  %v5611_v43 = vand.u32 2147483647, %v5390_v30  ;;  %v5613_v48 = vand.u32 2147483648, %v5390_v30  ;;  %v13354_v20 = vpop.f32.mrf.mxu1 }
 0x390   :  { %v5644_v15 = vmul.f32 %v5585_v0, %v13275_v11  ;;  %v5588_v26 = vmul.f32 %v9257_v46, %v5389_v49  ;;  %9260 = vpow2.f32 %v8047_v16  ;;  %vm5593_vm7 = vweird.f32 %v9257_v46  ;;  %v5912_v9 = vpop.f32.mrf.mxu0 }
 0x391   :  { %v6452_v42 = vpop.f32.mrf.mxu3  ;;  %v5596_v11 = vand.u32 2147483647, %v5389_v49  ;;  %vm5594_vm9 = vmor %vm5592_vm8, %vm5593_vm7  ;;  %vm5607_vm12 = vweird.f32 %v5390_v30  ;;  %v5614_v8 = vor.u32 1.1754944e-38, %v5613_v48  ;;  %vm5612_vm0 = vcmp.eq.f32.partialorder %v5611_v43, 8.507059e+37 }
 0x392   :  { %v5660_v59 = vpack.c.bf16 %v5644_v15, %v5644_v15  ;;  %v5589_v39 = vsub.f32 1.0, %v5588_v26  ;;  %v13344_v17 = vadd.f32 %v6452_v42, %v6227_v62  ;;  %v6018_v19 = vadd.f32 %v13342_v54, %v5912_v9 }
 0x393   :  { %vm5597_vm10 = vcmp.eq.f32.partialorder %v5596_v11, 8.507059e+37 }
 0x394   :  { %5676 = vst.msk [vmem:[%s13506_s3 + $0xb0] sm:$0xf] %vm3303_vm14, %v5660_v59  ;;  %v5590_v21 = vmul.f32 %v9257_v46, %v5589_v39  ;;  %v8320_v53 = vmul.f32 -1.442695, %v13344_v17  ;;  %v6230_v42 = vadd.f32 %v6194_v34, %v6018_v19 }
 0x395   :  { %v9259_v52 = vpop.eup %9258 }
 0x396   :  { %v5591_v61 = vadd.f32 %v9257_v46, %v5590_v21  ;;  %v5603_v44 = vmul.f32 %v9259_v52, %v5390_v30  ;;  %9262 = vpow2.f32 %v8320_v53  ;;  %v9261_v29 = vpop.eup %9260  ;;  %vm5608_vm11 = vweird.f32 %v9259_v52  ;;  %v6197_v45 = vpop.f32.mrf.mxu2 }
 0x397   :  { %v5391_v23 = vadd.f32 1.0, %v9261_v29  ;;  %vm5609_vm13 = vmor %vm5607_vm12, %vm5608_vm11  ;;  %v13371_v5 = vpop.f32.mrf.mxu1 }
 0x398   :  { %v5595_v10 = vsel %vm5594_vm9, %v9257_v46, %v5591_v61  ;;  %v5604_v12 = vsub.f32 1.0, %v5603_v44  ;;  %v5915_v63 = vpop.f32.mrf.mxu0 }
 0x399   :  { %v5600_v37 = vsel %vm5597_vm10, %v5599_v55, %v5595_v10  ;;  %v6454_v6 = vpop.f32.mrf.mxu3  ;;  %9264 = vrcp.f32 %v5391_v23  ;;  %v5628_v22 = vand.u32 2147483648, %v5391_v23  ;;  %v5626_v16 = vand.u32 2147483647, %v5391_v23 }
 0x39a   :  { %v5645_v4 = vmul.f32 %v5600_v37, %v13294_v2  ;;  %v5605_v32 = vmul.f32 %v9259_v52, %v5604_v12  ;;  %v13356_v40 = vadd.f32 %v6454_v6, %v6228_v51  ;;  %vm5622_vm2 = vweird.f32 %v5391_v23 }
 0x39b   :  { %v5629_v26 = vor.u32 1.1754944e-38, %v5628_v22  ;;  %vm5627_vm4 = vcmp.eq.f32.partialorder %v5626_v16, 8.507059e+37  ;;  %v6021_v44 = vadd.f32 %v13354_v20, %v5915_v63 }
 0x39c   :  { %v9263_v56 = vpop.eup %9262  ;;  %v5661_v18 = vpack.c.bf16 %v5645_v4, %v5645_v4  ;;  %v5606_v35 = vadd.f32 %v9259_v52, %v5605_v32  ;;  %v8321_v47 = vmul.f32 -1.442695, %v13356_v40 }
 0x39d   :  { %v6556_v49 = vadd.f32 1.0, %v9263_v56  ;;  %v6231_v51 = vadd.f32 %v6197_v45, %v6021_v44 }
 0x39e   :  { %5677 = vst.msk [vmem:[%s13506_s3 + $0xb4] sm:$0xf] %vm3303_vm14, %v5661_v18  ;;  %v5610_v2 = vsel %vm5609_vm13, %v9259_v52, %v5606_v35  ;;  %v13375_v15 = vpop.f32.mrf.mxu2 }
 0x39f   :  { %v5615_v28 = vsel %vm5612_vm0, %v5614_v8, %v5610_v2  ;;  %9266 = vrcp.f32 %v6556_v49  ;;  %v9265_v31 = vpop.eup %9264  ;;  %v6583_v59 = vand.u32 2147483648, %v6556_v49  ;;  %v6581_v11 = vand.u32 2147483647, %v6556_v49  ;;  %v6025_v12 = vpop.f32.mrf.mxu1 }
 0x3a0   :  { %v5646_v25 = vmul.f32 %v5615_v28, %v13311_v50  ;;  %9268 = vpow2.f32 %v8321_v47  ;;  %v5618_v13 = vmul.f32 %v9265_v31, %v5391_v23  ;;  %vm5623_vm1 = vweird.f32 %v9265_v31  ;;  %v5917_v27 = vpop.f32.mrf.mxu0 }
 0x3a1   :  { %v6457_v41 = vpop.f32.mrf.mxu3  ;;  %vm5624_vm3 = vmor %vm5622_vm2, %vm5623_vm1  ;;  %vm6577_vm6 = vweird.f32 %v6556_v49  ;;  %v6584_v55 = vor.u32 1.1754944e-38, %v6583_v59  ;;  %vm6582_vm7 = vcmp.eq.f32.partialorder %v6581_v11, 8.507059e+37 }
 0x3a2   :  { %v5662_v58 = vpack.c.bf16 %v5646_v25, %v5646_v25  ;;  %v13365_v1 = vadd.f32 %v6457_v41, %v6229_v36  ;;  %v5619_v7 = vsub.f32 1.0, %v5618_v13 }
 0x3a4   :  { %5678 = vst.msk [vmem:[%s13506_s3 + $0xb8] sm:$0xf] %vm3303_vm14, %v5662_v58  ;;  %v8322_v50 = vmul.f32 -1.442695, %v13365_v1  ;;  %v5620_v30 = vmul.f32 %v9265_v31, %v5619_v7 }
 0x3a5   :  { %v9267_v24 = vpop.eup %9266 }
 0x3a6   :  { %v9269_v38 = vpop.eup %9268  ;;  %v6573_v46 = vmul.f32 %v9267_v24, %v6556_v49  ;;  %9270 = vpow2.f32 %v8322_v50  ;;  %v5621_v0 = vadd.f32 %v9265_v31, %v5620_v30  ;;  %vm6578_vm5 = vweird.f32 %v9267_v24  ;;  %v6202_v6 = vpop.f32.mrf.mxu2 }
 0x3a7   :  { %v6557_v3 = vadd.f32 1.0, %v9269_v38  ;;  %vm6579_vm15 = vmor %vm6577_vm6, %vm6578_vm5  ;;  %v6023_v49 = vadd.f32 %v13371_v5, %v5917_v27  ;;  %v6027_v25 = vpop.f32.mrf.mxu1 }
 0x3a8   :  { %v6574_v62 = vsub.f32 1.0, %v6573_v46  ;;  %v5625_v54 = vsel %vm5624_vm3, %v9265_v31, %v5621_v0  ;;  %v5920_v37 = vpop.f32.mrf.mxu0 }
 0x3a9   :  { %9272 = vrcp.f32 %v6557_v3  ;;  %v6459_v39 = vpop.f32.mrf.mxu3  ;;  %v5630_v33 = vsel %vm5627_vm4, %v5629_v26, %v5625_v54  ;;  %v6598_v18 = vand.u32 2147483648, %v6557_v3  ;;  %v6596_v60 = vand.u32 2147483647, %v6557_v3 }
 0x3aa   :  { %v6575_v21 = vmul.f32 %v9267_v24, %v6574_v62  ;;  %v5647_v53 = vmul.f32 %v5630_v33, %v13331_v14  ;;  %v13378_v52 = vadd.f32 %v6459_v39, %v6230_v42  ;;  %vm6592_vm9 = vweird.f32 %v6557_v3 }
 0x3ab   :  { %v6599_v63 = vor.u32 1.1754944e-38, %v6598_v18  ;;  %vm6597_vm11 = vcmp.eq.f32.partialorder %v6596_v60, 8.507059e+37  ;;  %v6232_v22 = vadd.f32 %v13375_v15, %v6023_v49  ;;  %v6026_v0 = vadd.f32 %v6025_v12, %v5920_v37 }
 0x3ac   :  { %v9271_v57 = vpop.eup %9270  ;;  %v6576_v61 = vadd.f32 %v9267_v24, %v6575_v21  ;;  %v5663_v29 = vpack.c.bf16 %v5647_v53, %v5647_v53  ;;  %v8323_v34 = vmul.f32 -1.442695, %v13378_v52 }
 0x3ad   :  { %v13381_v9 = vadd.f32 1.0, %v9271_v57  ;;  %v6233_v54 = vadd.f32 %v6202_v6, %v6026_v0 }
 0x3ae   :  { %v6580_v10 = vsel %vm6579_vm15, %v9267_v24, %v6576_v61  ;;  %5679 = vst.msk [vmem:[%s13506_s3 + $0xbc] sm:$0xf] %vm3303_vm14, %v5663_v29  ;;  %v6204_v24 = vpop.f32.mrf.mxu2 }
 0x3af   :  { %v9273_v23 = vpop.eup %9272  ;;  %v6585_v14 = vsel %vm6582_vm7, %v6584_v55, %v6580_v10  ;;  %9274 = vrcp.f32 %v13381_v9  ;;  %v6611_v58 = vand.u32 2147483647, %v13381_v9  ;;  %v6613_v7 = vand.u32 2147483648, %v13381_v9  ;;  %v6030_v11 = vpop.f32.mrf.mxu1 }
 0x3b0   :  { %v6812_v43 = vmul.f32 %v6585_v14, %v13344_v17  ;;  %v6588_v48 = vmul.f32 %v9273_v23, %v6557_v3  ;;  %9276 = vpow2.f32 %v8323_v34  ;;  %vm6593_vm8 = vweird.f32 %v9273_v23  ;;  %v5922_v45 = vpop.f32.mrf.mxu0 }
 0x3b1   :  { %v6462_v4 = vpop.f32.mrf.mxu3  ;;  %vm6594_vm10 = vmor %vm6592_vm9, %vm6593_vm8  ;;  %vm6607_vm13 = vweird.f32 %v13381_v9  ;;  %v6614_v3 = vor.u32 1.1754944e-38, %v6613_v7  ;;  %vm6612_vm1 = vcmp.eq.f32.partialorder %v6611_v58, 8.507059e+37  ;;  %v6028_v44 = vadd.f32 %v6027_v25, %v5922_v45 }
 0x3b2   :  { %v6828_v32 = vpack.c.bf16 %v6812_v43, %v6812_v43  ;;  %v6589_v20 = vsub.f32 1.0, %v6588_v48  ;;  %v13390_v56 = vadd.f32 %v6462_v4, %v6231_v51 }
 0x3b3   :  { %v6234_v48 = vadd.f32 %v6204_v24, %v6028_v44 }
 0x3b4   :  { %6844 = vst.msk [vmem:[%s13506_s3 + $0xc0] sm:$0xf] %vm3303_vm14, %v6828_v32  ;;  %v6590_v35 = vmul.f32 %v9273_v23, %v6589_v20  ;;  %v8324_v17 = vmul.f32 -1.442695, %v13390_v56 }
 0x3b5   :  { %v9275_v8 = vpop.eup %9274 }
 0x3b6   :  { %v6591_v47 = vadd.f32 %v9273_v23, %v6590_v35  ;;  %v6603_v2 = vmul.f32 %v9275_v8, %v13381_v9  ;;  %9278 = vpow2.f32 %v8324_v17  ;;  %v9277_v28 = vpop.eup %9276  ;;  %vm6608_vm12 = vweird.f32 %v9275_v8  ;;  %v6207_v29 = vpop.f32.mrf.mxu2 }
 0x3b7   :  { %v6559_v13 = vadd.f32 1.0, %v9277_v28  ;;  %vm6609_vm0 = vmor %vm6607_vm13, %vm6608_vm12  ;;  %v6032_v49 = vpop.f32.mrf.mxu1 }
 0x3b8   :  { %v6595_v31 = vsel %vm6594_vm10, %v9273_v23, %v6591_v47  ;;  %v6604_v36 = vsub.f32 1.0, %v6603_v2  ;;  %v5925_v59 = vpop.f32.mrf.mxu0 }
 0x3b9   :  { %v6600_v41 = vsel %vm6597_vm11, %v6599_v63, %v6595_v31  ;;  %v6464_v5 = vpop.f32.mrf.mxu3  ;;  %9280 = vrcp.f32 %v6559_v13  ;;  %v6628_v61 = vand.u32 2147483648, %v6559_v13  ;;  %v6626_v34 = vand.u32 2147483647, %v6559_v13 }
 0x3ba   :  { %v6813_v19 = vmul.f32 %v6600_v41, %v13356_v40  ;;  %v6605_v50 = vmul.f32 %v9275_v8, %v6604_v36  ;;  %v13403_v30 = vadd.f32 %v6464_v5, %v6232_v22  ;;  %vm6622_vm3 = vweird.f32 %v6559_v13 }
 0x3bb   :  { %v6629_v37 = vor.u32 1.1754944e-38, %v6628_v61  ;;  %vm6627_vm5 = vcmp.eq.f32.partialorder %v6626_v34, 8.507059e+37  ;;  %v6031_v2 = vadd.f32 %v6030_v11, %v5925_v59 }
 0x3bc   :  { %v9279_v16 = vpop.eup %9278  ;;  %v6829_v38 = vpack.c.bf16 %v6813_v19, %v6813_v19  ;;  %v6606_v46 = vadd.f32 %v9275_v8, %v6605_v50  ;;  %v8325_v15 = vmul.f32 -1.442695, %v13403_v30 }
 0x3bd   :  { %v6560_v27 = vadd.f32 1.0, %v9279_v16  ;;  %v6235_v7 = vadd.f32 %v6207_v29, %v6031_v2 }
 0x3be   :  { %6845 = vst.msk [vmem:[%s13506_s3 + $0xc4] sm:$0xf] %vm3303_vm14, %v6829_v38  ;;  %v6610_v40 = vsel %vm6609_vm0, %v9275_v8, %v6606_v46  ;;  %v6209_v36 = vpop.f32.mrf.mxu2 }
 0x3bf   :  { %v6615_v26 = vsel %vm6612_vm1, %v6614_v3, %v6610_v40  ;;  %9282 = vrcp.f32 %v6560_v27  ;;  %v9281_v62 = vpop.eup %9280  ;;  %v6643_v6 = vand.u32 2147483648, %v6560_v27  ;;  %v6641_v18 = vand.u32 2147483647, %v6560_v27 }
 0x3c0   :  { %v6814_v42 = vmul.f32 %v6615_v26, %v13365_v1  ;;  %9284 = vpow2.f32 %v8325_v15  ;;  %v6618_v39 = vmul.f32 %v9281_v62, %v6559_v13  ;;  %vm6623_vm2 = vweird.f32 %v9281_v62  ;;  %v5927_v35 = vpop.f32.mrf.mxu0 }
 0x3c1   :  { %v6467_v33 = vpop.f32.mrf.mxu3  ;;  %vm6624_vm4 = vmor %vm6622_vm3, %vm6623_vm2  ;;  %vm6637_vm15 = vweird.f32 %v6560_v27  ;;  %v6644_v63 = vor.u32 1.1754944e-38, %v6643_v6  ;;  %vm6642_vm8 = vcmp.eq.f32.partialorder %v6641_v18, 8.507059e+37  ;;  %v6033_v3 = vadd.f32 %v6032_v49, %v5927_v35 }
 0x3c2   :  { %v6830_v21 = vpack.c.bf16 %v6814_v42, %v6814_v42  ;;  %v13412_v53 = vadd.f32 %v6467_v33, %v6233_v54  ;;  %v6619_v57 = vsub.f32 1.0, %v6618_v39 }
 0x3c4   :  { %6846 = vst.msk [vmem:[%s13506_s3 + $0xc8] sm:$0xf] %vm3303_vm14, %v6830_v21  ;;  %v8326_v1 = vmul.f32 -1.442695, %v13412_v53  ;;  %v6620_v9 = vmul.f32 %v9281_v62, %v6619_v57  ;;  %v6236_v57 = vadd.f32 %v6209_v36, %v6033_v3 }
 0x3c5   :  { %v9283_v55 = vpop.eup %9282 }
 0x3c6   :  { %v9285_v10 = vpop.eup %9284  ;;  %v6633_v12 = vmul.f32 %v9283_v55, %v6560_v27  ;;  %9286 = vpow2.f32 %v8326_v1  ;;  %v6621_v23 = vadd.f32 %v9281_v62, %v6620_v9  ;;  %vm6638_vm6 = vweird.f32 %v9283_v55  ;;  %v6035_v27 = vpop.f32.mrf.mxu1 }
 0x3c7   :  { %v6561_v14 = vadd.f32 1.0, %v9285_v10  ;;  %vm6639_vm7 = vmor %vm6637_vm15, %vm6638_vm6  ;;  %v6212_v39 = vpop.f32.mrf.mxu2 }
 0x3c8   :  { %v6634_v43 = vsub.f32 1.0, %v6633_v12  ;;  %v6625_v51 = vsel %vm6624_vm4, %v9281_v62, %v6621_v23  ;;  %v5930_v46 = vpop.f32.mrf.mxu0 }
 0x3c9   :  { %9288 = vrcp.f32 %v6561_v14  ;;  %v6469_v4 = vpop.f32.mrf.mxu3  ;;  %v6630_v32 = vsel %vm6627_vm5, %v6629_v37, %v6625_v51  ;;  %v6658_v24 = vand.u32 2147483648, %v6561_v14  ;;  %v6656_v38 = vand.u32 2147483647, %v6561_v14 }
 0x3ca   :  { %v6635_v20 = vmul.f32 %v9283_v55, %v6634_v43  ;;  %v6815_v60 = vmul.f32 %v6630_v32, %v13378_v52  ;;  %v13420_v17 = vadd.f32 %v6469_v4, %v6234_v48  ;;  %vm6652_vm10 = vweird.f32 %v6561_v14 }
 0x3cb   :  { %v6659_v62 = vor.u32 1.1754944e-38, %v6658_v24  ;;  %vm6657_vm12 = vcmp.eq.f32.partialorder %v6656_v38, 8.507059e+37  ;;  %v6036_v10 = vadd.f32 %v6035_v27, %v5930_v46 }
 0x3cc   :  { %v9287_v8 = vpop.eup %9286  ;;  %v6636_v47 = vadd.f32 %v9283_v55, %v6635_v20  ;;  %v6831_v28 = vpack.c.bf16 %v6815_v60, %v6815_v60  ;;  %v8327_v31 = vmul.f32 -1.442695, %v13420_v17 }
 0x3cd   :  { %v6562_v45 = vadd.f32 1.0, %v9287_v8  ;;  %v6237_v4 = vadd.f32 %v6212_v39, %v6036_v10 }
 0x3ce   :  { %v6640_v25 = vsel %vm6639_vm7, %v9283_v55, %v6636_v47  ;;  %6847 = vst.msk [vmem:[%s13506_s3 + $0xcc] sm:$0xf] %vm3303_vm14, %v6831_v28  ;;  %v6037_v51 = vpop.f32.mrf.mxu1 }
 0x3cf   :  { %v9289_v13 = vpop.eup %9288  ;;  %v6645_v52 = vsel %vm6642_vm8, %v6644_v63, %v6640_v25  ;;  %9290 = vrcp.f32 %v6562_v45  ;;  %v6671_v21 = vand.u32 2147483647, %v6562_v45  ;;  %v6673_v11 = vand.u32 2147483648, %v6562_v45  ;;  %v6214_v35 = vpop.f32.mrf.mxu2 }
 0x3d0   :  { %v6816_v41 = vmul.f32 %v6645_v52, %v13390_v56  ;;  %v6648_v58 = vmul.f32 %v9289_v13, %v6561_v14  ;;  %9292 = vpow2.f32 %v8327_v31  ;;  %vm6653_vm9 = vweird.f32 %v9289_v13  ;;  %v5932_v37 = vpop.f32.mrf.mxu0 }
 0x3d1   :  { %v6472_v22 = vpop.f32.mrf.mxu3  ;;  %vm6654_vm11 = vmor %vm6652_vm10, %vm6653_vm9  ;;  %vm6667_vm0 = vweird.f32 %v6562_v45  ;;  %v6674_v12 = vor.u32 1.1754944e-38, %v6673_v11  ;;  %vm6672_vm2 = vcmp.eq.f32.partialorder %v6671_v21, 8.507059e+37  ;;  %v6038_v47 = vadd.f32 %v6037_v51, %v5932_v37 }
 0x3d2   :  { %v6832_v5 = vpack.c.bf16 %v6816_v41, %v6816_v41  ;;  %v6649_v19 = vsub.f32 1.0, %v6648_v58  ;;  %v13428_v50 = vadd.f32 %v6472_v22, %v6235_v7 }
 0x3d3   :  { %v6238_v41 = vadd.f32 %v6214_v35, %v6038_v47 }
 0x3d4   :  { %6848 = vst.msk [vmem:[%s13506_s3 + $0xd0] sm:$0xf] %vm3303_vm14, %v6832_v5  ;;  %v6650_v16 = vmul.f32 %v9289_v13, %v6649_v19  ;;  %v8328_v56 = vmul.f32 -1.442695, %v13428_v50 }
 0x3d5   :  { %v9291_v0 = vpop.eup %9290 }
 0x3d6   :  { %v6651_v15 = vadd.f32 %v9289_v13, %v6650_v16  ;;  %v6663_v40 = vmul.f32 %v9291_v0, %v6562_v45  ;;  %9294 = vpow2.f32 %v8328_v56  ;;  %v9293_v26 = vpop.eup %9292  ;;  %vm6668_vm13 = vweird.f32 %v9291_v0  ;;  %v6040_v19 = vpop.f32.mrf.mxu1 }
 0x3d7   :  { %v6563_v59 = vadd.f32 1.0, %v9293_v26  ;;  %vm6669_vm1 = vmor %vm6667_vm0, %vm6668_vm13 }
 0x3d8   :  { %v6655_v42 = vsel %vm6654_vm11, %v9289_v13, %v6651_v15  ;;  %v6664_v54 = vsub.f32 1.0, %v6663_v40  ;;  %v5935_v58 = vpop.f32.mrf.mxu0  ;;  %v6217_v15 = vpop.f32.mrf.mxu2 }
 0x3d9   :  { %v6660_v33 = vsel %vm6657_vm12, %v6659_v62, %v6655_v42  ;;  %v6474_v61 = vpop.f32.mrf.mxu3  ;;  %9296 = vrcp.f32 %v6563_v59  ;;  %v6688_v49 = vand.u32 2147483648, %v6563_v59  ;;  %v6686_v63 = vand.u32 2147483647, %v6563_v59 }
 0x3da   :  { %v6817_v44 = vmul.f32 %v6660_v33, %v13403_v30  ;;  %v6665_v29 = vmul.f32 %v9291_v0, %v6664_v54  ;;  %v13436_v1 = vadd.f32 %v6474_v61, %v6236_v57  ;;  %vm6682_vm4 = vweird.f32 %v6563_v59 }
 0x3db   :  { %v6689_v13 = vor.u32 1.1754944e-38, %v6688_v49  ;;  %vm6687_vm6 = vcmp.eq.f32.partialorder %v6686_v63, 8.507059e+37  ;;  %v6041_v27 = vadd.f32 %v6040_v19, %v5935_v58 }
 0x3dc   :  { %v9295_v55 = vpop.eup %9294  ;;  %v6833_v9 = vpack.c.bf16 %v6817_v44, %v6817_v44  ;;  %v6666_v34 = vadd.f32 %v9291_v0, %v6665_v29  ;;  %v8329_v14 = vmul.f32 -1.442695, %v13436_v1 }
 0x3dd   :  { %v6564_v23 = vadd.f32 1.0, %v9295_v55  ;;  %v6239_v21 = vadd.f32 %v6217_v15, %v6041_v27 }
 0x3de   :  { %6849 = vst.msk [vmem:[%s13506_s3 + $0xd4] sm:$0xf] %vm3303_vm14, %v6833_v9  ;;  %v6670_v30 = vsel %vm6669_vm1, %v9291_v0, %v6666_v34  ;;  %v6042_v9 = vpop.f32.mrf.mxu1 }
 0x3df   :  { %v6675_v43 = vsel %vm6672_vm2, %v6674_v12, %v6670_v30  ;;  %9298 = vrcp.f32 %v6564_v23  ;;  %v9297_v48 = vpop.eup %9296  ;;  %v6703_v22 = vand.u32 2147483648, %v6564_v23  ;;  %v6701_v38 = vand.u32 2147483647, %v6564_v23 }
 0x3e0   :  { %v6818_v6 = vmul.f32 %v6675_v43, %v13412_v53  ;;  %9300 = vpow2.f32 %v8329_v14  ;;  %v6678_v32 = vmul.f32 %v9297_v48, %v6563_v59  ;;  %vm6683_vm3 = vweird.f32 %v9297_v48  ;;  %v5937_v44 = vpop.f32.mrf.mxu0  ;;  %v6219_v37 = vpop.f32.mrf.mxu2 }
 0x3e1   :  { %v6477_v20 = vpop.f32.mrf.mxu3  ;;  %vm6684_vm5 = vmor %vm6682_vm4, %vm6683_vm3  ;;  %vm6697_vm7 = vweird.f32 %v6564_v23  ;;  %v6704_v26 = vor.u32 1.1754944e-38, %v6703_v22  ;;  %vm6702_vm9 = vcmp.eq.f32.partialorder %v6701_v38, 8.507059e+37 }
 0x3e2   :  { %v6834_v18 = vpack.c.bf16 %v6818_v6, %v6818_v6  ;;  %v13444_v60 = vadd.f32 %v6477_v20, %v6237_v4  ;;  %v6679_v8 = vsub.f32 1.0, %v6678_v32 }
 0x3e4   :  { %6850 = vst.msk [vmem:[%s13506_s3 + $0xd8] sm:$0xf] %vm3303_vm14, %v6834_v18  ;;  %v8330_v2 = vmul.f32 -1.442695, %v13444_v60  ;;  %v6680_v53 = vmul.f32 %v9297_v48, %v6679_v8 }
 0x3e5   :  { %v9299_v28 = vpop.eup %9298 }
 0x3e6   :  { %v9301_v45 = vpop.eup %9300  ;;  %v6693_v31 = vmul.f32 %v9299_v28, %v6564_v23  ;;  %9302 = vpow2.f32 %v8330_v2  ;;  %v6681_v25 = vadd.f32 %v9297_v48, %v6680_v53  ;;  %vm6698_vm15 = vweird.f32 %v9299_v28 }
 0x3e7   :  { %v6565_v36 = vadd.f32 1.0, %v9301_v45  ;;  %vm6699_vm8 = vmor %vm6697_vm7, %vm6698_vm15  ;;  %v6043_v23 = vadd.f32 %v6042_v9, %v5937_v44 }
 0x3e8   :  { %v6694_v52 = vsub.f32 1.0, %v6693_v31  ;;  %v6685_v7 = vsel %vm6684_vm5, %v9297_v48, %v6681_v25 }
 0x3e9   :  { %9304 = vrcp.f32 %v6565_v36  ;;  %v6479_v5 = vpop.f32.mrf.mxu3  ;;  %v6690_v24 = vsel %vm6687_vm6, %v6689_v13, %v6685_v7  ;;  %v6718_v55 = vand.u32 2147483648, %v6565_v36  ;;  %v6716_v10 = vand.u32 2147483647, %v6565_v36 }
 0x3ea   :  { %v6695_v16 = vmul.f32 %v9299_v28, %v6694_v52  ;;  %v6819_v46 = vmul.f32 %v6690_v24, %v13420_v17  ;;  %v13452_v56 = vadd.f32 %v6479_v5, %v6238_v41  ;;  %vm6712_vm11 = vweird.f32 %v6565_v36  ;;  %v5940_v5 = vpop.f32.mrf.mxu0 }
 0x3eb   :  { %v6719_v48 = vor.u32 1.1754944e-38, %v6718_v55  ;;  %vm6717_vm13 = vcmp.eq.f32.partialorder %v6716_v10, 8.507059e+37  ;;  %v6240_v35 = vadd.f32 %v6219_v37, %v6043_v23 }
 0x3ec   :  { %v9303_v0 = vpop.eup %9302  ;;  %v6696_v3 = vadd.f32 %v9299_v28, %v6695_v16  ;;  %v6835_v40 = vpack.c.bf16 %v6819_v46, %v6819_v46  ;;  %v8331_v42 = vmul.f32 -1.442695, %v13452_v56  ;;  %v6045_v46 = vpop.f32.mrf.mxu1 }
 0x3ed   :  { %v6566_v62 = vadd.f32 1.0, %v9303_v0  ;;  %v6046_v15 = vadd.f32 %v6045_v46, %v5940_v5 }
 0x3ee   :  { %v6700_v54 = vsel %vm6699_vm8, %v9299_v28, %v6696_v3  ;;  %6851 = vst.msk [vmem:[%s13506_s3 + $0xdc] sm:$0xf] %vm3303_vm14, %v6835_v40  ;;  %v6222_v40 = vpop.f32.mrf.mxu2 }
 0x3ef   :  { %v9305_v59 = vpop.eup %9304  ;;  %v6705_v17 = vsel %vm6702_vm9, %v6704_v26, %v6700_v54  ;;  %9306 = vrcp.f32 %v6566_v62  ;;  %v6731_v20 = vand.u32 2147483647, %v6566_v62  ;;  %v6733_v18 = vand.u32 2147483648, %v6566_v62 }
 0x3f0   :  { %v6820_v39 = vmul.f32 %v6705_v17, %v13428_v50  ;;  %v6708_v33 = vmul.f32 %v9305_v59, %v6565_v36  ;;  %9308 = vpow2.f32 %v8331_v42  ;;  %vm6713_vm10 = vweird.f32 %v9305_v59 }
 0x3f1   :  { %v6482_v11 = vpop.f32.mrf.mxu3  ;;  %vm6714_vm12 = vmor %vm6712_vm11, %vm6713_vm10  ;;  %vm6727_vm1 = vweird.f32 %v6566_v62  ;;  %v6734_v45 = vor.u32 1.1754944e-38, %v6733_v18  ;;  %vm6732_vm3 = vcmp.eq.f32.partialorder %v6731_v20, 8.507059e+37 }
 0x3f2   :  { %v6836_v57 = vpack.c.bf16 %v6820_v39, %v6820_v39  ;;  %v6709_v61 = vsub.f32 1.0, %v6708_v33  ;;  %v13460_v29 = vadd.f32 %v6482_v11, %v6239_v21  ;;  %v6241_v11 = vadd.f32 %v6222_v40, %v6046_v15  ;;  %v5942_v44 = vpop.f32.mrf.mxu0 }
 0x3f4   :  { %6852 = vst.msk [vmem:[%s13506_s3 + $0xe0] sm:$0xf] %vm3303_vm14, %v6836_v57  ;;  %v6710_v34 = vmul.f32 %v9305_v59, %v6709_v61  ;;  %v8332_v50 = vmul.f32 -1.442695, %v13460_v29 }
 0x3f5   :  { %v9307_v12 = vpop.eup %9306 }
 0x3f6   :  { %v6711_v14 = vadd.f32 %v9305_v59, %v6710_v34  ;;  %v6723_v30 = vmul.f32 %v9307_v12, %v6566_v62  ;;  %9310 = vpow2.f32 %v8332_v50  ;;  %v9309_v43 = vpop.eup %9308  ;;  %vm6728_vm0 = vweird.f32 %v9307_v12  ;;  %v6047_v50 = vpop.f32.mrf.mxu1 }
 0x3f7   :  { %v6567_v4 = vadd.f32 1.0, %v9309_v43  ;;  %vm6729_vm2 = vmor %vm6727_vm1, %vm6728_vm0  ;;  %v6048_v23 = vadd.f32 %v6047_v50, %v5942_v44  ;;  %v6224_v37 = vpop.f32.mrf.mxu2 }
 0x3f8   :  { %v6715_v51 = vsel %vm6714_vm12, %v9305_v59, %v6711_v14  ;;  %v6724_v6 = vsub.f32 1.0, %v6723_v30 }
 0x3f9   :  { %v6720_v32 = vsel %vm6717_vm13, %v6719_v48, %v6715_v51  ;;  %v6484_v8 = vpop.f32.mrf.mxu3  ;;  %9312 = vrcp.f32 %v6567_v4  ;;  %v6748_v22 = vand.u32 2147483648, %v6567_v4  ;;  %v6746_v16 = vand.u32 2147483647, %v6567_v4 }
 0x3fa   :  { %v6821_v49 = vmul.f32 %v6720_v32, %v13436_v1  ;;  %v6725_v47 = vmul.f32 %v9307_v12, %v6724_v6  ;;  %v13468_v2 = vadd.f32 %v6484_v8, %v6240_v35  ;;  %vm6742_vm5 = vweird.f32 %v6567_v4 }
 0x3fb   :  { %v6749_v27 = vor.u32 1.1754944e-38, %v6748_v22  ;;  %vm6747_vm15 = vcmp.eq.f32.partialorder %v6746_v16, 8.507059e+37 }
 0x3fc   :  { %v9311_v28 = vpop.eup %9310  ;;  %v6837_v53 = vpack.c.bf16 %v6821_v49, %v6821_v49  ;;  %v6726_v63 = vadd.f32 %v9307_v12, %v6725_v47  ;;  %v8333_v25 = vmul.f32 -1.442695, %v13468_v2 }
 0x3fd   :  { %v6568_v31 = vadd.f32 1.0, %v9311_v28 }
 0x3fe   :  { %6853 = vst.msk [vmem:[%s13506_s3 + $0xe4] sm:$0xf] %vm3303_vm14, %v6837_v53  ;;  %v6730_v1 = vsel %vm6729_vm2, %v9307_v12, %v6726_v63 }
 0x3ff   :  { %v6735_v36 = vsel %vm6732_vm3, %v6734_v45, %v6730_v1  ;;  %9314 = vrcp.f32 %v6568_v31  ;;  %v9313_v13 = vpop.eup %9312  ;;  %v6763_v42 = vand.u32 2147483648, %v6568_v31  ;;  %v6761_v17 = vand.u32 2147483647, %v6568_v31 }
 0x400   :  { %v6822_v52 = vmul.f32 %v6735_v36, %v13444_v60  ;;  %9316 = vpow2.f32 %v8333_v25  ;;  %v6738_v41 = vmul.f32 %v9313_v13, %v6567_v4  ;;  %vm6743_vm4 = vweird.f32 %v9313_v13 }
 0x401   :  { %vm6744_vm6 = vmor %vm6742_vm5, %vm6743_vm4  ;;  %vm6757_vm8 = vweird.f32 %v6568_v31  ;;  %v6764_v57 = vor.u32 1.1754944e-38, %v6763_v42  ;;  %vm6762_vm10 = vcmp.eq.f32.partialorder %v6761_v17, 8.507059e+37  ;;  %v6242_v4 = vadd.f32 %v6224_v37, %v6048_v23 }
 0x402   :  { %v6838_v58 = vpack.c.bf16 %v6822_v52, %v6822_v52  ;;  %v6739_v7 = vsub.f32 1.0, %v6738_v41 }
 0x404   :  { %6854 = vst.msk [vmem:[%s13506_s3 + $0xe8] sm:$0xf] %vm3303_vm14, %v6838_v58  ;;  %v6740_v24 = vmul.f32 %v9313_v13, %v6739_v7  ;;  %v6487_v55 = vpop.f32.mrf.mxu3 }
 0x405   :  { %v9315_v19 = vpop.eup %9314  ;;  %v6506_v10 = vadd.f32 %v6487_v55, %v6241_v11 }
 0x406   :  { %v9317_v38 = vpop.eup %9316  ;;  %v6753_v0 = vmul.f32 %v9315_v19, %v6568_v31  ;;  %v6741_v3 = vadd.f32 %v9313_v13, %v6740_v24  ;;  %vm6758_vm7 = vweird.f32 %v9315_v19 }
 0x407   :  { %v6569_v60 = vadd.f32 1.0, %v9317_v38  ;;  %vm6759_vm9 = vmor %vm6757_vm8, %vm6758_vm7  ;;  %v8334_v14 = vmul.f32 -1.442695, %v6506_v10 }
 0x408   :  { %v6754_v26 = vsub.f32 1.0, %v6753_v0  ;;  %v6745_v62 = vsel %vm6744_vm6, %v9313_v13, %v6741_v3 }
 0x409   :  { %9318 = vrcp.f32 %v6569_v60  ;;  %v6750_v54 = vsel %vm6747_vm15, %v6749_v27, %v6745_v62  ;;  %v6778_v48 = vand.u32 2147483648, %v6569_v60  ;;  %v6776_v6 = vand.u32 2147483647, %v6569_v60 }
 0x40a   :  { %v6755_v59 = vmul.f32 %v9315_v19, %v6754_v26  ;;  %v6823_v39 = vmul.f32 %v6750_v54, %v13452_v56  ;;  %9320 = vpow2.f32 %v8334_v14  ;;  %vm6772_vm12 = vweird.f32 %v6569_v60 }
 0x40b   :  { %v6779_v20 = vor.u32 1.1754944e-38, %v6778_v48  ;;  %vm6777_vm0 = vcmp.eq.f32.partialorder %v6776_v6, 8.507059e+37 }
 0x40c   :  { %v6756_v33 = vadd.f32 %v9315_v19, %v6755_v59  ;;  %v6839_v21 = vpack.c.bf16 %v6823_v39, %v6823_v39 }
 0x40e   :  { %v6760_v61 = vsel %vm6759_vm9, %v9315_v19, %v6756_v33  ;;  %6855 = vst.msk [vmem:[%s13506_s3 + $0xec] sm:$0xf] %vm3303_vm14, %v6839_v21 }
 0x40f   :  { %v9319_v9 = vpop.eup %9318  ;;  %v6765_v34 = vsel %vm6762_vm10, %v6764_v57, %v6760_v61 }
 0x410   :  { %v6824_v56 = vmul.f32 %v6765_v34, %v13460_v29  ;;  %v6768_v12 = vmul.f32 %v9319_v9, %v6569_v60  ;;  %vm6773_vm11 = vweird.f32 %v9319_v9  ;;  %v6489_v29 = vpop.f32.mrf.mxu3  ;;  %v9321_v8 = vpop.eup %9320 }
 0x411   :  { %vm6774_vm13 = vmor %vm6772_vm12, %vm6773_vm11  ;;  %v6507_v18 = vadd.f32 %v6489_v29, %v6242_v4  ;;  %v6570_v53 = vadd.f32 1.0, %v9321_v8 }
 0x412   :  { %v6840_v30 = vpack.c.bf16 %v6824_v56, %v6824_v56  ;;  %v6769_v43 = vsub.f32 1.0, %v6768_v12 }
 0x413   :  { %v8335_v47 = vmul.f32 -1.442695, %v6507_v18  ;;  %v6793_v13 = vand.u32 2147483648, %v6570_v53  ;;  %v6791_v41 = vand.u32 2147483647, %v6570_v53  ;;  %vm6787_vm2 = vweird.f32 %v6570_v53 }
 0x414   :  { %6856 = vst.msk [vmem:[%s13506_s3 + $0xf0] sm:$0xf] %vm3303_vm14, %v6840_v30  ;;  %v6770_v51 = vmul.f32 %v9319_v9, %v6769_v43 }
 0x415   :  { %9322 = vpow2.f32 %v8335_v47  ;;  %v6794_v7 = vor.u32 1.1754944e-38, %v6793_v13  ;;  %vm6792_vm4 = vcmp.eq.f32.partialorder %v6791_v41, 8.507059e+37 }
 0x416   :  { %v6771_v32 = vadd.f32 %v9319_v9, %v6770_v51  ;;  %9324 = vrcp.f32 %v6570_v53 }
 0x418   :  { %v6775_v35 = vsel %vm6774_vm13, %v9319_v9, %v6771_v32 }
 0x419   :  { %v6780_v49 = vsel %vm6777_vm0, %v6779_v20, %v6775_v35 }
 0x41a   :  { %v6825_v28 = vmul.f32 %v6780_v49, %v13468_v2 }
 0x41b   :  { %v9323_v45 = vpop.eup %9322 }
 0x41c   :  { %v6841_v63 = vpack.c.bf16 %v6825_v28, %v6825_v28  ;;  %v9325_v31 = vpop.eup %9324  ;;  %v6571_v25 = vadd.f32 1.0, %v9323_v45 }
 0x41d   :  { %v6783_v1 = vmul.f32 %v9325_v31, %v6570_v53  ;;  %vm6788_vm1 = vweird.f32 %v9325_v31 }
 0x41e   :  { %6857 = vst.msk [vmem:[%s13506_s3 + $0xf4] sm:$0xf] %vm3303_vm14, %v6841_v63  ;;  %9326 = vrcp.f32 %v6571_v25  ;;  %vm6789_vm3 = vmor %vm6787_vm2, %vm6788_vm1  ;;  %v6808_v38 = vand.u32 2147483648, %v6571_v25  ;;  %v6806_v3 = vand.u32 2147483647, %v6571_v25  ;;  %vm6802_vm6 = vweird.f32 %v6571_v25 }
 0x41f   :  { %v6784_v36 = vsub.f32 1.0, %v6783_v1 }
 0x420   :  { %v6809_v27 = vor.u32 1.1754944e-38, %v6808_v38  ;;  %vm6807_vm7 = vcmp.eq.f32.partialorder %v6806_v3, 8.507059e+37 }
 0x421   :  { %v6785_v52 = vmul.f32 %v9325_v31, %v6784_v36 }
 0x423   :  { %v6786_v2 = vadd.f32 %v9325_v31, %v6785_v52 }
 0x424   :  { %v9327_v58 = vpop.eup %9326 }
 0x425   :  { %v6790_v22 = vsel %vm6789_vm3, %v9325_v31, %v6786_v2  ;;  %v6798_v5 = vmul.f32 %v9327_v58, %v6571_v25  ;;  %vm6803_vm5 = vweird.f32 %v9327_v58 }
 0x426   :  { %v6795_v19 = vsel %vm6792_vm4, %v6794_v7, %v6790_v22  ;;  %vm6804_vm15 = vmor %vm6802_vm6, %vm6803_vm5 }
 0x427   :  { %v6826_v24 = vmul.f32 %v6795_v19, %v6506_v10  ;;  %v6799_v16 = vsub.f32 1.0, %v6798_v5 }
 0x429   :  { %v6842_v46 = vpack.c.bf16 %v6826_v24, %v6826_v24  ;;  %v6800_v0 = vmul.f32 %v9327_v58, %v6799_v16 }
 0x42b   :  { %6858 = vst.msk [vmem:[%s13506_s3 + $0xf8] sm:$0xf] %vm3303_vm14, %v6842_v46  ;;  %v6801_v60 = vadd.f32 %v9327_v58, %v6800_v0 }
 0x42d   :  { %v6805_v15 = vsel %vm6804_vm15, %v9327_v58, %v6801_v60 }
 0x42e   :  { %v6810_v40 = vsel %vm6807_vm7, %v6809_v27, %v6805_v15 }
 0x42f   :  { %v6827_v26 = vmul.f32 %v6810_v40, %v6507_v18 }
 0x431   :  { %v6843_v62 = vpack.c.bf16 %v6827_v26, %v6827_v26 }
 0x433   :  { %6859 = vst.msk [vmem:[%s13506_s3 + $0xfc] sm:$0xf] %vm3303_vm14, %v6843_v62 }

// kernel: image_encoder_forward.3
= control target key start
LH: loop header
LB: loop body
LE: loop exit
PB: predicated region body
PF: predicated region fallthrough
CT: control target
= control target key end

     0   :  { %s7395_s18 = smov 0   ;;  %s8020_s0 = inlined_call_operand.vmem [shape: bf16[2,2,7424], index: 0, kind: input, shape index: {}]   ;;  %s8021_s1 = inlined_call_operand.vmem [shape: bf16[14848,128], index: 1, kind: input, shape index: {}]   ;;  %s8022_s2 = inlined_call_operand.vmem [shape: f32[1,128], index: 2, kind: input, shape index: {}]   ;;  %s8023_s3 = inlined_call_operand.vmem [shape: bf16[128,128], index: 3, kind: input, shape index: {}]   ;;  %s8024_s4 = inlined_call_operand.vmem [shape: f32[1,128], index: 4, kind: input, shape index: {}]   ;;  %s8025_s5 = inlined_call_operand.vmem [shape: f32[2,128], index: 5, kind: output, shape index: {}]  }
   0x1 LB: > { %s7401_s19 = sadd.s32 4294967295, %s7362_s18   ;;  %p4974_p0 = scmp.ge.s32.totalorder %s7362_s18, 1  ;;  %s7362_s18 = sphi %s7395_s18, %s15_s18  }
   0x2   : > { %p183_p1 = scmp.lt.s32.totalorder %s7362_s18, 3 }
   0x4   : > { %p184_p2 = pnand %p4974_p0, %p183_p1 }
   0x5   : > { %s206_s20 = smul.u32 (!%p184_p2), 928, %s7401_s19  ;;  %p4976_p4 = scmp.ne.s32.totalorder (!%p184_p2), %s7401_s19, 0 }
   0x6   : > { %187 = sbr.rel (%p184_p2) target bundleno = 806 (0x326), region = 40 }
   0x7   : > { %p207_p3 = scmp.lt.s32.totalorder (!%p184_p2), %s206_s20, 1855 }
   0xb   : > { %s8027_s20 = smov (!%p207_p3, %s206_s20), 1855  ;;  %215 = sbr.rel (%p4976_p4) target bundleno = 18 (0x12), region = 44 }
   0xc   : > { %s4975_s21 = sshll.u32 %s8027_s20, 2 }
   0xd   : > { %s7409_s24 = scalar_lea.vmem %s8021_s1, %s4975_s21 }
  0x10   : > { %v7364_v0 = vmov 0.0  }
  0x11   : > { %216 = vst [vmem:[#allocation2] sm:$0x3] %v7364_v0 }
  0x12 PF: > { %v6876_v1 = vld [vmem:[%s7409_s24 + $0x38] sm:$0xff]  ;;  %v6875_v5 = vld [vmem:[%s7409_s24 + $0x30] sm:$0xff]  ;;  %v6874_v9 = vld [vmem:[%s7409_s24 + $0x28] sm:$0xff]  ;;  %s218_s25 = smul.u32 58, %s7401_s19  ;;  %p6833_p5 = scmp.ne.s32.totalorder %s7401_s19, 1 }
  0x13   : > { %v6884_v2 = vld [vmem:[%s7409_s24 + $0x78] sm:$0xff]  ;;  %4072 = vmatpush.bf16.msra.mxu0 %v6876_v1  ;;  %v6883_v6 = vld [vmem:[%s7409_s24 + $0x70] sm:$0xff]  ;;  %v6882_v10 = vld [vmem:[%s7409_s24 + $0x68] sm:$0xff] }
  0x14   : > { %v6892_v3 = vld [vmem:[%s7409_s24 + $0xb8] sm:$0xff]  ;;  %4085 = vmatpush.bf16.msra.mxu1 %v6884_v2  ;;  %v6891_v7 = vld [vmem:[%s7409_s24 + $0xb0] sm:$0xff]  ;;  %v6890_v11 = vld [vmem:[%s7409_s24 + $0xa8] sm:$0xff]  ;;  %s7434_s28 = scalar_lea.vmem %s8020_s0, %s218_s25 }
  0x15   : > { %v6900_v4 = vld [vmem:[%s7409_s24 + $0xf8] sm:$0xff]  ;;  %4098 = vmatpush.bf16.msra.mxu2 %v6892_v3  ;;  %v6899_v8 = vld [vmem:[%s7409_s24 + $0xf0] sm:$0xff]  ;;  %v6898_v12 = vld [vmem:[%s7409_s24 + $0xe8] sm:$0xff] }
  0x16   : > { %4111 = vmatpush.bf16.msra.mxu3 %v6900_v4  ;;  %v6873_v13 = vld [vmem:[%s7409_s24 + $0x20] sm:$0xff]  ;;  %v6872_v17 = vld [vmem:[%s7409_s24 + $0x18] sm:$0xff]  ;;  %v6871_v22 = vld [vmem:[%s7409_s24 + $0x10] sm:$0xff] }
  0x17   : > { %4073 = vmatpush.bf16.msra.mxu0 %v6875_v5  ;;  %v6881_v14 = vld [vmem:[%s7409_s24 + $0x60] sm:$0xff]  ;;  %v6880_v18 = vld [vmem:[%s7409_s24 + $0x58] sm:$0xff]  ;;  %v6879_v23 = vld [vmem:[%s7409_s24 + $0x50] sm:$0xff] }
  0x18   : > { %4086 = vmatpush.bf16.msra.mxu1 %v6883_v6  ;;  %v6889_v15 = vld [vmem:[%s7409_s24 + $0xa0] sm:$0xff]  ;;  %v6888_v19 = vld [vmem:[%s7409_s24 + $0x98] sm:$0xff]  ;;  %v6887_v24 = vld [vmem:[%s7409_s24 + $0x90] sm:$0xff] }
  0x19   : > { %4099 = vmatpush.bf16.msra.mxu2 %v6891_v7  ;;  %v6897_v16 = vld [vmem:[%s7409_s24 + $0xe0] sm:$0xff]  ;;  %v6896_v20 = vld [vmem:[%s7409_s24 + $0xd8] sm:$0xff]  ;;  %v6895_v25 = vld [vmem:[%s7409_s24 + $0xd0] sm:$0xff] }
  0x1a   : > { %4112 = vmatpush.bf16.msra.mxu3 %v6899_v8  ;;  %v220_v21 = vld [vmem:[%s7434_s28] sm:$0xff]  ;;  %v6870_v26 = vld [vmem:[%s7409_s24 + $0x8] sm:$0xff]  ;;  %v6908_v33 = vld [vmem:[%s7409_s24 + $0x138] sm:$0xff] }
  0x1b   : > { %4074 = vmatpush.bf16.msra.mxu0 %v6874_v9  ;;  %1157 = vst [vmem:[#allocation1] ss:$9 sm:$0xff] %v220_v21  ;;  %v6878_v27 = vld [vmem:[%s7409_s24 + $0x48] sm:$0xff]  ;;  %v6869_v30 = vld [vmem:[%s7409_s24] sm:$0xff]  ;;  %v6916_v34 = vld [vmem:[%s7409_s24 + $0x178] sm:$0xff] }
  0x1c   : > { %4087 = vmatpush.bf16.msra.mxu1 %v6882_v10  ;;  %v6886_v28 = vld [vmem:[%s7409_s24 + $0x88] sm:$0xff]  ;;  %v6877_v31 = vld [vmem:[%s7409_s24 + $0x40] sm:$0xff]  ;;  %v6924_v35 = vld [vmem:[%s7409_s24 + $0x1b8] sm:$0xff] }
  0x1d   : > { %4100 = vmatpush.bf16.msra.mxu2 %v6890_v11  ;;  %v6894_v29 = vld [vmem:[%s7409_s24 + $0xc8] sm:$0xff]  ;;  %v6885_v32 = vld [vmem:[%s7409_s24 + $0x80] sm:$0xff]  ;;  %v6932_v37 = vld [vmem:[%s7409_s24 + $0x1f8] sm:$0xff] }
  0x1e   : > { %4113 = vmatpush.bf16.msra.mxu3 %v6898_v12  ;;  %v6893_v36 = vld [vmem:[%s7409_s24 + $0xc0] sm:$0xff]  ;;  %v6907_v39 = vld [vmem:[%s7409_s24 + $0x130] sm:$0xff]  ;;  %v6906_v45 = vld [vmem:[%s7409_s24 + $0x128] sm:$0xff] }
  0x1f   : > { %4075 = vmatpush.bf16.msra.mxu0 %v6873_v13  ;;  %v6915_v41 = vld [vmem:[%s7409_s24 + $0x170] sm:$0xff]  ;;  %v221_v50 = vld [vmem:[%s7434_s28 + $0x8] sm:$0xff]  ;;  %v6905_v55 = vld [vmem:[%s7409_s24 + $0x120] sm:$0xff] }
  0x20   : > { %4088 = vmatpush.bf16.msra.mxu1 %v6881_v14  ;;  %v6923_v42 = vld [vmem:[%s7409_s24 + $0x1b0] sm:$0xff]  ;;  %v6914_v52 = vld [vmem:[%s7409_s24 + $0x168] sm:$0xff]  ;;  %v6913_v56 = vld [vmem:[%s7409_s24 + $0x160] sm:$0xff] }
  0x21   : > { %4101 = vmatpush.bf16.msra.mxu2 %v6889_v15  ;;  %v6931_v44 = vld [vmem:[%s7409_s24 + $0x1f0] sm:$0xff]  ;;  %v6922_v53 = vld [vmem:[%s7409_s24 + $0x1a8] sm:$0xff]  ;;  %v6921_v57 = vld [vmem:[%s7409_s24 + $0x1a0] sm:$0xff] }
  0x22   : > { %4114 = vmatpush.bf16.msra.mxu3 %v6897_v16  ;;  %v1158_v38 = vld [vmem:[#allocation1] sm:$0xff]  ;;  %v1160_v40 = vld [vmem:[#allocation1 + $0x12] sm:$0xff]  ;;  %v1159_v43 = vld [vmem:[#allocation1 + $0x9] sm:$0xff] }
  0x23   : > { %4076 = vmatpush.bf16.msra.mxu0 %v6872_v17  ;;  %v1161_v46 = vld [vmem:[#allocation1 + $0x1b] sm:$0xff]  ;;  %v7462_v48 = vld [vmem:[#allocation1 + $0x24] sm:$0xff]  ;;  %v7467_v51 = vld [vmem:[#allocation1 + $0x2d] sm:$0xff] }
  0x24   : > { %4089 = vmatpush.bf16.msra.mxu1 %v6880_v18  ;;  %v7460_v47 = vld [vmem:[#allocation1 + $0x36] sm:$0xff]  ;;  %v7464_v49 = vld [vmem:[#allocation1 + $0x3f] sm:$0xff]  ;;  %v6930_v54 = vld [vmem:[%s7409_s24 + $0x1e8] sm:$0xff] }
  0x25   : > { %4102 = vmatpush.bf16.msra.mxu2 %v6888_v19  ;;  %1167 = vst [vmem:[#allocation1] ss:$9 sm:$0xff] %v221_v50  ;;  %v6929_v58 = vld [vmem:[%s7409_s24 + $0x1e0] sm:$0xff]  ;;  %v6904_v59 = vld [vmem:[%s7409_s24 + $0x118] sm:$0xff]  ;;  %v6903_v63 = vld [vmem:[%s7409_s24 + $0x110] sm:$0xff] }
  0x26   : > { %4115 = vmatpush.bf16.msra.mxu3 %v6896_v20  ;;  %v6912_v60 = vld [vmem:[%s7409_s24 + $0x158] sm:$0xff]  ;;  %v6911_v0 = vld [vmem:[%s7409_s24 + $0x150] sm:$0xff]  ;;  %v6902_v3 = vld [vmem:[%s7409_s24 + $0x108] sm:$0xff] }
  0x27   : > { %4077 = vmatpush.bf16.msra.mxu0 %v6871_v22  ;;  %v6920_v61 = vld [vmem:[%s7409_s24 + $0x198] sm:$0xff]  ;;  %v6919_v1 = vld [vmem:[%s7409_s24 + $0x190] sm:$0xff]  ;;  %v6910_v4 = vld [vmem:[%s7409_s24 + $0x148] sm:$0xff] }
  0x28   : > { %4090 = vmatpush.bf16.msra.mxu1 %v6879_v23  ;;  %v6928_v62 = vld [vmem:[%s7409_s24 + $0x1d8] sm:$0xff]  ;;  %v6927_v2 = vld [vmem:[%s7409_s24 + $0x1d0] sm:$0xff]  ;;  %v6918_v5 = vld [vmem:[%s7409_s24 + $0x188] sm:$0xff] }
  0x29   : > { %4103 = vmatpush.bf16.msra.mxu2 %v6887_v24  ;;  %v6926_v6 = vld [vmem:[%s7409_s24 + $0x1c8] sm:$0xff]  ;;  %v6901_v7 = vld [vmem:[%s7409_s24 + $0x100] sm:$0xff]  ;;  %v6940_v10 = vld [vmem:[%s7409_s24 + $0x238] sm:$0xff] }
  0x2a   : > { %4116 = vmatpush.bf16.msra.mxu3 %v6895_v25  ;;  %v6909_v8 = vld [vmem:[%s7409_s24 + $0x140] sm:$0xff]  ;;  %v6948_v11 = vld [vmem:[%s7409_s24 + $0x278] sm:$0xff]  ;;  %v6939_v15 = vld [vmem:[%s7409_s24 + $0x230] sm:$0xff] }
  0x2b   : > { %4078 = vmatpush.bf16.msra.mxu0 %v6870_v26  ;;  %v6917_v9 = vld [vmem:[%s7409_s24 + $0x180] sm:$0xff]  ;;  %v6956_v12 = vld [vmem:[%s7409_s24 + $0x2b8] sm:$0xff]  ;;  %v6947_v16 = vld [vmem:[%s7409_s24 + $0x270] sm:$0xff] }
  0x2c   : > { %4091 = vmatpush.bf16.msra.mxu1 %v6878_v27  ;;  %v6925_v13 = vld [vmem:[%s7409_s24 + $0x1c0] sm:$0xff]  ;;  %v6964_v14 = vld [vmem:[%s7409_s24 + $0x2f8] sm:$0xff]  ;;  %v6955_v17 = vld [vmem:[%s7409_s24 + $0x2b0] sm:$0xff] }
  0x2d   : > { %4104 = vmatpush.bf16.msra.mxu2 %v6886_v28  ;;  %v6963_v18 = vld [vmem:[%s7409_s24 + $0x2f0] sm:$0xff]  ;;  %v6938_v19 = vld [vmem:[%s7409_s24 + $0x228] sm:$0xff]  ;;  %v6937_v23 = vld [vmem:[%s7409_s24 + $0x220] sm:$0xff] }
  0x2e   : > { %4117 = vmatpush.bf16.msra.mxu3 %v6894_v29  ;;  %v6946_v20 = vld [vmem:[%s7409_s24 + $0x268] sm:$0xff]  ;;  %v6945_v24 = vld [vmem:[%s7409_s24 + $0x260] sm:$0xff]  ;;  %v6936_v27 = vld [vmem:[%s7409_s24 + $0x218] sm:$0xff] }
  0x2f   : > { %4079 = vmatpush.bf16.msra.mxu0 %v6869_v30  ;;  %v6954_v21 = vld [vmem:[%s7409_s24 + $0x2a8] sm:$0xff]  ;;  %v6953_v25 = vld [vmem:[%s7409_s24 + $0x2a0] sm:$0xff]  ;;  %v6944_v28 = vld [vmem:[%s7409_s24 + $0x258] sm:$0xff] }
  0x30   : > { %4092 = vmatpush.bf16.msra.mxu1 %v6877_v31  ;;  %v6962_v22 = vld [vmem:[%s7409_s24 + $0x2e8] sm:$0xff]  ;;  %v6961_v26 = vld [vmem:[%s7409_s24 + $0x2e0] sm:$0xff]  ;;  %v6952_v29 = vld [vmem:[%s7409_s24 + $0x298] sm:$0xff] }
  0x31   : > { %4105 = vmatpush.bf16.msra.mxu2 %v6885_v32  ;;  %v6960_v30 = vld [vmem:[%s7409_s24 + $0x2d8] sm:$0xff]  ;;  %v6935_v31 = vld [vmem:[%s7409_s24 + $0x210] sm:$0xff] }
  0x32   : > { %4118 = vmatpush.bf16.msra.mxu3 %v6893_v36  ;;  %4080 = vmatmul.bf16.vlgmr.msra.gmra.mxu0 %v1158_v38  ;;  %v6943_v32 = vld [vmem:[%s7409_s24 + $0x250] sm:$0xff]  ;;  %v6942_v36 = vld [vmem:[%s7409_s24 + $0x248] sm:$0xff] }
  0x33   : > { %4124 = vmatpush.bf16.msrb.mxu0 %v6908_v33  ;;  %4093 = vmatmul.bf16.vlgmr.msra.gmra.mxu1 %v1159_v43  ;;  %v6951_v33 = vld [vmem:[%s7409_s24 + $0x290] sm:$0xff]  ;;  %v6958_v38 = vld [vmem:[%s7409_s24 + $0x2c8] sm:$0xff] }
  0x34   : > { %4137 = vmatpush.bf16.msrb.mxu1 %v6916_v34  ;;  %4106 = vmatmul.bf16.vlgmr.msra.gmra.mxu2 %v1160_v40  ;;  %v6959_v34 = vld [vmem:[%s7409_s24 + $0x2d0] sm:$0xff]  ;;  %v6941_v40 = vld [vmem:[%s7409_s24 + $0x240] sm:$0xff] }
  0x35   : > { %4150 = vmatpush.bf16.msrb.mxu2 %v6924_v35  ;;  %4119 = vmatmul.bf16.vlgmr.msra.gmra.mxu3 %v1161_v46  ;;  %v6934_v35 = vld [vmem:[%s7409_s24 + $0x208] sm:$0xff]  ;;  %v222_v43 = vld [vmem:[%s7434_s28 + $0x10] sm:$0xff]  ;;  %v6957_v46 = vld [vmem:[%s7409_s24 + $0x2c0] sm:$0xff] }
  0x36   : > { %4163 = vmatpush.bf16.msrb.mxu3 %v6932_v37  ;;  %v6950_v37 = vld [vmem:[%s7409_s24 + $0x288] sm:$0xff] }
  0x37   : > { %4125 = vmatpush.bf16.msrb.mxu0 %v6907_v39  ;;  %v6933_v39 = vld [vmem:[%s7409_s24 + $0x200] sm:$0xff]  ;;  %v1169_v50 = vld [vmem:[#allocation1 + $0x9] sm:$0xff] }
  0x38   : > { %4138 = vmatpush.bf16.msrb.mxu1 %v6915_v41  ;;  %v6949_v41 = vld [vmem:[%s7409_s24 + $0x280] sm:$0xff] }
  0x39   : > { %4151 = vmatpush.bf16.msrb.mxu2 %v6923_v42  ;;  %v6972_v42 = vld [vmem:[%s7409_s24 + $0x338] sm:$0xff] }
  0x3a   : > { %4164 = vmatpush.bf16.msrb.mxu3 %v6931_v44  ;;  %v6980_v44 = vld [vmem:[%s7409_s24 + $0x378] sm:$0xff] }
  0x3b   : > { %4126 = vmatpush.bf16.msrb.mxu0 %v6906_v45  ;;  %v6988_v45 = vld [vmem:[%s7409_s24 + $0x3b8] sm:$0xff] }
  0x3c   : > { %4139 = vmatpush.bf16.msrb.mxu1 %v6914_v52  ;;  %v1171_v52 = vld [vmem:[#allocation1 + $0x1b] sm:$0xff] }
  0x3d   : > { %4152 = vmatpush.bf16.msrb.mxu2 %v6922_v53  ;;  %v6979_v53 = vld [vmem:[%s7409_s24 + $0x370] sm:$0xff] }
  0x3e   : > { %4165 = vmatpush.bf16.msrb.mxu3 %v6930_v54  ;;  %v7535_v54 = vld [vmem:[#allocation1 + $0x24] sm:$0xff] }
  0x3f   : > { %4127 = vmatpush.bf16.msrb.mxu0 %v6905_v55  ;;  %v7537_v55 = vld [vmem:[#allocation1 + $0x36] sm:$0xff] }
  0x40   : > { %4140 = vmatpush.bf16.msrb.mxu1 %v6913_v56  ;;  %v7539_v56 = vld [vmem:[#allocation1 + $0x2d] sm:$0xff] }
  0x41   : > { %4153 = vmatpush.bf16.msrb.mxu2 %v6921_v57  ;;  %v7541_v57 = vld [vmem:[#allocation1 + $0x3f] sm:$0xff] }
  0x42   : > { %4166 = vmatpush.bf16.msrb.mxu3 %v6929_v58  ;;  %v6987_v58 = vld [vmem:[%s7409_s24 + $0x3b0] sm:$0xff] }
  0x43   : > { %4128 = vmatpush.bf16.msrb.mxu0 %v6904_v59  ;;  %v6995_v59 = vld [vmem:[%s7409_s24 + $0x3f0] sm:$0xff] }
  0x44   : > { %4141 = vmatpush.bf16.msrb.mxu1 %v6912_v60  ;;  %v6970_v60 = vld [vmem:[%s7409_s24 + $0x328] sm:$0xff] }
  0x45   : > { %4154 = vmatpush.bf16.msrb.mxu2 %v6920_v61  ;;  %v6978_v61 = vld [vmem:[%s7409_s24 + $0x368] sm:$0xff] }
  0x46   : > { %4167 = vmatpush.bf16.msrb.mxu3 %v6928_v62  ;;  %v6986_v62 = vld [vmem:[%s7409_s24 + $0x3a8] sm:$0xff] }
  0x47   : > { %4129 = vmatpush.bf16.msrb.mxu0 %v6903_v63  ;;  %v6994_v63 = vld [vmem:[%s7409_s24 + $0x3e8] sm:$0xff] }
  0x48   : > { %4142 = vmatpush.bf16.msrb.mxu1 %v6911_v0  ;;  %v6969_v0 = vld [vmem:[%s7409_s24 + $0x320] sm:$0xff] }
  0x49   : > { %4155 = vmatpush.bf16.msrb.mxu2 %v6919_v1  ;;  %v6977_v1 = vld [vmem:[%s7409_s24 + $0x360] sm:$0xff] }
  0x4a   : > { %4168 = vmatpush.bf16.msrb.mxu3 %v6927_v2  ;;  %v6985_v2 = vld [vmem:[%s7409_s24 + $0x3a0] sm:$0xff] }
  0x4b   : > { %4130 = vmatpush.bf16.msrb.mxu0 %v6902_v3  ;;  %v6993_v3 = vld [vmem:[%s7409_s24 + $0x3e0] sm:$0xff] }
  0x4c   : > { %4143 = vmatpush.bf16.msrb.mxu1 %v6910_v4  ;;  %v6968_v4 = vld [vmem:[%s7409_s24 + $0x318] sm:$0xff] }
  0x4d   : > { %4156 = vmatpush.bf16.msrb.mxu2 %v6918_v5  ;;  %v6976_v5 = vld [vmem:[%s7409_s24 + $0x358] sm:$0xff] }
  0x4e   : > { %4169 = vmatpush.bf16.msrb.mxu3 %v6926_v6  ;;  %v6984_v6 = vld [vmem:[%s7409_s24 + $0x398] sm:$0xff] }
  0x4f   : > { %4131 = vmatpush.bf16.msrb.mxu0 %v6901_v7  ;;  %v6992_v7 = vld [vmem:[%s7409_s24 + $0x3d8] sm:$0xff] }
  0x50   : > { %4144 = vmatpush.bf16.msrb.mxu1 %v6909_v8  ;;  %v6967_v8 = vld [vmem:[%s7409_s24 + $0x310] sm:$0xff] }
  0x51   : > { %4157 = vmatpush.bf16.msrb.mxu2 %v6917_v9  ;;  %v6975_v9 = vld [vmem:[%s7409_s24 + $0x350] sm:$0xff] }
  0x52   : > { %4170 = vmatpush.bf16.msrb.mxu3 %v6925_v13  ;;  %4132 = vmatmul.bf16.vlgmr.msrb.gmra.mxu0 %v7462_v48  ;;  %v6996_v48 = vld [vmem:[%s7409_s24 + $0x3f8] sm:$0xff]  ;;  %v6974_v13 = vld [vmem:[%s7409_s24 + $0x348] sm:$0xff] }
  0x53   : > { %4176 = vmatpush.bf16.msra.mxu0 %v6940_v10  ;;  %4145 = vmatmul.bf16.vlgmr.msrb.gmra.mxu1 %v7467_v51  ;;  %v6971_v51 = vld [vmem:[%s7409_s24 + $0x330] sm:$0xff] }
  0x54   : > { %4189 = vmatpush.bf16.msra.mxu1 %v6948_v11  ;;  %4158 = vmatmul.bf16.vlgmr.msrb.gmra.mxu2 %v7460_v47  ;;  %v1168_v47 = vld [vmem:[#allocation1] sm:$0xff]  ;;  %v6983_v10 = vld [vmem:[%s7409_s24 + $0x390] sm:$0xff] }
  0x55   : > { %4202 = vmatpush.bf16.msra.mxu2 %v6956_v12  ;;  %4171 = vmatmul.bf16.vlgmr.msrb.gmra.mxu3 %v7464_v49  ;;  %v1170_v49 = vld [vmem:[#allocation1 + $0x12] sm:$0xff]  ;;  %v6966_v12 = vld [vmem:[%s7409_s24 + $0x308] sm:$0xff] }
  0x56   : > { %4215 = vmatpush.bf16.msra.mxu3 %v6964_v14  ;;  %1177 = vst [vmem:[#allocation1] ss:$9 sm:$0xff] %v222_v43  ;;  %v6991_v11 = vld [vmem:[%s7409_s24 + $0x3d0] sm:$0xff]  ;;  %v6982_v14 = vld [vmem:[%s7409_s24 + $0x388] sm:$0xff] }
  0x57   : > { %4177 = vmatpush.bf16.msra.mxu0 %v6939_v15  ;;  %v6990_v15 = vld [vmem:[%s7409_s24 + $0x3c8] sm:$0xff]  ;;  %v7023_v43 = vld [vmem:[%s7409_s24 + $0x4d0] sm:$0xff] }
  0x58   : > { %4190 = vmatpush.bf16.msra.mxu1 %v6947_v16  ;;  %v6965_v16 = vld [vmem:[%s7409_s24 + $0x300] sm:$0xff] }
  0x59   : > { %4203 = vmatpush.bf16.msra.mxu2 %v6955_v17  ;;  %v6973_v17 = vld [vmem:[%s7409_s24 + $0x340] sm:$0xff] }
  0x5a   : > { %4216 = vmatpush.bf16.msra.mxu3 %v6963_v18  ;;  %v7004_v18 = vld [vmem:[%s7409_s24 + $0x438] sm:$0xff] }
  0x5b   : > { %4178 = vmatpush.bf16.msra.mxu0 %v6938_v19  ;;  %v6981_v19 = vld [vmem:[%s7409_s24 + $0x380] sm:$0xff] }
  0x5c   : > { %4191 = vmatpush.bf16.msra.mxu1 %v6946_v20  ;;  %v7012_v20 = vld [vmem:[%s7409_s24 + $0x478] sm:$0xff] }
  0x5d   : > { %4204 = vmatpush.bf16.msra.mxu2 %v6954_v21  ;;  %v7020_v21 = vld [vmem:[%s7409_s24 + $0x4b8] sm:$0xff] }
  0x5e   : > { %4217 = vmatpush.bf16.msra.mxu3 %v6962_v22  ;;  %v6989_v22 = vld [vmem:[%s7409_s24 + $0x3c0] sm:$0xff] }
  0x5f   : > { %4179 = vmatpush.bf16.msra.mxu0 %v6937_v23  ;;  %v7028_v23 = vld [vmem:[%s7409_s24 + $0x4f8] sm:$0xff] }
  0x60   : > { %4192 = vmatpush.bf16.msra.mxu1 %v6945_v24  ;;  %v7003_v24 = vld [vmem:[%s7409_s24 + $0x430] sm:$0xff] }
  0x61   : > { %4205 = vmatpush.bf16.msra.mxu2 %v6953_v25  ;;  %v7011_v25 = vld [vmem:[%s7409_s24 + $0x470] sm:$0xff] }
  0x62   : > { %4218 = vmatpush.bf16.msra.mxu3 %v6961_v26  ;;  %v7019_v26 = vld [vmem:[%s7409_s24 + $0x4b0] sm:$0xff] }
  0x63   : > { %4180 = vmatpush.bf16.msra.mxu0 %v6936_v27  ;;  %v7027_v27 = vld [vmem:[%s7409_s24 + $0x4f0] sm:$0xff] }
  0x64   : > { %4193 = vmatpush.bf16.msra.mxu1 %v6944_v28  ;;  %v7002_v28 = vld [vmem:[%s7409_s24 + $0x428] sm:$0xff] }
  0x65   : > { %4206 = vmatpush.bf16.msra.mxu2 %v6952_v29  ;;  %v7010_v29 = vld [vmem:[%s7409_s24 + $0x468] sm:$0xff] }
  0x66   : > { %4219 = vmatpush.bf16.msra.mxu3 %v6960_v30  ;;  %v7018_v30 = vld [vmem:[%s7409_s24 + $0x4a8] sm:$0xff] }
  0x67   : > { %4181 = vmatpush.bf16.msra.mxu0 %v6935_v31  ;;  %v7026_v31 = vld [vmem:[%s7409_s24 + $0x4e8] sm:$0xff] }
  0x68   : > { %4194 = vmatpush.bf16.msra.mxu1 %v6943_v32  ;;  %v7001_v32 = vld [vmem:[%s7409_s24 + $0x420] sm:$0xff] }
  0x69   : > { %4207 = vmatpush.bf16.msra.mxu2 %v6951_v33  ;;  %v7009_v33 = vld [vmem:[%s7409_s24 + $0x460] sm:$0xff] }
  0x6a   : > { %4220 = vmatpush.bf16.msra.mxu3 %v6959_v34  ;;  %v7017_v34 = vld [vmem:[%s7409_s24 + $0x4a0] sm:$0xff] }
  0x6b   : > { %4182 = vmatpush.bf16.msra.mxu0 %v6934_v35  ;;  %v7025_v35 = vld [vmem:[%s7409_s24 + $0x4e0] sm:$0xff] }
  0x6c   : > { %4195 = vmatpush.bf16.msra.mxu1 %v6942_v36  ;;  %v7000_v36 = vld [vmem:[%s7409_s24 + $0x418] sm:$0xff] }
  0x6d   : > { %4208 = vmatpush.bf16.msra.mxu2 %v6950_v37  ;;  %v7008_v37 = vld [vmem:[%s7409_s24 + $0x458] sm:$0xff] }
  0x6e   : > { %4221 = vmatpush.bf16.msra.mxu3 %v6958_v38  ;;  %v7016_v38 = vld [vmem:[%s7409_s24 + $0x498] sm:$0xff] }
  0x6f   : > { %4183 = vmatpush.bf16.msra.mxu0 %v6933_v39  ;;  %v7024_v39 = vld [vmem:[%s7409_s24 + $0x4d8] sm:$0xff] }
  0x70   : > { %4196 = vmatpush.bf16.msra.mxu1 %v6941_v40  ;;  %v6999_v40 = vld [vmem:[%s7409_s24 + $0x410] sm:$0xff] }
  0x71   : > { %4209 = vmatpush.bf16.msra.mxu2 %v6949_v41  ;;  %v7007_v41 = vld [vmem:[%s7409_s24 + $0x450] sm:$0xff] }
  0x72   : > { %4222 = vmatpush.bf16.msra.mxu3 %v6957_v46  ;;  %4184 = vmatmul.bf16.vlgmr.msra.gmra.mxu0 %v1168_v47  ;;  %v7014_v46 = vld [vmem:[%s7409_s24 + $0x488] sm:$0xff] }
  0x73   : > { %4228 = vmatpush.bf16.msrb.mxu0 %v6972_v42  ;;  %4197 = vmatmul.bf16.vlgmr.msra.gmra.mxu1 %v1169_v50  ;;  %v7015_v42 = vld [vmem:[%s7409_s24 + $0x490] sm:$0xff]  ;;  %v7022_v47 = vld [vmem:[%s7409_s24 + $0x4c8] sm:$0xff]  ;;  %v7013_v50 = vld [vmem:[%s7409_s24 + $0x480] sm:$0xff] }
  0x74   : > { %4241 = vmatpush.bf16.msrb.mxu1 %v6980_v44  ;;  %4210 = vmatmul.bf16.vlgmr.msra.gmra.mxu2 %v1170_v49  ;;  %v6998_v44 = vld [vmem:[%s7409_s24 + $0x408] sm:$0xff]  ;;  %v7005_v49 = vld [vmem:[%s7409_s24 + $0x440] sm:$0xff] }
  0x75   : > { %4254 = vmatpush.bf16.msrb.mxu2 %v6988_v45  ;;  %4223 = vmatmul.bf16.vlgmr.msra.gmra.mxu3 %v1171_v52  ;;  %v7006_v45 = vld [vmem:[%s7409_s24 + $0x448] sm:$0xff]  ;;  %v7044_v52 = vld [vmem:[%s7409_s24 + $0x578] sm:$0xff] }
  0x76   : > { %4267 = vmatpush.bf16.msrb.mxu3 %v6996_v48  ;;  %v6997_v48 = vld [vmem:[%s7409_s24 + $0x400] sm:$0xff] }
  0x77   : > { %4229 = vmatpush.bf16.msrb.mxu0 %v6971_v51  ;;  %v7036_v51 = vld [vmem:[%s7409_s24 + $0x538] sm:$0xff] }
  0x78   : > { %4242 = vmatpush.bf16.msrb.mxu1 %v6979_v53  ;;  %v223_v53 = vld [vmem:[%s7434_s28 + $0x18] sm:$0xff] }
  0x79   : > { %4255 = vmatpush.bf16.msrb.mxu2 %v6987_v58  ;;  %v7060_v58 = vld [vmem:[%s7409_s24 + $0x5f8] sm:$0xff] }
  0x7a   : > { %4268 = vmatpush.bf16.msrb.mxu3 %v6995_v59  ;;  %v1179_v59 = vld [vmem:[#allocation1 + $0x9] sm:$0xff] }
  0x7b   : > { %4230 = vmatpush.bf16.msrb.mxu0 %v6970_v60  ;;  %v1181_v60 = vld [vmem:[#allocation1 + $0x1b] sm:$0xff] }
  0x7c   : > { %4243 = vmatpush.bf16.msrb.mxu1 %v6978_v61  ;;  %v7035_v61 = vld [vmem:[%s7409_s24 + $0x530] sm:$0xff] }
  0x7d   : > { %4256 = vmatpush.bf16.msrb.mxu2 %v6986_v62  ;;  %v7043_v62 = vld [vmem:[%s7409_s24 + $0x570] sm:$0xff] }
  0x7e   : > { %4269 = vmatpush.bf16.msrb.mxu3 %v6994_v63  ;;  %v7051_v63 = vld [vmem:[%s7409_s24 + $0x5b0] sm:$0xff] }
  0x7f   : > { %4231 = vmatpush.bf16.msrb.mxu0 %v6969_v0  ;;  %v7613_v0 = vld [vmem:[#allocation1 + $0x24] sm:$0xff] }
  0x80   : > { %4244 = vmatpush.bf16.msrb.mxu1 %v6977_v1  ;;  %v7615_v1 = vld [vmem:[#allocation1 + $0x36] sm:$0xff] }
  0x81   : > { %4257 = vmatpush.bf16.msrb.mxu2 %v6985_v2  ;;  %v7617_v2 = vld [vmem:[#allocation1 + $0x2d] sm:$0xff] }
  0x82   : > { %4270 = vmatpush.bf16.msrb.mxu3 %v6993_v3  ;;  %v7619_v3 = vld [vmem:[#allocation1 + $0x3f] sm:$0xff] }
  0x83   : > { %4232 = vmatpush.bf16.msrb.mxu0 %v6968_v4  ;;  %v7059_v4 = vld [vmem:[%s7409_s24 + $0x5f0] sm:$0xff] }
  0x84   : > { %4245 = vmatpush.bf16.msrb.mxu1 %v6976_v5  ;;  %v7034_v5 = vld [vmem:[%s7409_s24 + $0x528] sm:$0xff] }
  0x85   : > { %4258 = vmatpush.bf16.msrb.mxu2 %v6984_v6  ;;  %v7042_v6 = vld [vmem:[%s7409_s24 + $0x568] sm:$0xff] }
  0x86   : > { %4271 = vmatpush.bf16.msrb.mxu3 %v6992_v7  ;;  %v7050_v7 = vld [vmem:[%s7409_s24 + $0x5a8] sm:$0xff] }
  0x87   : > { %4233 = vmatpush.bf16.msrb.mxu0 %v6967_v8  ;;  %v7058_v8 = vld [vmem:[%s7409_s24 + $0x5e8] sm:$0xff] }
  0x88   : > { %4246 = vmatpush.bf16.msrb.mxu1 %v6975_v9  ;;  %v7033_v9 = vld [vmem:[%s7409_s24 + $0x520] sm:$0xff] }
  0x89   : > { %4259 = vmatpush.bf16.msrb.mxu2 %v6983_v10 }
  0x8a   : > { %4272 = vmatpush.bf16.msrb.mxu3 %v6991_v11  ;;  %v7041_v11 = vld [vmem:[%s7409_s24 + $0x560] sm:$0xff] }
  0x8b   : > { %4234 = vmatpush.bf16.msrb.mxu0 %v6966_v12  ;;  %v7049_v12 = vld [vmem:[%s7409_s24 + $0x5a0] sm:$0xff] }
  0x8c   : > { %4247 = vmatpush.bf16.msrb.mxu1 %v6974_v13 }
  0x8d   : > { %4260 = vmatpush.bf16.msrb.mxu2 %v6982_v14  ;;  %v7057_v14 = vld [vmem:[%s7409_s24 + $0x5e0] sm:$0xff] }
  0x8e   : > { %4273 = vmatpush.bf16.msrb.mxu3 %v6990_v15 }
  0x8f   : > { %4235 = vmatpush.bf16.msrb.mxu0 %v6965_v16  ;;  %v7032_v16 = vld [vmem:[%s7409_s24 + $0x518] sm:$0xff] }
  0x90   : > { %4248 = vmatpush.bf16.msrb.mxu1 %v6973_v17  ;;  %v7040_v17 = vld [vmem:[%s7409_s24 + $0x558] sm:$0xff] }
  0x91   : > { %4261 = vmatpush.bf16.msrb.mxu2 %v6981_v19  ;;  %v7056_v19 = vld [vmem:[%s7409_s24 + $0x5d8] sm:$0xff] }
  0x92   : > { %4274 = vmatpush.bf16.msrb.mxu3 %v6989_v22  ;;  %4236 = vmatmul.bf16.vlgmr.msrb.gmra.mxu0 %v7535_v54  ;;  %v7052_v54 = vld [vmem:[%s7409_s24 + $0x5b8] sm:$0xff] }
  0x93   : > { %4280 = vmatpush.bf16.msra.mxu0 %v7004_v18  ;;  %4249 = vmatmul.bf16.vlgmr.msrb.gmra.mxu1 %v7539_v56  ;;  %v1178_v56 = vld [vmem:[#allocation1] sm:$0xff]  ;;  %v7048_v18 = vld [vmem:[%s7409_s24 + $0x598] sm:$0xff] }
  0x94   : > { %4293 = vmatpush.bf16.msra.mxu1 %v7012_v20  ;;  %4262 = vmatmul.bf16.vlgmr.msrb.gmra.mxu2 %v7537_v55  ;;  %v7021_v55 = vld [vmem:[%s7409_s24 + $0x4c0] sm:$0xff] }
  0x95   : > { %4306 = vmatpush.bf16.msra.mxu2 %v7020_v21  ;;  %4275 = vmatmul.bf16.vlgmr.msrb.gmra.mxu3 %v7541_v57  ;;  %v1180_v57 = vld [vmem:[#allocation1 + $0x12] sm:$0xff] }
  0x96   : > { %4319 = vmatpush.bf16.msra.mxu3 %v7028_v23  ;;  %1187 = vst [vmem:[#allocation1] ss:$9 sm:$0xff] %v223_v53  ;;  %v7031_v21 = vld [vmem:[%s7409_s24 + $0x510] sm:$0xff]  ;;  %v7073_v53 = vld [vmem:[%s7409_s24 + $0x660] sm:$0xff] }
  0x97   : > { %4281 = vmatpush.bf16.msra.mxu0 %v7003_v24  ;;  %v7039_v24 = vld [vmem:[%s7409_s24 + $0x550] sm:$0xff] }
  0x98   : > { %4294 = vmatpush.bf16.msra.mxu1 %v7011_v25  ;;  %v7047_v25 = vld [vmem:[%s7409_s24 + $0x590] sm:$0xff] }
  0x99   : > { %4307 = vmatpush.bf16.msra.mxu2 %v7019_v26 }
  0x9a   : > { %4320 = vmatpush.bf16.msra.mxu3 %v7027_v27 }
  0x9b   : > { %4282 = vmatpush.bf16.msra.mxu0 %v7002_v28  ;;  %v7055_v28 = vld [vmem:[%s7409_s24 + $0x5d0] sm:$0xff] }
  0x9c   : > { %4295 = vmatpush.bf16.msra.mxu1 %v7010_v29 }
  0x9d   : > { %4308 = vmatpush.bf16.msra.mxu2 %v7018_v30  ;;  %v7030_v30 = vld [vmem:[%s7409_s24 + $0x508] sm:$0xff] }
  0x9e   : > { %4321 = vmatpush.bf16.msra.mxu3 %v7026_v31  ;;  %v7038_v31 = vld [vmem:[%s7409_s24 + $0x548] sm:$0xff] }
  0x9f   : > { %4283 = vmatpush.bf16.msra.mxu0 %v7001_v32  ;;  %v7046_v32 = vld [vmem:[%s7409_s24 + $0x588] sm:$0xff] }
  0xa0   : > { %4296 = vmatpush.bf16.msra.mxu1 %v7009_v33  ;;  %v7054_v33 = vld [vmem:[%s7409_s24 + $0x5c8] sm:$0xff] }
  0xa1   : > { %4309 = vmatpush.bf16.msra.mxu2 %v7017_v34 }
  0xa2   : > { %4322 = vmatpush.bf16.msra.mxu3 %v7025_v35  ;;  %v7029_v35 = vld [vmem:[%s7409_s24 + $0x500] sm:$0xff] }
  0xa3   : > { %4284 = vmatpush.bf16.msra.mxu0 %v7000_v36  ;;  %v7037_v36 = vld [vmem:[%s7409_s24 + $0x540] sm:$0xff] }
  0xa4   : > { %4297 = vmatpush.bf16.msra.mxu1 %v7008_v37  ;;  %v7045_v37 = vld [vmem:[%s7409_s24 + $0x580] sm:$0xff] }
  0xa5   : > { %4310 = vmatpush.bf16.msra.mxu2 %v7016_v38  ;;  %v7068_v38 = vld [vmem:[%s7409_s24 + $0x638] sm:$0xff] }
  0xa6   : > { %4323 = vmatpush.bf16.msra.mxu3 %v7024_v39  ;;  %v7076_v39 = vld [vmem:[%s7409_s24 + $0x678] sm:$0xff] }
  0xa7   : > { %4285 = vmatpush.bf16.msra.mxu0 %v6999_v40 }
  0xa8   : > { %4298 = vmatpush.bf16.msra.mxu1 %v7007_v41  ;;  %v7084_v41 = vld [vmem:[%s7409_s24 + $0x6b8] sm:$0xff] }
  0xa9   : > { %4311 = vmatpush.bf16.msra.mxu2 %v7015_v42  ;;  %v7053_v42 = vld [vmem:[%s7409_s24 + $0x5c0] sm:$0xff] }
  0xaa   : > { %4324 = vmatpush.bf16.msra.mxu3 %v7023_v43  ;;  %v7092_v43 = vld [vmem:[%s7409_s24 + $0x6f8] sm:$0xff] }
  0xab   : > { %4286 = vmatpush.bf16.msra.mxu0 %v6998_v44  ;;  %v7067_v44 = vld [vmem:[%s7409_s24 + $0x630] sm:$0xff] }
  0xac   : > { %4299 = vmatpush.bf16.msra.mxu1 %v7006_v45  ;;  %v7075_v45 = vld [vmem:[%s7409_s24 + $0x670] sm:$0xff] }
  0xad   : > { %4312 = vmatpush.bf16.msra.mxu2 %v7014_v46  ;;  %v7083_v46 = vld [vmem:[%s7409_s24 + $0x6b0] sm:$0xff] }
  0xae   : > { %4325 = vmatpush.bf16.msra.mxu3 %v7022_v47  ;;  %v7091_v47 = vld [vmem:[%s7409_s24 + $0x6f0] sm:$0xff] }
  0xaf   : > { %4287 = vmatpush.bf16.msra.mxu0 %v6997_v48  ;;  %v4081_v10 = vpop.f32.mrf.mxu0  ;;  %v7066_v48 = vld [vmem:[%s7409_s24 + $0x628] sm:$0xff] }
  0xb0   : > { %4300 = vmatpush.bf16.msra.mxu1 %v7005_v49  ;;  %v4094_v13 = vpop.f32.mrf.mxu1  ;;  %v7074_v49 = vld [vmem:[%s7409_s24 + $0x668] sm:$0xff] }
  0xb1   : > { %4313 = vmatpush.bf16.msra.mxu2 %v7013_v50  ;;  %v4095_v15 = vadd.f32 %v4094_v13, %v4081_v10  ;;  %v7082_v50 = vld [vmem:[%s7409_s24 + $0x6a8] sm:$0xff] }
  0xb2   : > { %4326 = vmatpush.bf16.msra.mxu3 %v7021_v55  ;;  %4288 = vmatmul.bf16.vlgmr.msra.gmra.mxu0 %v1178_v56  ;;  %v7062_v10 = vld [vmem:[%s7409_s24 + $0x608] sm:$0xff] }
  0xb3   : > { %4332 = vmatpush.bf16.msrb.mxu0 %v7036_v51  ;;  %4301 = vmatmul.bf16.vlgmr.msra.gmra.mxu1 %v1179_v59  ;;  %v7090_v51 = vld [vmem:[%s7409_s24 + $0x6e8] sm:$0xff]  ;;  %v7064_v59 = vld [vmem:[%s7409_s24 + $0x618] sm:$0xff] }
  0xb4   : > { %4345 = vmatpush.bf16.msrb.mxu1 %v7044_v52  ;;  %4314 = vmatmul.bf16.vlgmr.msra.gmra.mxu2 %v1180_v57  ;;  %v7065_v52 = vld [vmem:[%s7409_s24 + $0x620] sm:$0xff] }
  0xb5   : > { %4358 = vmatpush.bf16.msrb.mxu2 %v7052_v54  ;;  %4327 = vmatmul.bf16.vlgmr.msra.gmra.mxu3 %v1181_v60  ;;  %v7081_v54 = vld [vmem:[%s7409_s24 + $0x6a0] sm:$0xff] }
  0xb6   : > { %4371 = vmatpush.bf16.msrb.mxu3 %v7060_v58  ;;  %v7089_v58 = vld [vmem:[%s7409_s24 + $0x6e0] sm:$0xff] }
  0xb7   : > { %4333 = vmatpush.bf16.msrb.mxu0 %v7035_v61  ;;  %v4107_v20 = vpop.f32.mrf.mxu2  ;;  %v4083_v23 = vpop.f32.mrf.mxu0  ;;  %v7072_v61 = vld [vmem:[%s7409_s24 + $0x658] sm:$0xff] }
  0xb8   : > { %4346 = vmatpush.bf16.msrb.mxu1 %v7043_v62  ;;  %v4108_v22 = vadd.f32 %v4107_v20, %v4095_v15  ;;  %v4120_v26 = vpop.f32.mrf.mxu3  ;;  %v4096_v27 = vpop.f32.mrf.mxu1  ;;  %v7080_v62 = vld [vmem:[%s7409_s24 + $0x698] sm:$0xff]  ;;  %v7061_v15 = vld [vmem:[%s7409_s24 + $0x600] sm:$0xff] }
  0xb9   : > { %4359 = vmatpush.bf16.msrb.mxu2 %v7051_v63  ;;  %v7108_v20 = vld [vmem:[%s7409_s24 + $0x778] sm:$0xff]  ;;  %v7085_v23 = vld [vmem:[%s7409_s24 + $0x6c0] sm:$0xff]  ;;  %v1189_v27 = vld [vmem:[#allocation1 + $0x9] sm:$0xff] }
  0xba   : > { %4372 = vmatpush.bf16.msrb.mxu3 %v7059_v4  ;;  %v4121_v29 = vadd.f32 %v4120_v26, %v4108_v22  ;;  %v7079_v4 = vld [vmem:[%s7409_s24 + $0x690] sm:$0xff]  ;;  %v7116_v22 = vld [vmem:[%s7409_s24 + $0x7b8] sm:$0xff] }
  0xbb   : > { %4334 = vmatpush.bf16.msrb.mxu0 %v7034_v5  ;;  %v7124_v26 = vld [vmem:[%s7409_s24 + $0x7f8] sm:$0xff] }
  0xbc   : > { %4347 = vmatpush.bf16.msrb.mxu1 %v7042_v6 }
  0xbd   : > { %4360 = vmatpush.bf16.msrb.mxu2 %v7050_v7 }
  0xbe   : > { %4373 = vmatpush.bf16.msrb.mxu3 %v7058_v8 }
  0xbf   : > { %4335 = vmatpush.bf16.msrb.mxu0 %v7033_v9  ;;  %v4109_v34 = vpop.f32.mrf.mxu2  ;;  %v7087_v9 = vld [vmem:[%s7409_s24 + $0x6d0] sm:$0xff] }
  0xc0   : > { %4348 = vmatpush.bf16.msrb.mxu1 %v7041_v11  ;;  %v4122_v40 = vpop.f32.mrf.mxu3  ;;  %v7070_v11 = vld [vmem:[%s7409_s24 + $0x648] sm:$0xff] }
  0xc1   : > { %4361 = vmatpush.bf16.msrb.mxu2 %v7049_v12  ;;  %v7078_v12 = vld [vmem:[%s7409_s24 + $0x688] sm:$0xff] }
  0xc2   : > { %4374 = vmatpush.bf16.msrb.mxu3 %v7057_v14  ;;  %v7086_v14 = vld [vmem:[%s7409_s24 + $0x6c8] sm:$0xff] }
  0xc3   : > { %4336 = vmatpush.bf16.msrb.mxu0 %v7032_v16  ;;  %v7069_v16 = vld [vmem:[%s7409_s24 + $0x640] sm:$0xff]  ;;  %v7694_v34 = vld [vmem:[#allocation1 + $0x2d] sm:$0xff] }
  0xc4   : > { %4349 = vmatpush.bf16.msrb.mxu1 %v7040_v17  ;;  %v7077_v17 = vld [vmem:[%s7409_s24 + $0x680] sm:$0xff]  ;;  %v7122_v40 = vld [vmem:[%s7409_s24 + $0x7e8] sm:$0xff] }
  0xc5   : > { %4362 = vmatpush.bf16.msrb.mxu2 %v7048_v18 }
  0xc6   : > { %4375 = vmatpush.bf16.msrb.mxu3 %v7056_v19  ;;  %v7100_v19 = vld [vmem:[%s7409_s24 + $0x738] sm:$0xff] }
  0xc7   : > { %4337 = vmatpush.bf16.msrb.mxu0 %v7031_v21  ;;  %v224_v21 = vld [vmem:[%s7434_s28 + $0x20] sm:$0xff] }
  0xc8   : > { %4350 = vmatpush.bf16.msrb.mxu1 %v7039_v24  ;;  %v1188_v24 = vld [vmem:[#allocation1] sm:$0xff] }
  0xc9   : > { %4363 = vmatpush.bf16.msrb.mxu2 %v7047_v25  ;;  %v1190_v25 = vld [vmem:[#allocation1 + $0x12] sm:$0xff] }
  0xca   : > { %4376 = vmatpush.bf16.msrb.mxu3 %v7055_v28  ;;  %v1191_v28 = vld [vmem:[#allocation1 + $0x1b] sm:$0xff] }
  0xcb   : > { %4338 = vmatpush.bf16.msrb.mxu0 %v7030_v30  ;;  %v7107_v30 = vld [vmem:[%s7409_s24 + $0x770] sm:$0xff] }
  0xcc   : > { %4351 = vmatpush.bf16.msrb.mxu1 %v7038_v31  ;;  %v7115_v31 = vld [vmem:[%s7409_s24 + $0x7b0] sm:$0xff] }
  0xcd   : > { %4364 = vmatpush.bf16.msrb.mxu2 %v7046_v32  ;;  %v7690_v32 = vld [vmem:[#allocation1 + $0x24] sm:$0xff] }
  0xce   : > { %4377 = vmatpush.bf16.msrb.mxu3 %v7054_v33  ;;  %v7692_v33 = vld [vmem:[#allocation1 + $0x36] sm:$0xff] }
  0xcf   : > { %4339 = vmatpush.bf16.msrb.mxu0 %v7029_v35  ;;  %v4133_v55 = vpop.f32.mrf.mxu0  ;;  %v7696_v35 = vld [vmem:[#allocation1 + $0x3f] sm:$0xff] }
  0xd0   : > { %4352 = vmatpush.bf16.msrb.mxu1 %v7037_v36  ;;  %v4146_v56 = vpop.f32.mrf.mxu1  ;;  %v4134_v57 = vadd.f32 %v4133_v55, %v4121_v29  ;;  %v7099_v29 = vld [vmem:[%s7409_s24 + $0x730] sm:$0xff]  ;;  %1197 = vst [vmem:[#allocation1] ss:$9 sm:$0xff] %v224_v21 }
  0xd1   : > { %4365 = vmatpush.bf16.msrb.mxu2 %v7045_v37  ;;  %v7123_v36 = vld [vmem:[%s7409_s24 + $0x7f0] sm:$0xff]  ;;  %v7098_v37 = vld [vmem:[%s7409_s24 + $0x728] sm:$0xff] }
  0xd2   : > { %4378 = vmatpush.bf16.msrb.mxu3 %v7053_v42  ;;  %4340 = vmatmul.bf16.vlgmr.msrb.gmra.mxu0 %v7613_v0  ;;  %v4147_v60 = vadd.f32 %v4146_v56, %v4134_v57  ;;  %v7088_v0 = vld [vmem:[%s7409_s24 + $0x6d8] sm:$0xff]  ;;  %v7095_v57 = vld [vmem:[%s7409_s24 + $0x710] sm:$0xff] }
  0xd3   : > { %4384 = vmatpush.bf16.msra.mxu0 %v7068_v38  ;;  %4353 = vmatmul.bf16.vlgmr.msrb.gmra.mxu1 %v7617_v2  ;;  %v7063_v2 = vld [vmem:[%s7409_s24 + $0x610] sm:$0xff]  ;;  %v7106_v38 = vld [vmem:[%s7409_s24 + $0x768] sm:$0xff] }
  0xd4   : > { %4397 = vmatpush.bf16.msra.mxu1 %v7076_v39  ;;  %4366 = vmatmul.bf16.vlgmr.msrb.gmra.mxu2 %v7615_v1  ;;  %v7114_v39 = vld [vmem:[%s7409_s24 + $0x7a8] sm:$0xff] }
  0xd5   : > { %4410 = vmatpush.bf16.msra.mxu2 %v7084_v41  ;;  %4379 = vmatmul.bf16.vlgmr.msrb.gmra.mxu3 %v7619_v3  ;;  %v7071_v3 = vld [vmem:[%s7409_s24 + $0x650] sm:$0xff] }
  0xd6   : > { %4423 = vmatpush.bf16.msra.mxu3 %v7092_v43  ;;  %v7097_v43 = vld [vmem:[%s7409_s24 + $0x720] sm:$0xff] }
  0xd7   : > { %4385 = vmatpush.bf16.msra.mxu0 %v7067_v44  ;;  %v4159_v63 = vpop.f32.mrf.mxu2  ;;  %v4135_v6 = vpop.f32.mrf.mxu0  ;;  %v7105_v44 = vld [vmem:[%s7409_s24 + $0x760] sm:$0xff] }
  0xd8   : > { %4398 = vmatpush.bf16.msra.mxu1 %v7075_v45  ;;  %v4160_v1 = vadd.f32 %v4159_v63, %v4147_v60  ;;  %v4172_v5 = vpop.f32.mrf.mxu3  ;;  %v4148_v8 = vpop.f32.mrf.mxu1  ;;  %v7113_v45 = vld [vmem:[%s7409_s24 + $0x7a0] sm:$0xff]  ;;  %v7111_v60 = vld [vmem:[%s7409_s24 + $0x790] sm:$0xff]  ;;  %v7094_v63 = vld [vmem:[%s7409_s24 + $0x708] sm:$0xff] }
  0xd9   : > { %4411 = vmatpush.bf16.msra.mxu2 %v7083_v46  ;;  %v7101_v6 = vld [vmem:[%s7409_s24 + $0x740] sm:$0xff]  ;;  %v7132_v8 = vld [vmem:[%s7409_s24 + $0x838] sm:$0xff] }
  0xda   : > { %4424 = vmatpush.bf16.msra.mxu3 %v7091_v47  ;;  %v4173_v7 = vadd.f32 %v4172_v5, %v4160_v1  ;;  %v7110_v1 = vld [vmem:[%s7409_s24 + $0x788] sm:$0xff] }
  0xdb   : > { %4386 = vmatpush.bf16.msra.mxu0 %v7066_v48  ;;  %v7121_v48 = vld [vmem:[%s7409_s24 + $0x7e0] sm:$0xff] }
  0xdc   : > { %4399 = vmatpush.bf16.msra.mxu1 %v7074_v49  ;;  %v7096_v49 = vld [vmem:[%s7409_s24 + $0x718] sm:$0xff] }
  0xdd   : > { %4412 = vmatpush.bf16.msra.mxu2 %v7082_v50  ;;  %v7104_v50 = vld [vmem:[%s7409_s24 + $0x758] sm:$0xff] }
  0xde   : > { %4425 = vmatpush.bf16.msra.mxu3 %v7090_v51  ;;  %v7112_v51 = vld [vmem:[%s7409_s24 + $0x798] sm:$0xff] }
  0xdf   : > { %4387 = vmatpush.bf16.msra.mxu0 %v7065_v52  ;;  %v4161_v13 = vpop.f32.mrf.mxu2 }
  0xe0   : > { %4400 = vmatpush.bf16.msra.mxu1 %v7073_v53  ;;  %v4174_v18 = vpop.f32.mrf.mxu3  ;;  %v7131_v13 = vld [vmem:[%s7409_s24 + $0x830] sm:$0xff] }
  0xe1   : > { %4413 = vmatpush.bf16.msra.mxu2 %v7081_v54  ;;  %v7120_v54 = vld [vmem:[%s7409_s24 + $0x7d8] sm:$0xff]  ;;  %v7138_v18 = vld [vmem:[%s7409_s24 + $0x868] sm:$0xff] }
  0xe2   : > { %4426 = vmatpush.bf16.msra.mxu3 %v7089_v58 }
  0xe3   : > { %4388 = vmatpush.bf16.msra.mxu0 %v7064_v59  ;;  %v7103_v59 = vld [vmem:[%s7409_s24 + $0x750] sm:$0xff] }
  0xe4   : > { %4401 = vmatpush.bf16.msra.mxu1 %v7072_v61 }
  0xe5   : > { %4414 = vmatpush.bf16.msra.mxu2 %v7080_v62  ;;  %v7119_v62 = vld [vmem:[%s7409_s24 + $0x7d0] sm:$0xff] }
  0xe6   : > { %4427 = vmatpush.bf16.msra.mxu3 %v7088_v0  ;;  %v7102_v0 = vld [vmem:[%s7409_s24 + $0x748] sm:$0xff] }
  0xe7   : > { %4389 = vmatpush.bf16.msra.mxu0 %v7063_v2 }
  0xe8   : > { %4402 = vmatpush.bf16.msra.mxu1 %v7071_v3  ;;  %v7118_v3 = vld [vmem:[%s7409_s24 + $0x7c8] sm:$0xff] }
  0xe9   : > { %4415 = vmatpush.bf16.msra.mxu2 %v7079_v4  ;;  %v7093_v4 = vld [vmem:[%s7409_s24 + $0x700] sm:$0xff] }
  0xea   : > { %4428 = vmatpush.bf16.msra.mxu3 %v7087_v9  ;;  %v7140_v9 = vld [vmem:[%s7409_s24 + $0x878] sm:$0xff] }
  0xeb   : > { %4390 = vmatpush.bf16.msra.mxu0 %v7062_v10  ;;  %v7148_v10 = vld [vmem:[%s7409_s24 + $0x8b8] sm:$0xff] }
  0xec   : > { %4403 = vmatpush.bf16.msra.mxu1 %v7070_v11  ;;  %v7117_v11 = vld [vmem:[%s7409_s24 + $0x7c0] sm:$0xff] }
  0xed   : > { %4416 = vmatpush.bf16.msra.mxu2 %v7078_v12  ;;  %v7156_v12 = vld [vmem:[%s7409_s24 + $0x8f8] sm:$0xff] }
  0xee   : > { %4429 = vmatpush.bf16.msra.mxu3 %v7086_v14  ;;  %v7139_v14 = vld [vmem:[%s7409_s24 + $0x870] sm:$0xff] }
  0xef   : > { %4391 = vmatpush.bf16.msra.mxu0 %v7061_v15  ;;  %v4185_v41 = vpop.f32.mrf.mxu0  ;;  %v7147_v15 = vld [vmem:[%s7409_s24 + $0x8b0] sm:$0xff] }
  0xf0   : > { %4404 = vmatpush.bf16.msra.mxu1 %v7069_v16  ;;  %v4186_v42 = vadd.f32 %v4185_v41, %v4173_v7  ;;  %v4198_v46 = vpop.f32.mrf.mxu1  ;;  %v7109_v7 = vld [vmem:[%s7409_s24 + $0x780] sm:$0xff]  ;;  %v7155_v16 = vld [vmem:[%s7409_s24 + $0x8f0] sm:$0xff] }
  0xf1   : > { %4417 = vmatpush.bf16.msra.mxu2 %v7077_v17  ;;  %v7130_v17 = vld [vmem:[%s7409_s24 + $0x828] sm:$0xff]  ;;  %v7143_v41 = vld [vmem:[%s7409_s24 + $0x890] sm:$0xff] }
  0xf2   : > { %4430 = vmatpush.bf16.msra.mxu3 %v7085_v23  ;;  %4392 = vmatmul.bf16.vlgmr.msra.gmra.mxu0 %v1188_v24  ;;  %v4199_v47 = vadd.f32 %v4198_v46, %v4186_v42  ;;  %v7129_v23 = vld [vmem:[%s7409_s24 + $0x820] sm:$0xff]  ;;  %v7151_v42 = vld [vmem:[%s7409_s24 + $0x8d0] sm:$0xff] }
  0xf3   : > { %4436 = vmatpush.bf16.msrb.mxu0 %v7100_v19  ;;  %4405 = vmatmul.bf16.vlgmr.msra.gmra.mxu1 %v1189_v27  ;;  %v7146_v19 = vld [vmem:[%s7409_s24 + $0x8a8] sm:$0xff] }
  0xf4   : > { %4449 = vmatpush.bf16.msrb.mxu1 %v7108_v20  ;;  %4418 = vmatmul.bf16.vlgmr.msra.gmra.mxu2 %v1190_v25  ;;  %v7154_v20 = vld [vmem:[%s7409_s24 + $0x8e8] sm:$0xff]  ;;  %v7137_v25 = vld [vmem:[%s7409_s24 + $0x860] sm:$0xff] }
  0xf5   : > { %4462 = vmatpush.bf16.msrb.mxu2 %v7116_v22  ;;  %4431 = vmatmul.bf16.vlgmr.msra.gmra.mxu3 %v1191_v28  ;;  %v7153_v28 = vld [vmem:[%s7409_s24 + $0x8e0] sm:$0xff] }
  0xf6   : > { %4475 = vmatpush.bf16.msrb.mxu3 %v7124_v26  ;;  %v7145_v26 = vld [vmem:[%s7409_s24 + $0x8a0] sm:$0xff] }
  0xf7   : > { %4437 = vmatpush.bf16.msrb.mxu0 %v7099_v29  ;;  %v4211_v52 = vpop.f32.mrf.mxu2  ;;  %v4187_v55 = vpop.f32.mrf.mxu0  ;;  %v7128_v29 = vld [vmem:[%s7409_s24 + $0x818] sm:$0xff] }
  0xf8   : > { %4450 = vmatpush.bf16.msrb.mxu1 %v7107_v30  ;;  %v4212_v53 = vadd.f32 %v4211_v52, %v4199_v47  ;;  %v4224_v56 = vpop.f32.mrf.mxu3  ;;  %v4200_v61 = vpop.f32.mrf.mxu1  ;;  %v7136_v30 = vld [vmem:[%s7409_s24 + $0x858] sm:$0xff]  ;;  %v7150_v47 = vld [vmem:[%s7409_s24 + $0x8c8] sm:$0xff] }
  0xf9   : > { %4463 = vmatpush.bf16.msrb.mxu2 %v7115_v31  ;;  %v7144_v31 = vld [vmem:[%s7409_s24 + $0x898] sm:$0xff] }
  0xfa   : > { %4476 = vmatpush.bf16.msrb.mxu3 %v7123_v36  ;;  %v4225_v58 = vadd.f32 %v4224_v56, %v4212_v53  ;;  %v7164_v52 = vld [vmem:[%s7409_s24 + $0x938] sm:$0xff]  ;;  %v7149_v56 = vld [vmem:[%s7409_s24 + $0x8c0] sm:$0xff] }
  0xfb   : > { %4438 = vmatpush.bf16.msrb.mxu0 %v7098_v37  ;;  %v7127_v37 = vld [vmem:[%s7409_s24 + $0x810] sm:$0xff]  ;;  %v7172_v53 = vld [vmem:[%s7409_s24 + $0x978] sm:$0xff] }
  0xfc   : > { %4451 = vmatpush.bf16.msrb.mxu1 %v7106_v38  ;;  %v7180_v55 = vld [vmem:[%s7409_s24 + $0x9b8] sm:$0xff] }
  0xfd   : > { %4464 = vmatpush.bf16.msrb.mxu2 %v7114_v39  ;;  %v1201_v61 = vld [vmem:[#allocation1 + $0x1b] sm:$0xff] }
  0xfe   : > { %4477 = vmatpush.bf16.msrb.mxu3 %v7122_v40  ;;  %v7135_v40 = vld [vmem:[%s7409_s24 + $0x850] sm:$0xff] }
  0xff   : > { %4439 = vmatpush.bf16.msrb.mxu0 %v7097_v43  ;;  %v4213_v2 = vpop.f32.mrf.mxu2  ;;  %v7126_v43 = vld [vmem:[%s7409_s24 + $0x808] sm:$0xff] }
 0x100   : > { %4452 = vmatpush.bf16.msrb.mxu1 %v7105_v44  ;;  %v4226_v5 = vpop.f32.mrf.mxu3  ;;  %v7134_v44 = vld [vmem:[%s7409_s24 + $0x848] sm:$0xff]  ;;  %v7771_v2 = vld [vmem:[#allocation1 + $0x36] sm:$0xff] }
 0x101   : > { %4465 = vmatpush.bf16.msrb.mxu2 %v7113_v45  ;;  %v7142_v45 = vld [vmem:[%s7409_s24 + $0x888] sm:$0xff]  ;;  %v7187_v5 = vld [vmem:[%s7409_s24 + $0x9f0] sm:$0xff] }
 0x102   : > { %4478 = vmatpush.bf16.msrb.mxu3 %v7121_v48 }
 0x103   : > { %4440 = vmatpush.bf16.msrb.mxu0 %v7096_v49  ;;  %v7125_v49 = vld [vmem:[%s7409_s24 + $0x800] sm:$0xff] }
 0x104   : > { %4453 = vmatpush.bf16.msrb.mxu1 %v7104_v50  ;;  %v7133_v50 = vld [vmem:[%s7409_s24 + $0x840] sm:$0xff] }
 0x105   : > { %4466 = vmatpush.bf16.msrb.mxu2 %v7112_v51  ;;  %v7141_v51 = vld [vmem:[%s7409_s24 + $0x880] sm:$0xff] }
 0x106   : > { %4479 = vmatpush.bf16.msrb.mxu3 %v7120_v54  ;;  %v225_v54 = vld [vmem:[%s7434_s28 + $0x28] sm:$0xff] }
 0x107   : > { %4441 = vmatpush.bf16.msrb.mxu0 %v7095_v57  ;;  %v1198_v57 = vld [vmem:[#allocation1] sm:$0xff] }
 0x108   : > { %4454 = vmatpush.bf16.msrb.mxu1 %v7103_v59  ;;  %v7188_v59 = vld [vmem:[%s7409_s24 + $0x9f8] sm:$0xff] }
 0x109   : > { %4467 = vmatpush.bf16.msrb.mxu2 %v7111_v60  ;;  %v1199_v60 = vld [vmem:[#allocation1 + $0x9] sm:$0xff] }
 0x10a   : > { %4480 = vmatpush.bf16.msrb.mxu3 %v7119_v62  ;;  %v7163_v62 = vld [vmem:[%s7409_s24 + $0x930] sm:$0xff] }
 0x10b   : > { %4442 = vmatpush.bf16.msrb.mxu0 %v7094_v63  ;;  %v7171_v63 = vld [vmem:[%s7409_s24 + $0x970] sm:$0xff] }
 0x10c   : > { %4455 = vmatpush.bf16.msrb.mxu1 %v7102_v0  ;;  %v7179_v0 = vld [vmem:[%s7409_s24 + $0x9b0] sm:$0xff] }
 0x10d   : > { %4468 = vmatpush.bf16.msrb.mxu2 %v7110_v1  ;;  %v7769_v1 = vld [vmem:[#allocation1 + $0x24] sm:$0xff] }
 0x10e   : > { %4481 = vmatpush.bf16.msrb.mxu3 %v7118_v3  ;;  %v7773_v3 = vld [vmem:[#allocation1 + $0x2d] sm:$0xff] }
 0x10f   : > { %4443 = vmatpush.bf16.msrb.mxu0 %v7093_v4  ;;  %v4237_v21 = vpop.f32.mrf.mxu0  ;;  %v7775_v4 = vld [vmem:[#allocation1 + $0x3f] sm:$0xff] }
 0x110   : > { %4456 = vmatpush.bf16.msrb.mxu1 %v7101_v6  ;;  %v4238_v22 = vadd.f32 %v4237_v21, %v4225_v58  ;;  %v4250_v24 = vpop.f32.mrf.mxu1  ;;  %v1200_v58 = vld [vmem:[#allocation1 + $0x12] sm:$0xff]  ;;  %v7162_v6 = vld [vmem:[%s7409_s24 + $0x928] sm:$0xff] }
 0x111   : > { %4469 = vmatpush.bf16.msrb.mxu2 %v7109_v7  ;;  %1207 = vst [vmem:[#allocation1] ss:$9 sm:$0xff] %v225_v54  ;;  %v7170_v7 = vld [vmem:[%s7409_s24 + $0x968] sm:$0xff] }
 0x112   : > { %4482 = vmatpush.bf16.msrb.mxu3 %v7117_v11  ;;  %4444 = vmatmul.bf16.vlgmr.msrb.gmra.mxu0 %v7690_v32  ;;  %v4251_v27 = vadd.f32 %v4250_v24, %v4238_v22 }
 0x113   : > { %4488 = vmatpush.bf16.msra.mxu0 %v7132_v8  ;;  %4457 = vmatmul.bf16.vlgmr.msrb.gmra.mxu1 %v7694_v34  ;;  %v7152_v34 = vld [vmem:[%s7409_s24 + $0x8d8] sm:$0xff]  ;;  %v7178_v8 = vld [vmem:[%s7409_s24 + $0x9a8] sm:$0xff] }
 0x114   : > { %4501 = vmatpush.bf16.msra.mxu1 %v7140_v9  ;;  %4470 = vmatmul.bf16.vlgmr.msrb.gmra.mxu2 %v7692_v33  ;;  %v7186_v9 = vld [vmem:[%s7409_s24 + $0x9e8] sm:$0xff] }
 0x115   : > { %4514 = vmatpush.bf16.msra.mxu2 %v7148_v10  ;;  %4483 = vmatmul.bf16.vlgmr.msrb.gmra.mxu3 %v7696_v35 }
 0x116   : > { %4527 = vmatpush.bf16.msra.mxu3 %v7156_v12  ;;  %v7161_v12 = vld [vmem:[%s7409_s24 + $0x920] sm:$0xff] }
 0x117   : > { %4489 = vmatpush.bf16.msra.mxu0 %v7131_v13  ;;  %v4263_v32 = vpop.f32.mrf.mxu2  ;;  %v4239_v36 = vpop.f32.mrf.mxu0 }
 0x118   : > { %4502 = vmatpush.bf16.msra.mxu1 %v7139_v14  ;;  %v4264_v33 = vadd.f32 %v4263_v32, %v4251_v27  ;;  %v4276_v35 = vpop.f32.mrf.mxu3  ;;  %v4252_v38 = vpop.f32.mrf.mxu1  ;;  %v7169_v14 = vld [vmem:[%s7409_s24 + $0x960] sm:$0xff]  ;;  %v7159_v27 = vld [vmem:[%s7409_s24 + $0x910] sm:$0xff]  ;;  %v7158_v32 = vld [vmem:[%s7409_s24 + $0x908] sm:$0xff] }
 0x119   : > { %4515 = vmatpush.bf16.msra.mxu2 %v7147_v15  ;;  %v7177_v15 = vld [vmem:[%s7409_s24 + $0x9a0] sm:$0xff]  ;;  %v7182_v36 = vld [vmem:[%s7409_s24 + $0x9c8] sm:$0xff] }
 0x11a   : > { %4528 = vmatpush.bf16.msra.mxu3 %v7155_v16  ;;  %v7748_v39 = vadd.f32 %v4276_v35, %v4264_v33  ;;  %v7166_v33 = vld [vmem:[%s7409_s24 + $0x948] sm:$0xff]  ;;  %v7157_v38 = vld [vmem:[%s7409_s24 + $0x900] sm:$0xff] }
 0x11b   : > { %4490 = vmatpush.bf16.msra.mxu0 %v7130_v17  ;;  %v7185_v17 = vld [vmem:[%s7409_s24 + $0x9e0] sm:$0xff] }
 0x11c   : > { %4503 = vmatpush.bf16.msra.mxu1 %v7138_v18  ;;  %v7160_v18 = vld [vmem:[%s7409_s24 + $0x918] sm:$0xff] }
 0x11d   : > { %4516 = vmatpush.bf16.msra.mxu2 %v7146_v19  ;;  %v7168_v19 = vld [vmem:[%s7409_s24 + $0x958] sm:$0xff] }
 0x11e   : > { %4529 = vmatpush.bf16.msra.mxu3 %v7154_v20  ;;  %v7176_v20 = vld [vmem:[%s7409_s24 + $0x998] sm:$0xff] }
 0x11f   : > { %4491 = vmatpush.bf16.msra.mxu0 %v7129_v23  ;;  %v4265_v46 = vpop.f32.mrf.mxu2  ;;  %v7184_v23 = vld [vmem:[%s7409_s24 + $0x9d8] sm:$0xff] }
 0x120   : > { %4504 = vmatpush.bf16.msra.mxu1 %v7137_v25  ;;  %v4278_v48 = vpop.f32.mrf.mxu3  ;;  %v7195_v46 = vld [vmem:[%s7409_s24 + $0xa30] sm:$0xff] }
 0x121   : > { %4517 = vmatpush.bf16.msra.mxu2 %v7145_v26  ;;  %v7211_v48 = vld [vmem:[%s7409_s24 + $0xab0] sm:$0xff] }
 0x122   : > { %4530 = vmatpush.bf16.msra.mxu3 %v7153_v28 }
 0x123   : > { %4492 = vmatpush.bf16.msra.mxu0 %v7128_v29  ;;  %v7167_v29 = vld [vmem:[%s7409_s24 + $0x950] sm:$0xff] }
 0x124   : > { %4505 = vmatpush.bf16.msra.mxu1 %v7136_v30  ;;  %v7175_v30 = vld [vmem:[%s7409_s24 + $0x990] sm:$0xff] }
 0x125   : > { %4518 = vmatpush.bf16.msra.mxu2 %v7144_v31  ;;  %v7183_v31 = vld [vmem:[%s7409_s24 + $0x9d0] sm:$0xff] }
 0x126   : > { %4531 = vmatpush.bf16.msra.mxu3 %v7152_v34  ;;  %v7174_v34 = vld [vmem:[%s7409_s24 + $0x988] sm:$0xff] }
 0x127   : > { %4493 = vmatpush.bf16.msra.mxu0 %v7127_v37 }
 0x128   : > { %4506 = vmatpush.bf16.msra.mxu1 %v7135_v40  ;;  %v7173_v40 = vld [vmem:[%s7409_s24 + $0x980] sm:$0xff] }
 0x129   : > { %4519 = vmatpush.bf16.msra.mxu2 %v7143_v41  ;;  %v7196_v41 = vld [vmem:[%s7409_s24 + $0xa38] sm:$0xff] }
 0x12a   : > { %4532 = vmatpush.bf16.msra.mxu3 %v7151_v42  ;;  %v7204_v42 = vld [vmem:[%s7409_s24 + $0xa78] sm:$0xff] }
 0x12b   : > { %4494 = vmatpush.bf16.msra.mxu0 %v7126_v43  ;;  %v7212_v43 = vld [vmem:[%s7409_s24 + $0xab8] sm:$0xff] }
 0x12c   : > { %4507 = vmatpush.bf16.msra.mxu1 %v7134_v44  ;;  %v7181_v44 = vld [vmem:[%s7409_s24 + $0x9c0] sm:$0xff] }
 0x12d   : > { %4520 = vmatpush.bf16.msra.mxu2 %v7142_v45  ;;  %v7220_v45 = vld [vmem:[%s7409_s24 + $0xaf8] sm:$0xff] }
 0x12e   : > { %4533 = vmatpush.bf16.msra.mxu3 %v7150_v47  ;;  %v7203_v47 = vld [vmem:[%s7409_s24 + $0xa70] sm:$0xff] }
 0x12f   : > { %4495 = vmatpush.bf16.msra.mxu0 %v7125_v49  ;;  %v4289_v10 = vpop.f32.mrf.mxu0  ;;  %v7219_v49 = vld [vmem:[%s7409_s24 + $0xaf0] sm:$0xff] }
 0x130   : > { %4508 = vmatpush.bf16.msra.mxu1 %v7133_v50  ;;  %v4290_v11 = vadd.f32 %v4289_v10, %v7748_v39  ;;  %v4302_v13 = vpop.f32.mrf.mxu1  ;;  %v7165_v39 = vld [vmem:[%s7409_s24 + $0x940] sm:$0xff]  ;;  %v7194_v50 = vld [vmem:[%s7409_s24 + $0xa28] sm:$0xff]  ;;  %v7207_v10 = vld [vmem:[%s7409_s24 + $0xa90] sm:$0xff] }
 0x131   : > { %4521 = vmatpush.bf16.msra.mxu2 %v7141_v51  ;;  %v7202_v51 = vld [vmem:[%s7409_s24 + $0xa68] sm:$0xff] }
 0x132   : > { %4534 = vmatpush.bf16.msra.mxu3 %v7149_v56  ;;  %4496 = vmatmul.bf16.vlgmr.msra.gmra.mxu0 %v1198_v57  ;;  %v4303_v16 = vadd.f32 %v4302_v13, %v4290_v11  ;;  %v7193_v56 = vld [vmem:[%s7409_s24 + $0xa20] sm:$0xff]  ;;  %v7215_v11 = vld [vmem:[%s7409_s24 + $0xad0] sm:$0xff]  ;;  %v7198_v13 = vld [vmem:[%s7409_s24 + $0xa48] sm:$0xff] }
 0x133   : > { %4540 = vmatpush.bf16.msrb.mxu0 %v7164_v52  ;;  %4509 = vmatmul.bf16.vlgmr.msra.gmra.mxu1 %v1199_v60  ;;  %v7210_v52 = vld [vmem:[%s7409_s24 + $0xaa8] sm:$0xff] }
 0x134   : > { %4553 = vmatpush.bf16.msrb.mxu1 %v7172_v53  ;;  %4522 = vmatmul.bf16.vlgmr.msra.gmra.mxu2 %v1200_v58  ;;  %v7218_v53 = vld [vmem:[%s7409_s24 + $0xae8] sm:$0xff]  ;;  %v7201_v58 = vld [vmem:[%s7409_s24 + $0xa60] sm:$0xff] }
 0x135   : > { %4566 = vmatpush.bf16.msrb.mxu2 %v7180_v55  ;;  %4535 = vmatmul.bf16.vlgmr.msra.gmra.mxu3 %v1201_v61  ;;  %v7217_v61 = vld [vmem:[%s7409_s24 + $0xae0] sm:$0xff] }
 0x136   : > { %4579 = vmatpush.bf16.msrb.mxu3 %v7188_v59  ;;  %v7209_v59 = vld [vmem:[%s7409_s24 + $0xaa0] sm:$0xff] }
 0x137   : > { %4541 = vmatpush.bf16.msrb.mxu0 %v7163_v62  ;;  %v4315_v21 = vpop.f32.mrf.mxu2  ;;  %v4291_v25 = vpop.f32.mrf.mxu0  ;;  %v7192_v62 = vld [vmem:[%s7409_s24 + $0xa18] sm:$0xff] }
 0x138   : > { %4554 = vmatpush.bf16.msrb.mxu1 %v7171_v63  ;;  %v4316_v22 = vadd.f32 %v4315_v21, %v4303_v16  ;;  %v4328_v24 = vpop.f32.mrf.mxu3  ;;  %v4304_v28 = vpop.f32.mrf.mxu1  ;;  %v7200_v63 = vld [vmem:[%s7409_s24 + $0xa58] sm:$0xff]  ;;  %v7214_v16 = vld [vmem:[%s7409_s24 + $0xac8] sm:$0xff]  ;;  %v7213_v25 = vld [vmem:[%s7409_s24 + $0xac0] sm:$0xff] }
 0x139   : > { %4567 = vmatpush.bf16.msrb.mxu2 %v7179_v0  ;;  %v7208_v0 = vld [vmem:[%s7409_s24 + $0xa98] sm:$0xff] }
 0x13a   : > { %4580 = vmatpush.bf16.msrb.mxu3 %v7187_v5  ;;  %v4329_v26 = vadd.f32 %v4328_v24, %v4316_v22  ;;  %v7228_v21 = vld [vmem:[%s7409_s24 + $0xb38] sm:$0xff] }
 0x13b   : > { %4542 = vmatpush.bf16.msrb.mxu0 %v7162_v6  ;;  %v7236_v22 = vld [vmem:[%s7409_s24 + $0xb78] sm:$0xff] }
 0x13c   : > { %4555 = vmatpush.bf16.msrb.mxu1 %v7170_v7  ;;  %v7191_v7 = vld [vmem:[%s7409_s24 + $0xa10] sm:$0xff]  ;;  %v7244_v24 = vld [vmem:[%s7409_s24 + $0xbb8] sm:$0xff] }
 0x13d   : > { %4568 = vmatpush.bf16.msrb.mxu2 %v7178_v8  ;;  %v7252_v28 = vld [vmem:[%s7409_s24 + $0xbf8] sm:$0xff] }
 0x13e   : > { %4581 = vmatpush.bf16.msrb.mxu3 %v7186_v9  ;;  %v7199_v9 = vld [vmem:[%s7409_s24 + $0xa50] sm:$0xff] }
 0x13f   : > { %4543 = vmatpush.bf16.msrb.mxu0 %v7161_v12  ;;  %v4317_v35 = vpop.f32.mrf.mxu2  ;;  %v7190_v12 = vld [vmem:[%s7409_s24 + $0xa08] sm:$0xff] }
 0x140   : > { %4556 = vmatpush.bf16.msrb.mxu1 %v7169_v14  ;;  %v4330_v37 = vpop.f32.mrf.mxu3  ;;  %v7206_v14 = vld [vmem:[%s7409_s24 + $0xa88] sm:$0xff]  ;;  %v7851_v35 = vld [vmem:[#allocation1 + $0x36] sm:$0xff] }
 0x141   : > { %4569 = vmatpush.bf16.msrb.mxu2 %v7177_v15  ;;  %v7855_v37 = vld [vmem:[#allocation1 + $0x3f] sm:$0xff] }
 0x142   : > { %4582 = vmatpush.bf16.msrb.mxu3 %v7185_v17 }
 0x143   : > { %4544 = vmatpush.bf16.msrb.mxu0 %v7160_v18  ;;  %v7189_v18 = vld [vmem:[%s7409_s24 + $0xa00] sm:$0xff] }
 0x144   : > { %4557 = vmatpush.bf16.msrb.mxu1 %v7168_v19  ;;  %v7197_v19 = vld [vmem:[%s7409_s24 + $0xa40] sm:$0xff] }
 0x145   : > { %4570 = vmatpush.bf16.msrb.mxu2 %v7176_v20  ;;  %v7205_v20 = vld [vmem:[%s7409_s24 + $0xa80] sm:$0xff] }
 0x146   : > { %4583 = vmatpush.bf16.msrb.mxu3 %v7184_v23  ;;  %v226_v23 = vld [vmem:[%s7434_s28 + $0x30] sm:$0xff] }
 0x147   : > { %4545 = vmatpush.bf16.msrb.mxu0 %v7159_v27  ;;  %v1210_v27 = vld [vmem:[#allocation1 + $0x12] sm:$0xff] }
 0x148   : > { %4558 = vmatpush.bf16.msrb.mxu1 %v7167_v29  ;;  %v1209_v29 = vld [vmem:[#allocation1 + $0x9] sm:$0xff] }
 0x149   : > { %4571 = vmatpush.bf16.msrb.mxu2 %v7175_v30  ;;  %v1211_v30 = vld [vmem:[#allocation1 + $0x1b] sm:$0xff] }
 0x14a   : > { %4584 = vmatpush.bf16.msrb.mxu3 %v7183_v31  ;;  %v7227_v31 = vld [vmem:[%s7409_s24 + $0xb30] sm:$0xff] }
 0x14b   : > { %4546 = vmatpush.bf16.msrb.mxu0 %v7158_v32  ;;  %v7235_v32 = vld [vmem:[%s7409_s24 + $0xb70] sm:$0xff] }
 0x14c   : > { %4559 = vmatpush.bf16.msrb.mxu1 %v7166_v33  ;;  %v7243_v33 = vld [vmem:[%s7409_s24 + $0xbb0] sm:$0xff] }
 0x14d   : > { %4572 = vmatpush.bf16.msrb.mxu2 %v7174_v34  ;;  %v7849_v34 = vld [vmem:[#allocation1 + $0x24] sm:$0xff] }
 0x14e   : > { %4585 = vmatpush.bf16.msrb.mxu3 %v7182_v36  ;;  %v7853_v36 = vld [vmem:[#allocation1 + $0x2d] sm:$0xff] }
 0x14f   : > { %4547 = vmatpush.bf16.msrb.mxu0 %v7157_v38  ;;  %v4341_v54 = vpop.f32.mrf.mxu0  ;;  %v7251_v38 = vld [vmem:[%s7409_s24 + $0xbf0] sm:$0xff] }
 0x150   : > { %4560 = vmatpush.bf16.msrb.mxu1 %v7165_v39  ;;  %v4342_v55 = vadd.f32 %v4341_v54, %v4329_v26  ;;  %v4354_v57 = vpop.f32.mrf.mxu1  ;;  %v1208_v26 = vld [vmem:[#allocation1] sm:$0xff]  ;;  %v7226_v39 = vld [vmem:[%s7409_s24 + $0xb28] sm:$0xff] }
 0x151   : > { %4573 = vmatpush.bf16.msrb.mxu2 %v7173_v40  ;;  %1217 = vst [vmem:[#allocation1] ss:$9 sm:$0xff] %v226_v23  ;;  %v7234_v40 = vld [vmem:[%s7409_s24 + $0xb68] sm:$0xff] }
 0x152   : > { %4586 = vmatpush.bf16.msrb.mxu3 %v7181_v44  ;;  %4548 = vmatmul.bf16.vlgmr.msrb.gmra.mxu0 %v7769_v1  ;;  %v4355_v60 = vadd.f32 %v4354_v57, %v4342_v55 }
 0x153   : > { %4592 = vmatpush.bf16.msra.mxu0 %v7196_v41  ;;  %4561 = vmatmul.bf16.vlgmr.msrb.gmra.mxu1 %v7773_v3  ;;  %v7216_v3 = vld [vmem:[%s7409_s24 + $0xad8] sm:$0xff]  ;;  %v7242_v41 = vld [vmem:[%s7409_s24 + $0xba8] sm:$0xff] }
 0x154   : > { %4605 = vmatpush.bf16.msra.mxu1 %v7204_v42  ;;  %4574 = vmatmul.bf16.vlgmr.msrb.gmra.mxu2 %v7771_v2  ;;  %v7250_v42 = vld [vmem:[%s7409_s24 + $0xbe8] sm:$0xff] }
 0x155   : > { %4618 = vmatpush.bf16.msra.mxu2 %v7212_v43  ;;  %4587 = vmatmul.bf16.vlgmr.msrb.gmra.mxu3 %v7775_v4 }
 0x156   : > { %4631 = vmatpush.bf16.msra.mxu3 %v7220_v45  ;;  %v7225_v45 = vld [vmem:[%s7409_s24 + $0xb20] sm:$0xff] }
 0x157   : > { %4593 = vmatpush.bf16.msra.mxu0 %v7195_v46  ;;  %v4367_v1 = vpop.f32.mrf.mxu2  ;;  %v4343_v5 = vpop.f32.mrf.mxu0 }
 0x158   : > { %4606 = vmatpush.bf16.msra.mxu1 %v7203_v47  ;;  %v4368_v2 = vadd.f32 %v4367_v1, %v4355_v60  ;;  %v4380_v4 = vpop.f32.mrf.mxu3  ;;  %v4356_v8 = vpop.f32.mrf.mxu1  ;;  %v7233_v47 = vld [vmem:[%s7409_s24 + $0xb60] sm:$0xff]  ;;  %v7223_v60 = vld [vmem:[%s7409_s24 + $0xb10] sm:$0xff]  ;;  %v7222_v1 = vld [vmem:[%s7409_s24 + $0xb08] sm:$0xff] }
 0x159   : > { %4619 = vmatpush.bf16.msra.mxu2 %v7211_v48  ;;  %v7241_v48 = vld [vmem:[%s7409_s24 + $0xba0] sm:$0xff]  ;;  %v7246_v5 = vld [vmem:[%s7409_s24 + $0xbc8] sm:$0xff] }
 0x15a   : > { %4632 = vmatpush.bf16.msra.mxu3 %v7219_v49  ;;  %v7827_v6 = vadd.f32 %v4380_v4, %v4368_v2  ;;  %v7230_v2 = vld [vmem:[%s7409_s24 + $0xb48] sm:$0xff]  ;;  %v7229_v8 = vld [vmem:[%s7409_s24 + $0xb40] sm:$0xff] }
 0x15b   : > { %4594 = vmatpush.bf16.msra.mxu0 %v7194_v50  ;;  %v7249_v50 = vld [vmem:[%s7409_s24 + $0xbe0] sm:$0xff] }
 0x15c   : > { %4607 = vmatpush.bf16.msra.mxu1 %v7202_v51  ;;  %v7224_v51 = vld [vmem:[%s7409_s24 + $0xb18] sm:$0xff] }
 0x15d   : > { %4620 = vmatpush.bf16.msra.mxu2 %v7210_v52  ;;  %v7232_v52 = vld [vmem:[%s7409_s24 + $0xb58] sm:$0xff] }
 0x15e   : > { %4633 = vmatpush.bf16.msra.mxu3 %v7218_v53  ;;  %v7240_v53 = vld [vmem:[%s7409_s24 + $0xb98] sm:$0xff] }
 0x15f   : > { %4595 = vmatpush.bf16.msra.mxu0 %v7193_v56  ;;  %v4369_v15 = vpop.f32.mrf.mxu2  ;;  %v7248_v56 = vld [vmem:[%s7409_s24 + $0xbd8] sm:$0xff] }
 0x160   : > { %4608 = vmatpush.bf16.msra.mxu1 %v7201_v58  ;;  %v4382_v17 = vpop.f32.mrf.mxu3  ;;  %v7259_v15 = vld [vmem:[%s7409_s24 + $0xc30] sm:$0xff] }
 0x161   : > { %4621 = vmatpush.bf16.msra.mxu2 %v7209_v59  ;;  %v7275_v17 = vld [vmem:[%s7409_s24 + $0xcb0] sm:$0xff] }
 0x162   : > { %4634 = vmatpush.bf16.msra.mxu3 %v7217_v61 }
 0x163   : > { %4596 = vmatpush.bf16.msra.mxu0 %v7192_v62  ;;  %v7231_v62 = vld [vmem:[%s7409_s24 + $0xb50] sm:$0xff] }
 0x164   : > { %4609 = vmatpush.bf16.msra.mxu1 %v7200_v63  ;;  %v7239_v63 = vld [vmem:[%s7409_s24 + $0xb90] sm:$0xff] }
 0x165   : > { %4622 = vmatpush.bf16.msra.mxu2 %v7208_v0  ;;  %v7247_v0 = vld [vmem:[%s7409_s24 + $0xbd0] sm:$0xff] }
 0x166   : > { %4635 = vmatpush.bf16.msra.mxu3 %v7216_v3  ;;  %v7238_v3 = vld [vmem:[%s7409_s24 + $0xb88] sm:$0xff] }
 0x167   : > { %4597 = vmatpush.bf16.msra.mxu0 %v7191_v7  ;;  %v7221_v7 = vld [vmem:[%s7409_s24 + $0xb00] sm:$0xff] }
 0x168   : > { %4610 = vmatpush.bf16.msra.mxu1 %v7199_v9  ;;  %v7237_v9 = vld [vmem:[%s7409_s24 + $0xb80] sm:$0xff] }
 0x169   : > { %4623 = vmatpush.bf16.msra.mxu2 %v7207_v10  ;;  %v7260_v10 = vld [vmem:[%s7409_s24 + $0xc38] sm:$0xff] }
 0x16a   : > { %4636 = vmatpush.bf16.msra.mxu3 %v7215_v11  ;;  %v7268_v11 = vld [vmem:[%s7409_s24 + $0xc78] sm:$0xff] }
 0x16b   : > { %4598 = vmatpush.bf16.msra.mxu0 %v7190_v12  ;;  %v7276_v12 = vld [vmem:[%s7409_s24 + $0xcb8] sm:$0xff] }
 0x16c   : > { %4611 = vmatpush.bf16.msra.mxu1 %v7198_v13  ;;  %v7245_v13 = vld [vmem:[%s7409_s24 + $0xbc0] sm:$0xff] }
 0x16d   : > { %4624 = vmatpush.bf16.msra.mxu2 %v7206_v14  ;;  %v7284_v14 = vld [vmem:[%s7409_s24 + $0xcf8] sm:$0xff] }
 0x16e   : > { %4637 = vmatpush.bf16.msra.mxu3 %v7214_v16  ;;  %v7267_v16 = vld [vmem:[%s7409_s24 + $0xc70] sm:$0xff] }
 0x16f   : > { %4599 = vmatpush.bf16.msra.mxu0 %v7189_v18  ;;  %v4393_v43 = vpop.f32.mrf.mxu0  ;;  %v7283_v18 = vld [vmem:[%s7409_s24 + $0xcf0] sm:$0xff] }
 0x170   : > { %4612 = vmatpush.bf16.msra.mxu1 %v7197_v19  ;;  %v4394_v44 = vadd.f32 %v4393_v43, %v7827_v6  ;;  %v4406_v46 = vpop.f32.mrf.mxu1  ;;  %v7258_v19 = vld [vmem:[%s7409_s24 + $0xc28] sm:$0xff]  ;;  %v7271_v43 = vld [vmem:[%s7409_s24 + $0xc90] sm:$0xff] }
 0x171   : > { %4625 = vmatpush.bf16.msra.mxu2 %v7205_v20  ;;  %v7266_v20 = vld [vmem:[%s7409_s24 + $0xc68] sm:$0xff] }
 0x172   : > { %4638 = vmatpush.bf16.msra.mxu3 %v7213_v25  ;;  %4600 = vmatmul.bf16.vlgmr.msra.gmra.mxu0 %v1208_v26  ;;  %v4407_v49 = vadd.f32 %v4406_v46, %v4394_v44  ;;  %v7257_v25 = vld [vmem:[%s7409_s24 + $0xc20] sm:$0xff]  ;;  %v7279_v44 = vld [vmem:[%s7409_s24 + $0xcd0] sm:$0xff]  ;;  %v7262_v46 = vld [vmem:[%s7409_s24 + $0xc48] sm:$0xff] }
 0x173   : > { %4644 = vmatpush.bf16.msrb.mxu0 %v7228_v21  ;;  %4613 = vmatmul.bf16.vlgmr.msra.gmra.mxu1 %v1209_v29  ;;  %v7274_v21 = vld [vmem:[%s7409_s24 + $0xca8] sm:$0xff] }
 0x174   : > { %4657 = vmatpush.bf16.msrb.mxu1 %v7236_v22  ;;  %4626 = vmatmul.bf16.vlgmr.msra.gmra.mxu2 %v1210_v27  ;;  %v7282_v22 = vld [vmem:[%s7409_s24 + $0xce8] sm:$0xff]  ;;  %v7265_v27 = vld [vmem:[%s7409_s24 + $0xc60] sm:$0xff] }
 0x175   : > { %4670 = vmatpush.bf16.msrb.mxu2 %v7244_v24  ;;  %4639 = vmatmul.bf16.vlgmr.msra.gmra.mxu3 %v1211_v30  ;;  %v7281_v30 = vld [vmem:[%s7409_s24 + $0xce0] sm:$0xff] }
 0x176   : > { %4683 = vmatpush.bf16.msrb.mxu3 %v7252_v28  ;;  %v7273_v28 = vld [vmem:[%s7409_s24 + $0xca0] sm:$0xff] }
 0x177   : > { %4645 = vmatpush.bf16.msrb.mxu0 %v7227_v31  ;;  %v4419_v54 = vpop.f32.mrf.mxu2  ;;  %v4395_v58 = vpop.f32.mrf.mxu0  ;;  %v7256_v31 = vld [vmem:[%s7409_s24 + $0xc18] sm:$0xff] }
 0x178   : > { %4658 = vmatpush.bf16.msrb.mxu1 %v7235_v32  ;;  %v4420_v55 = vadd.f32 %v4419_v54, %v4407_v49  ;;  %v4432_v57 = vpop.f32.mrf.mxu3  ;;  %v4408_v61 = vpop.f32.mrf.mxu1  ;;  %v7264_v32 = vld [vmem:[%s7409_s24 + $0xc58] sm:$0xff]  ;;  %v7278_v49 = vld [vmem:[%s7409_s24 + $0xcc8] sm:$0xff]  ;;  %v7277_v58 = vld [vmem:[%s7409_s24 + $0xcc0] sm:$0xff] }
 0x179   : > { %4671 = vmatpush.bf16.msrb.mxu2 %v7243_v33  ;;  %v7272_v33 = vld [vmem:[%s7409_s24 + $0xc98] sm:$0xff] }
 0x17a   : > { %4684 = vmatpush.bf16.msrb.mxu3 %v7251_v38  ;;  %v4433_v59 = vadd.f32 %v4432_v57, %v4420_v55  ;;  %v227_v54 = vld [vmem:[%s7434_s28 + $0x38] sm:$0x3] }
 0x17b   : > { %4646 = vmatpush.bf16.msrb.mxu0 %v7226_v39  ;;  %v7292_v55 = vld [vmem:[%s7409_s24 + $0xd38] sm:$0xff] }
 0x17c   : > { %4659 = vmatpush.bf16.msrb.mxu1 %v7234_v40  ;;  %v7255_v40 = vld [vmem:[%s7409_s24 + $0xc10] sm:$0xff]  ;;  %v7308_v57 = vld [vmem:[%s7409_s24 + $0xdb8] sm:$0xff] }
 0x17d   : > { %4672 = vmatpush.bf16.msrb.mxu2 %v7242_v41  ;;  %v7316_v61 = vld [vmem:[%s7409_s24 + $0xdf8] sm:$0xff] }
 0x17e   : > { %4685 = vmatpush.bf16.msrb.mxu3 %v7250_v42  ;;  %v7263_v42 = vld [vmem:[%s7409_s24 + $0xc50] sm:$0xff] }
 0x17f   : > { %4647 = vmatpush.bf16.msrb.mxu0 %v7225_v45  ;;  %v4421_v4 = vpop.f32.mrf.mxu2  ;;  %v7254_v45 = vld [vmem:[%s7409_s24 + $0xc08] sm:$0xff] }
 0x180   : > { %4660 = vmatpush.bf16.msrb.mxu1 %v7233_v47  ;;  %v4434_v6 = vpop.f32.mrf.mxu3  ;;  %v7270_v47 = vld [vmem:[%s7409_s24 + $0xc88] sm:$0xff]  ;;  %v7933_v4 = vld [vmem:[#allocation1 + $0x3f] sm:$0xff] }
 0x181   : > { %4673 = vmatpush.bf16.msrb.mxu2 %v7241_v48  ;;  %v7307_v6 = vld [vmem:[%s7409_s24 + $0xdb0] sm:$0xff] }
 0x182   : > { %4686 = vmatpush.bf16.msrb.mxu3 %v7249_v50 }
 0x183   : > { %4648 = vmatpush.bf16.msrb.mxu0 %v7224_v51  ;;  %v7253_v51 = vld [vmem:[%s7409_s24 + $0xc00] sm:$0xff] }
 0x184   : > { %4661 = vmatpush.bf16.msrb.mxu1 %v7232_v52  ;;  %v7261_v52 = vld [vmem:[%s7409_s24 + $0xc40] sm:$0xff] }
 0x185   : > { %4674 = vmatpush.bf16.msrb.mxu2 %v7240_v53  ;;  %v7269_v53 = vld [vmem:[%s7409_s24 + $0xc80] sm:$0xff] }
 0x186   : > { %4687 = vmatpush.bf16.msrb.mxu3 %v7248_v56  ;;  %v7300_v56 = vld [vmem:[%s7409_s24 + $0xd78] sm:$0xff] }
 0x187   : > { %4649 = vmatpush.bf16.msrb.mxu0 %v7223_v60  ;;  %v1220_v60 = vld [vmem:[#allocation1 + $0x12] sm:$0xff] }
 0x188   : > { %4662 = vmatpush.bf16.msrb.mxu1 %v7231_v62  ;;  %v1219_v62 = vld [vmem:[#allocation1 + $0x9] sm:$0xff] }
 0x189   : > { %4675 = vmatpush.bf16.msrb.mxu2 %v7239_v63  ;;  %v1221_v63 = vld [vmem:[#allocation1 + $0x1b] sm:$0xff] }
 0x18a   : > { %4688 = vmatpush.bf16.msrb.mxu3 %v7247_v0  ;;  %v7291_v0 = vld [vmem:[%s7409_s24 + $0xd30] sm:$0xff] }
 0x18b   : > { %4650 = vmatpush.bf16.msrb.mxu0 %v7222_v1  ;;  %v7927_v1 = vld [vmem:[#allocation1 + $0x24] sm:$0xff] }
 0x18c   : > { %4663 = vmatpush.bf16.msrb.mxu1 %v7230_v2  ;;  %v7929_v2 = vld [vmem:[#allocation1 + $0x36] sm:$0xff] }
 0x18d   : > { %4676 = vmatpush.bf16.msrb.mxu2 %v7238_v3  ;;  %v7931_v3 = vld [vmem:[#allocation1 + $0x2d] sm:$0xff] }
 0x18e   : > { %4689 = vmatpush.bf16.msrb.mxu3 %v7246_v5  ;;  %v7299_v5 = vld [vmem:[%s7409_s24 + $0xd70] sm:$0xff] }
 0x18f   : > { %4651 = vmatpush.bf16.msrb.mxu0 %v7221_v7  ;;  %v4445_v23 = vpop.f32.mrf.mxu0  ;;  %v7315_v7 = vld [vmem:[%s7409_s24 + $0xdf0] sm:$0xff] }
 0x190   : > { %4664 = vmatpush.bf16.msrb.mxu1 %v7229_v8  ;;  %v4446_v24 = vadd.f32 %v4445_v23, %v4433_v59  ;;  %v4458_v26 = vpop.f32.mrf.mxu1  ;;  %v1218_v59 = vld [vmem:[#allocation1] sm:$0xff]  ;;  %v7290_v8 = vld [vmem:[%s7409_s24 + $0xd28] sm:$0xff] }
 0x191   : > { %4677 = vmatpush.bf16.msrb.mxu2 %v7237_v9  ;;  %1227 = vst [vmem:[#allocation1] ss:$9 sm:$0xff] %v227_v54  ;;  %v7298_v9 = vld [vmem:[%s7409_s24 + $0xd68] sm:$0xff]  ;;  %v7329_v54 = vld [vmem:[%s7409_s24 + $0xe60] sm:$0xff] }
 0x192   : > { %4690 = vmatpush.bf16.msrb.mxu3 %v7245_v13  ;;  %4652 = vmatmul.bf16.vlgmr.msrb.gmra.mxu0 %v7849_v34  ;;  %v4459_v29 = vadd.f32 %v4458_v26, %v4446_v24 }
 0x193   : > { %4696 = vmatpush.bf16.msra.mxu0 %v7260_v10  ;;  %4665 = vmatmul.bf16.vlgmr.msrb.gmra.mxu1 %v7853_v36  ;;  %v7280_v36 = vld [vmem:[%s7409_s24 + $0xcd8] sm:$0xff]  ;;  %v7306_v10 = vld [vmem:[%s7409_s24 + $0xda8] sm:$0xff] }
 0x194   : > { %4709 = vmatpush.bf16.msra.mxu1 %v7268_v11  ;;  %4678 = vmatmul.bf16.vlgmr.msrb.gmra.mxu2 %v7851_v35  ;;  %v7314_v11 = vld [vmem:[%s7409_s24 + $0xde8] sm:$0xff] }
 0x195   : > { %4722 = vmatpush.bf16.msra.mxu2 %v7276_v12  ;;  %4691 = vmatmul.bf16.vlgmr.msrb.gmra.mxu3 %v7855_v37 }
 0x196   : > { %4735 = vmatpush.bf16.msra.mxu3 %v7284_v14  ;;  %v7289_v14 = vld [vmem:[%s7409_s24 + $0xd20] sm:$0xff] }
 0x197   : > { %4697 = vmatpush.bf16.msra.mxu0 %v7259_v15  ;;  %v4471_v34 = vpop.f32.mrf.mxu2  ;;  %v4447_v38 = vpop.f32.mrf.mxu0 }
 0x198   : > { %4710 = vmatpush.bf16.msra.mxu1 %v7267_v16  ;;  %v4472_v35 = vadd.f32 %v4471_v34, %v4459_v29  ;;  %v4484_v37 = vpop.f32.mrf.mxu3  ;;  %v4460_v41 = vpop.f32.mrf.mxu1  ;;  %v7297_v16 = vld [vmem:[%s7409_s24 + $0xd60] sm:$0xff]  ;;  %v7287_v29 = vld [vmem:[%s7409_s24 + $0xd10] sm:$0xff]  ;;  %v7286_v34 = vld [vmem:[%s7409_s24 + $0xd08] sm:$0xff] }
 0x199   : > { %4723 = vmatpush.bf16.msra.mxu2 %v7275_v17  ;;  %v7305_v17 = vld [vmem:[%s7409_s24 + $0xda0] sm:$0xff]  ;;  %v7310_v38 = vld [vmem:[%s7409_s24 + $0xdc8] sm:$0xff] }
 0x19a   : > { %4736 = vmatpush.bf16.msra.mxu3 %v7283_v18  ;;  %v7907_v39 = vadd.f32 %v4484_v37, %v4472_v35  ;;  %v7294_v35 = vld [vmem:[%s7409_s24 + $0xd48] sm:$0xff]  ;;  %v7293_v41 = vld [vmem:[%s7409_s24 + $0xd40] sm:$0xff] }
 0x19b   : > { %4698 = vmatpush.bf16.msra.mxu0 %v7258_v19  ;;  %v7313_v19 = vld [vmem:[%s7409_s24 + $0xde0] sm:$0xff] }
 0x19c   : > { %4711 = vmatpush.bf16.msra.mxu1 %v7266_v20  ;;  %v7288_v20 = vld [vmem:[%s7409_s24 + $0xd18] sm:$0xff] }
 0x19d   : > { %4724 = vmatpush.bf16.msra.mxu2 %v7274_v21  ;;  %v7296_v21 = vld [vmem:[%s7409_s24 + $0xd58] sm:$0xff] }
 0x19e   : > { %4737 = vmatpush.bf16.msra.mxu3 %v7282_v22  ;;  %v7304_v22 = vld [vmem:[%s7409_s24 + $0xd98] sm:$0xff] }
 0x19f   : > { %4699 = vmatpush.bf16.msra.mxu0 %v7257_v25  ;;  %v4473_v48 = vpop.f32.mrf.mxu2  ;;  %v7312_v25 = vld [vmem:[%s7409_s24 + $0xdd8] sm:$0xff] }
 0x1a0   : > { %4712 = vmatpush.bf16.msra.mxu1 %v7265_v27  ;;  %v4486_v50 = vpop.f32.mrf.mxu3  ;;  %v7322_v48 = vld [vmem:[%s7409_s24 + $0xe28] sm:$0xff] }
 0x1a1   : > { %4725 = vmatpush.bf16.msra.mxu2 %v7273_v28 }
 0x1a2   : > { %4738 = vmatpush.bf16.msra.mxu3 %v7281_v30 }
 0x1a3   : > { %4700 = vmatpush.bf16.msra.mxu0 %v7256_v31  ;;  %v7295_v31 = vld [vmem:[%s7409_s24 + $0xd50] sm:$0xff] }
 0x1a4   : > { %4713 = vmatpush.bf16.msra.mxu1 %v7264_v32  ;;  %v7303_v32 = vld [vmem:[%s7409_s24 + $0xd90] sm:$0xff] }
 0x1a5   : > { %4726 = vmatpush.bf16.msra.mxu2 %v7272_v33  ;;  %v7311_v33 = vld [vmem:[%s7409_s24 + $0xdd0] sm:$0xff] }
 0x1a6   : > { %4739 = vmatpush.bf16.msra.mxu3 %v7280_v36  ;;  %v7302_v36 = vld [vmem:[%s7409_s24 + $0xd88] sm:$0xff] }
 0x1a7   : > { %4701 = vmatpush.bf16.msra.mxu0 %v7255_v40  ;;  %v7285_v40 = vld [vmem:[%s7409_s24 + $0xd00] sm:$0xff] }
 0x1a8   : > { %4714 = vmatpush.bf16.msra.mxu1 %v7263_v42  ;;  %v7301_v42 = vld [vmem:[%s7409_s24 + $0xd80] sm:$0xff] }
 0x1a9   : > { %4727 = vmatpush.bf16.msra.mxu2 %v7271_v43  ;;  %v7324_v43 = vld [vmem:[%s7409_s24 + $0xe38] sm:$0xff] }
 0x1aa   : > { %4740 = vmatpush.bf16.msra.mxu3 %v7279_v44  ;;  %v7332_v44 = vld [vmem:[%s7409_s24 + $0xe78] sm:$0xff] }
 0x1ab   : > { %4702 = vmatpush.bf16.msra.mxu0 %v7254_v45  ;;  %v7309_v45 = vld [vmem:[%s7409_s24 + $0xdc0] sm:$0xff] }
 0x1ac   : > { %4715 = vmatpush.bf16.msra.mxu1 %v7262_v46  ;;  %v7323_v46 = vld [vmem:[%s7409_s24 + $0xe30] sm:$0xff] }
 0x1ad   : > { %4728 = vmatpush.bf16.msra.mxu2 %v7270_v47  ;;  %v7331_v47 = vld [vmem:[%s7409_s24 + $0xe70] sm:$0xff] }
 0x1ae   : > { %4741 = vmatpush.bf16.msra.mxu3 %v7278_v49  ;;  %v7330_v49 = vld [vmem:[%s7409_s24 + $0xe68] sm:$0xff] }
 0x1af   : > { %4703 = vmatpush.bf16.msra.mxu0 %v7253_v51  ;;  %v4497_v12 = vpop.f32.mrf.mxu0 }
 0x1b0   : > { %4716 = vmatpush.bf16.msra.mxu1 %v7261_v52  ;;  %v4498_v13 = vadd.f32 %v4497_v12, %v7907_v39  ;;  %v4510_v15 = vpop.f32.mrf.mxu1  ;;  %v7321_v52 = vld [vmem:[%s7409_s24 + $0xe20] sm:$0xff] }
 0x1b1   : > { %4729 = vmatpush.bf16.msra.mxu2 %v7269_v53 }
 0x1b2   : > { %4742 = vmatpush.bf16.msra.mxu3 %v7277_v58  ;;  %4704 = vmatmul.bf16.vlgmr.msra.gmra.mxu0 %v1218_v59  ;;  %v4511_v18 = vadd.f32 %v4510_v15, %v4498_v13 }
 0x1b3   : > { %4748 = vmatpush.bf16.msrb.mxu0 %v7292_v55  ;;  %4717 = vmatmul.bf16.vlgmr.msra.gmra.mxu1 %v1219_v62 }
 0x1b4   : > { %4761 = vmatpush.bf16.msrb.mxu1 %v7300_v56  ;;  %4730 = vmatmul.bf16.vlgmr.msra.gmra.mxu2 %v1220_v60  ;;  %v7320_v56 = vld [vmem:[%s7409_s24 + $0xe18] sm:$0xff] }
 0x1b5   : > { %4774 = vmatpush.bf16.msrb.mxu2 %v7308_v57  ;;  %4743 = vmatmul.bf16.vlgmr.msra.gmra.mxu3 %v1221_v63  ;;  %v7328_v57 = vld [vmem:[%s7409_s24 + $0xe58] sm:$0xff]  ;;  %v7319_v63 = vld [vmem:[%s7409_s24 + $0xe10] sm:$0xff] }
 0x1b6   : > { %4787 = vmatpush.bf16.msrb.mxu3 %v7316_v61 }
 0x1b7   : > { %4749 = vmatpush.bf16.msrb.mxu0 %v7291_v0  ;;  %v4523_v23 = vpop.f32.mrf.mxu2  ;;  %v4499_v27 = vpop.f32.mrf.mxu0 }
 0x1b8   : > { %4762 = vmatpush.bf16.msrb.mxu1 %v7299_v5  ;;  %v4524_v24 = vadd.f32 %v4523_v23, %v4511_v18  ;;  %v4536_v26 = vpop.f32.mrf.mxu3  ;;  %v4512_v30 = vpop.f32.mrf.mxu1 }
 0x1b9   : > { %4775 = vmatpush.bf16.msrb.mxu2 %v7307_v6  ;;  %v7317_v6 = vld [vmem:[%s7409_s24 + $0xe00] sm:$0xff] }
 0x1ba   : > { %4788 = vmatpush.bf16.msrb.mxu3 %v7315_v7  ;;  %v4537_v28 = vadd.f32 %v4536_v26, %v4524_v24  ;;  %v7325_v7 = vld [vmem:[%s7409_s24 + $0xe40] sm:$0xff] }
 0x1bb   : > { %4750 = vmatpush.bf16.msrb.mxu0 %v7290_v8  ;;  %v1228_v8 = vld [vmem:[#allocation1] sm:$0xff] }
 0x1bc   : > { %4763 = vmatpush.bf16.msrb.mxu1 %v7298_v9  ;;  %v1229_v9 = vld [vmem:[#allocation1 + $0x9] sm:$0xff] }
 0x1bd   : > { %4776 = vmatpush.bf16.msrb.mxu2 %v7306_v10 }
 0x1be   : > { %4789 = vmatpush.bf16.msrb.mxu3 %v7314_v11 }
 0x1bf   : > { %4751 = vmatpush.bf16.msrb.mxu0 %v7289_v14  ;;  %v4525_v37 = vpop.f32.mrf.mxu2 }
 0x1c0   : > { %4764 = vmatpush.bf16.msrb.mxu1 %v7297_v16  ;;  %v4538_v39 = vpop.f32.mrf.mxu3 }
 0x1c1   : > { %4777 = vmatpush.bf16.msrb.mxu2 %v7305_v17 }
 0x1c2   : > { %4790 = vmatpush.bf16.msrb.mxu3 %v7313_v19 }
 0x1c3   : > { %4752 = vmatpush.bf16.msrb.mxu0 %v7288_v20 }
 0x1c4   : > { %4765 = vmatpush.bf16.msrb.mxu1 %v7296_v21 }
 0x1c5   : > { %4778 = vmatpush.bf16.msrb.mxu2 %v7304_v22 }
 0x1c6   : > { %4791 = vmatpush.bf16.msrb.mxu3 %v7312_v25 }
 0x1c7   : > { %4753 = vmatpush.bf16.msrb.mxu0 %v7287_v29 }
 0x1c8   : > { %4766 = vmatpush.bf16.msrb.mxu1 %v7295_v31 }
 0x1c9   : > { %4779 = vmatpush.bf16.msrb.mxu2 %v7303_v32 }
 0x1ca   : > { %4792 = vmatpush.bf16.msrb.mxu3 %v7311_v33 }
 0x1cb   : > { %4754 = vmatpush.bf16.msrb.mxu0 %v7286_v34 }
 0x1cc   : > { %4767 = vmatpush.bf16.msrb.mxu1 %v7294_v35 }
 0x1cd   : > { %4780 = vmatpush.bf16.msrb.mxu2 %v7302_v36 }
 0x1ce   : > { %4793 = vmatpush.bf16.msrb.mxu3 %v7310_v38 }
 0x1cf   : > { %4755 = vmatpush.bf16.msrb.mxu0 %v7285_v40  ;;  %v4549_v50 = vpop.f32.mrf.mxu0 }
 0x1d0   : > { %4768 = vmatpush.bf16.msrb.mxu1 %v7293_v41  ;;  %v4550_v51 = vadd.f32 %v4549_v50, %v4537_v28  ;;  %v4562_v53 = vpop.f32.mrf.mxu1 }
 0x1d1   : > { %4781 = vmatpush.bf16.msrb.mxu2 %v7301_v42 }
 0x1d2   : > { %4794 = vmatpush.bf16.msrb.mxu3 %v7309_v45  ;;  %4756 = vmatmul.bf16.vlgmr.msrb.gmra.mxu0 %v7927_v1  ;;  %v4563_v55 = vadd.f32 %v4562_v53, %v4550_v51  ;;  %v7327_v1 = vld [vmem:[%s7409_s24 + $0xe50] sm:$0xff] }
 0x1d3   : > { %4800 = vmatpush.bf16.msra.mxu0 %v7324_v43  ;;  %4769 = vmatmul.bf16.vlgmr.msrb.gmra.mxu1 %v7931_v3  ;;  %v7326_v3 = vld [vmem:[%s7409_s24 + $0xe48] sm:$0xff] }
 0x1d4   : > { %4813 = vmatpush.bf16.msra.mxu1 %v7332_v44  ;;  %4782 = vmatmul.bf16.vlgmr.msrb.gmra.mxu2 %v7929_v2  ;;  %v7318_v2 = vld [vmem:[%s7409_s24 + $0xe08] sm:$0xff] }
 0x1d5   : > { %4795 = vmatmul.bf16.vlgmr.msrb.gmra.mxu3 %v7933_v4 }
 0x1d7   : > { %4801 = vmatpush.bf16.msra.mxu0 %v7323_v46  ;;  %v4575_v58 = vpop.f32.mrf.mxu2  ;;  %v4551_v61 = vpop.f32.mrf.mxu0 }
 0x1d8   : > { %4814 = vmatpush.bf16.msra.mxu1 %v7331_v47  ;;  %v4576_v59 = vadd.f32 %v4575_v58, %v4563_v55  ;;  %v4588_v60 = vpop.f32.mrf.mxu3  ;;  %v4564_v0 = vpop.f32.mrf.mxu1  ;;  %v217_v61 = vld [vmem:[#allocation2] sm:$0x3] }
 0x1da   : > { %v4589_v62 = vadd.f32 %v4588_v60, %v4576_v59 }
 0x1db   : > { %4802 = vmatpush.bf16.msra.mxu0 %v7322_v48 }
 0x1dc   : > { %4815 = vmatpush.bf16.msra.mxu1 %v7330_v49 }
 0x1df   : > { %4803 = vmatpush.bf16.msra.mxu0 %v7321_v52  ;;  %v4577_v4 = vpop.f32.mrf.mxu2 }
 0x1e0   : > { %4816 = vmatpush.bf16.msra.mxu1 %v7329_v54  ;;  %v4590_v5 = vpop.f32.mrf.mxu3 }
 0x1e3   : > { %4804 = vmatpush.bf16.msra.mxu0 %v7320_v56 }
 0x1e4   : > { %4817 = vmatpush.bf16.msra.mxu1 %v7328_v57 }
 0x1e7   : > { %4805 = vmatpush.bf16.msra.mxu0 %v7319_v63 }
 0x1e8   : > { %4818 = vmatpush.bf16.msra.mxu1 %v7327_v1 }
 0x1eb   : > { %4806 = vmatpush.bf16.msra.mxu0 %v7318_v2 }
 0x1ec   : > { %4819 = vmatpush.bf16.msra.mxu1 %v7326_v3 }
 0x1ef   : > { %4807 = vmatpush.bf16.msra.mxu0 %v7317_v6  ;;  %v4601_v10 = vpop.f32.mrf.mxu0 }
 0x1f0   : > { %4820 = vmatpush.bf16.msra.mxu1 %v7325_v7  ;;  %v4602_v11 = vadd.f32 %v4601_v10, %v4589_v62  ;;  %v4614_v12 = vpop.f32.mrf.mxu1 }
 0x1f2   : > { %4808 = vmatmul.bf16.vlgmr.msra.gmra.mxu0 %v1228_v8  ;;  %v4615_v13 = vadd.f32 %v4614_v12, %v4602_v11 }
 0x1f3   : > { %4821 = vmatmul.bf16.vlgmr.msra.gmra.mxu1 %v1229_v9 }
 0x1f7   : > { %v4627_v14 = vpop.f32.mrf.mxu2  ;;  %v4603_v17 = vpop.f32.mrf.mxu0 }
 0x1f8   : > { %v4628_v15 = vadd.f32 %v4627_v14, %v4615_v13  ;;  %v4640_v16 = vpop.f32.mrf.mxu3  ;;  %v4616_v19 = vpop.f32.mrf.mxu1 }
 0x1fa   : > { %v4641_v18 = vadd.f32 %v4640_v16, %v4628_v15 }
 0x1ff   : > { %v4629_v20 = vpop.f32.mrf.mxu2 }
 0x200   : > { %v4642_v21 = vpop.f32.mrf.mxu3 }
 0x20f   : > { %v4653_v22 = vpop.f32.mrf.mxu0 }
 0x210   : > { %v4654_v23 = vadd.f32 %v4653_v22, %v4641_v18  ;;  %v4666_v24 = vpop.f32.mrf.mxu1 }
 0x212   : > { %v4667_v25 = vadd.f32 %v4666_v24, %v4654_v23 }
 0x217   : > { %v4679_v26 = vpop.f32.mrf.mxu2  ;;  %v4655_v28 = vpop.f32.mrf.mxu0 }
 0x218   : > { %v4692_v27 = vpop.f32.mrf.mxu3  ;;  %v4668_v29 = vpop.f32.mrf.mxu1  ;;  %v4680_v41 = vadd.f32 %v4679_v26, %v4667_v25 }
 0x21a   : > { %v4693_v43 = vadd.f32 %v4692_v27, %v4680_v41 }
 0x21f   : > { %v4681_v30 = vpop.f32.mrf.mxu2 }
 0x220   : > { %v4694_v31 = vpop.f32.mrf.mxu3 }
 0x22f   : > { %v4705_v32 = vpop.f32.mrf.mxu0 }
 0x230   : > { %v4718_v33 = vpop.f32.mrf.mxu1  ;;  %v4706_v44 = vadd.f32 %v4705_v32, %v4693_v43 }
 0x232   : > { %v4719_v49 = vadd.f32 %v4718_v33, %v4706_v44 }
 0x237   : > { %v4731_v34 = vpop.f32.mrf.mxu2  ;;  %v4707_v36 = vpop.f32.mrf.mxu0 }
 0x238   : > { %v4744_v35 = vpop.f32.mrf.mxu3  ;;  %v4720_v37 = vpop.f32.mrf.mxu1  ;;  %v4732_v50 = vadd.f32 %v4731_v34, %v4719_v49 }
 0x23a   : > { %v4745_v52 = vadd.f32 %v4744_v35, %v4732_v50 }
 0x23f   : > { %v4733_v38 = vpop.f32.mrf.mxu2 }
 0x240   : > { %v4746_v39 = vpop.f32.mrf.mxu3 }
 0x24f   : > { %v4757_v40 = vpop.f32.mrf.mxu0 }
 0x250   : > { %v4770_v42 = vpop.f32.mrf.mxu1  ;;  %v4758_v54 = vadd.f32 %v4757_v40, %v4745_v52 }
 0x252   : > { %v4771_v55 = vadd.f32 %v4770_v42, %v4758_v54 }
 0x257   : > { %v4783_v45 = vpop.f32.mrf.mxu2  ;;  %v4759_v46 = vpop.f32.mrf.mxu0 }
 0x258   : > { %v4796_v47 = vpop.f32.mrf.mxu3  ;;  %v4772_v48 = vpop.f32.mrf.mxu1  ;;  %v4784_v56 = vadd.f32 %v4783_v45, %v4771_v55 }
 0x25a   : > { %v4797_v57 = vadd.f32 %v4796_v47, %v4784_v56 }
 0x25f   : > { %v4785_v51 = vpop.f32.mrf.mxu2 }
 0x260   : > { %v4798_v53 = vpop.f32.mrf.mxu3 }
 0x26f   : > { %v4809_v58 = vpop.f32.mrf.mxu0 }
 0x270   : > { %v4810_v59 = vadd.f32 %v4809_v58, %v4797_v57  ;;  %v4822_v60 = vpop.f32.mrf.mxu1 }
 0x272   : > { %v4823_v62 = vadd.f32 %v4822_v60, %v4810_v59 }
 0x274   : > { %v4826_v63 = vadd.f32 %v4823_v62, %v217_v61  ;;  %4831 = sbr.rel (%p6833_p5) target bundleno = 806 (0x326), region = 48 }
 0x276   : > { %4827 = vst [vmem:[#allocation2] sm:$0x3] %v4826_v63 }
 0x277   : > { %v4811_v0 = vpop.f32.mrf.mxu0 }
 0x278   : > { %v4824_v1 = vpop.f32.mrf.mxu1 }
 0x279   : > { %v7340_v2 = vld [vmem:[%s8023_s3 + $0x38] sm:$0xff]  ;;  %v7339_v3 = vld [vmem:[%s8023_s3 + $0x30] sm:$0xff]  ;;  %v7350_v5 = vld [vmem:[%s8022_s2] ss:$0 sm:$0xff] }
 0x27a   : > { %4927 = vmatpush.bf16.msra.mxu0 %v7340_v2  ;;  %v7338_v7 = vld [vmem:[%s8023_s3 + $0x28] sm:$0xff]  ;;  %v7337_v9 = vld [vmem:[%s8023_s3 + $0x20] sm:$0xff]  ;;  %v7336_v10 = vld [vmem:[%s8023_s3 + $0x18] sm:$0xff] }
 0x27b   : > { %v7335_v13 = vld [vmem:[%s8023_s3 + $0x10] sm:$0xff]  ;;  %v7334_v14 = vld [vmem:[%s8023_s3 + $0x8] sm:$0xff]  ;;  %v7333_v17 = vld [vmem:[%s8023_s3] sm:$0xff] }
 0x27c   : > { %v7351_v28 = vld [vmem:[%s8024_s4] ss:$0 sm:$0xff] }
 0x27d   : > { %v4832_v4 = vld [vmem:[#allocation2] sm:$0x3] }
 0x27e   : > { %v4837_v6 = vadd.f32 %v7350_v5, %v4832_v4  ;;  %4928 = vmatpush.bf16.msra.mxu0 %v7339_v3 }
 0x280   : > { %v6834_v8 = vmul.f32 -1.442695, %v4837_v6 }
 0x282   : > { %7352 = vpow2.f32 %v6834_v8  ;;  %4929 = vmatpush.bf16.msra.mxu0 %v7338_v7 }
 0x286   : > { %4930 = vmatpush.bf16.msra.mxu0 %v7337_v9 }
 0x288   : > { %v7353_v11 = vpop.eup %7352 }
 0x289   : > { %v4841_v12 = vadd.f32 1.0, %v7353_v11 }
 0x28a   : > { %4931 = vmatpush.bf16.msra.mxu0 %v7336_v10 }
 0x28b   : > { %7354 = vrcp.f32 %v4841_v12  ;;  %v4853_v18 = vand.u32 2147483648, %v4841_v12  ;;  %vm4847_vm0 = vweird.f32 %v4841_v12  ;;  %v4851_v20 = vand.u32 2147483647, %v4841_v12 }
 0x28d   : > { %v4854_v22 = vor.u32 1.1754944e-38, %v4853_v18  ;;  %vm4852_vm3 = vcmp.eq.f32.partialorder %v4851_v20, 8.507059e+37 }
 0x28e   : > { %4932 = vmatpush.bf16.msra.mxu0 %v7335_v13 }
 0x291   : > { %v7355_v15 = vpop.eup %7354 }
 0x292   : > { %v4843_v16 = vmul.f32 %v7355_v15, %v4841_v12  ;;  %4933 = vmatpush.bf16.msra.mxu0 %v7334_v14  ;;  %vm4848_vm1 = vweird.f32 %v7355_v15 }
 0x293   : > { %vm4849_vm2 = vmor %vm4847_vm0, %vm4848_vm1 }
 0x294   : > { %v4844_v19 = vsub.f32 1.0, %v4843_v16 }
 0x296   : > { %v4845_v21 = vmul.f32 %v7355_v15, %v4844_v19  ;;  %4934 = vmatpush.bf16.msra.mxu0 %v7333_v17 }
 0x298   : > { %v4846_v23 = vadd.f32 %v7355_v15, %v4845_v21 }
 0x29a   : > { %v4850_v24 = vsel %vm4849_vm2, %v7355_v15, %v4846_v23 }
 0x29b   : > { %v4855_v25 = vsel %vm4852_vm3, %v4854_v22, %v4850_v24 }
 0x29c   : > { %v4857_v26 = vmul.f32 %v4855_v25, %v4837_v6 }
 0x29e   : > { %v4858_v27 = vpack.c.bf16 %v4857_v26, %v4857_v26 }
 0x2a0   : > { %4935 = vmatmul.bf16.vlgmr.msra.gmra.mxu0 %v4858_v27 }
 0x31d   : > { %v4936_v29 = vpop.f32.mrf.mxu0 }
 0x31e   : > { %v4937_v30 = vadd.f32 %v7351_v28, %v4936_v29 }
 0x320   : > { %4940 = vst [vmem:[%s8025_s5] sm:$0x3] %v4937_v30 }
 0x325   : > { %v4938_v31 = vpop.f32.mrf.mxu0 }
 0x326 PF: > { %s15_s18 = sadd.s32 1, %s7362_s18  }
 0x327   : > { %p12_p6 = scmp.ge.s32.totalorder %s15_s18, 4  }
 0x329   :  { %14 = sbr.rel (!%p12_p6) target bundleno = 1 (0x1), region = 75 }

</bundles_post_ra>
